<compile_context>
chip_gen: v7x
topology: tpu7x:2x2x1
jax: 0.10.0
libtpu: 0.0.40
codegen_flags: <defaults>
</compile_context>

<pallas_src>
import functools

import jax
import jax.numpy as jnp
from jax.experimental import pallas as pl
from jax.experimental.pallas import tpu as pltpu


# ---------------------------------------------------------------------------
# Pallas kernel 1: tiled matmul with fused BN scale/bias (+ optional ReLU)
# ---------------------------------------------------------------------------

def _matmul_bn_kernel(a_ref, b_ref, s_ref, c_ref, o_ref, acc_ref, *, relu):
    k = pl.program_id(2)

    @pl.when(k == 0)
    def _():
        acc_ref[...] = jnp.zeros_like(acc_ref)

    acc_ref[...] += jnp.dot(a_ref[...], b_ref[...],
                            preferred_element_type=jnp.float32)

    @pl.when(k == pl.num_programs(2) - 1)
    def _():
        # folded inference BatchNorm epilogue, done in f32 on the accumulator
        y = acc_ref[...] * s_ref[...] + c_ref[...]
        if relu:
            y = jnp.maximum(y, 0.0)
        o_ref[...] = y


def _pick_tile(dim, candidates):
    """Largest candidate tile that evenly divides `dim`, else the full dim."""
    for c in candidates:
        if dim % c == 0:
            return c
    return dim


def matmul_bn_act(a, b, scale, bias, *, relu):
    """(M, K) @ (K, N) with fused per-output-channel scale/bias (+ReLU).

    bf16 operands on the MXU, f32 VMEM accumulator, grid tiled over (M, N, K)
    with K innermost (accumulator init at k==0, writeback at last k).
    """
    M, K = a.shape
    K2, N = b.shape
    assert K == K2
    tm = _pick_tile(M, (512, 256, 128, 64, 32, 16, 8))
    tn = _pick_tile(N, (512, 256, 128))
    tk = _pick_tile(K, (512, 256, 128))
    grid = (M // tm, N // tn, K // tk)

    a = a.astype(jnp.bfloat16)
    b = b.astype(jnp.bfloat16)
    scale = scale.reshape(1, N).astype(jnp.float32)
    bias = bias.reshape(1, N).astype(jnp.float32)

    return pl.pallas_call(
        functools.partial(_matmul_bn_kernel, relu=relu),
        out_shape=jax.ShapeDtypeStruct((M, N), jnp.float32),
        grid_spec=pltpu.PrefetchScalarGridSpec(
            num_scalar_prefetch=0,
            grid=grid,
            in_specs=[pl.BlockSpec((tm, tk), lambda i, j, kk: (i, kk)),
                      pl.BlockSpec((tk, tn), lambda i, j, kk: (kk, j)),
                      pl.BlockSpec((1, tn), lambda i, j, kk: (0, j)),
                      pl.BlockSpec((1, tn), lambda i, j, kk: (0, j))],
            out_specs=pl.BlockSpec((tm, tn), lambda i, j, kk: (i, j)),
            scratch_shapes=[pltpu.VMEM((tm, tn), jnp.float32)]),
        compiler_params=pltpu.CompilerParams(
            dimension_semantics=("parallel", "parallel", "arbitrary")),
    )(a, b, scale, bias)


# ---------------------------------------------------------------------------
# Pallas kernel 2: fused soft-attention heads (all class_num heads at once)
# ---------------------------------------------------------------------------

def _heads_kernel(x_ref, watt_ref, attk_ref, wcls_ref, bcls_ref, out_ref,
                  *, num_heads):
    """One batch element, all heads.

    x_ref    : (1, HW, C)   backbone features (channels on lanes)
    watt_ref : (C, NH)      stacked att[i] 1x1-conv weights (2048 -> 1 each)
    attk_ref : (K, NH)      stacked att_k[i] extra logits
    wcls_ref : (NH, C, 2)   stacked classifier weights (transposed)
    bcls_ref : (NH, 2)      stacked classifier biases
    out_ref  : (1, NH, 2)
    """
    x = x_ref[0]                                                # (HW, C) f32

    # F.normalize(p=2, dim=2) on the PyTorch (B, C, HW) view == per-channel
    # L2 norm over the spatial axis -> reduce over axis 0 of this (HW, C) tile.
    sq = jnp.sum(x * x, axis=0, keepdims=True)                  # (1, C)
    norm = jnp.sqrt(jnp.maximum(sq, 1e-24))                     # max(||.||, 1e-12)
    xn = x * pl.reciprocal(norm, approx=True)                   # EUP reciprocal

    # 1x1 attention conv on normalized features -> one logit per position/head
    logits = jnp.dot(xn, watt_ref[...],
                     preferred_element_type=jnp.float32)        # (HW, NH)
    attk = attk_ref[...]                                        # (K, NH)

    # softmax over concatenated [HW logits, K learnable logits]; keep first HW
    m = jnp.maximum(jnp.max(logits, axis=0, keepdims=True),
                    jnp.max(attk, axis=0, keepdims=True))       # (1, NH)
    e_l = jnp.exp(logits - m)                                   # (HW, NH)
    e_k = jnp.exp(attk - m)                                     # (K, NH)
    denom = (jnp.sum(e_l, axis=0, keepdims=True)
             + jnp.sum(e_k, axis=0, keepdims=True))             # (1, NH)
    att = e_l * pl.reciprocal(denom, approx=True)               # (HW, NH)

    # weighted spatial sum on the MXU: contract HW (dim 0 of both operands),
    # using the un-normalized features x (as in the PyTorch forward).
    x0 = jax.lax.dot_general(att, x, (((0,), (0,)), ((), ())),
                             preferred_element_type=jnp.float32)  # (NH, C)

    rows = []
    for h in range(num_heads):          # static unroll, NH is small
        rows.append(jnp.dot(x0[h:h + 1, :], wcls_ref[h],
                            preferred_element_type=jnp.float32))  # (1, 2)
    out = rows[0] if num_heads == 1 else jnp.concatenate(rows, axis=0)
    out_ref[0] = out + bcls_ref[...]


def heads_pallas(xf, att_w, att_k, cls_w, cls_b):
    B, HW, C = xf.shape
    K, NH = att_k.shape
    return pl.pallas_call(
        functools.partial(_heads_kernel, num_heads=NH),
        out_shape=jax.ShapeDtypeStruct((B, NH, 2), jnp.float32),
        grid_spec=pltpu.PrefetchScalarGridSpec(
            num_scalar_prefetch=0,
            grid=(B,),
            in_specs=[pl.BlockSpec((1, HW, C), lambda b: (b, 0, 0)),
                      pl.BlockSpec((C, NH), lambda b: (0, 0)),
                      pl.BlockSpec((K, NH), lambda b: (0, 0)),
                      pl.BlockSpec((NH, C, 2), lambda b: (0, 0, 0)),
                      pl.BlockSpec((NH, 2), lambda b: (0, 0))],
            out_specs=pl.BlockSpec((1, NH, 2), lambda b: (b, 0, 0))),
        compiler_params=pltpu.CompilerParams(
            dimension_semantics=("parallel",)),
    )(xf, att_w, att_k, cls_w, cls_b)


# ---------------------------------------------------------------------------
# Backbone glue (NHWC; 1x1 convs + BN/ReLU fused through the Pallas matmul)
# ---------------------------------------------------------------------------

def conv2d_nhwc(x, w_hwio, stride, padding, groups=1):
    return jax.lax.conv_general_dilated(
        x, w_hwio, (stride, stride),
        [(padding, padding), (padding, padding)],
        feature_group_count=groups,
        dimension_numbers=('NHWC', 'HWIO', 'NHWC'))


def conv1x1_bn(x, w_kn, scale, bias, *, stride=1, relu=False):
    """1x1 conv (weights pre-transposed to (Cin, Cout)) + folded BN (+ReLU)."""
    if stride > 1:
        x = x[:, ::stride, ::stride, :]
    B, H, W, Cin = x.shape
    Cout = w_kn.shape[1]
    y = matmul_bn_act(x.reshape(B * H * W, Cin), w_kn, scale, bias, relu=relu)
    return y.reshape(B, H, W, Cout)


def maxpool3x3s2_nhwc(x):
    return jax.lax.reduce_window(
        x, -jnp.inf, jax.lax.max,
        (1, 3, 3, 1), (1, 2, 2, 1),
        [(0, 0), (1, 1), (1, 1), (0, 0)])


def bottleneck(x, p, stride, groups):
    y = conv1x1_bn(x, p['w1'], p['s1'], p['c1'], relu=True)
    # TODO(synk): grouped 3x3 conv (cardinality-32 path) kept in lax.conv glue.
    y = conv2d_nhwc(y, p['w2'], stride, 1, groups)
    y = jax.nn.relu(y * p['s2'] + p['c2'])
    y = conv1x1_bn(y, p['w3'], p['s3'], p['c3'], relu=False)
    if 'ws' in p:
        s = conv1x1_bn(x, p['ws'], p['ss'], p['cs'], stride=stride, relu=False)
    else:
        s = x
    return jax.nn.relu(y + s)   # LambdaReduce(x + y) -> ReLU


def forward(x, params, *, cropsize, class_num, groups, stage_cfgs):
    x = x.reshape(-1, 3, cropsize, cropsize)
    x = jnp.transpose(x, (0, 2, 3, 1))                   # NCHW -> NHWC, once
    # TODO(synk): 7x7 stem conv and 3x3 maxpool kept in lax glue.
    y = conv2d_nhwc(x, params['stem_w'], 2, 3)
    y = jax.nn.relu(y * params['stem_s'] + params['stem_c'])
    y = maxpool3x3s2_nhwc(y)
    for stage_params, (_, _, _, stride) in zip(params['stages'], stage_cfgs):
        for bi, bp in enumerate(stage_params):
            y = bottleneck(y, bp, stride if bi == 0 else 1, groups)
    B, h, w, C = y.shape
    xf = y.reshape(B, h * w, C)                          # no-op layout-wise
    out = heads_pallas(xf, params['att_w'], params['att_k'],
                       params['cls_w'], params['cls_b'])  # (B, NH, 2)
    return [out[:, i, :] for i in range(class_num)]


# ---------------------------------------------------------------------------
# Deterministic parameter init (shapes follow the module, scaled 1/16 wide)
# ---------------------------------------------------------------------------

def _xavier_2d(key, cin, cout):
    a = (6.0 / (cin + cout)) ** 0.5
    return jax.random.uniform(key, (cin, cout), jnp.float32, -a, a)


def _xavier_conv_hwio(key, kh, kw, cin, cout):
    fan_in = cin * kh * kw
    fan_out = cout * kh * kw
    a = (6.0 / (fan_in + fan_out)) ** 0.5
    return jax.random.uniform(key, (kh, kw, cin, cout), jnp.float32, -a, a)


def _bn_fold(key_g, key_b, ch, eps=1e-5):
    # inference-mode BN with default running stats (mean=0, var=1), folded
    gamma = 1.0 + 0.1 * jax.random.normal(key_g, (ch,), jnp.float32)
    beta = 0.1 * jax.random.normal(key_b, (ch,), jnp.float32)
    scale = gamma / jnp.sqrt(1.0 + eps)
    return scale, beta


def init_params(key, stem_ch, stage_cfgs, groups, class_num, k):
    keys = iter(jax.random.split(key, 4096))
    nk = lambda: next(keys)

    params = {
        'stem_w': _xavier_conv_hwio(nk(), 7, 7, 3, stem_ch),
    }
    params['stem_s'], params['stem_c'] = _bn_fold(nk(), nk(), stem_ch)

    stages = []
    in_ch = stem_ch
    for (n_blocks, bot, out, _) in stage_cfgs:
        blocks = []
        for bi in range(n_blocks):
            p = {
                # 1x1 weights pre-transposed to (Cin, Cout) and stored bf16
                'w1': _xavier_2d(nk(), in_ch, bot).astype(jnp.bfloat16),
                'w2': _xavier_conv_hwio(nk(), 3, 3, bot // groups, bot),
                'w3': _xavier_2d(nk(), bot, out).astype(jnp.bfloat16),
            }
            p['s1'], p['c1'] = _bn_fold(nk(), nk(), bot)
            p['s2'], p['c2'] = _bn_fold(nk(), nk(), bot)
            p['s3'], p['c3'] = _bn_fold(nk(), nk(), out)
            if bi == 0:
                p['ws'] = _xavier_2d(nk(), in_ch, out).astype(jnp.bfloat16)
                p['ss'], p['cs'] = _bn_fold(nk(), nk(), out)
            blocks.append(p)
            in_ch = out
        stages.append(blocks)
    params['stages'] = stages

    embed = in_ch
    # head params, stacked across heads: module fills att weights / att_k with 0
    params['att_w'] = jnp.zeros((embed, class_num), jnp.float32)
    params['att_k'] = jnp.zeros((k, class_num), jnp.float32)
    params['cls_w'] = jnp.stack(
        [_xavier_2d(nk(), embed, 2) for _ in range(class_num)], axis=0)
    params['cls_b'] = 0.1 * jax.random.normal(nk(), (class_num, 2), jnp.float32)
    return params


# ---------------------------------------------------------------------------
if __name__ == "__main__":
    CROPSIZE = 64          # real model uses 224 -> 7x7 features; 64 -> 2x2
    CLASS_NUM = 1
    K = 5
    GROUPS = 2             # real model: 32 (channels scaled by 1/16)
    STEM_CH = 4            # real model: 64
    # ResNeXt-50 structure (3/4/6/3 bottlenecks), channel widths scaled 1/16:
    # (num_blocks, bottleneck_width, out_width, first_block_stride)
    STAGE_CFGS = ((3, 8, 16, 1), (4, 16, 32, 2), (6, 32, 64, 2), (3, 64, 128, 2))

    key = jax.random.PRNGKey(0)
    kp, kx = jax.random.split(key)
    params = init_params(kp, STEM_CH, STAGE_CFGS, GROUPS, CLASS_NUM, K)
    x = jax.random.normal(kx, (2, 3, CROPSIZE, CROPSIZE), jnp.float32)

    fwd = jax.jit(functools.partial(forward, cropsize=CROPSIZE,
                                    class_num=CLASS_NUM, groups=GROUPS,
                                    stage_cfgs=STAGE_CFGS))
    outs = fwd(x, params)
    for o in outs:
        jax.block_until_ready(o)
    assert outs[0].shape == (2, 2)
    print("KERNEL_OK")
</pallas_src>

<mosaic_0001>
module attributes {stable_mosaic.version = 11 : i64} {
  func.func @_matmul_bn_kernel(%arg0: i32, %arg1: i32, %arg2: i32, %arg3: memref<512x4xbf16, #tpu.memory_space<vmem>>, %arg4: memref<4x8xbf16, #tpu.memory_space<vmem>>, %arg5: memref<1x8xf32, #tpu.memory_space<vmem>>, %arg6: memref<1x8xf32, #tpu.memory_space<vmem>>, %arg7: memref<512x8xf32, #tpu.memory_space<vmem>>, %arg8: memref<512x8xf32, #tpu.memory_space<vmem>>) attributes {dimension_semantics = [#tpu.dimension_semantics<parallel>, #tpu.dimension_semantics<parallel>, #tpu.dimension_semantics<arbitrary>], iteration_bounds = array<i64: 1, 1, 1>, scalar_prefetch = 0 : i64, scratch_operands = 1 : i64, tpu.core_type = #tpu.core_type<tc>, window_params = [{transform_indices = @transform_0, window_bounds = array<i64: 512, 4>}, {transform_indices = @transform_1, window_bounds = array<i64: 4, 8>}, {transform_indices = @transform_2, window_bounds = array<i64: 1, 8>}, {transform_indices = @transform_3, window_bounds = array<i64: 1, 8>}, {transform_indices = @transform_4, window_bounds = array<i64: 512, 8>}]} {
    %c0_i32 = arith.constant 0 : i32
    %0 = arith.cmpi eq, %arg2, %c0_i32 : i32
    %1 = arith.extui %0 : i1 to i32
    %c0_i32_0 = arith.constant 0 : i32
    %2 = arith.cmpi ne, %1, %c0_i32_0 : i32
    scf.if %2 {
      %cst_10 = arith.constant 0.000000e+00 : f32
      %12 = vector.broadcast %cst_10 : f32 to vector<512x8xf32>
      %c0_11 = arith.constant 0 : index
      %c0_12 = arith.constant 0 : index
      %13 = vector.load %arg8[%c0_11, %c0_12] : memref<512x8xf32, #tpu.memory_space<vmem>>, vector<512x8xf32>
      tpu.vector_store %arg8[%c0_11, %c0_12], %12 {strides = array<i32>} : memref<512x8xf32, #tpu.memory_space<vmem>>, vector<512x8xf32>,
    } else {
    }
    %c0 = arith.constant 0 : index
    %c0_1 = arith.constant 0 : index
    %3 = vector.load %arg8[%c0, %c0_1] : memref<512x8xf32, #tpu.memory_space<vmem>>, vector<512x8xf32>
    %c0_2 = arith.constant 0 : index
    %c0_3 = arith.constant 0 : index
    %4 = vector.load %arg3[%c0_2, %c0_3] : memref<512x4xbf16, #tpu.memory_space<vmem>>, vector<512x4xbf16>
    %c0_4 = arith.constant 0 : index
    %c0_5 = arith.constant 0 : index
    %5 = vector.load %arg4[%c0_4, %c0_5] : memref<4x8xbf16, #tpu.memory_space<vmem>>, vector<4x8xbf16>
    %cst = arith.constant dense<0.000000e+00> : vector<512x8xf32>
    %6 = tpu.matmul %4, %5, %cst {dimension_numbers = #tpu.dot_dimension_numbers<[1], [0], [0], [1], [0, 0, 1, 1], [], []>} : vector<512x4xbf16>, vector<4x8xbf16>, vector<512x8xf32> -> vector<512x8xf32>
    %7 = arith.addf %3, %6 : vector<512x8xf32>
    %c0_6 = arith.constant 0 : index
    %c0_7 = arith.constant 0 : index
    %8 = vector.load %arg8[%c0_6, %c0_7] : memref<512x8xf32, #tpu.memory_space<vmem>>, vector<512x8xf32>
    tpu.vector_store %arg8[%c0_6, %c0_7], %7 {strides = array<i32>} : memref<512x8xf32, #tpu.memory_space<vmem>>, vector<512x8xf32>,
    %c0_i32_8 = arith.constant 0 : i32
    %9 = arith.cmpi eq, %arg2, %c0_i32_8 : i32
    %10 = arith.extui %9 : i1 to i32
    %c0_i32_9 = arith.constant 0 : i32
    %11 = arith.cmpi ne, %10, %c0_i32_9 : i32
    scf.if %11 {
      %c0_10 = arith.constant 0 : index
      %c0_11 = arith.constant 0 : index
      %12 = vector.load %arg8[%c0_10, %c0_11] : memref<512x8xf32, #tpu.memory_space<vmem>>, vector<512x8xf32>
      %c0_12 = arith.constant 0 : index
      %c0_13 = arith.constant 0 : index
      %13 = vector.load %arg5[%c0_12, %c0_13] : memref<1x8xf32, #tpu.memory_space<vmem>>, vector<1x8xf32>
      %14 = vector.broadcast %13 : vector<1x8xf32> to vector<512x8xf32>
      %15 = arith.mulf %12, %14 : vector<512x8xf32>
      %c0_14 = arith.constant 0 : index
      %c0_15 = arith.constant 0 : index
      %16 = vector.load %arg6[%c0_14, %c0_15] : memref<1x8xf32, #tpu.memory_space<vmem>>, vector<1x8xf32>
      %17 = vector.broadcast %16 : vector<1x8xf32> to vector<512x8xf32>
      %18 = arith.addf %15, %17 : vector<512x8xf32>
      %cst_16 = arith.constant 0.000000e+00 : f32
      %19 = vector.broadcast %cst_16 : f32 to vector<512x8xf32>
      %20 = arith.maximumf %18, %19 : vector<512x8xf32>
      %c0_17 = arith.constant 0 : index
      %c0_18 = arith.constant 0 : index
      %21 = vector.load %arg7[%c0_17, %c0_18] : memref<512x8xf32, #tpu.memory_space<vmem>>, vector<512x8xf32>
      tpu.vector_store %arg7[%c0_17, %c0_18], %20 {strides = array<i32>} : memref<512x8xf32, #tpu.memory_space<vmem>>, vector<512x8xf32>,
    } else {
    }
    return
  }
  func.func @transform_0(%arg0: i32, %arg1: i32, %arg2: i32) -> (i32, i32) {
    %c0_i32 = arith.constant 0 : i32
    return %arg0, %arg2 : i32, i32
  }
  func.func @transform_1(%arg0: i32, %arg1: i32, %arg2: i32) -> (i32, i32) {
    %c0_i32 = arith.constant 0 : i32
    return %arg2, %arg1 : i32, i32
  }
  func.func @transform_2(%arg0: i32, %arg1: i32, %arg2: i32) -> (i32, i32) {
    %c0_i32 = arith.constant 0 : i32
    %c0_i32_0 = arith.constant 0 : i32
    return %c0_i32, %arg1 : i32, i32
  }
  func.func @transform_3(%arg0: i32, %arg1: i32, %arg2: i32) -> (i32, i32) {
    %c0_i32 = arith.constant 0 : i32
    %c0_i32_0 = arith.constant 0 : i32
    return %c0_i32, %arg1 : i32, i32
  }
  func.func @transform_4(%arg0: i32, %arg1: i32, %arg2: i32) -> (i32, i32) {
    %c0_i32 = arith.constant 0 : i32
    return %arg0, %arg1 : i32, i32
  }
}

module attributes {stable_mosaic.version = 11 : i64} {
  func.func @_matmul_bn_kernel(%arg0: i32, %arg1: i32, %arg2: i32, %arg3: memref<512x8xbf16, #tpu.memory_space<vmem>>, %arg4: memref<8x16xbf16, #tpu.memory_space<vmem>>, %arg5: memref<1x16xf32, #tpu.memory_space<vmem>>, %arg6: memref<1x16xf32, #tpu.memory_space<vmem>>, %arg7: memref<512x16xf32, #tpu.memory_space<vmem>>, %arg8: memref<512x16xf32, #tpu.memory_space<vmem>>) attributes {dimension_semantics = [#tpu.dimension_semantics<parallel>, #tpu.dimension_semantics<parallel>, #tpu.dimension_semantics<arbitrary>], iteration_bounds = array<i64: 1, 1, 1>, scalar_prefetch = 0 : i64, scratch_operands = 1 : i64, tpu.core_type = #tpu.core_type<tc>, window_params = [{transform_indices = @transform_0, window_bounds = array<i64: 512, 8>}, {transform_indices = @transform_1, window_bounds = array<i64: 8, 16>}, {transform_indices = @transform_2, window_bounds = array<i64: 1, 16>}, {transform_indices = @transform_3, window_bounds = array<i64: 1, 16>}, {transform_indices = @transform_4, window_bounds = array<i64: 512, 16>}]} {
    %c0_i32 = arith.constant 0 : i32
    %0 = arith.cmpi eq, %arg2, %c0_i32 : i32
    %1 = arith.extui %0 : i1 to i32
    %c0_i32_0 = arith.constant 0 : i32
    %2 = arith.cmpi ne, %1, %c0_i32_0 : i32
    scf.if %2 {
      %cst_10 = arith.constant 0.000000e+00 : f32
      %12 = vector.broadcast %cst_10 : f32 to vector<512x16xf32>
      %c0_11 = arith.constant 0 : index
      %c0_12 = arith.constant 0 : index
      %13 = vector.load %arg8[%c0_11, %c0_12] : memref<512x16xf32, #tpu.memory_space<vmem>>, vector<512x16xf32>
      tpu.vector_store %arg8[%c0_11, %c0_12], %12 {strides = array<i32>} : memref<512x16xf32, #tpu.memory_space<vmem>>, vector<512x16xf32>,
    } else {
    }
    %c0 = arith.constant 0 : index
    %c0_1 = arith.constant 0 : index
    %3 = vector.load %arg8[%c0, %c0_1] : memref<512x16xf32, #tpu.memory_space<vmem>>, vector<512x16xf32>
    %c0_2 = arith.constant 0 : index
    %c0_3 = arith.constant 0 : index
    %4 = vector.load %arg3[%c0_2, %c0_3] : memref<512x8xbf16, #tpu.memory_space<vmem>>, vector<512x8xbf16>
    %c0_4 = arith.constant 0 : index
    %c0_5 = arith.constant 0 : index
    %5 = vector.load %arg4[%c0_4, %c0_5] : memref<8x16xbf16, #tpu.memory_space<vmem>>, vector<8x16xbf16>
    %cst = arith.constant dense<0.000000e+00> : vector<512x16xf32>
    %6 = tpu.matmul %4, %5, %cst {dimension_numbers = #tpu.dot_dimension_numbers<[1], [0], [0], [1], [0, 0, 1, 1], [], []>} : vector<512x8xbf16>, vector<8x16xbf16>, vector<512x16xf32> -> vector<512x16xf32>
    %7 = arith.addf %3, %6 : vector<512x16xf32>
    %c0_6 = arith.constant 0 : index
    %c0_7 = arith.constant 0 : index
    %8 = vector.load %arg8[%c0_6, %c0_7] : memref<512x16xf32, #tpu.memory_space<vmem>>, vector<512x16xf32>
    tpu.vector_store %arg8[%c0_6, %c0_7], %7 {strides = array<i32>} : memref<512x16xf32, #tpu.memory_space<vmem>>, vector<512x16xf32>,
    %c0_i32_8 = arith.constant 0 : i32
    %9 = arith.cmpi eq, %arg2, %c0_i32_8 : i32
    %10 = arith.extui %9 : i1 to i32
    %c0_i32_9 = arith.constant 0 : i32
    %11 = arith.cmpi ne, %10, %c0_i32_9 : i32
    scf.if %11 {
      %c0_10 = arith.constant 0 : index
      %c0_11 = arith.constant 0 : index
      %12 = vector.load %arg8[%c0_10, %c0_11] : memref<512x16xf32, #tpu.memory_space<vmem>>, vector<512x16xf32>
      %c0_12 = arith.constant 0 : index
      %c0_13 = arith.constant 0 : index
      %13 = vector.load %arg5[%c0_12, %c0_13] : memref<1x16xf32, #tpu.memory_space<vmem>>, vector<1x16xf32>
      %14 = vector.broadcast %13 : vector<1x16xf32> to vector<512x16xf32>
      %15 = arith.mulf %12, %14 : vector<512x16xf32>
      %c0_14 = arith.constant 0 : index
      %c0_15 = arith.constant 0 : index
      %16 = vector.load %arg6[%c0_14, %c0_15] : memref<1x16xf32, #tpu.memory_space<vmem>>, vector<1x16xf32>
      %17 = vector.broadcast %16 : vector<1x16xf32> to vector<512x16xf32>
      %18 = arith.addf %15, %17 : vector<512x16xf32>
      %c0_16 = arith.constant 0 : index
      %c0_17 = arith.constant 0 : index
      %19 = vector.load %arg7[%c0_16, %c0_17] : memref<512x16xf32, #tpu.memory_space<vmem>>, vector<512x16xf32>
      tpu.vector_store %arg7[%c0_16, %c0_17], %18 {strides = array<i32>} : memref<512x16xf32, #tpu.memory_space<vmem>>, vector<512x16xf32>,
    } else {
    }
    return
  }
  func.func @transform_0(%arg0: i32, %arg1: i32, %arg2: i32) -> (i32, i32) {
    %c0_i32 = arith.constant 0 : i32
    return %arg0, %arg2 : i32, i32
  }
  func.func @transform_1(%arg0: i32, %arg1: i32, %arg2: i32) -> (i32, i32) {
    %c0_i32 = arith.constant 0 : i32
    return %arg2, %arg1 : i32, i32
  }
  func.func @transform_2(%arg0: i32, %arg1: i32, %arg2: i32) -> (i32, i32) {
    %c0_i32 = arith.constant 0 : i32
    %c0_i32_0 = arith.constant 0 : i32
    return %c0_i32, %arg1 : i32, i32
  }
  func.func @transform_3(%arg0: i32, %arg1: i32, %arg2: i32) -> (i32, i32) {
    %c0_i32 = arith.constant 0 : i32
    %c0_i32_0 = arith.constant 0 : i32
    return %c0_i32, %arg1 : i32, i32
  }
  func.func @transform_4(%arg0: i32, %arg1: i32, %arg2: i32) -> (i32, i32) {
    %c0_i32 = arith.constant 0 : i32
    return %arg0, %arg1 : i32, i32
  }
}

module attributes {stable_mosaic.version = 11 : i64} {
  func.func @_matmul_bn_kernel(%arg0: i32, %arg1: i32, %arg2: i32, %arg3: memref<512x4xbf16, #tpu.memory_space<vmem>>, %arg4: memref<4x16xbf16, #tpu.memory_space<vmem>>, %arg5: memref<1x16xf32, #tpu.memory_space<vmem>>, %arg6: memref<1x16xf32, #tpu.memory_space<vmem>>, %arg7: memref<512x16xf32, #tpu.memory_space<vmem>>, %arg8: memref<512x16xf32, #tpu.memory_space<vmem>>) attributes {dimension_semantics = [#tpu.dimension_semantics<parallel>, #tpu.dimension_semantics<parallel>, #tpu.dimension_semantics<arbitrary>], iteration_bounds = array<i64: 1, 1, 1>, scalar_prefetch = 0 : i64, scratch_operands = 1 : i64, tpu.core_type = #tpu.core_type<tc>, window_params = [{transform_indices = @transform_0, window_bounds = array<i64: 512, 4>}, {transform_indices = @transform_1, window_bounds = array<i64: 4, 16>}, {transform_indices = @transform_2, window_bounds = array<i64: 1, 16>}, {transform_indices = @transform_3, window_bounds = array<i64: 1, 16>}, {transform_indices = @transform_4, window_bounds = array<i64: 512, 16>}]} {
    %c0_i32 = arith.constant 0 : i32
    %0 = arith.cmpi eq, %arg2, %c0_i32 : i32
    %1 = arith.extui %0 : i1 to i32
    %c0_i32_0 = arith.constant 0 : i32
    %2 = arith.cmpi ne, %1, %c0_i32_0 : i32
    scf.if %2 {
      %cst_10 = arith.constant 0.000000e+00 : f32
      %12 = vector.broadcast %cst_10 : f32 to vector<512x16xf32>
      %c0_11 = arith.constant 0 : index
      %c0_12 = arith.constant 0 : index
      %13 = vector.load %arg8[%c0_11, %c0_12] : memref<512x16xf32, #tpu.memory_space<vmem>>, vector<512x16xf32>
      tpu.vector_store %arg8[%c0_11, %c0_12], %12 {strides = array<i32>} : memref<512x16xf32, #tpu.memory_space<vmem>>, vector<512x16xf32>,
    } else {
    }
    %c0 = arith.constant 0 : index
    %c0_1 = arith.constant 0 : index
    %3 = vector.load %arg8[%c0, %c0_1] : memref<512x16xf32, #tpu.memory_space<vmem>>, vector<512x16xf32>
    %c0_2 = arith.constant 0 : index
    %c0_3 = arith.constant 0 : index
    %4 = vector.load %arg3[%c0_2, %c0_3] : memref<512x4xbf16, #tpu.memory_space<vmem>>, vector<512x4xbf16>
    %c0_4 = arith.constant 0 : index
    %c0_5 = arith.constant 0 : index
    %5 = vector.load %arg4[%c0_4, %c0_5] : memref<4x16xbf16, #tpu.memory_space<vmem>>, vector<4x16xbf16>
    %cst = arith.constant dense<0.000000e+00> : vector<512x16xf32>
    %6 = tpu.matmul %4, %5, %cst {dimension_numbers = #tpu.dot_dimension_numbers<[1], [0], [0], [1], [0, 0, 1, 1], [], []>} : vector<512x4xbf16>, vector<4x16xbf16>, vector<512x16xf32> -> vector<512x16xf32>
    %7 = arith.addf %3, %6 : vector<512x16xf32>
    %c0_6 = arith.constant 0 : index
    %c0_7 = arith.constant 0 : index
    %8 = vector.load %arg8[%c0_6, %c0_7] : memref<512x16xf32, #tpu.memory_space<vmem>>, vector<512x16xf32>
    tpu.vector_store %arg8[%c0_6, %c0_7], %7 {strides = array<i32>} : memref<512x16xf32, #tpu.memory_space<vmem>>, vector<512x16xf32>,
    %c0_i32_8 = arith.constant 0 : i32
    %9 = arith.cmpi eq, %arg2, %c0_i32_8 : i32
    %10 = arith.extui %9 : i1 to i32
    %c0_i32_9 = arith.constant 0 : i32
    %11 = arith.cmpi ne, %10, %c0_i32_9 : i32
    scf.if %11 {
      %c0_10 = arith.constant 0 : index
      %c0_11 = arith.constant 0 : index
      %12 = vector.load %arg8[%c0_10, %c0_11] : memref<512x16xf32, #tpu.memory_space<vmem>>, vector<512x16xf32>
      %c0_12 = arith.constant 0 : index
      %c0_13 = arith.constant 0 : index
      %13 = vector.load %arg5[%c0_12, %c0_13] : memref<1x16xf32, #tpu.memory_space<vmem>>, vector<1x16xf32>
      %14 = vector.broadcast %13 : vector<1x16xf32> to vector<512x16xf32>
      %15 = arith.mulf %12, %14 : vector<512x16xf32>
      %c0_14 = arith.constant 0 : index
      %c0_15 = arith.constant 0 : index
      %16 = vector.load %arg6[%c0_14, %c0_15] : memref<1x16xf32, #tpu.memory_space<vmem>>, vector<1x16xf32>
      %17 = vector.broadcast %16 : vector<1x16xf32> to vector<512x16xf32>
      %18 = arith.addf %15, %17 : vector<512x16xf32>
      %c0_16 = arith.constant 0 : index
      %c0_17 = arith.constant 0 : index
      %19 = vector.load %arg7[%c0_16, %c0_17] : memref<512x16xf32, #tpu.memory_space<vmem>>, vector<512x16xf32>
      tpu.vector_store %arg7[%c0_16, %c0_17], %18 {strides = array<i32>} : memref<512x16xf32, #tpu.memory_space<vmem>>, vector<512x16xf32>,
    } else {
    }
    return
  }
  func.func @transform_0(%arg0: i32, %arg1: i32, %arg2: i32) -> (i32, i32) {
    %c0_i32 = arith.constant 0 : i32
    return %arg0, %arg2 : i32, i32
  }
  func.func @transform_1(%arg0: i32, %arg1: i32, %arg2: i32) -> (i32, i32) {
    %c0_i32 = arith.constant 0 : i32
    return %arg2, %arg1 : i32, i32
  }
  func.func @transform_2(%arg0: i32, %arg1: i32, %arg2: i32) -> (i32, i32) {
    %c0_i32 = arith.constant 0 : i32
    %c0_i32_0 = arith.constant 0 : i32
    return %c0_i32, %arg1 : i32, i32
  }
  func.func @transform_3(%arg0: i32, %arg1: i32, %arg2: i32) -> (i32, i32) {
    %c0_i32 = arith.constant 0 : i32
    %c0_i32_0 = arith.constant 0 : i32
    return %c0_i32, %arg1 : i32, i32
  }
  func.func @transform_4(%arg0: i32, %arg1: i32, %arg2: i32) -> (i32, i32) {
    %c0_i32 = arith.constant 0 : i32
    return %arg0, %arg1 : i32, i32
  }
}

module attributes {stable_mosaic.version = 11 : i64} {
  func.func @_matmul_bn_kernel(%arg0: i32, %arg1: i32, %arg2: i32, %arg3: memref<512x16xbf16, #tpu.memory_space<vmem>>, %arg4: memref<16x8xbf16, #tpu.memory_space<vmem>>, %arg5: memref<1x8xf32, #tpu.memory_space<vmem>>, %arg6: memref<1x8xf32, #tpu.memory_space<vmem>>, %arg7: memref<512x8xf32, #tpu.memory_space<vmem>>, %arg8: memref<512x8xf32, #tpu.memory_space<vmem>>) attributes {dimension_semantics = [#tpu.dimension_semantics<parallel>, #tpu.dimension_semantics<parallel>, #tpu.dimension_semantics<arbitrary>], iteration_bounds = array<i64: 1, 1, 1>, scalar_prefetch = 0 : i64, scratch_operands = 1 : i64, tpu.core_type = #tpu.core_type<tc>, window_params = [{transform_indices = @transform_0, window_bounds = array<i64: 512, 16>}, {transform_indices = @transform_1, window_bounds = array<i64: 16, 8>}, {transform_indices = @transform_2, window_bounds = array<i64: 1, 8>}, {transform_indices = @transform_3, window_bounds = array<i64: 1, 8>}, {transform_indices = @transform_4, window_bounds = array<i64: 512, 8>}]} {
    %c0_i32 = arith.constant 0 : i32
    %0 = arith.cmpi eq, %arg2, %c0_i32 : i32
    %1 = arith.extui %0 : i1 to i32
    %c0_i32_0 = arith.constant 0 : i32
    %2 = arith.cmpi ne, %1, %c0_i32_0 : i32
    scf.if %2 {
      %cst_10 = arith.constant 0.000000e+00 : f32
      %12 = vector.broadcast %cst_10 : f32 to vector<512x8xf32>
      %c0_11 = arith.constant 0 : index
      %c0_12 = arith.constant 0 : index
      %13 = vector.load %arg8[%c0_11, %c0_12] : memref<512x8xf32, #tpu.memory_space<vmem>>, vector<512x8xf32>
      tpu.vector_store %arg8[%c0_11, %c0_12], %12 {strides = array<i32>} : memref<512x8xf32, #tpu.memory_space<vmem>>, vector<512x8xf32>,
    } else {
    }
    %c0 = arith.constant 0 : index
    %c0_1 = arith.constant 0 : index
    %3 = vector.load %arg8[%c0, %c0_1] : memref<512x8xf32, #tpu.memory_space<vmem>>, vector<512x8xf32>
    %c0_2 = arith.constant 0 : index
    %c0_3 = arith.constant 0 : index
    %4 = vector.load %arg3[%c0_2, %c0_3] : memref<512x16xbf16, #tpu.memory_space<vmem>>, vector<512x16xbf16>
    %c0_4 = arith.constant 0 : index
    %c0_5 = arith.constant 0 : index
    %5 = vector.load %arg4[%c0_4, %c0_5] : memref<16x8xbf16, #tpu.memory_space<vmem>>, vector<16x8xbf16>
    %cst = arith.constant dense<0.000000e+00> : vector<512x8xf32>
    %6 = tpu.matmul %4, %5, %cst {dimension_numbers = #tpu.dot_dimension_numbers<[1], [0], [0], [1], [0, 0, 1, 1], [], []>} : vector<512x16xbf16>, vector<16x8xbf16>, vector<512x8xf32> -> vector<512x8xf32>
    %7 = arith.addf %3, %6 : vector<512x8xf32>
    %c0_6 = arith.constant 0 : index
    %c0_7 = arith.constant 0 : index
    %8 = vector.load %arg8[%c0_6, %c0_7] : memref<512x8xf32, #tpu.memory_space<vmem>>, vector<512x8xf32>
    tpu.vector_store %arg8[%c0_6, %c0_7], %7 {strides = array<i32>} : memref<512x8xf32, #tpu.memory_space<vmem>>, vector<512x8xf32>,
    %c0_i32_8 = arith.constant 0 : i32
    %9 = arith.cmpi eq, %arg2, %c0_i32_8 : i32
    %10 = arith.extui %9 : i1 to i32
    %c0_i32_9 = arith.constant 0 : i32
    %11 = arith.cmpi ne, %10, %c0_i32_9 : i32
    scf.if %11 {
      %c0_10 = arith.constant 0 : index
      %c0_11 = arith.constant 0 : index
      %12 = vector.load %arg8[%c0_10, %c0_11] : memref<512x8xf32, #tpu.memory_space<vmem>>, vector<512x8xf32>
      %c0_12 = arith.constant 0 : index
      %c0_13 = arith.constant 0 : index
      %13 = vector.load %arg5[%c0_12, %c0_13] : memref<1x8xf32, #tpu.memory_space<vmem>>, vector<1x8xf32>
      %14 = vector.broadcast %13 : vector<1x8xf32> to vector<512x8xf32>
      %15 = arith.mulf %12, %14 : vector<512x8xf32>
      %c0_14 = arith.constant 0 : index
      %c0_15 = arith.constant 0 : index
      %16 = vector.load %arg6[%c0_14, %c0_15] : memref<1x8xf32, #tpu.memory_space<vmem>>, vector<1x8xf32>
      %17 = vector.broadcast %16 : vector<1x8xf32> to vector<512x8xf32>
      %18 = arith.addf %15, %17 : vector<512x8xf32>
      %cst_16 = arith.constant 0.000000e+00 : f32
      %19 = vector.broadcast %cst_16 : f32 to vector<512x8xf32>
      %20 = arith.maximumf %18, %19 : vector<512x8xf32>
      %c0_17 = arith.constant 0 : index
      %c0_18 = arith.constant 0 : index
      %21 = vector.load %arg7[%c0_17, %c0_18] : memref<512x8xf32, #tpu.memory_space<vmem>>, vector<512x8xf32>
      tpu.vector_store %arg7[%c0_17, %c0_18], %20 {strides = array<i32>} : memref<512x8xf32, #tpu.memory_space<vmem>>, vector<512x8xf32>,
    } else {
    }
    return
  }
  func.func @transform_0(%arg0: i32, %arg1: i32, %arg2: i32) -> (i32, i32) {
    %c0_i32 = arith.constant 0 : i32
    return %arg0, %arg2 : i32, i32
  }
  func.func @transform_1(%arg0: i32, %arg1: i32, %arg2: i32) -> (i32, i32) {
    %c0_i32 = arith.constant 0 : i32
    return %arg2, %arg1 : i32, i32
  }
  func.func @transform_2(%arg0: i32, %arg1: i32, %arg2: i32) -> (i32, i32) {
    %c0_i32 = arith.constant 0 : i32
    %c0_i32_0 = arith.constant 0 : i32
    return %c0_i32, %arg1 : i32, i32
  }
  func.func @transform_3(%arg0: i32, %arg1: i32, %arg2: i32) -> (i32, i32) {
    %c0_i32 = arith.constant 0 : i32
    %c0_i32_0 = arith.constant 0 : i32
    return %c0_i32, %arg1 : i32, i32
  }
  func.func @transform_4(%arg0: i32, %arg1: i32, %arg2: i32) -> (i32, i32) {
    %c0_i32 = arith.constant 0 : i32
    return %arg0, %arg1 : i32, i32
  }
}

module attributes {stable_mosaic.version = 11 : i64} {
  func.func @_matmul_bn_kernel(%arg0: i32, %arg1: i32, %arg2: i32, %arg3: memref<512x16xbf16, #tpu.memory_space<vmem>>, %arg4: memref<16x16xbf16, #tpu.memory_space<vmem>>, %arg5: memref<1x16xf32, #tpu.memory_space<vmem>>, %arg6: memref<1x16xf32, #tpu.memory_space<vmem>>, %arg7: memref<512x16xf32, #tpu.memory_space<vmem>>, %arg8: memref<512x16xf32, #tpu.memory_space<vmem>>) attributes {dimension_semantics = [#tpu.dimension_semantics<parallel>, #tpu.dimension_semantics<parallel>, #tpu.dimension_semantics<arbitrary>], iteration_bounds = array<i64: 1, 1, 1>, scalar_prefetch = 0 : i64, scratch_operands = 1 : i64, tpu.core_type = #tpu.core_type<tc>, window_params = [{transform_indices = @transform_0, window_bounds = array<i64: 512, 16>}, {transform_indices = @transform_1, window_bounds = array<i64: 16, 16>}, {transform_indices = @transform_2, window_bounds = array<i64: 1, 16>}, {transform_indices = @transform_3, window_bounds = array<i64: 1, 16>}, {transform_indices = @transform_4, window_bounds = array<i64: 512, 16>}]} {
    %c0_i32 = arith.constant 0 : i32
    %0 = arith.cmpi eq, %arg2, %c0_i32 : i32
    %1 = arith.extui %0 : i1 to i32
    %c0_i32_0 = arith.constant 0 : i32
    %2 = arith.cmpi ne, %1, %c0_i32_0 : i32
    scf.if %2 {
      %cst_10 = arith.constant 0.000000e+00 : f32
      %12 = vector.broadcast %cst_10 : f32 to vector<512x16xf32>
      %c0_11 = arith.constant 0 : index
      %c0_12 = arith.constant 0 : index
      %13 = vector.load %arg8[%c0_11, %c0_12] : memref<512x16xf32, #tpu.memory_space<vmem>>, vector<512x16xf32>
      tpu.vector_store %arg8[%c0_11, %c0_12], %12 {strides = array<i32>} : memref<512x16xf32, #tpu.memory_space<vmem>>, vector<512x16xf32>,
    } else {
    }
    %c0 = arith.constant 0 : index
    %c0_1 = arith.constant 0 : index
    %3 = vector.load %arg8[%c0, %c0_1] : memref<512x16xf32, #tpu.memory_space<vmem>>, vector<512x16xf32>
    %c0_2 = arith.constant 0 : index
    %c0_3 = arith.constant 0 : index
    %4 = vector.load %arg3[%c0_2, %c0_3] : memref<512x16xbf16, #tpu.memory_space<vmem>>, vector<512x16xbf16>
    %c0_4 = arith.constant 0 : index
    %c0_5 = arith.constant 0 : index
    %5 = vector.load %arg4[%c0_4, %c0_5] : memref<16x16xbf16, #tpu.memory_space<vmem>>, vector<16x16xbf16>
    %cst = arith.constant dense<0.000000e+00> : vector<512x16xf32>
    %6 = tpu.matmul %4, %5, %cst {dimension_numbers = #tpu.dot_dimension_numbers<[1], [0], [0], [1], [0, 0, 1, 1], [], []>} : vector<512x16xbf16>, vector<16x16xbf16>, vector<512x16xf32> -> vector<512x16xf32>
    %7 = arith.addf %3, %6 : vector<512x16xf32>
    %c0_6 = arith.constant 0 : index
    %c0_7 = arith.constant 0 : index
    %8 = vector.load %arg8[%c0_6, %c0_7] : memref<512x16xf32, #tpu.memory_space<vmem>>, vector<512x16xf32>
    tpu.vector_store %arg8[%c0_6, %c0_7], %7 {strides = array<i32>} : memref<512x16xf32, #tpu.memory_space<vmem>>, vector<512x16xf32>,
    %c0_i32_8 = arith.constant 0 : i32
    %9 = arith.cmpi eq, %arg2, %c0_i32_8 : i32
    %10 = arith.extui %9 : i1 to i32
    %c0_i32_9 = arith.constant 0 : i32
    %11 = arith.cmpi ne, %10, %c0_i32_9 : i32
    scf.if %11 {
      %c0_10 = arith.constant 0 : index
      %c0_11 = arith.constant 0 : index
      %12 = vector.load %arg8[%c0_10, %c0_11] : memref<512x16xf32, #tpu.memory_space<vmem>>, vector<512x16xf32>
      %c0_12 = arith.constant 0 : index
      %c0_13 = arith.constant 0 : index
      %13 = vector.load %arg5[%c0_12, %c0_13] : memref<1x16xf32, #tpu.memory_space<vmem>>, vector<1x16xf32>
      %14 = vector.broadcast %13 : vector<1x16xf32> to vector<512x16xf32>
      %15 = arith.mulf %12, %14 : vector<512x16xf32>
      %c0_14 = arith.constant 0 : index
      %c0_15 = arith.constant 0 : index
      %16 = vector.load %arg6[%c0_14, %c0_15] : memref<1x16xf32, #tpu.memory_space<vmem>>, vector<1x16xf32>
      %17 = vector.broadcast %16 : vector<1x16xf32> to vector<512x16xf32>
      %18 = arith.addf %15, %17 : vector<512x16xf32>
      %cst_16 = arith.constant 0.000000e+00 : f32
      %19 = vector.broadcast %cst_16 : f32 to vector<512x16xf32>
      %20 = arith.maximumf %18, %19 : vector<512x16xf32>
      %c0_17 = arith.constant 0 : index
      %c0_18 = arith.constant 0 : index
      %21 = vector.load %arg7[%c0_17, %c0_18] : memref<512x16xf32, #tpu.memory_space<vmem>>, vector<512x16xf32>
      tpu.vector_store %arg7[%c0_17, %c0_18], %20 {strides = array<i32>} : memref<512x16xf32, #tpu.memory_space<vmem>>, vector<512x16xf32>,
    } else {
    }
    return
  }
  func.func @transform_0(%arg0: i32, %arg1: i32, %arg2: i32) -> (i32, i32) {
    %c0_i32 = arith.constant 0 : i32
    return %arg0, %arg2 : i32, i32
  }
  func.func @transform_1(%arg0: i32, %arg1: i32, %arg2: i32) -> (i32, i32) {
    %c0_i32 = arith.constant 0 : i32
    return %arg2, %arg1 : i32, i32
  }
  func.func @transform_2(%arg0: i32, %arg1: i32, %arg2: i32) -> (i32, i32) {
    %c0_i32 = arith.constant 0 : i32
    %c0_i32_0 = arith.constant 0 : i32
    return %c0_i32, %arg1 : i32, i32
  }
  func.func @transform_3(%arg0: i32, %arg1: i32, %arg2: i32) -> (i32, i32) {
    %c0_i32 = arith.constant 0 : i32
    %c0_i32_0 = arith.constant 0 : i32
    return %c0_i32, %arg1 : i32, i32
  }
  func.func @transform_4(%arg0: i32, %arg1: i32, %arg2: i32) -> (i32, i32) {
    %c0_i32 = arith.constant 0 : i32
    return %arg0, %arg1 : i32, i32
  }
}

module attributes {stable_mosaic.version = 11 : i64} {
  func.func @_matmul_bn_kernel(%arg0: i32, %arg1: i32, %arg2: i32, %arg3: memref<128x16xbf16, #tpu.memory_space<vmem>>, %arg4: memref<16x32xbf16, #tpu.memory_space<vmem>>, %arg5: memref<1x32xf32, #tpu.memory_space<vmem>>, %arg6: memref<1x32xf32, #tpu.memory_space<vmem>>, %arg7: memref<128x32xf32, #tpu.memory_space<vmem>>, %arg8: memref<128x32xf32, #tpu.memory_space<vmem>>) attributes {dimension_semantics = [#tpu.dimension_semantics<parallel>, #tpu.dimension_semantics<parallel>, #tpu.dimension_semantics<arbitrary>], iteration_bounds = array<i64: 1, 1, 1>, scalar_prefetch = 0 : i64, scratch_operands = 1 : i64, tpu.core_type = #tpu.core_type<tc>, window_params = [{transform_indices = @transform_0, window_bounds = array<i64: 128, 16>}, {transform_indices = @transform_1, window_bounds = array<i64: 16, 32>}, {transform_indices = @transform_2, window_bounds = array<i64: 1, 32>}, {transform_indices = @transform_3, window_bounds = array<i64: 1, 32>}, {transform_indices = @transform_4, window_bounds = array<i64: 128, 32>}]} {
    %c0_i32 = arith.constant 0 : i32
    %0 = arith.cmpi eq, %arg2, %c0_i32 : i32
    %1 = arith.extui %0 : i1 to i32
    %c0_i32_0 = arith.constant 0 : i32
    %2 = arith.cmpi ne, %1, %c0_i32_0 : i32
    scf.if %2 {
      %cst_10 = arith.constant 0.000000e+00 : f32
      %12 = vector.broadcast %cst_10 : f32 to vector<128x32xf32>
      %c0_11 = arith.constant 0 : index
      %c0_12 = arith.constant 0 : index
      %13 = vector.load %arg8[%c0_11, %c0_12] : memref<128x32xf32, #tpu.memory_space<vmem>>, vector<128x32xf32>
      tpu.vector_store %arg8[%c0_11, %c0_12], %12 {strides = array<i32>} : memref<128x32xf32, #tpu.memory_space<vmem>>, vector<128x32xf32>,
    } else {
    }
    %c0 = arith.constant 0 : index
    %c0_1 = arith.constant 0 : index
    %3 = vector.load %arg8[%c0, %c0_1] : memref<128x32xf32, #tpu.memory_space<vmem>>, vector<128x32xf32>
    %c0_2 = arith.constant 0 : index
    %c0_3 = arith.constant 0 : index
    %4 = vector.load %arg3[%c0_2, %c0_3] : memref<128x16xbf16, #tpu.memory_space<vmem>>, vector<128x16xbf16>
    %c0_4 = arith.constant 0 : index
    %c0_5 = arith.constant 0 : index
    %5 = vector.load %arg4[%c0_4, %c0_5] : memref<16x32xbf16, #tpu.memory_space<vmem>>, vector<16x32xbf16>
    %cst = arith.constant dense<0.000000e+00> : vector<128x32xf32>
    %6 = tpu.matmul %4, %5, %cst {dimension_numbers = #tpu.dot_dimension_numbers<[1], [0], [0], [1], [0, 0, 1, 1], [], []>} : vector<128x16xbf16>, vector<16x32xbf16>, vector<128x32xf32> -> vector<128x32xf32>
    %7 = arith.addf %3, %6 : vector<128x32xf32>
    %c0_6 = arith.constant 0 : index
    %c0_7 = arith.constant 0 : index
    %8 = vector.load %arg8[%c0_6, %c0_7] : memref<128x32xf32, #tpu.memory_space<vmem>>, vector<128x32xf32>
    tpu.vector_store %arg8[%c0_6, %c0_7], %7 {strides = array<i32>} : memref<128x32xf32, #tpu.memory_space<vmem>>, vector<128x32xf32>,
    %c0_i32_8 = arith.constant 0 : i32
    %9 = arith.cmpi eq, %arg2, %c0_i32_8 : i32
    %10 = arith.extui %9 : i1 to i32
    %c0_i32_9 = arith.constant 0 : i32
    %11 = arith.cmpi ne, %10, %c0_i32_9 : i32
    scf.if %11 {
      %c0_10 = arith.constant 0 : index
      %c0_11 = arith.constant 0 : index
      %12 = vector.load %arg8[%c0_10, %c0_11] : memref<128x32xf32, #tpu.memory_space<vmem>>, vector<128x32xf32>
      %c0_12 = arith.constant 0 : index
      %c0_13 = arith.constant 0 : index
      %13 = vector.load %arg5[%c0_12, %c0_13] : memref<1x32xf32, #tpu.memory_space<vmem>>, vector<1x32xf32>
      %14 = vector.broadcast %13 : vector<1x32xf32> to vector<128x32xf32>
      %15 = arith.mulf %12, %14 : vector<128x32xf32>
      %c0_14 = arith.constant 0 : index
      %c0_15 = arith.constant 0 : index
      %16 = vector.load %arg6[%c0_14, %c0_15] : memref<1x32xf32, #tpu.memory_space<vmem>>, vector<1x32xf32>
      %17 = vector.broadcast %16 : vector<1x32xf32> to vector<128x32xf32>
      %18 = arith.addf %15, %17 : vector<128x32xf32>
      %c0_16 = arith.constant 0 : index
      %c0_17 = arith.constant 0 : index
      %19 = vector.load %arg7[%c0_16, %c0_17] : memref<128x32xf32, #tpu.memory_space<vmem>>, vector<128x32xf32>
      tpu.vector_store %arg7[%c0_16, %c0_17], %18 {strides = array<i32>} : memref<128x32xf32, #tpu.memory_space<vmem>>, vector<128x32xf32>,
    } else {
    }
    return
  }
  func.func @transform_0(%arg0: i32, %arg1: i32, %arg2: i32) -> (i32, i32) {
    %c0_i32 = arith.constant 0 : i32
    return %arg0, %arg2 : i32, i32
  }
  func.func @transform_1(%arg0: i32, %arg1: i32, %arg2: i32) -> (i32, i32) {
    %c0_i32 = arith.constant 0 : i32
    return %arg2, %arg1 : i32, i32
  }
  func.func @transform_2(%arg0: i32, %arg1: i32, %arg2: i32) -> (i32, i32) {
    %c0_i32 = arith.constant 0 : i32
    %c0_i32_0 = arith.constant 0 : i32
    return %c0_i32, %arg1 : i32, i32
  }
  func.func @transform_3(%arg0: i32, %arg1: i32, %arg2: i32) -> (i32, i32) {
    %c0_i32 = arith.constant 0 : i32
    %c0_i32_0 = arith.constant 0 : i32
    return %c0_i32, %arg1 : i32, i32
  }
  func.func @transform_4(%arg0: i32, %arg1: i32, %arg2: i32) -> (i32, i32) {
    %c0_i32 = arith.constant 0 : i32
    return %arg0, %arg1 : i32, i32
  }
}

module attributes {stable_mosaic.version = 11 : i64} {
  func.func @_matmul_bn_kernel(%arg0: i32, %arg1: i32, %arg2: i32, %arg3: memref<128x32xbf16, #tpu.memory_space<vmem>>, %arg4: memref<32x16xbf16, #tpu.memory_space<vmem>>, %arg5: memref<1x16xf32, #tpu.memory_space<vmem>>, %arg6: memref<1x16xf32, #tpu.memory_space<vmem>>, %arg7: memref<128x16xf32, #tpu.memory_space<vmem>>, %arg8: memref<128x16xf32, #tpu.memory_space<vmem>>) attributes {dimension_semantics = [#tpu.dimension_semantics<parallel>, #tpu.dimension_semantics<parallel>, #tpu.dimension_semantics<arbitrary>], iteration_bounds = array<i64: 1, 1, 1>, scalar_prefetch = 0 : i64, scratch_operands = 1 : i64, tpu.core_type = #tpu.core_type<tc>, window_params = [{transform_indices = @transform_0, window_bounds = array<i64: 128, 32>}, {transform_indices = @transform_1, window_bounds = array<i64: 32, 16>}, {transform_indices = @transform_2, window_bounds = array<i64: 1, 16>}, {transform_indices = @transform_3, window_bounds = array<i64: 1, 16>}, {transform_indices = @transform_4, window_bounds = array<i64: 128, 16>}]} {
    %c0_i32 = arith.constant 0 : i32
    %0 = arith.cmpi eq, %arg2, %c0_i32 : i32
    %1 = arith.extui %0 : i1 to i32
    %c0_i32_0 = arith.constant 0 : i32
    %2 = arith.cmpi ne, %1, %c0_i32_0 : i32
    scf.if %2 {
      %cst_10 = arith.constant 0.000000e+00 : f32
      %12 = vector.broadcast %cst_10 : f32 to vector<128x16xf32>
      %c0_11 = arith.constant 0 : index
      %c0_12 = arith.constant 0 : index
      %13 = vector.load %arg8[%c0_11, %c0_12] : memref<128x16xf32, #tpu.memory_space<vmem>>, vector<128x16xf32>
      tpu.vector_store %arg8[%c0_11, %c0_12], %12 {strides = array<i32>} : memref<128x16xf32, #tpu.memory_space<vmem>>, vector<128x16xf32>,
    } else {
    }
    %c0 = arith.constant 0 : index
    %c0_1 = arith.constant 0 : index
    %3 = vector.load %arg8[%c0, %c0_1] : memref<128x16xf32, #tpu.memory_space<vmem>>, vector<128x16xf32>
    %c0_2 = arith.constant 0 : index
    %c0_3 = arith.constant 0 : index
    %4 = vector.load %arg3[%c0_2, %c0_3] : memref<128x32xbf16, #tpu.memory_space<vmem>>, vector<128x32xbf16>
    %c0_4 = arith.constant 0 : index
    %c0_5 = arith.constant 0 : index
    %5 = vector.load %arg4[%c0_4, %c0_5] : memref<32x16xbf16, #tpu.memory_space<vmem>>, vector<32x16xbf16>
    %cst = arith.constant dense<0.000000e+00> : vector<128x16xf32>
    %6 = tpu.matmul %4, %5, %cst {dimension_numbers = #tpu.dot_dimension_numbers<[1], [0], [0], [1], [0, 0, 1, 1], [], []>} : vector<128x32xbf16>, vector<32x16xbf16>, vector<128x16xf32> -> vector<128x16xf32>
    %7 = arith.addf %3, %6 : vector<128x16xf32>
    %c0_6 = arith.constant 0 : index
    %c0_7 = arith.constant 0 : index
    %8 = vector.load %arg8[%c0_6, %c0_7] : memref<128x16xf32, #tpu.memory_space<vmem>>, vector<128x16xf32>
    tpu.vector_store %arg8[%c0_6, %c0_7], %7 {strides = array<i32>} : memref<128x16xf32, #tpu.memory_space<vmem>>, vector<128x16xf32>,
    %c0_i32_8 = arith.constant 0 : i32
    %9 = arith.cmpi eq, %arg2, %c0_i32_8 : i32
    %10 = arith.extui %9 : i1 to i32
    %c0_i32_9 = arith.constant 0 : i32
    %11 = arith.cmpi ne, %10, %c0_i32_9 : i32
    scf.if %11 {
      %c0_10 = arith.constant 0 : index
      %c0_11 = arith.constant 0 : index
      %12 = vector.load %arg8[%c0_10, %c0_11] : memref<128x16xf32, #tpu.memory_space<vmem>>, vector<128x16xf32>
      %c0_12 = arith.constant 0 : index
      %c0_13 = arith.constant 0 : index
      %13 = vector.load %arg5[%c0_12, %c0_13] : memref<1x16xf32, #tpu.memory_space<vmem>>, vector<1x16xf32>
      %14 = vector.broadcast %13 : vector<1x16xf32> to vector<128x16xf32>
      %15 = arith.mulf %12, %14 : vector<128x16xf32>
      %c0_14 = arith.constant 0 : index
      %c0_15 = arith.constant 0 : index
      %16 = vector.load %arg6[%c0_14, %c0_15] : memref<1x16xf32, #tpu.memory_space<vmem>>, vector<1x16xf32>
      %17 = vector.broadcast %16 : vector<1x16xf32> to vector<128x16xf32>
      %18 = arith.addf %15, %17 : vector<128x16xf32>
      %cst_16 = arith.constant 0.000000e+00 : f32
      %19 = vector.broadcast %cst_16 : f32 to vector<128x16xf32>
      %20 = arith.maximumf %18, %19 : vector<128x16xf32>
      %c0_17 = arith.constant 0 : index
      %c0_18 = arith.constant 0 : index
      %21 = vector.load %arg7[%c0_17, %c0_18] : memref<128x16xf32, #tpu.memory_space<vmem>>, vector<128x16xf32>
      tpu.vector_store %arg7[%c0_17, %c0_18], %20 {strides = array<i32>} : memref<128x16xf32, #tpu.memory_space<vmem>>, vector<128x16xf32>,
    } else {
    }
    return
  }
  func.func @transform_0(%arg0: i32, %arg1: i32, %arg2: i32) -> (i32, i32) {
    %c0_i32 = arith.constant 0 : i32
    return %arg0, %arg2 : i32, i32
  }
  func.func @transform_1(%arg0: i32, %arg1: i32, %arg2: i32) -> (i32, i32) {
    %c0_i32 = arith.constant 0 : i32
    return %arg2, %arg1 : i32, i32
  }
  func.func @transform_2(%arg0: i32, %arg1: i32, %arg2: i32) -> (i32, i32) {
    %c0_i32 = arith.constant 0 : i32
    %c0_i32_0 = arith.constant 0 : i32
    return %c0_i32, %arg1 : i32, i32
  }
  func.func @transform_3(%arg0: i32, %arg1: i32, %arg2: i32) -> (i32, i32) {
    %c0_i32 = arith.constant 0 : i32
    %c0_i32_0 = arith.constant 0 : i32
    return %c0_i32, %arg1 : i32, i32
  }
  func.func @transform_4(%arg0: i32, %arg1: i32, %arg2: i32) -> (i32, i32) {
    %c0_i32 = arith.constant 0 : i32
    return %arg0, %arg1 : i32, i32
  }
}

module attributes {stable_mosaic.version = 11 : i64} {
  func.func @_matmul_bn_kernel(%arg0: i32, %arg1: i32, %arg2: i32, %arg3: memref<128x32xbf16, #tpu.memory_space<vmem>>, %arg4: memref<32x32xbf16, #tpu.memory_space<vmem>>, %arg5: memref<1x32xf32, #tpu.memory_space<vmem>>, %arg6: memref<1x32xf32, #tpu.memory_space<vmem>>, %arg7: memref<128x32xf32, #tpu.memory_space<vmem>>, %arg8: memref<128x32xf32, #tpu.memory_space<vmem>>) attributes {dimension_semantics = [#tpu.dimension_semantics<parallel>, #tpu.dimension_semantics<parallel>, #tpu.dimension_semantics<arbitrary>], iteration_bounds = array<i64: 1, 1, 1>, scalar_prefetch = 0 : i64, scratch_operands = 1 : i64, tpu.core_type = #tpu.core_type<tc>, window_params = [{transform_indices = @transform_0, window_bounds = array<i64: 128, 32>}, {transform_indices = @transform_1, window_bounds = array<i64: 32, 32>}, {transform_indices = @transform_2, window_bounds = array<i64: 1, 32>}, {transform_indices = @transform_3, window_bounds = array<i64: 1, 32>}, {transform_indices = @transform_4, window_bounds = array<i64: 128, 32>}]} {
    %c0_i32 = arith.constant 0 : i32
    %0 = arith.cmpi eq, %arg2, %c0_i32 : i32
    %1 = arith.extui %0 : i1 to i32
    %c0_i32_0 = arith.constant 0 : i32
    %2 = arith.cmpi ne, %1, %c0_i32_0 : i32
    scf.if %2 {
      %cst_10 = arith.constant 0.000000e+00 : f32
      %12 = vector.broadcast %cst_10 : f32 to vector<128x32xf32>
      %c0_11 = arith.constant 0 : index
      %c0_12 = arith.constant 0 : index
      %13 = vector.load %arg8[%c0_11, %c0_12] : memref<128x32xf32, #tpu.memory_space<vmem>>, vector<128x32xf32>
      tpu.vector_store %arg8[%c0_11, %c0_12], %12 {strides = array<i32>} : memref<128x32xf32, #tpu.memory_space<vmem>>, vector<128x32xf32>,
    } else {
    }
    %c0 = arith.constant 0 : index
    %c0_1 = arith.constant 0 : index
    %3 = vector.load %arg8[%c0, %c0_1] : memref<128x32xf32, #tpu.memory_space<vmem>>, vector<128x32xf32>
    %c0_2 = arith.constant 0 : index
    %c0_3 = arith.constant 0 : index
    %4 = vector.load %arg3[%c0_2, %c0_3] : memref<128x32xbf16, #tpu.memory_space<vmem>>, vector<128x32xbf16>
    %c0_4 = arith.constant 0 : index
    %c0_5 = arith.constant 0 : index
    %5 = vector.load %arg4[%c0_4, %c0_5] : memref<32x32xbf16, #tpu.memory_space<vmem>>, vector<32x32xbf16>
    %cst = arith.constant dense<0.000000e+00> : vector<128x32xf32>
    %6 = tpu.matmul %4, %5, %cst {dimension_numbers = #tpu.dot_dimension_numbers<[1], [0], [0], [1], [0, 0, 1, 1], [], []>} : vector<128x32xbf16>, vector<32x32xbf16>, vector<128x32xf32> -> vector<128x32xf32>
    %7 = arith.addf %3, %6 : vector<128x32xf32>
    %c0_6 = arith.constant 0 : index
    %c0_7 = arith.constant 0 : index
    %8 = vector.load %arg8[%c0_6, %c0_7] : memref<128x32xf32, #tpu.memory_space<vmem>>, vector<128x32xf32>
    tpu.vector_store %arg8[%c0_6, %c0_7], %7 {strides = array<i32>} : memref<128x32xf32, #tpu.memory_space<vmem>>, vector<128x32xf32>,
    %c0_i32_8 = arith.constant 0 : i32
    %9 = arith.cmpi eq, %arg2, %c0_i32_8 : i32
    %10 = arith.extui %9 : i1 to i32
    %c0_i32_9 = arith.constant 0 : i32
    %11 = arith.cmpi ne, %10, %c0_i32_9 : i32
    scf.if %11 {
      %c0_10 = arith.constant 0 : index
      %c0_11 = arith.constant 0 : index
      %12 = vector.load %arg8[%c0_10, %c0_11] : memref<128x32xf32, #tpu.memory_space<vmem>>, vector<128x32xf32>
      %c0_12 = arith.constant 0 : index
      %c0_13 = arith.constant 0 : index
      %13 = vector.load %arg5[%c0_12, %c0_13] : memref<1x32xf32, #tpu.memory_space<vmem>>, vector<1x32xf32>
      %14 = vector.broadcast %13 : vector<1x32xf32> to vector<128x32xf32>
      %15 = arith.mulf %12, %14 : vector<128x32xf32>
      %c0_14 = arith.constant 0 : index
      %c0_15 = arith.constant 0 : index
      %16 = vector.load %arg6[%c0_14, %c0_15] : memref<1x32xf32, #tpu.memory_space<vmem>>, vector<1x32xf32>
      %17 = vector.broadcast %16 : vector<1x32xf32> to vector<128x32xf32>
      %18 = arith.addf %15, %17 : vector<128x32xf32>
      %cst_16 = arith.constant 0.000000e+00 : f32
      %19 = vector.broadcast %cst_16 : f32 to vector<128x32xf32>
      %20 = arith.maximumf %18, %19 : vector<128x32xf32>
      %c0_17 = arith.constant 0 : index
      %c0_18 = arith.constant 0 : index
      %21 = vector.load %arg7[%c0_17, %c0_18] : memref<128x32xf32, #tpu.memory_space<vmem>>, vector<128x32xf32>
      tpu.vector_store %arg7[%c0_17, %c0_18], %20 {strides = array<i32>} : memref<128x32xf32, #tpu.memory_space<vmem>>, vector<128x32xf32>,
    } else {
    }
    return
  }
  func.func @transform_0(%arg0: i32, %arg1: i32, %arg2: i32) -> (i32, i32) {
    %c0_i32 = arith.constant 0 : i32
    return %arg0, %arg2 : i32, i32
  }
  func.func @transform_1(%arg0: i32, %arg1: i32, %arg2: i32) -> (i32, i32) {
    %c0_i32 = arith.constant 0 : i32
    return %arg2, %arg1 : i32, i32
  }
  func.func @transform_2(%arg0: i32, %arg1: i32, %arg2: i32) -> (i32, i32) {
    %c0_i32 = arith.constant 0 : i32
    %c0_i32_0 = arith.constant 0 : i32
    return %c0_i32, %arg1 : i32, i32
  }
  func.func @transform_3(%arg0: i32, %arg1: i32, %arg2: i32) -> (i32, i32) {
    %c0_i32 = arith.constant 0 : i32
    %c0_i32_0 = arith.constant 0 : i32
    return %c0_i32, %arg1 : i32, i32
  }
  func.func @transform_4(%arg0: i32, %arg1: i32, %arg2: i32) -> (i32, i32) {
    %c0_i32 = arith.constant 0 : i32
    return %arg0, %arg1 : i32, i32
  }
}

module attributes {stable_mosaic.version = 11 : i64} {
  func.func @_matmul_bn_kernel(%arg0: i32, %arg1: i32, %arg2: i32, %arg3: memref<32x32xbf16, #tpu.memory_space<vmem>>, %arg4: memref<32x64xbf16, #tpu.memory_space<vmem>>, %arg5: memref<1x64xf32, #tpu.memory_space<vmem>>, %arg6: memref<1x64xf32, #tpu.memory_space<vmem>>, %arg7: memref<32x64xf32, #tpu.memory_space<vmem>>, %arg8: memref<32x64xf32, #tpu.memory_space<vmem>>) attributes {dimension_semantics = [#tpu.dimension_semantics<parallel>, #tpu.dimension_semantics<parallel>, #tpu.dimension_semantics<arbitrary>], iteration_bounds = array<i64: 1, 1, 1>, scalar_prefetch = 0 : i64, scratch_operands = 1 : i64, tpu.core_type = #tpu.core_type<tc>, window_params = [{transform_indices = @transform_0, window_bounds = array<i64: 32, 32>}, {transform_indices = @transform_1, window_bounds = array<i64: 32, 64>}, {transform_indices = @transform_2, window_bounds = array<i64: 1, 64>}, {transform_indices = @transform_3, window_bounds = array<i64: 1, 64>}, {transform_indices = @transform_4, window_bounds = array<i64: 32, 64>}]} {
    %c0_i32 = arith.constant 0 : i32
    %0 = arith.cmpi eq, %arg2, %c0_i32 : i32
    %1 = arith.extui %0 : i1 to i32
    %c0_i32_0 = arith.constant 0 : i32
    %2 = arith.cmpi ne, %1, %c0_i32_0 : i32
    scf.if %2 {
      %cst_10 = arith.constant 0.000000e+00 : f32
      %12 = vector.broadcast %cst_10 : f32 to vector<32x64xf32>
      %c0_11 = arith.constant 0 : index
      %c0_12 = arith.constant 0 : index
      %13 = vector.load %arg8[%c0_11, %c0_12] : memref<32x64xf32, #tpu.memory_space<vmem>>, vector<32x64xf32>
      tpu.vector_store %arg8[%c0_11, %c0_12], %12 {strides = array<i32>} : memref<32x64xf32, #tpu.memory_space<vmem>>, vector<32x64xf32>,
    } else {
    }
    %c0 = arith.constant 0 : index
    %c0_1 = arith.constant 0 : index
    %3 = vector.load %arg8[%c0, %c0_1] : memref<32x64xf32, #tpu.memory_space<vmem>>, vector<32x64xf32>
    %c0_2 = arith.constant 0 : index
    %c0_3 = arith.constant 0 : index
    %4 = vector.load %arg3[%c0_2, %c0_3] : memref<32x32xbf16, #tpu.memory_space<vmem>>, vector<32x32xbf16>
    %c0_4 = arith.constant 0 : index
    %c0_5 = arith.constant 0 : index
    %5 = vector.load %arg4[%c0_4, %c0_5] : memref<32x64xbf16, #tpu.memory_space<vmem>>, vector<32x64xbf16>
    %cst = arith.constant dense<0.000000e+00> : vector<32x64xf32>
    %6 = tpu.matmul %4, %5, %cst {dimension_numbers = #tpu.dot_dimension_numbers<[1], [0], [0], [1], [0, 0, 1, 1], [], []>} : vector<32x32xbf16>, vector<32x64xbf16>, vector<32x64xf32> -> vector<32x64xf32>
    %7 = arith.addf %3, %6 : vector<32x64xf32>
    %c0_6 = arith.constant 0 : index
    %c0_7 = arith.constant 0 : index
    %8 = vector.load %arg8[%c0_6, %c0_7] : memref<32x64xf32, #tpu.memory_space<vmem>>, vector<32x64xf32>
    tpu.vector_store %arg8[%c0_6, %c0_7], %7 {strides = array<i32>} : memref<32x64xf32, #tpu.memory_space<vmem>>, vector<32x64xf32>,
    %c0_i32_8 = arith.constant 0 : i32
    %9 = arith.cmpi eq, %arg2, %c0_i32_8 : i32
    %10 = arith.extui %9 : i1 to i32
    %c0_i32_9 = arith.constant 0 : i32
    %11 = arith.cmpi ne, %10, %c0_i32_9 : i32
    scf.if %11 {
      %c0_10 = arith.constant 0 : index
      %c0_11 = arith.constant 0 : index
      %12 = vector.load %arg8[%c0_10, %c0_11] : memref<32x64xf32, #tpu.memory_space<vmem>>, vector<32x64xf32>
      %c0_12 = arith.constant 0 : index
      %c0_13 = arith.constant 0 : index
      %13 = vector.load %arg5[%c0_12, %c0_13] : memref<1x64xf32, #tpu.memory_space<vmem>>, vector<1x64xf32>
      %14 = vector.broadcast %13 : vector<1x64xf32> to vector<32x64xf32>
      %15 = arith.mulf %12, %14 : vector<32x64xf32>
      %c0_14 = arith.constant 0 : index
      %c0_15 = arith.constant 0 : index
      %16 = vector.load %arg6[%c0_14, %c0_15] : memref<1x64xf32, #tpu.memory_space<vmem>>, vector<1x64xf32>
      %17 = vector.broadcast %16 : vector<1x64xf32> to vector<32x64xf32>
      %18 = arith.addf %15, %17 : vector<32x64xf32>
      %c0_16 = arith.constant 0 : index
      %c0_17 = arith.constant 0 : index
      %19 = vector.load %arg7[%c0_16, %c0_17] : memref<32x64xf32, #tpu.memory_space<vmem>>, vector<32x64xf32>
      tpu.vector_store %arg7[%c0_16, %c0_17], %18 {strides = array<i32>} : memref<32x64xf32, #tpu.memory_space<vmem>>, vector<32x64xf32>,
    } else {
    }
    return
  }
  func.func @transform_0(%arg0: i32, %arg1: i32, %arg2: i32) -> (i32, i32) {
    %c0_i32 = arith.constant 0 : i32
    return %arg0, %arg2 : i32, i32
  }
  func.func @transform_1(%arg0: i32, %arg1: i32, %arg2: i32) -> (i32, i32) {
    %c0_i32 = arith.constant 0 : i32
    return %arg2, %arg1 : i32, i32
  }
  func.func @transform_2(%arg0: i32, %arg1: i32, %arg2: i32) -> (i32, i32) {
    %c0_i32 = arith.constant 0 : i32
    %c0_i32_0 = arith.constant 0 : i32
    return %c0_i32, %arg1 : i32, i32
  }
  func.func @transform_3(%arg0: i32, %arg1: i32, %arg2: i32) -> (i32, i32) {
    %c0_i32 = arith.constant 0 : i32
    %c0_i32_0 = arith.constant 0 : i32
    return %c0_i32, %arg1 : i32, i32
  }
  func.func @transform_4(%arg0: i32, %arg1: i32, %arg2: i32) -> (i32, i32) {
    %c0_i32 = arith.constant 0 : i32
    return %arg0, %arg1 : i32, i32
  }
}

module attributes {stable_mosaic.version = 11 : i64} {
  func.func @_matmul_bn_kernel(%arg0: i32, %arg1: i32, %arg2: i32, %arg3: memref<32x64xbf16, #tpu.memory_space<vmem>>, %arg4: memref<64x32xbf16, #tpu.memory_space<vmem>>, %arg5: memref<1x32xf32, #tpu.memory_space<vmem>>, %arg6: memref<1x32xf32, #tpu.memory_space<vmem>>, %arg7: memref<32x32xf32, #tpu.memory_space<vmem>>, %arg8: memref<32x32xf32, #tpu.memory_space<vmem>>) attributes {dimension_semantics = [#tpu.dimension_semantics<parallel>, #tpu.dimension_semantics<parallel>, #tpu.dimension_semantics<arbitrary>], iteration_bounds = array<i64: 1, 1, 1>, scalar_prefetch = 0 : i64, scratch_operands = 1 : i64, tpu.core_type = #tpu.core_type<tc>, window_params = [{transform_indices = @transform_0, window_bounds = array<i64: 32, 64>}, {transform_indices = @transform_1, window_bounds = array<i64: 64, 32>}, {transform_indices = @transform_2, window_bounds = array<i64: 1, 32>}, {transform_indices = @transform_3, window_bounds = array<i64: 1, 32>}, {transform_indices = @transform_4, window_bounds = array<i64: 32, 32>}]} {
    %c0_i32 = arith.constant 0 : i32
    %0 = arith.cmpi eq, %arg2, %c0_i32 : i32
    %1 = arith.extui %0 : i1 to i32
    %c0_i32_0 = arith.constant 0 : i32
    %2 = arith.cmpi ne, %1, %c0_i32_0 : i32
    scf.if %2 {
      %cst_10 = arith.constant 0.000000e+00 : f32
      %12 = vector.broadcast %cst_10 : f32 to vector<32x32xf32>
      %c0_11 = arith.constant 0 : index
      %c0_12 = arith.constant 0 : index
      %13 = vector.load %arg8[%c0_11, %c0_12] : memref<32x32xf32, #tpu.memory_space<vmem>>, vector<32x32xf32>
      tpu.vector_store %arg8[%c0_11, %c0_12], %12 {strides = array<i32>} : memref<32x32xf32, #tpu.memory_space<vmem>>, vector<32x32xf32>,
    } else {
    }
    %c0 = arith.constant 0 : index
    %c0_1 = arith.constant 0 : index
    %3 = vector.load %arg8[%c0, %c0_1] : memref<32x32xf32, #tpu.memory_space<vmem>>, vector<32x32xf32>
    %c0_2 = arith.constant 0 : index
    %c0_3 = arith.constant 0 : index
    %4 = vector.load %arg3[%c0_2, %c0_3] : memref<32x64xbf16, #tpu.memory_space<vmem>>, vector<32x64xbf16>
    %c0_4 = arith.constant 0 : index
    %c0_5 = arith.constant 0 : index
    %5 = vector.load %arg4[%c0_4, %c0_5] : memref<64x32xbf16, #tpu.memory_space<vmem>>, vector<64x32xbf16>
    %cst = arith.constant dense<0.000000e+00> : vector<32x32xf32>
    %6 = tpu.matmul %4, %5, %cst {dimension_numbers = #tpu.dot_dimension_numbers<[1], [0], [0], [1], [0, 0, 1, 1], [], []>} : vector<32x64xbf16>, vector<64x32xbf16>, vector<32x32xf32> -> vector<32x32xf32>
    %7 = arith.addf %3, %6 : vector<32x32xf32>
    %c0_6 = arith.constant 0 : index
    %c0_7 = arith.constant 0 : index
    %8 = vector.load %arg8[%c0_6, %c0_7] : memref<32x32xf32, #tpu.memory_space<vmem>>, vector<32x32xf32>
    tpu.vector_store %arg8[%c0_6, %c0_7], %7 {strides = array<i32>} : memref<32x32xf32, #tpu.memory_space<vmem>>, vector<32x32xf32>,
    %c0_i32_8 = arith.constant 0 : i32
    %9 = arith.cmpi eq, %arg2, %c0_i32_8 : i32
    %10 = arith.extui %9 : i1 to i32
    %c0_i32_9 = arith.constant 0 : i32
    %11 = arith.cmpi ne, %10, %c0_i32_9 : i32
    scf.if %11 {
      %c0_10 = arith.constant 0 : index
      %c0_11 = arith.constant 0 : index
      %12 = vector.load %arg8[%c0_10, %c0_11] : memref<32x32xf32, #tpu.memory_space<vmem>>, vector<32x32xf32>
      %c0_12 = arith.constant 0 : index
      %c0_13 = arith.constant 0 : index
      %13 = vector.load %arg5[%c0_12, %c0_13] : memref<1x32xf32, #tpu.memory_space<vmem>>, vector<1x32xf32>
      %14 = vector.broadcast %13 : vector<1x32xf32> to vector<32x32xf32>
      %15 = arith.mulf %12, %14 : vector<32x32xf32>
      %c0_14 = arith.constant 0 : index
      %c0_15 = arith.constant 0 : index
      %16 = vector.load %arg6[%c0_14, %c0_15] : memref<1x32xf32, #tpu.memory_space<vmem>>, vector<1x32xf32>
      %17 = vector.broadcast %16 : vector<1x32xf32> to vector<32x32xf32>
      %18 = arith.addf %15, %17 : vector<32x32xf32>
      %cst_16 = arith.constant 0.000000e+00 : f32
      %19 = vector.broadcast %cst_16 : f32 to vector<32x32xf32>
      %20 = arith.maximumf %18, %19 : vector<32x32xf32>
      %c0_17 = arith.constant 0 : index
      %c0_18 = arith.constant 0 : index
      %21 = vector.load %arg7[%c0_17, %c0_18] : memref<32x32xf32, #tpu.memory_space<vmem>>, vector<32x32xf32>
      tpu.vector_store %arg7[%c0_17, %c0_18], %20 {strides = array<i32>} : memref<32x32xf32, #tpu.memory_space<vmem>>, vector<32x32xf32>,
    } else {
    }
    return
  }
  func.func @transform_0(%arg0: i32, %arg1: i32, %arg2: i32) -> (i32, i32) {
    %c0_i32 = arith.constant 0 : i32
    return %arg0, %arg2 : i32, i32
  }
  func.func @transform_1(%arg0: i32, %arg1: i32, %arg2: i32) -> (i32, i32) {
    %c0_i32 = arith.constant 0 : i32
    return %arg2, %arg1 : i32, i32
  }
  func.func @transform_2(%arg0: i32, %arg1: i32, %arg2: i32) -> (i32, i32) {
    %c0_i32 = arith.constant 0 : i32
    %c0_i32_0 = arith.constant 0 : i32
    return %c0_i32, %arg1 : i32, i32
  }
  func.func @transform_3(%arg0: i32, %arg1: i32, %arg2: i32) -> (i32, i32) {
    %c0_i32 = arith.constant 0 : i32
    %c0_i32_0 = arith.constant 0 : i32
    return %c0_i32, %arg1 : i32, i32
  }
  func.func @transform_4(%arg0: i32, %arg1: i32, %arg2: i32) -> (i32, i32) {
    %c0_i32 = arith.constant 0 : i32
    return %arg0, %arg1 : i32, i32
  }
}

module attributes {stable_mosaic.version = 11 : i64} {
  func.func @_matmul_bn_kernel(%arg0: i32, %arg1: i32, %arg2: i32, %arg3: memref<32x32xbf16, #tpu.memory_space<vmem>>, %arg4: memref<32x64xbf16, #tpu.memory_space<vmem>>, %arg5: memref<1x64xf32, #tpu.memory_space<vmem>>, %arg6: memref<1x64xf32, #tpu.memory_space<vmem>>, %arg7: memref<32x64xf32, #tpu.memory_space<vmem>>, %arg8: memref<32x64xf32, #tpu.memory_space<vmem>>) attributes {dimension_semantics = [#tpu.dimension_semantics<parallel>, #tpu.dimension_semantics<parallel>, #tpu.dimension_semantics<arbitrary>], iteration_bounds = array<i64: 1, 1, 1>, scalar_prefetch = 0 : i64, scratch_operands = 1 : i64, tpu.core_type = #tpu.core_type<tc>, window_params = [{transform_indices = @transform_0, window_bounds = array<i64: 32, 32>}, {transform_indices = @transform_1, window_bounds = array<i64: 32, 64>}, {transform_indices = @transform_2, window_bounds = array<i64: 1, 64>}, {transform_indices = @transform_3, window_bounds = array<i64: 1, 64>}, {transform_indices = @transform_4, window_bounds = array<i64: 32, 64>}]} {
    %c0_i32 = arith.constant 0 : i32
    %0 = arith.cmpi eq, %arg2, %c0_i32 : i32
    %1 = arith.extui %0 : i1 to i32
    %c0_i32_0 = arith.constant 0 : i32
    %2 = arith.cmpi ne, %1, %c0_i32_0 : i32
    scf.if %2 {
      %cst_10 = arith.constant 0.000000e+00 : f32
      %12 = vector.broadcast %cst_10 : f32 to vector<32x64xf32>
      %c0_11 = arith.constant 0 : index
      %c0_12 = arith.constant 0 : index
      %13 = vector.load %arg8[%c0_11, %c0_12] : memref<32x64xf32, #tpu.memory_space<vmem>>, vector<32x64xf32>
      tpu.vector_store %arg8[%c0_11, %c0_12], %12 {strides = array<i32>} : memref<32x64xf32, #tpu.memory_space<vmem>>, vector<32x64xf32>,
    } else {
    }
    %c0 = arith.constant 0 : index
    %c0_1 = arith.constant 0 : index
    %3 = vector.load %arg8[%c0, %c0_1] : memref<32x64xf32, #tpu.memory_space<vmem>>, vector<32x64xf32>
    %c0_2 = arith.constant 0 : index
    %c0_3 = arith.constant 0 : index
    %4 = vector.load %arg3[%c0_2, %c0_3] : memref<32x32xbf16, #tpu.memory_space<vmem>>, vector<32x32xbf16>
    %c0_4 = arith.constant 0 : index
    %c0_5 = arith.constant 0 : index
    %5 = vector.load %arg4[%c0_4, %c0_5] : memref<32x64xbf16, #tpu.memory_space<vmem>>, vector<32x64xbf16>
    %cst = arith.constant dense<0.000000e+00> : vector<32x64xf32>
    %6 = tpu.matmul %4, %5, %cst {dimension_numbers = #tpu.dot_dimension_numbers<[1], [0], [0], [1], [0, 0, 1, 1], [], []>} : vector<32x32xbf16>, vector<32x64xbf16>, vector<32x64xf32> -> vector<32x64xf32>
    %7 = arith.addf %3, %6 : vector<32x64xf32>
    %c0_6 = arith.constant 0 : index
    %c0_7 = arith.constant 0 : index
    %8 = vector.load %arg8[%c0_6, %c0_7] : memref<32x64xf32, #tpu.memory_space<vmem>>, vector<32x64xf32>
    tpu.vector_store %arg8[%c0_6, %c0_7], %7 {strides = array<i32>} : memref<32x64xf32, #tpu.memory_space<vmem>>, vector<32x64xf32>,
    %c0_i32_8 = arith.constant 0 : i32
    %9 = arith.cmpi eq, %arg2, %c0_i32_8 : i32
    %10 = arith.extui %9 : i1 to i32
    %c0_i32_9 = arith.constant 0 : i32
    %11 = arith.cmpi ne, %10, %c0_i32_9 : i32
    scf.if %11 {
      %c0_10 = arith.constant 0 : index
      %c0_11 = arith.constant 0 : index
      %12 = vector.load %arg8[%c0_10, %c0_11] : memref<32x64xf32, #tpu.memory_space<vmem>>, vector<32x64xf32>
      %c0_12 = arith.constant 0 : index
      %c0_13 = arith.constant 0 : index
      %13 = vector.load %arg5[%c0_12, %c0_13] : memref<1x64xf32, #tpu.memory_space<vmem>>, vector<1x64xf32>
      %14 = vector.broadcast %13 : vector<1x64xf32> to vector<32x64xf32>
      %15 = arith.mulf %12, %14 : vector<32x64xf32>
      %c0_14 = arith.constant 0 : index
      %c0_15 = arith.constant 0 : index
      %16 = vector.load %arg6[%c0_14, %c0_15] : memref<1x64xf32, #tpu.memory_space<vmem>>, vector<1x64xf32>
      %17 = vector.broadcast %16 : vector<1x64xf32> to vector<32x64xf32>
      %18 = arith.addf %15, %17 : vector<32x64xf32>
      %c0_16 = arith.constant 0 : index
      %c0_17 = arith.constant 0 : index
      %19 = vector.load %arg7[%c0_16, %c0_17] : memref<32x64xf32, #tpu.memory_space<vmem>>, vector<32x64xf32>
      tpu.vector_store %arg7[%c0_16, %c0_17], %18 {strides = array<i32>} : memref<32x64xf32, #tpu.memory_space<vmem>>, vector<32x64xf32>,
    } else {
    }
    return
  }
  func.func @transform_0(%arg0: i32, %arg1: i32, %arg2: i32) -> (i32, i32) {
    %c0_i32 = arith.constant 0 : i32
    return %arg0, %arg2 : i32, i32
  }
  func.func @transform_1(%arg0: i32, %arg1: i32, %arg2: i32) -> (i32, i32) {
    %c0_i32 = arith.constant 0 : i32
    return %arg2, %arg1 : i32, i32
  }
  func.func @transform_2(%arg0: i32, %arg1: i32, %arg2: i32) -> (i32, i32) {
    %c0_i32 = arith.constant 0 : i32
    %c0_i32_0 = arith.constant 0 : i32
    return %c0_i32, %arg1 : i32, i32
  }
  func.func @transform_3(%arg0: i32, %arg1: i32, %arg2: i32) -> (i32, i32) {
    %c0_i32 = arith.constant 0 : i32
    %c0_i32_0 = arith.constant 0 : i32
    return %c0_i32, %arg1 : i32, i32
  }
  func.func @transform_4(%arg0: i32, %arg1: i32, %arg2: i32) -> (i32, i32) {
    %c0_i32 = arith.constant 0 : i32
    return %arg0, %arg1 : i32, i32
  }
}

module attributes {stable_mosaic.version = 11 : i64} {
  func.func @_matmul_bn_kernel(%arg0: i32, %arg1: i32, %arg2: i32, %arg3: memref<32x32xbf16, #tpu.memory_space<vmem>>, %arg4: memref<32x64xbf16, #tpu.memory_space<vmem>>, %arg5: memref<1x64xf32, #tpu.memory_space<vmem>>, %arg6: memref<1x64xf32, #tpu.memory_space<vmem>>, %arg7: memref<32x64xf32, #tpu.memory_space<vmem>>, %arg8: memref<32x64xf32, #tpu.memory_space<vmem>>) attributes {dimension_semantics = [#tpu.dimension_semantics<parallel>, #tpu.dimension_semantics<parallel>, #tpu.dimension_semantics<arbitrary>], iteration_bounds = array<i64: 1, 1, 1>, scalar_prefetch = 0 : i64, scratch_operands = 1 : i64, tpu.core_type = #tpu.core_type<tc>, window_params = [{transform_indices = @transform_0, window_bounds = array<i64: 32, 32>}, {transform_indices = @transform_1, window_bounds = array<i64: 32, 64>}, {transform_indices = @transform_2, window_bounds = array<i64: 1, 64>}, {transform_indices = @transform_3, window_bounds = array<i64: 1, 64>}, {transform_indices = @transform_4, window_bounds = array<i64: 32, 64>}]} {
    %c0_i32 = arith.constant 0 : i32
    %0 = arith.cmpi eq, %arg2, %c0_i32 : i32
    %1 = arith.extui %0 : i1 to i32
    %c0_i32_0 = arith.constant 0 : i32
    %2 = arith.cmpi ne, %1, %c0_i32_0 : i32
    scf.if %2 {
      %cst_10 = arith.constant 0.000000e+00 : f32
      %12 = vector.broadcast %cst_10 : f32 to vector<32x64xf32>
      %c0_11 = arith.constant 0 : index
      %c0_12 = arith.constant 0 : index
      %13 = vector.load %arg8[%c0_11, %c0_12] : memref<32x64xf32, #tpu.memory_space<vmem>>, vector<32x64xf32>
      tpu.vector_store %arg8[%c0_11, %c0_12], %12 {strides = array<i32>} : memref<32x64xf32, #tpu.memory_space<vmem>>, vector<32x64xf32>,
    } else {
    }
    %c0 = arith.constant 0 : index
    %c0_1 = arith.constant 0 : index
    %3 = vector.load %arg8[%c0, %c0_1] : memref<32x64xf32, #tpu.memory_space<vmem>>, vector<32x64xf32>
    %c0_2 = arith.constant 0 : index
    %c0_3 = arith.constant 0 : index
    %4 = vector.load %arg3[%c0_2, %c0_3] : memref<32x32xbf16, #tpu.memory_space<vmem>>, vector<32x32xbf16>
    %c0_4 = arith.constant 0 : index
    %c0_5 = arith.constant 0 : index
    %5 = vector.load %arg4[%c0_4, %c0_5] : memref<32x64xbf16, #tpu.memory_space<vmem>>, vector<32x64xbf16>
    %cst = arith.constant dense<0.000000e+00> : vector<32x64xf32>
    %6 = tpu.matmul %4, %5, %cst {dimension_numbers = #tpu.dot_dimension_numbers<[1], [0], [0], [1], [0, 0, 1, 1], [], []>} : vector<32x32xbf16>, vector<32x64xbf16>, vector<32x64xf32> -> vector<32x64xf32>
    %7 = arith.addf %3, %6 : vector<32x64xf32>
    %c0_6 = arith.constant 0 : index
    %c0_7 = arith.constant 0 : index
    %8 = vector.load %arg8[%c0_6, %c0_7] : memref<32x64xf32, #tpu.memory_space<vmem>>, vector<32x64xf32>
    tpu.vector_store %arg8[%c0_6, %c0_7], %7 {strides = array<i32>} : memref<32x64xf32, #tpu.memory_space<vmem>>, vector<32x64xf32>,
    %c0_i32_8 = arith.constant 0 : i32
    %9 = arith.cmpi eq, %arg2, %c0_i32_8 : i32
    %10 = arith.extui %9 : i1 to i32
    %c0_i32_9 = arith.constant 0 : i32
    %11 = arith.cmpi ne, %10, %c0_i32_9 : i32
    scf.if %11 {
      %c0_10 = arith.constant 0 : index
      %c0_11 = arith.constant 0 : index
      %12 = vector.load %arg8[%c0_10, %c0_11] : memref<32x64xf32, #tpu.memory_space<vmem>>, vector<32x64xf32>
      %c0_12 = arith.constant 0 : index
      %c0_13 = arith.constant 0 : index
      %13 = vector.load %arg5[%c0_12, %c0_13] : memref<1x64xf32, #tpu.memory_space<vmem>>, vector<1x64xf32>
      %14 = vector.broadcast %13 : vector<1x64xf32> to vector<32x64xf32>
      %15 = arith.mulf %12, %14 : vector<32x64xf32>
      %c0_14 = arith.constant 0 : index
      %c0_15 = arith.constant 0 : index
      %16 = vector.load %arg6[%c0_14, %c0_15] : memref<1x64xf32, #tpu.memory_space<vmem>>, vector<1x64xf32>
      %17 = vector.broadcast %16 : vector<1x64xf32> to vector<32x64xf32>
      %18 = arith.addf %15, %17 : vector<32x64xf32>
      %c0_16 = arith.constant 0 : index
      %c0_17 = arith.constant 0 : index
      %19 = vector.load %arg7[%c0_16, %c0_17] : memref<32x64xf32, #tpu.memory_space<vmem>>, vector<32x64xf32>
      tpu.vector_store %arg7[%c0_16, %c0_17], %18 {strides = array<i32>} : memref<32x64xf32, #tpu.memory_space<vmem>>, vector<32x64xf32>,
    } else {
    }
    return
  }
  func.func @transform_0(%arg0: i32, %arg1: i32, %arg2: i32) -> (i32, i32) {
    %c0_i32 = arith.constant 0 : i32
    return %arg0, %arg2 : i32, i32
  }
  func.func @transform_1(%arg0: i32, %arg1: i32, %arg2: i32) -> (i32, i32) {
    %c0_i32 = arith.constant 0 : i32
    return %arg2, %arg1 : i32, i32
  }
  func.func @transform_2(%arg0: i32, %arg1: i32, %arg2: i32) -> (i32, i32) {
    %c0_i32 = arith.constant 0 : i32
    %c0_i32_0 = arith.constant 0 : i32
    return %c0_i32, %arg1 : i32, i32
  }
  func.func @transform_3(%arg0: i32, %arg1: i32, %arg2: i32) -> (i32, i32) {
    %c0_i32 = arith.constant 0 : i32
    %c0_i32_0 = arith.constant 0 : i32
    return %c0_i32, %arg1 : i32, i32
  }
  func.func @transform_4(%arg0: i32, %arg1: i32, %arg2: i32) -> (i32, i32) {
    %c0_i32 = arith.constant 0 : i32
    return %arg0, %arg1 : i32, i32
  }
}

module attributes {stable_mosaic.version = 11 : i64} {
  func.func @_matmul_bn_kernel(%arg0: i32, %arg1: i32, %arg2: i32, %arg3: memref<32x64xbf16, #tpu.memory_space<vmem>>, %arg4: memref<64x32xbf16, #tpu.memory_space<vmem>>, %arg5: memref<1x32xf32, #tpu.memory_space<vmem>>, %arg6: memref<1x32xf32, #tpu.memory_space<vmem>>, %arg7: memref<32x32xf32, #tpu.memory_space<vmem>>, %arg8: memref<32x32xf32, #tpu.memory_space<vmem>>) attributes {dimension_semantics = [#tpu.dimension_semantics<parallel>, #tpu.dimension_semantics<parallel>, #tpu.dimension_semantics<arbitrary>], iteration_bounds = array<i64: 1, 1, 1>, scalar_prefetch = 0 : i64, scratch_operands = 1 : i64, tpu.core_type = #tpu.core_type<tc>, window_params = [{transform_indices = @transform_0, window_bounds = array<i64: 32, 64>}, {transform_indices = @transform_1, window_bounds = array<i64: 64, 32>}, {transform_indices = @transform_2, window_bounds = array<i64: 1, 32>}, {transform_indices = @transform_3, window_bounds = array<i64: 1, 32>}, {transform_indices = @transform_4, window_bounds = array<i64: 32, 32>}]} {
    %c0_i32 = arith.constant 0 : i32
    %0 = arith.cmpi eq, %arg2, %c0_i32 : i32
    %1 = arith.extui %0 : i1 to i32
    %c0_i32_0 = arith.constant 0 : i32
    %2 = arith.cmpi ne, %1, %c0_i32_0 : i32
    scf.if %2 {
      %cst_10 = arith.constant 0.000000e+00 : f32
      %12 = vector.broadcast %cst_10 : f32 to vector<32x32xf32>
      %c0_11 = arith.constant 0 : index
      %c0_12 = arith.constant 0 : index
      %13 = vector.load %arg8[%c0_11, %c0_12] : memref<32x32xf32, #tpu.memory_space<vmem>>, vector<32x32xf32>
      tpu.vector_store %arg8[%c0_11, %c0_12], %12 {strides = array<i32>} : memref<32x32xf32, #tpu.memory_space<vmem>>, vector<32x32xf32>,
    } else {
    }
    %c0 = arith.constant 0 : index
    %c0_1 = arith.constant 0 : index
    %3 = vector.load %arg8[%c0, %c0_1] : memref<32x32xf32, #tpu.memory_space<vmem>>, vector<32x32xf32>
    %c0_2 = arith.constant 0 : index
    %c0_3 = arith.constant 0 : index
    %4 = vector.load %arg3[%c0_2, %c0_3] : memref<32x64xbf16, #tpu.memory_space<vmem>>, vector<32x64xbf16>
    %c0_4 = arith.constant 0 : index
    %c0_5 = arith.constant 0 : index
    %5 = vector.load %arg4[%c0_4, %c0_5] : memref<64x32xbf16, #tpu.memory_space<vmem>>, vector<64x32xbf16>
    %cst = arith.constant dense<0.000000e+00> : vector<32x32xf32>
    %6 = tpu.matmul %4, %5, %cst {dimension_numbers = #tpu.dot_dimension_numbers<[1], [0], [0], [1], [0, 0, 1, 1], [], []>} : vector<32x64xbf16>, vector<64x32xbf16>, vector<32x32xf32> -> vector<32x32xf32>
    %7 = arith.addf %3, %6 : vector<32x32xf32>
    %c0_6 = arith.constant 0 : index
    %c0_7 = arith.constant 0 : index
    %8 = vector.load %arg8[%c0_6, %c0_7] : memref<32x32xf32, #tpu.memory_space<vmem>>, vector<32x32xf32>
    tpu.vector_store %arg8[%c0_6, %c0_7], %7 {strides = array<i32>} : memref<32x32xf32, #tpu.memory_space<vmem>>, vector<32x32xf32>,
    %c0_i32_8 = arith.constant 0 : i32
    %9 = arith.cmpi eq, %arg2, %c0_i32_8 : i32
    %10 = arith.extui %9 : i1 to i32
    %c0_i32_9 = arith.constant 0 : i32
    %11 = arith.cmpi ne, %10, %c0_i32_9 : i32
    scf.if %11 {
      %c0_10 = arith.constant 0 : index
      %c0_11 = arith.constant 0 : index
      %12 = vector.load %arg8[%c0_10, %c0_11] : memref<32x32xf32, #tpu.memory_space<vmem>>, vector<32x32xf32>
      %c0_12 = arith.constant 0 : index
      %c0_13 = arith.constant 0 : index
      %13 = vector.load %arg5[%c0_12, %c0_13] : memref<1x32xf32, #tpu.memory_space<vmem>>, vector<1x32xf32>
      %14 = vector.broadcast %13 : vector<1x32xf32> to vector<32x32xf32>
      %15 = arith.mulf %12, %14 : vector<32x32xf32>
      %c0_14 = arith.constant 0 : index
      %c0_15 = arith.constant 0 : index
      %16 = vector.load %arg6[%c0_14, %c0_15] : memref<1x32xf32, #tpu.memory_space<vmem>>, vector<1x32xf32>
      %17 = vector.broadcast %16 : vector<1x32xf32> to vector<32x32xf32>
      %18 = arith.addf %15, %17 : vector<32x32xf32>
      %cst_16 = arith.constant 0.000000e+00 : f32
      %19 = vector.broadcast %cst_16 : f32 to vector<32x32xf32>
      %20 = arith.maximumf %18, %19 : vector<32x32xf32>
      %c0_17 = arith.constant 0 : index
      %c0_18 = arith.constant 0 : index
      %21 = vector.load %arg7[%c0_17, %c0_18] : memref<32x32xf32, #tpu.memory_space<vmem>>, vector<32x32xf32>
      tpu.vector_store %arg7[%c0_17, %c0_18], %20 {strides = array<i32>} : memref<32x32xf32, #tpu.memory_space<vmem>>, vector<32x32xf32>,
    } else {
    }
    return
  }
  func.func @transform_0(%arg0: i32, %arg1: i32, %arg2: i32) -> (i32, i32) {
    %c0_i32 = arith.constant 0 : i32
    return %arg0, %arg2 : i32, i32
  }
  func.func @transform_1(%arg0: i32, %arg1: i32, %arg2: i32) -> (i32, i32) {
    %c0_i32 = arith.constant 0 : i32
    return %arg2, %arg1 : i32, i32
  }
  func.func @transform_2(%arg0: i32, %arg1: i32, %arg2: i32) -> (i32, i32) {
    %c0_i32 = arith.constant 0 : i32
    %c0_i32_0 = arith.constant 0 : i32
    return %c0_i32, %arg1 : i32, i32
  }
  func.func @transform_3(%arg0: i32, %arg1: i32, %arg2: i32) -> (i32, i32) {
    %c0_i32 = arith.constant 0 : i32
    %c0_i32_0 = arith.constant 0 : i32
    return %c0_i32, %arg1 : i32, i32
  }
  func.func @transform_4(%arg0: i32, %arg1: i32, %arg2: i32) -> (i32, i32) {
    %c0_i32 = arith.constant 0 : i32
    return %arg0, %arg1 : i32, i32
  }
}

module attributes {stable_mosaic.version = 11 : i64} {
  func.func @_matmul_bn_kernel(%arg0: i32, %arg1: i32, %arg2: i32, %arg3: memref<32x64xbf16, #tpu.memory_space<vmem>>, %arg4: memref<64x64xbf16, #tpu.memory_space<vmem>>, %arg5: memref<1x64xf32, #tpu.memory_space<vmem>>, %arg6: memref<1x64xf32, #tpu.memory_space<vmem>>, %arg7: memref<32x64xf32, #tpu.memory_space<vmem>>, %arg8: memref<32x64xf32, #tpu.memory_space<vmem>>) attributes {dimension_semantics = [#tpu.dimension_semantics<parallel>, #tpu.dimension_semantics<parallel>, #tpu.dimension_semantics<arbitrary>], iteration_bounds = array<i64: 1, 1, 1>, scalar_prefetch = 0 : i64, scratch_operands = 1 : i64, tpu.core_type = #tpu.core_type<tc>, window_params = [{transform_indices = @transform_0, window_bounds = array<i64: 32, 64>}, {transform_indices = @transform_1, window_bounds = array<i64: 64, 64>}, {transform_indices = @transform_2, window_bounds = array<i64: 1, 64>}, {transform_indices = @transform_3, window_bounds = array<i64: 1, 64>}, {transform_indices = @transform_4, window_bounds = array<i64: 32, 64>}]} {
    %c0_i32 = arith.constant 0 : i32
    %0 = arith.cmpi eq, %arg2, %c0_i32 : i32
    %1 = arith.extui %0 : i1 to i32
    %c0_i32_0 = arith.constant 0 : i32
    %2 = arith.cmpi ne, %1, %c0_i32_0 : i32
    scf.if %2 {
      %cst_10 = arith.constant 0.000000e+00 : f32
      %12 = vector.broadcast %cst_10 : f32 to vector<32x64xf32>
      %c0_11 = arith.constant 0 : index
      %c0_12 = arith.constant 0 : index
      %13 = vector.load %arg8[%c0_11, %c0_12] : memref<32x64xf32, #tpu.memory_space<vmem>>, vector<32x64xf32>
      tpu.vector_store %arg8[%c0_11, %c0_12], %12 {strides = array<i32>} : memref<32x64xf32, #tpu.memory_space<vmem>>, vector<32x64xf32>,
    } else {
    }
    %c0 = arith.constant 0 : index
    %c0_1 = arith.constant 0 : index
    %3 = vector.load %arg8[%c0, %c0_1] : memref<32x64xf32, #tpu.memory_space<vmem>>, vector<32x64xf32>
    %c0_2 = arith.constant 0 : index
    %c0_3 = arith.constant 0 : index
    %4 = vector.load %arg3[%c0_2, %c0_3] : memref<32x64xbf16, #tpu.memory_space<vmem>>, vector<32x64xbf16>
    %c0_4 = arith.constant 0 : index
    %c0_5 = arith.constant 0 : index
    %5 = vector.load %arg4[%c0_4, %c0_5] : memref<64x64xbf16, #tpu.memory_space<vmem>>, vector<64x64xbf16>
    %cst = arith.constant dense<0.000000e+00> : vector<32x64xf32>
    %6 = tpu.matmul %4, %5, %cst {dimension_numbers = #tpu.dot_dimension_numbers<[1], [0], [0], [1], [0, 0, 1, 1], [], []>} : vector<32x64xbf16>, vector<64x64xbf16>, vector<32x64xf32> -> vector<32x64xf32>
    %7 = arith.addf %3, %6 : vector<32x64xf32>
    %c0_6 = arith.constant 0 : index
    %c0_7 = arith.constant 0 : index
    %8 = vector.load %arg8[%c0_6, %c0_7] : memref<32x64xf32, #tpu.memory_space<vmem>>, vector<32x64xf32>
    tpu.vector_store %arg8[%c0_6, %c0_7], %7 {strides = array<i32>} : memref<32x64xf32, #tpu.memory_space<vmem>>, vector<32x64xf32>,
    %c0_i32_8 = arith.constant 0 : i32
    %9 = arith.cmpi eq, %arg2, %c0_i32_8 : i32
    %10 = arith.extui %9 : i1 to i32
    %c0_i32_9 = arith.constant 0 : i32
    %11 = arith.cmpi ne, %10, %c0_i32_9 : i32
    scf.if %11 {
      %c0_10 = arith.constant 0 : index
      %c0_11 = arith.constant 0 : index
      %12 = vector.load %arg8[%c0_10, %c0_11] : memref<32x64xf32, #tpu.memory_space<vmem>>, vector<32x64xf32>
      %c0_12 = arith.constant 0 : index
      %c0_13 = arith.constant 0 : index
      %13 = vector.load %arg5[%c0_12, %c0_13] : memref<1x64xf32, #tpu.memory_space<vmem>>, vector<1x64xf32>
      %14 = vector.broadcast %13 : vector<1x64xf32> to vector<32x64xf32>
      %15 = arith.mulf %12, %14 : vector<32x64xf32>
      %c0_14 = arith.constant 0 : index
      %c0_15 = arith.constant 0 : index
      %16 = vector.load %arg6[%c0_14, %c0_15] : memref<1x64xf32, #tpu.memory_space<vmem>>, vector<1x64xf32>
      %17 = vector.broadcast %16 : vector<1x64xf32> to vector<32x64xf32>
      %18 = arith.addf %15, %17 : vector<32x64xf32>
      %cst_16 = arith.constant 0.000000e+00 : f32
      %19 = vector.broadcast %cst_16 : f32 to vector<32x64xf32>
      %20 = arith.maximumf %18, %19 : vector<32x64xf32>
      %c0_17 = arith.constant 0 : index
      %c0_18 = arith.constant 0 : index
      %21 = vector.load %arg7[%c0_17, %c0_18] : memref<32x64xf32, #tpu.memory_space<vmem>>, vector<32x64xf32>
      tpu.vector_store %arg7[%c0_17, %c0_18], %20 {strides = array<i32>} : memref<32x64xf32, #tpu.memory_space<vmem>>, vector<32x64xf32>,
    } else {
    }
    return
  }
  func.func @transform_0(%arg0: i32, %arg1: i32, %arg2: i32) -> (i32, i32) {
    %c0_i32 = arith.constant 0 : i32
    return %arg0, %arg2 : i32, i32
  }
  func.func @transform_1(%arg0: i32, %arg1: i32, %arg2: i32) -> (i32, i32) {
    %c0_i32 = arith.constant 0 : i32
    return %arg2, %arg1 : i32, i32
  }
  func.func @transform_2(%arg0: i32, %arg1: i32, %arg2: i32) -> (i32, i32) {
    %c0_i32 = arith.constant 0 : i32
    %c0_i32_0 = arith.constant 0 : i32
    return %c0_i32, %arg1 : i32, i32
  }
  func.func @transform_3(%arg0: i32, %arg1: i32, %arg2: i32) -> (i32, i32) {
    %c0_i32 = arith.constant 0 : i32
    %c0_i32_0 = arith.constant 0 : i32
    return %c0_i32, %arg1 : i32, i32
  }
  func.func @transform_4(%arg0: i32, %arg1: i32, %arg2: i32) -> (i32, i32) {
    %c0_i32 = arith.constant 0 : i32
    return %arg0, %arg1 : i32, i32
  }
}

module attributes {stable_mosaic.version = 11 : i64} {
  func.func @_matmul_bn_kernel(%arg0: i32, %arg1: i32, %arg2: i32, %arg3: memref<8x64xbf16, #tpu.memory_space<vmem>>, %arg4: memref<64x128xbf16, #tpu.memory_space<vmem>>, %arg5: memref<1x128xf32, #tpu.memory_space<vmem>>, %arg6: memref<1x128xf32, #tpu.memory_space<vmem>>, %arg7: memref<8x128xf32, #tpu.memory_space<vmem>>, %arg8: memref<8x128xf32, #tpu.memory_space<vmem>>) attributes {dimension_semantics = [#tpu.dimension_semantics<parallel>, #tpu.dimension_semantics<parallel>, #tpu.dimension_semantics<arbitrary>], iteration_bounds = array<i64: 1, 1, 1>, scalar_prefetch = 0 : i64, scratch_operands = 1 : i64, tpu.core_type = #tpu.core_type<tc>, window_params = [{transform_indices = @transform_0, window_bounds = array<i64: 8, 64>}, {transform_indices = @transform_1, window_bounds = array<i64: 64, 128>}, {transform_indices = @transform_2, window_bounds = array<i64: 1, 128>}, {transform_indices = @transform_3, window_bounds = array<i64: 1, 128>}, {transform_indices = @transform_4, window_bounds = array<i64: 8, 128>}]} {
    %c0_i32 = arith.constant 0 : i32
    %0 = arith.cmpi eq, %arg2, %c0_i32 : i32
    %1 = arith.extui %0 : i1 to i32
    %c0_i32_0 = arith.constant 0 : i32
    %2 = arith.cmpi ne, %1, %c0_i32_0 : i32
    scf.if %2 {
      %cst_10 = arith.constant 0.000000e+00 : f32
      %12 = vector.broadcast %cst_10 : f32 to vector<8x128xf32>
      %c0_11 = arith.constant 0 : index
      %c0_12 = arith.constant 0 : index
      %13 = vector.load %arg8[%c0_11, %c0_12] : memref<8x128xf32, #tpu.memory_space<vmem>>, vector<8x128xf32>
      tpu.vector_store %arg8[%c0_11, %c0_12], %12 {strides = array<i32>} : memref<8x128xf32, #tpu.memory_space<vmem>>, vector<8x128xf32>,
    } else {
    }
    %c0 = arith.constant 0 : index
    %c0_1 = arith.constant 0 : index
    %3 = vector.load %arg8[%c0, %c0_1] : memref<8x128xf32, #tpu.memory_space<vmem>>, vector<8x128xf32>
    %c0_2 = arith.constant 0 : index
    %c0_3 = arith.constant 0 : index
    %4 = vector.load %arg3[%c0_2, %c0_3] : memref<8x64xbf16, #tpu.memory_space<vmem>>, vector<8x64xbf16>
    %c0_4 = arith.constant 0 : index
    %c0_5 = arith.constant 0 : index
    %5 = vector.load %arg4[%c0_4, %c0_5] : memref<64x128xbf16, #tpu.memory_space<vmem>>, vector<64x128xbf16>
    %cst = arith.constant dense<0.000000e+00> : vector<8x128xf32>
    %6 = tpu.matmul %4, %5, %cst {dimension_numbers = #tpu.dot_dimension_numbers<[1], [0], [0], [1], [0, 0, 1, 1], [], []>} : vector<8x64xbf16>, vector<64x128xbf16>, vector<8x128xf32> -> vector<8x128xf32>
    %7 = arith.addf %3, %6 : vector<8x128xf32>
    %c0_6 = arith.constant 0 : index
    %c0_7 = arith.constant 0 : index
    %8 = vector.load %arg8[%c0_6, %c0_7] : memref<8x128xf32, #tpu.memory_space<vmem>>, vector<8x128xf32>
    tpu.vector_store %arg8[%c0_6, %c0_7], %7 {strides = array<i32>} : memref<8x128xf32, #tpu.memory_space<vmem>>, vector<8x128xf32>,
    %c0_i32_8 = arith.constant 0 : i32
    %9 = arith.cmpi eq, %arg2, %c0_i32_8 : i32
    %10 = arith.extui %9 : i1 to i32
    %c0_i32_9 = arith.constant 0 : i32
    %11 = arith.cmpi ne, %10, %c0_i32_9 : i32
    scf.if %11 {
      %c0_10 = arith.constant 0 : index
      %c0_11 = arith.constant 0 : index
      %12 = vector.load %arg8[%c0_10, %c0_11] : memref<8x128xf32, #tpu.memory_space<vmem>>, vector<8x128xf32>
      %c0_12 = arith.constant 0 : index
      %c0_13 = arith.constant 0 : index
      %13 = vector.load %arg5[%c0_12, %c0_13] : memref<1x128xf32, #tpu.memory_space<vmem>>, vector<1x128xf32>
      %14 = vector.broadcast %13 : vector<1x128xf32> to vector<8x128xf32>
      %15 = arith.mulf %12, %14 : vector<8x128xf32>
      %c0_14 = arith.constant 0 : index
      %c0_15 = arith.constant 0 : index
      %16 = vector.load %arg6[%c0_14, %c0_15] : memref<1x128xf32, #tpu.memory_space<vmem>>, vector<1x128xf32>
      %17 = vector.broadcast %16 : vector<1x128xf32> to vector<8x128xf32>
      %18 = arith.addf %15, %17 : vector<8x128xf32>
      %c0_16 = arith.constant 0 : index
      %c0_17 = arith.constant 0 : index
      %19 = vector.load %arg7[%c0_16, %c0_17] : memref<8x128xf32, #tpu.memory_space<vmem>>, vector<8x128xf32>
      tpu.vector_store %arg7[%c0_16, %c0_17], %18 {strides = array<i32>} : memref<8x128xf32, #tpu.memory_space<vmem>>, vector<8x128xf32>,
    } else {
    }
    return
  }
  func.func @transform_0(%arg0: i32, %arg1: i32, %arg2: i32) -> (i32, i32) {
    %c0_i32 = arith.constant 0 : i32
    return %arg0, %arg2 : i32, i32
  }
  func.func @transform_1(%arg0: i32, %arg1: i32, %arg2: i32) -> (i32, i32) {
    %c0_i32 = arith.constant 0 : i32
    return %arg2, %arg1 : i32, i32
  }
  func.func @transform_2(%arg0: i32, %arg1: i32, %arg2: i32) -> (i32, i32) {
    %c0_i32 = arith.constant 0 : i32
    %c0_i32_0 = arith.constant 0 : i32
    return %c0_i32, %arg1 : i32, i32
  }
  func.func @transform_3(%arg0: i32, %arg1: i32, %arg2: i32) -> (i32, i32) {
    %c0_i32 = arith.constant 0 : i32
    %c0_i32_0 = arith.constant 0 : i32
    return %c0_i32, %arg1 : i32, i32
  }
  func.func @transform_4(%arg0: i32, %arg1: i32, %arg2: i32) -> (i32, i32) {
    %c0_i32 = arith.constant 0 : i32
    return %arg0, %arg1 : i32, i32
  }
}

module attributes {stable_mosaic.version = 11 : i64} {
  func.func @_matmul_bn_kernel(%arg0: i32, %arg1: i32, %arg2: i32, %arg3: memref<8x128xbf16, #tpu.memory_space<vmem>>, %arg4: memref<128x64xbf16, #tpu.memory_space<vmem>>, %arg5: memref<1x64xf32, #tpu.memory_space<vmem>>, %arg6: memref<1x64xf32, #tpu.memory_space<vmem>>, %arg7: memref<8x64xf32, #tpu.memory_space<vmem>>, %arg8: memref<8x64xf32, #tpu.memory_space<vmem>>) attributes {dimension_semantics = [#tpu.dimension_semantics<parallel>, #tpu.dimension_semantics<parallel>, #tpu.dimension_semantics<arbitrary>], iteration_bounds = array<i64: 1, 1, 1>, scalar_prefetch = 0 : i64, scratch_operands = 1 : i64, tpu.core_type = #tpu.core_type<tc>, window_params = [{transform_indices = @transform_0, window_bounds = array<i64: 8, 128>}, {transform_indices = @transform_1, window_bounds = array<i64: 128, 64>}, {transform_indices = @transform_2, window_bounds = array<i64: 1, 64>}, {transform_indices = @transform_3, window_bounds = array<i64: 1, 64>}, {transform_indices = @transform_4, window_bounds = array<i64: 8, 64>}]} {
    %c0_i32 = arith.constant 0 : i32
    %0 = arith.cmpi eq, %arg2, %c0_i32 : i32
    %1 = arith.extui %0 : i1 to i32
    %c0_i32_0 = arith.constant 0 : i32
    %2 = arith.cmpi ne, %1, %c0_i32_0 : i32
    scf.if %2 {
      %cst_10 = arith.constant 0.000000e+00 : f32
      %12 = vector.broadcast %cst_10 : f32 to vector<8x64xf32>
      %c0_11 = arith.constant 0 : index
      %c0_12 = arith.constant 0 : index
      %13 = vector.load %arg8[%c0_11, %c0_12] : memref<8x64xf32, #tpu.memory_space<vmem>>, vector<8x64xf32>
      tpu.vector_store %arg8[%c0_11, %c0_12], %12 {strides = array<i32>} : memref<8x64xf32, #tpu.memory_space<vmem>>, vector<8x64xf32>,
    } else {
    }
    %c0 = arith.constant 0 : index
    %c0_1 = arith.constant 0 : index
    %3 = vector.load %arg8[%c0, %c0_1] : memref<8x64xf32, #tpu.memory_space<vmem>>, vector<8x64xf32>
    %c0_2 = arith.constant 0 : index
    %c0_3 = arith.constant 0 : index
    %4 = vector.load %arg3[%c0_2, %c0_3] : memref<8x128xbf16, #tpu.memory_space<vmem>>, vector<8x128xbf16>
    %c0_4 = arith.constant 0 : index
    %c0_5 = arith.constant 0 : index
    %5 = vector.load %arg4[%c0_4, %c0_5] : memref<128x64xbf16, #tpu.memory_space<vmem>>, vector<128x64xbf16>
    %cst = arith.constant dense<0.000000e+00> : vector<8x64xf32>
    %6 = tpu.matmul %4, %5, %cst {dimension_numbers = #tpu.dot_dimension_numbers<[1], [0], [0], [1], [0, 0, 1, 1], [], []>} : vector<8x128xbf16>, vector<128x64xbf16>, vector<8x64xf32> -> vector<8x64xf32>
    %7 = arith.addf %3, %6 : vector<8x64xf32>
    %c0_6 = arith.constant 0 : index
    %c0_7 = arith.constant 0 : index
    %8 = vector.load %arg8[%c0_6, %c0_7] : memref<8x64xf32, #tpu.memory_space<vmem>>, vector<8x64xf32>
    tpu.vector_store %arg8[%c0_6, %c0_7], %7 {strides = array<i32>} : memref<8x64xf32, #tpu.memory_space<vmem>>, vector<8x64xf32>,
    %c0_i32_8 = arith.constant 0 : i32
    %9 = arith.cmpi eq, %arg2, %c0_i32_8 : i32
    %10 = arith.extui %9 : i1 to i32
    %c0_i32_9 = arith.constant 0 : i32
    %11 = arith.cmpi ne, %10, %c0_i32_9 : i32
    scf.if %11 {
      %c0_10 = arith.constant 0 : index
      %c0_11 = arith.constant 0 : index
      %12 = vector.load %arg8[%c0_10, %c0_11] : memref<8x64xf32, #tpu.memory_space<vmem>>, vector<8x64xf32>
      %c0_12 = arith.constant 0 : index
      %c0_13 = arith.constant 0 : index
      %13 = vector.load %arg5[%c0_12, %c0_13] : memref<1x64xf32, #tpu.memory_space<vmem>>, vector<1x64xf32>
      %14 = vector.broadcast %13 : vector<1x64xf32> to vector<8x64xf32>
      %15 = arith.mulf %12, %14 : vector<8x64xf32>
      %c0_14 = arith.constant 0 : index
      %c0_15 = arith.constant 0 : index
      %16 = vector.load %arg6[%c0_14, %c0_15] : memref<1x64xf32, #tpu.memory_space<vmem>>, vector<1x64xf32>
      %17 = vector.broadcast %16 : vector<1x64xf32> to vector<8x64xf32>
      %18 = arith.addf %15, %17 : vector<8x64xf32>
      %cst_16 = arith.constant 0.000000e+00 : f32
      %19 = vector.broadcast %cst_16 : f32 to vector<8x64xf32>
      %20 = arith.maximumf %18, %19 : vector<8x64xf32>
      %c0_17 = arith.constant 0 : index
      %c0_18 = arith.constant 0 : index
      %21 = vector.load %arg7[%c0_17, %c0_18] : memref<8x64xf32, #tpu.memory_space<vmem>>, vector<8x64xf32>
      tpu.vector_store %arg7[%c0_17, %c0_18], %20 {strides = array<i32>} : memref<8x64xf32, #tpu.memory_space<vmem>>, vector<8x64xf32>,
    } else {
    }
    return
  }
  func.func @transform_0(%arg0: i32, %arg1: i32, %arg2: i32) -> (i32, i32) {
    %c0_i32 = arith.constant 0 : i32
    return %arg0, %arg2 : i32, i32
  }
  func.func @transform_1(%arg0: i32, %arg1: i32, %arg2: i32) -> (i32, i32) {
    %c0_i32 = arith.constant 0 : i32
    return %arg2, %arg1 : i32, i32
  }
  func.func @transform_2(%arg0: i32, %arg1: i32, %arg2: i32) -> (i32, i32) {
    %c0_i32 = arith.constant 0 : i32
    %c0_i32_0 = arith.constant 0 : i32
    return %c0_i32, %arg1 : i32, i32
  }
  func.func @transform_3(%arg0: i32, %arg1: i32, %arg2: i32) -> (i32, i32) {
    %c0_i32 = arith.constant 0 : i32
    %c0_i32_0 = arith.constant 0 : i32
    return %c0_i32, %arg1 : i32, i32
  }
  func.func @transform_4(%arg0: i32, %arg1: i32, %arg2: i32) -> (i32, i32) {
    %c0_i32 = arith.constant 0 : i32
    return %arg0, %arg1 : i32, i32
  }
}

module attributes {stable_mosaic.version = 11 : i64} {
  func.func @_matmul_bn_kernel(%arg0: i32, %arg1: i32, %arg2: i32, %arg3: memref<8x64xbf16, #tpu.memory_space<vmem>>, %arg4: memref<64x128xbf16, #tpu.memory_space<vmem>>, %arg5: memref<1x128xf32, #tpu.memory_space<vmem>>, %arg6: memref<1x128xf32, #tpu.memory_space<vmem>>, %arg7: memref<8x128xf32, #tpu.memory_space<vmem>>, %arg8: memref<8x128xf32, #tpu.memory_space<vmem>>) attributes {dimension_semantics = [#tpu.dimension_semantics<parallel>, #tpu.dimension_semantics<parallel>, #tpu.dimension_semantics<arbitrary>], iteration_bounds = array<i64: 1, 1, 1>, scalar_prefetch = 0 : i64, scratch_operands = 1 : i64, tpu.core_type = #tpu.core_type<tc>, window_params = [{transform_indices = @transform_0, window_bounds = array<i64: 8, 64>}, {transform_indices = @transform_1, window_bounds = array<i64: 64, 128>}, {transform_indices = @transform_2, window_bounds = array<i64: 1, 128>}, {transform_indices = @transform_3, window_bounds = array<i64: 1, 128>}, {transform_indices = @transform_4, window_bounds = array<i64: 8, 128>}]} {
    %c0_i32 = arith.constant 0 : i32
    %0 = arith.cmpi eq, %arg2, %c0_i32 : i32
    %1 = arith.extui %0 : i1 to i32
    %c0_i32_0 = arith.constant 0 : i32
    %2 = arith.cmpi ne, %1, %c0_i32_0 : i32
    scf.if %2 {
      %cst_10 = arith.constant 0.000000e+00 : f32
      %12 = vector.broadcast %cst_10 : f32 to vector<8x128xf32>
      %c0_11 = arith.constant 0 : index
      %c0_12 = arith.constant 0 : index
      %13 = vector.load %arg8[%c0_11, %c0_12] : memref<8x128xf32, #tpu.memory_space<vmem>>, vector<8x128xf32>
      tpu.vector_store %arg8[%c0_11, %c0_12], %12 {strides = array<i32>} : memref<8x128xf32, #tpu.memory_space<vmem>>, vector<8x128xf32>,
    } else {
    }
    %c0 = arith.constant 0 : index
    %c0_1 = arith.constant 0 : index
    %3 = vector.load %arg8[%c0, %c0_1] : memref<8x128xf32, #tpu.memory_space<vmem>>, vector<8x128xf32>
    %c0_2 = arith.constant 0 : index
    %c0_3 = arith.constant 0 : index
    %4 = vector.load %arg3[%c0_2, %c0_3] : memref<8x64xbf16, #tpu.memory_space<vmem>>, vector<8x64xbf16>
    %c0_4 = arith.constant 0 : index
    %c0_5 = arith.constant 0 : index
    %5 = vector.load %arg4[%c0_4, %c0_5] : memref<64x128xbf16, #tpu.memory_space<vmem>>, vector<64x128xbf16>
    %cst = arith.constant dense<0.000000e+00> : vector<8x128xf32>
    %6 = tpu.matmul %4, %5, %cst {dimension_numbers = #tpu.dot_dimension_numbers<[1], [0], [0], [1], [0, 0, 1, 1], [], []>} : vector<8x64xbf16>, vector<64x128xbf16>, vector<8x128xf32> -> vector<8x128xf32>
    %7 = arith.addf %3, %6 : vector<8x128xf32>
    %c0_6 = arith.constant 0 : index
    %c0_7 = arith.constant 0 : index
    %8 = vector.load %arg8[%c0_6, %c0_7] : memref<8x128xf32, #tpu.memory_space<vmem>>, vector<8x128xf32>
    tpu.vector_store %arg8[%c0_6, %c0_7], %7 {strides = array<i32>} : memref<8x128xf32, #tpu.memory_space<vmem>>, vector<8x128xf32>,
    %c0_i32_8 = arith.constant 0 : i32
    %9 = arith.cmpi eq, %arg2, %c0_i32_8 : i32
    %10 = arith.extui %9 : i1 to i32
    %c0_i32_9 = arith.constant 0 : i32
    %11 = arith.cmpi ne, %10, %c0_i32_9 : i32
    scf.if %11 {
      %c0_10 = arith.constant 0 : index
      %c0_11 = arith.constant 0 : index
      %12 = vector.load %arg8[%c0_10, %c0_11] : memref<8x128xf32, #tpu.memory_space<vmem>>, vector<8x128xf32>
      %c0_12 = arith.constant 0 : index
      %c0_13 = arith.constant 0 : index
      %13 = vector.load %arg5[%c0_12, %c0_13] : memref<1x128xf32, #tpu.memory_space<vmem>>, vector<1x128xf32>
      %14 = vector.broadcast %13 : vector<1x128xf32> to vector<8x128xf32>
      %15 = arith.mulf %12, %14 : vector<8x128xf32>
      %c0_14 = arith.constant 0 : index
      %c0_15 = arith.constant 0 : index
      %16 = vector.load %arg6[%c0_14, %c0_15] : memref<1x128xf32, #tpu.memory_space<vmem>>, vector<1x128xf32>
      %17 = vector.broadcast %16 : vector<1x128xf32> to vector<8x128xf32>
      %18 = arith.addf %15, %17 : vector<8x128xf32>
      %c0_16 = arith.constant 0 : index
      %c0_17 = arith.constant 0 : index
      %19 = vector.load %arg7[%c0_16, %c0_17] : memref<8x128xf32, #tpu.memory_space<vmem>>, vector<8x128xf32>
      tpu.vector_store %arg7[%c0_16, %c0_17], %18 {strides = array<i32>} : memref<8x128xf32, #tpu.memory_space<vmem>>, vector<8x128xf32>,
    } else {
    }
    return
  }
  func.func @transform_0(%arg0: i32, %arg1: i32, %arg2: i32) -> (i32, i32) {
    %c0_i32 = arith.constant 0 : i32
    return %arg0, %arg2 : i32, i32
  }
  func.func @transform_1(%arg0: i32, %arg1: i32, %arg2: i32) -> (i32, i32) {
    %c0_i32 = arith.constant 0 : i32
    return %arg2, %arg1 : i32, i32
  }
  func.func @transform_2(%arg0: i32, %arg1: i32, %arg2: i32) -> (i32, i32) {
    %c0_i32 = arith.constant 0 : i32
    %c0_i32_0 = arith.constant 0 : i32
    return %c0_i32, %arg1 : i32, i32
  }
  func.func @transform_3(%arg0: i32, %arg1: i32, %arg2: i32) -> (i32, i32) {
    %c0_i32 = arith.constant 0 : i32
    %c0_i32_0 = arith.constant 0 : i32
    return %c0_i32, %arg1 : i32, i32
  }
  func.func @transform_4(%arg0: i32, %arg1: i32, %arg2: i32) -> (i32, i32) {
    %c0_i32 = arith.constant 0 : i32
    return %arg0, %arg1 : i32, i32
  }
}

module attributes {stable_mosaic.version = 11 : i64} {
  func.func @_heads_kernel(%arg0: i32, %arg1: memref<1x4x128xf32, #tpu.memory_space<vmem>>, %arg2: memref<128x1xf32, #tpu.memory_space<vmem>>, %arg3: memref<5x1xf32, #tpu.memory_space<vmem>>, %arg4: memref<1x128x2xf32, #tpu.memory_space<vmem>>, %arg5: memref<1x2xf32, #tpu.memory_space<vmem>>, %arg6: memref<1x1x2xf32, #tpu.memory_space<vmem>>) attributes {dimension_semantics = [#tpu.dimension_semantics<parallel>], iteration_bounds = array<i64: 2>, scalar_prefetch = 0 : i64, scratch_operands = 0 : i64, tpu.core_type = #tpu.core_type<tc>, window_params = [{transform_indices = @transform_0, window_bounds = array<i64: 1, 4, 128>}, {pipeline_mode = #tpu.pipeline_mode<synchronous>, transform_indices = @transform_1, window_bounds = array<i64: 128, 1>}, {pipeline_mode = #tpu.pipeline_mode<synchronous>, transform_indices = @transform_2, window_bounds = array<i64: 5, 1>}, {pipeline_mode = #tpu.pipeline_mode<synchronous>, transform_indices = @transform_3, window_bounds = array<i64: 1, 128, 2>}, {pipeline_mode = #tpu.pipeline_mode<synchronous>, transform_indices = @transform_4, window_bounds = array<i64: 1, 2>}, {transform_indices = @transform_5, window_bounds = array<i64: 1, 1, 2>}]} {
    %c0 = arith.constant 0 : index
    %c0_0 = arith.constant 0 : index
    %c0_1 = arith.constant 0 : index
    %0 = vector.load %arg1[%c0, %c0_0, %c0_1] : memref<1x4x128xf32, #tpu.memory_space<vmem>>, vector<1x4x128xf32>
    %1 = vector.shape_cast %0 : vector<1x4x128xf32> to vector<4x128xf32>
    %2 = arith.mulf %1, %1 : vector<4x128xf32>
    %cst = arith.constant dense<0.000000e+00> : vector<128xf32>
    %3 = vector.multi_reduction <add>, %2, %cst [0] : vector<4x128xf32> to vector<128xf32>
    %4 = vector.shape_cast %3 : vector<128xf32> to vector<1x128xf32>
    %cst_2 = arith.constant 1.000000e-24 : f32
    %5 = vector.broadcast %cst_2 : f32 to vector<1x128xf32>
    %6 = arith.maximumf %4, %5 : vector<1x128xf32>
    %7 = math.sqrt %6 : vector<1x128xf32>
    %8 = tpu.reciprocal %7 {approx = true} : vector<1x128xf32> -> vector<1x128xf32>
    %9 = vector.broadcast %8 : vector<1x128xf32> to vector<4x128xf32>
    %10 = arith.mulf %1, %9 : vector<4x128xf32>
    %c0_3 = arith.constant 0 : index
    %c0_4 = arith.constant 0 : index
    %11 = vector.load %arg2[%c0_3, %c0_4] : memref<128x1xf32, #tpu.memory_space<vmem>>, vector<128x1xf32>
    %cst_5 = arith.constant dense<0.000000e+00> : vector<4x1xf32>
    %12 = tpu.matmul %10, %11, %cst_5 {dimension_numbers = #tpu.dot_dimension_numbers<[1], [0], [0], [1], [0, 0, 1, 1], [], []>} : vector<4x128xf32>, vector<128x1xf32>, vector<4x1xf32> -> vector<4x1xf32>
    %c0_6 = arith.constant 0 : index
    %c0_7 = arith.constant 0 : index
    %13 = vector.load %arg3[%c0_6, %c0_7] : memref<5x1xf32, #tpu.memory_space<vmem>>, vector<5x1xf32>
    %cst_8 = arith.constant dense<0xFF800000> : vector<1xf32>
    %14 = vector.multi_reduction <maximumf>, %12, %cst_8 [0] : vector<4x1xf32> to vector<1xf32>
    %15 = vector.shape_cast %14 : vector<1xf32> to vector<1x1xf32>
    %cst_9 = arith.constant dense<0xFF800000> : vector<1xf32>
    %16 = vector.multi_reduction <maximumf>, %13, %cst_9 [0] : vector<5x1xf32> to vector<1xf32>
    %17 = vector.shape_cast %16 : vector<1xf32> to vector<1x1xf32>
    %18 = arith.maximumf %15, %17 : vector<1x1xf32>
    %19 = vector.broadcast %18 : vector<1x1xf32> to vector<4x1xf32>
    %20 = arith.subf %12, %19 : vector<4x1xf32>
    %21 = math.exp %20 : vector<4x1xf32>
    %22 = vector.broadcast %18 : vector<1x1xf32> to vector<5x1xf32>
    %23 = arith.subf %13, %22 : vector<5x1xf32>
    %24 = math.exp %23 : vector<5x1xf32>
    %cst_10 = arith.constant dense<0.000000e+00> : vector<1xf32>
    %25 = vector.multi_reduction <add>, %21, %cst_10 [0] : vector<4x1xf32> to vector<1xf32>
    %26 = vector.shape_cast %25 : vector<1xf32> to vector<1x1xf32>
    %cst_11 = arith.constant dense<0.000000e+00> : vector<1xf32>
    %27 = vector.multi_reduction <add>, %24, %cst_11 [0] : vector<5x1xf32> to vector<1xf32>
    %28 = vector.shape_cast %27 : vector<1xf32> to vector<1x1xf32>
    %29 = arith.addf %26, %28 : vector<1x1xf32>
    %30 = tpu.reciprocal %29 {approx = true} : vector<1x1xf32> -> vector<1x1xf32>
    %31 = vector.broadcast %30 : vector<1x1xf32> to vector<4x1xf32>
    %32 = arith.mulf %21, %31 : vector<4x1xf32>
    %cst_12 = arith.constant dense<0.000000e+00> : vector<1x128xf32>
    %33 = tpu.matmul %32, %1, %cst_12 {dimension_numbers = #tpu.dot_dimension_numbers<[0], [0], [1], [1], [0, 1, 1, 1], [], []>} : vector<4x1xf32>, vector<4x128xf32>, vector<1x128xf32> -> vector<1x128xf32>
    %c0_13 = arith.constant 0 : index
    %c0_14 = arith.constant 0 : index
    %c0_15 = arith.constant 0 : index
    %34 = vector.load %arg4[%c0_13, %c0_14, %c0_15] : memref<1x128x2xf32, #tpu.memory_space<vmem>>, vector<1x128x2xf32>
    %35 = vector.shape_cast %34 : vector<1x128x2xf32> to vector<128x2xf32>
    %cst_16 = arith.constant dense<0.000000e+00> : vector<1x2xf32>
    %36 = tpu.matmul %33, %35, %cst_16 {dimension_numbers = #tpu.dot_dimension_numbers<[1], [0], [0], [1], [0, 0, 1, 1], [], []>} : vector<1x128xf32>, vector<128x2xf32>, vector<1x2xf32> -> vector<1x2xf32>
    %c0_17 = arith.constant 0 : index
    %c0_18 = arith.constant 0 : index
    %37 = vector.load %arg5[%c0_17, %c0_18] : memref<1x2xf32, #tpu.memory_space<vmem>>, vector<1x2xf32>
    %38 = arith.addf %36, %37 : vector<1x2xf32>
    %c0_19 = arith.constant 0 : index
    %c0_20 = arith.constant 0 : index
    %c0_21 = arith.constant 0 : index
    %39 = vector.load %arg6[%c0_19, %c0_20, %c0_21] : memref<1x1x2xf32, #tpu.memory_space<vmem>>, vector<1x1x2xf32>
    %40 = vector.shape_cast %39 : vector<1x1x2xf32> to vector<1x2xf32>
    %41 = vector.shape_cast %38 : vector<1x2xf32> to vector<1x1x2xf32>
    tpu.vector_store %arg6[%c0_19, %c0_20, %c0_21], %41 {strides = array<i32>} : memref<1x1x2xf32, #tpu.memory_space<vmem>>, vector<1x1x2xf32>,
    return
  }
  func.func @transform_0(%arg0: i32) -> (i32, i32, i32) {
    %c0_i32 = arith.constant 0 : i32
    %c0_i32_0 = arith.constant 0 : i32
    %c0_i32_1 = arith.constant 0 : i32
    return %arg0, %c0_i32, %c0_i32_0 : i32, i32, i32
  }
  func.func @transform_1(%arg0: i32) -> (i32, i32) {
    %c0_i32 = arith.constant 0 : i32
    %c0_i32_0 = arith.constant 0 : i32
    %c0_i32_1 = arith.constant 0 : i32
    return %c0_i32, %c0_i32_0 : i32, i32
  }
  func.func @transform_2(%arg0: i32) -> (i32, i32) {
    %c0_i32 = arith.constant 0 : i32
    %c0_i32_0 = arith.constant 0 : i32
    %c0_i32_1 = arith.constant 0 : i32
    return %c0_i32, %c0_i32_0 : i32, i32
  }
  func.func @transform_3(%arg0: i32) -> (i32, i32, i32) {
    %c0_i32 = arith.constant 0 : i32
    %c0_i32_0 = arith.constant 0 : i32
    %c0_i32_1 = arith.constant 0 : i32
    %c0_i32_2 = arith.constant 0 : i32
    return %c0_i32, %c0_i32_0, %c0_i32_1 : i32, i32, i32
  }
  func.func @transform_4(%arg0: i32) -> (i32, i32) {
    %c0_i32 = arith.constant 0 : i32
    %c0_i32_0 = arith.constant 0 : i32
    %c0_i32_1 = arith.constant 0 : i32
    return %c0_i32, %c0_i32_0 : i32, i32
  }
  func.func @transform_5(%arg0: i32) -> (i32, i32, i32) {
    %c0_i32 = arith.constant 0 : i32
    %c0_i32_0 = arith.constant 0 : i32
    %c0_i32_1 = arith.constant 0 : i32
    return %arg0, %c0_i32, %c0_i32_0 : i32, i32, i32
  }
}

</mosaic_0001>

<bundles_post_ra>
// kernel: forward.37
= control target key start
LH: loop header
LB: loop body
LE: loop exit
PB: predicated region body
PF: predicated region fallthrough
CT: control target
= control target key end

     0   :  { %vm473_vm0 = vcmask 1041408   ;;  %vm376_vm1 = vcmask 31744   ;;  %vm22_vm2 = vcmask 64512   ;;  %v1440_v1 = vmov 0.0   ;;  %s2187_s1 = inlined_call_operand.vmem [shape: bf16[4,8], index: 1, kind: input, shape index: {}]   ;;  %s2188_s0 = inlined_call_operand.vmem [shape: bf16[512,4], index: 0, kind: input, shape index: {}]   ;;  %s2189_s2 = inlined_call_operand.vmem [shape: f32[1,8], index: 2, kind: input, shape index: {}]   ;;  %s2190_s3 = inlined_call_operand.vmem [shape: f32[1,8], index: 3, kind: input, shape index: {}]   ;;  %s2191_s4 = inlined_call_operand.vmem [shape: f32[512,8], index: 4, kind: output, shape index: {}]  }
   0x1   :  { %v1469_v0 = vld [vmem:[%s2187_s1] sm:$0x3]  ;;  %25 = vst.msk [vmem:[#allocation2 + $0x10] sm:$0xff] %vm22_vm2, %v1440_v1  ;;  %23 = vst.msk [vmem:[#allocation2] sm:$0xff] %vm22_vm2, %v1440_v1  ;;  %v1408_v5 = vld [vmem:[%s2188_s0 + $0x8] sm:$0xff]  }
   0x2   :  { %24 = vst.msk [vmem:[#allocation2 + $0x8] sm:$0xff] %vm22_vm2, %v1440_v1  ;;  %26 = vst.msk [vmem:[#allocation2 + $0x18] sm:$0xff] %vm22_vm2, %v1440_v1  ;;  %1403 = vmatprep.subr.msk.bf16.mxu0 %vm473_vm0, %v1469_v0  ;;  %1404 = vmatprep.subr.msk.bf16.mxu1 %vm473_vm0, %v1469_v0  ;;  %v475_v2 = vsel %vm473_vm0, %v1469_v0, 0  ;;  %v1406_v3 = vld [vmem:[%s2188_s0] sm:$0xff]   ;;  %v1409_v6 = vld [vmem:[%s2188_s0 + $0x88] sm:$0xff]  }
   0x3   :  { %27 = vst.msk [vmem:[#allocation2 + $0x20] sm:$0xff] %vm22_vm2, %v1440_v1  ;;  %28 = vst.msk [vmem:[#allocation2 + $0x28] sm:$0xff] %vm22_vm2, %v1440_v1  ;;  %1336 = vmatpush3.bf16.msra.mxu0 %v475_v2  ;;  %1402 = vmatpush3.bf16.msra.mxu1 %v475_v2  ;;  %v1407_v4 = vld [vmem:[%s2188_s0 + $0x80] sm:$0xff]   ;;  %v1410_v7 = vld [vmem:[%s2188_s0 + $0x10] sm:$0xff]  }
   0x4   :  { %29 = vst.msk [vmem:[#allocation2 + $0x30] sm:$0xff] %vm22_vm2, %v1440_v1  ;;  %30 = vst.msk [vmem:[#allocation2 + $0x38] sm:$0xff] %vm22_vm2, %v1440_v1  ;;  %1337 = vmatprep.mubr.msk.bf16.mxu0 %vm376_vm1, %v1406_v3  ;;  %1369 = vmatprep.mubr.msk.bf16.mxu1 %vm376_vm1, %v1407_v4  ;;  %v1411_v8 = vld [vmem:[%s2188_s0 + $0x90] sm:$0xff]   ;;  %v1412_v9 = vld [vmem:[%s2188_s0 + $0x18] sm:$0xff]  }
   0x5   :  { %31 = vst.msk [vmem:[#allocation2 + $0x40] sm:$0xff] %vm22_vm2, %v1440_v1  ;;  %32 = vst.msk [vmem:[#allocation2 + $0x48] sm:$0xff] %vm22_vm2, %v1440_v1  ;;  %v1413_v10 = vld [vmem:[%s2188_s0 + $0x98] sm:$0xff]   ;;  %v1414_v11 = vld [vmem:[%s2188_s0 + $0x20] sm:$0xff]  }
   0x6   :  { %33 = vst.msk [vmem:[#allocation2 + $0x50] sm:$0xff] %vm22_vm2, %v1440_v1  ;;  %34 = vst.msk [vmem:[#allocation2 + $0x58] sm:$0xff] %vm22_vm2, %v1440_v1  ;;  %1338 = vmatmul.mubr.msk.bf16.vlgmr.msra.gmra.mrb[0].mxu0 %vm376_vm1, %v1408_v5  ;;  %1370 = vmatmul.mubr.msk.bf16.vlgmr.msra.gmra.mrb[0].mxu1 %vm376_vm1, %v1409_v6  ;;  %v1415_v12 = vld [vmem:[%s2188_s0 + $0xa0] sm:$0xff]   ;;  %v1416_v13 = vld [vmem:[%s2188_s0 + $0x28] sm:$0xff]  }
   0x7   :  { %35 = vst.msk [vmem:[#allocation2 + $0x60] sm:$0xff] %vm22_vm2, %v1440_v1  ;;  %36 = vst.msk [vmem:[#allocation2 + $0x68] sm:$0xff] %vm22_vm2, %v1440_v1  ;;  %1341 = vmatprep.mubr.msk.bf16.mxu0 %vm376_vm1, %v1410_v7  ;;  %1373 = vmatprep.mubr.msk.bf16.mxu1 %vm376_vm1, %v1411_v8  ;;  %v1417_v14 = vld [vmem:[%s2188_s0 + $0xa8] sm:$0xff]   ;;  %v1418_v15 = vld [vmem:[%s2188_s0 + $0x30] sm:$0xff]  }
   0x8   :  { %37 = vst.msk [vmem:[#allocation2 + $0x70] sm:$0xff] %vm22_vm2, %v1440_v1  ;;  %38 = vst.msk [vmem:[#allocation2 + $0x78] sm:$0xff] %vm22_vm2, %v1440_v1  ;;  %v1419_v16 = vld [vmem:[%s2188_s0 + $0xb0] sm:$0xff]   ;;  %v1420_v17 = vld [vmem:[%s2188_s0 + $0x38] sm:$0xff]  }
   0x9   :  { %39 = vst.msk [vmem:[#allocation2 + $0x80] sm:$0xff] %vm22_vm2, %v1440_v1  ;;  %40 = vst.msk [vmem:[#allocation2 + $0x88] sm:$0xff] %vm22_vm2, %v1440_v1  ;;  %v1421_v18 = vld [vmem:[%s2188_s0 + $0xb8] sm:$0xff]   ;;  %v1422_v19 = vld [vmem:[%s2188_s0 + $0x40] sm:$0xff]  }
   0xa   :  { %41 = vst.msk [vmem:[#allocation2 + $0x90] sm:$0xff] %vm22_vm2, %v1440_v1  ;;  %42 = vst.msk [vmem:[#allocation2 + $0x98] sm:$0xff] %vm22_vm2, %v1440_v1  ;;  %v1423_v20 = vld [vmem:[%s2188_s0 + $0xc0] sm:$0xff]   ;;  %v1424_v21 = vld [vmem:[%s2188_s0 + $0x48] sm:$0xff]  }
   0xb   :  { %43 = vst.msk [vmem:[#allocation2 + $0xa0] sm:$0xff] %vm22_vm2, %v1440_v1  ;;  %44 = vst.msk [vmem:[#allocation2 + $0xa8] sm:$0xff] %vm22_vm2, %v1440_v1  ;;  %v1425_v22 = vld [vmem:[%s2188_s0 + $0xc8] sm:$0xff]   ;;  %v1426_v23 = vld [vmem:[%s2188_s0 + $0x50] sm:$0xff]  }
   0xc   :  { %45 = vst.msk [vmem:[#allocation2 + $0xb0] sm:$0xff] %vm22_vm2, %v1440_v1  ;;  %46 = vst.msk [vmem:[#allocation2 + $0xb8] sm:$0xff] %vm22_vm2, %v1440_v1  ;;  %v1427_v24 = vld [vmem:[%s2188_s0 + $0xd0] sm:$0xff]   ;;  %v1428_v25 = vld [vmem:[%s2188_s0 + $0x58] sm:$0xff]  }
   0xd   :  { %47 = vst.msk [vmem:[#allocation2 + $0xc0] sm:$0xff] %vm22_vm2, %v1440_v1  ;;  %48 = vst.msk [vmem:[#allocation2 + $0xc8] sm:$0xff] %vm22_vm2, %v1440_v1  ;;  %v1429_v26 = vld [vmem:[%s2188_s0 + $0xd8] sm:$0xff]   ;;  %v1430_v27 = vld [vmem:[%s2188_s0 + $0x60] sm:$0xff]  }
   0xe   :  { %49 = vst.msk [vmem:[#allocation2 + $0xd0] sm:$0xff] %vm22_vm2, %v1440_v1  ;;  %50 = vst.msk [vmem:[#allocation2 + $0xd8] sm:$0xff] %vm22_vm2, %v1440_v1  ;;  %1342 = vmatmul.mubr.msk.bf16.gmra.mrb[4].mxu0 %vm376_vm1, %v1412_v9  ;;  %1374 = vmatmul.mubr.msk.bf16.gmra.mrb[4].mxu1 %vm376_vm1, %v1413_v10  ;;  %v1431_v28 = vld [vmem:[%s2188_s0 + $0xe0] sm:$0xff]   ;;  %v1432_v29 = vld [vmem:[%s2188_s0 + $0x68] sm:$0xff]  }
   0xf   :  { %51 = vst.msk [vmem:[#allocation2 + $0xe0] sm:$0xff] %vm22_vm2, %v1440_v1  ;;  %52 = vst.msk [vmem:[#allocation2 + $0xe8] sm:$0xff] %vm22_vm2, %v1440_v1  ;;  %1345 = vmatprep.mubr.msk.bf16.mxu0 %vm376_vm1, %v1414_v11  ;;  %1377 = vmatprep.mubr.msk.bf16.mxu1 %vm376_vm1, %v1415_v12  ;;  %v1433_v30 = vld [vmem:[%s2188_s0 + $0xe8] sm:$0xff]   ;;  %v1434_v31 = vld [vmem:[%s2188_s0 + $0x70] sm:$0xff]  }
  0x10   :  { %53 = vst.msk [vmem:[#allocation2 + $0xf0] sm:$0xff] %vm22_vm2, %v1440_v1  ;;  %54 = vst.msk [vmem:[#allocation2 + $0xf8] sm:$0xff] %vm22_vm2, %v1440_v1  ;;  %v1435_v32 = vld [vmem:[%s2188_s0 + $0xf0] sm:$0xff]   ;;  %v1436_v33 = vld [vmem:[%s2188_s0 + $0x78] sm:$0xff]  }
  0x11   :  { %55 = vst.msk [vmem:[#allocation2 + $0x100] sm:$0xff] %vm22_vm2, %v1440_v1  ;;  %56 = vst.msk [vmem:[#allocation2 + $0x108] sm:$0xff] %vm22_vm2, %v1440_v1  ;;  %v1437_v34 = vld [vmem:[%s2188_s0 + $0xf8] sm:$0xff]   ;;  %v89_v35 = vld [vmem:[#allocation2 + $0x10] sm:$0xff] }
  0x12   :  { %57 = vst.msk [vmem:[#allocation2 + $0x110] sm:$0xff] %vm22_vm2, %v1440_v1  ;;  %58 = vst.msk [vmem:[#allocation2 + $0x118] sm:$0xff] %vm22_vm2, %v1440_v1  ;;  %v87_v37 = vld [vmem:[#allocation2] sm:$0xff]  ;;  %v90_v40 = vld [vmem:[#allocation2 + $0x18] sm:$0xff] }
  0x13   :  { %59 = vst.msk [vmem:[#allocation2 + $0x120] sm:$0xff] %vm22_vm2, %v1440_v1  ;;  %60 = vst.msk [vmem:[#allocation2 + $0x128] sm:$0xff] %vm22_vm2, %v1440_v1  ;;  %v88_v45 = vld [vmem:[#allocation2 + $0x8] sm:$0xff]  ;;  %v93_v59 = vld [vmem:[#allocation2 + $0x30] sm:$0xff] }
  0x14   :  { %61 = vst.msk [vmem:[#allocation2 + $0x130] sm:$0xff] %vm22_vm2, %v1440_v1  ;;  %62 = vst.msk [vmem:[#allocation2 + $0x138] sm:$0xff] %vm22_vm2, %v1440_v1  ;;  %v91_v61 = vld [vmem:[#allocation2 + $0x20] sm:$0xff]  ;;  %v92_v6 = vld [vmem:[#allocation2 + $0x28] sm:$0xff] }
  0x15   :  { %63 = vst.msk [vmem:[#allocation2 + $0x140] sm:$0xff] %vm22_vm2, %v1440_v1  ;;  %64 = vst.msk [vmem:[#allocation2 + $0x148] sm:$0xff] %vm22_vm2, %v1440_v1  ;;  %v1744_v62 = vld [vmem:[%s2189_s2] ss:$0 sm:$0xff] }
  0x16   :  { %65 = vst.msk [vmem:[#allocation2 + $0x150] sm:$0xff] %vm22_vm2, %v1440_v1  ;;  %66 = vst.msk [vmem:[#allocation2 + $0x158] sm:$0xff] %vm22_vm2, %v1440_v1  ;;  %1346 = vmatmul.mubr.msk.bf16.gmra.mrb[8].mxu0 %vm376_vm1, %v1416_v13  ;;  %1378 = vmatmul.mubr.msk.bf16.gmra.mrb[8].mxu1 %vm376_vm1, %v1417_v14  ;;  %v1749_v8 = vld [vmem:[%s2190_s3] ss:$0 sm:$0xff] }
  0x17   :  { %67 = vst.msk [vmem:[#allocation2 + $0x160] sm:$0xff] %vm22_vm2, %v1440_v1  ;;  %68 = vst.msk [vmem:[#allocation2 + $0x168] sm:$0xff] %vm22_vm2, %v1440_v1  ;;  %1349 = vmatprep.mubr.msk.bf16.mxu0 %vm376_vm1, %v1418_v15  ;;  %1381 = vmatprep.mubr.msk.bf16.mxu1 %vm376_vm1, %v1419_v16 }
  0x18   :  { %69 = vst.msk [vmem:[#allocation2 + $0x170] sm:$0xff] %vm22_vm2, %v1440_v1  ;;  %70 = vst.msk [vmem:[#allocation2 + $0x178] sm:$0xff] %vm22_vm2, %v1440_v1  ;;  %v119_v39 = vld [vmem:[#allocation2 + $0x100] sm:$0xff]  ;;  %v120_v50 = vld [vmem:[#allocation2 + $0x108] sm:$0xff] }
  0x19   :  { %71 = vst.msk [vmem:[#allocation2 + $0x180] sm:$0xff] %vm22_vm2, %v1440_v1  ;;  %72 = vst.msk [vmem:[#allocation2 + $0x188] sm:$0xff] %vm22_vm2, %v1440_v1  ;;  %v121_v36 = vld [vmem:[#allocation2 + $0x110] sm:$0xff]  ;;  %v122_v44 = vld [vmem:[#allocation2 + $0x118] sm:$0xff] }
  0x1a   :  { %73 = vst.msk [vmem:[#allocation2 + $0x190] sm:$0xff] %vm22_vm2, %v1440_v1  ;;  %74 = vst.msk [vmem:[#allocation2 + $0x198] sm:$0xff] %vm22_vm2, %v1440_v1  ;;  %v123_v0 = vld [vmem:[#allocation2 + $0x120] sm:$0xff]  ;;  %v124_v13 = vld [vmem:[#allocation2 + $0x128] sm:$0xff] }
  0x1b   :  { %75 = vst.msk [vmem:[#allocation2 + $0x1a0] sm:$0xff] %vm22_vm2, %v1440_v1  ;;  %76 = vst.msk [vmem:[#allocation2 + $0x1a8] sm:$0xff] %vm22_vm2, %v1440_v1  ;;  %v125_v60 = vld [vmem:[#allocation2 + $0x130] sm:$0xff]  ;;  %v126_v5 = vld [vmem:[#allocation2 + $0x138] sm:$0xff] }
  0x1c   :  { %77 = vst.msk [vmem:[#allocation2 + $0x1b0] sm:$0xff] %vm22_vm2, %v1440_v1  ;;  %78 = vst.msk [vmem:[#allocation2 + $0x1b8] sm:$0xff] %vm22_vm2, %v1440_v1 }
  0x1d   :  { %79 = vst.msk [vmem:[#allocation2 + $0x1c0] sm:$0xff] %vm22_vm2, %v1440_v1  ;;  %80 = vst.msk [vmem:[#allocation2 + $0x1c8] sm:$0xff] %vm22_vm2, %v1440_v1 }
  0x1e   :  { %81 = vst.msk [vmem:[#allocation2 + $0x1d0] sm:$0xff] %vm22_vm2, %v1440_v1  ;;  %82 = vst.msk [vmem:[#allocation2 + $0x1d8] sm:$0xff] %vm22_vm2, %v1440_v1  ;;  %1350 = vmatmul.mubr.msk.bf16.gmra.mrb[12].mxu0 %vm376_vm1, %v1420_v17  ;;  %1382 = vmatmul.mubr.msk.bf16.gmra.mrb[12].mxu1 %vm376_vm1, %v1421_v18 }
  0x1f   :  { %83 = vst.msk [vmem:[#allocation2 + $0x1e0] sm:$0xff] %vm22_vm2, %v1440_v1  ;;  %84 = vst.msk [vmem:[#allocation2 + $0x1e8] sm:$0xff] %vm22_vm2, %v1440_v1  ;;  %1353 = vmatprep.mubr.msk.bf16.mxu0 %vm376_vm1, %v1422_v19  ;;  %1385 = vmatprep.mubr.msk.bf16.mxu1 %vm376_vm1, %v1423_v20 }
  0x20   :  { %85 = vst.msk [vmem:[#allocation2 + $0x1f0] sm:$0xff] %vm22_vm2, %v1440_v1  ;;  %86 = vst.msk [vmem:[#allocation2 + $0x1f8] sm:$0xff] %vm22_vm2, %v1440_v1  ;;  %v94_v1 = vld [vmem:[#allocation2 + $0x38] sm:$0xff] }
  0x26   :  { %1354 = vmatmul.mubr.msk.bf16.gmra.mrb[16].mxu0 %vm376_vm1, %v1424_v21  ;;  %1386 = vmatmul.mubr.msk.bf16.gmra.mrb[16].mxu1 %vm376_vm1, %v1425_v22 }
  0x27   :  { %1357 = vmatprep.mubr.msk.bf16.mxu0 %vm376_vm1, %v1426_v23  ;;  %1389 = vmatprep.mubr.msk.bf16.mxu1 %vm376_vm1, %v1427_v24 }
  0x2e   :  { %1358 = vmatmul.mubr.msk.bf16.gmra.mrb[20].mxu0 %vm376_vm1, %v1428_v25  ;;  %1390 = vmatmul.mubr.msk.bf16.gmra.mrb[20].mxu1 %vm376_vm1, %v1429_v26 }
  0x2f   :  { %1361 = vmatprep.mubr.msk.bf16.mxu0 %vm376_vm1, %v1430_v27  ;;  %1393 = vmatprep.mubr.msk.bf16.mxu1 %vm376_vm1, %v1431_v28 }
  0x36   :  { %1362 = vmatmul.mubr.msk.bf16.gmra.mrb[24].mxu0 %vm376_vm1, %v1432_v29  ;;  %1394 = vmatmul.mubr.msk.bf16.gmra.mrb[24].mxu1 %vm376_vm1, %v1433_v30 }
  0x37   :  { %1365 = vmatprep.mubr.msk.bf16.mxu0 %vm376_vm1, %v1434_v31  ;;  %1397 = vmatprep.mubr.msk.bf16.mxu1 %vm376_vm1, %v1435_v32 }
  0x3e   :  { %1366 = vmatmul.mubr.msk.bf16.gmra.mrb[28].mxu0 %vm376_vm1, %v1436_v33  ;;  %1398 = vmatmul.mubr.msk.bf16.gmra.mrb[28].mxu1 %vm376_vm1, %v1437_v34 }
  0xd9   :  { %v1339_v38 = vpop.f32.mrb[0].mxu0  ;;  %v1371_v42 = vpop.f32.mrb[0].mxu1 }
  0xda   :  { %v768_v41 = vadd.f32 %v1339_v38, %v89_v35  ;;  %v511_v43 = vpop.f32.mrb[1].mxu0  ;;  %v800_v46 = vadd.f32 %v1371_v42, %v121_v36  ;;  %v639_v48 = vpop.f32.mrb[1].mxu1 }
  0xdb   :  { %v766_v47 = vadd.f32 %v511_v43, %v87_v37  ;;  %v1340_v49 = vpop.f32.mrb[2].mxu0  ;;  %v798_v51 = vadd.f32 %v639_v48, %v119_v39  ;;  %v1372_v53 = vpop.f32.mrb[2].mxu1  ;;  %v97_v39 = vld [vmem:[#allocation2 + $0x50] sm:$0xff] }
  0xdc   :  { %833 = vst.msk [vmem:[#allocation2 + $0x10] sm:$0xff] %vm22_vm2, %v768_v41  ;;  %v769_v52 = vadd.f32 %v1340_v49, %v90_v40  ;;  %v514_v54 = vpop.f32.mrb[3].mxu0  ;;  %865 = vst.msk [vmem:[#allocation2 + $0x110] sm:$0xff] %vm22_vm2, %v800_v46  ;;  %v801_v55 = vadd.f32 %v1372_v53, %v122_v44  ;;  %v642_v57 = vpop.f32.mrb[3].mxu1  ;;  %v129_v44 = vld [vmem:[#allocation2 + $0x150] sm:$0xff] }
  0xdd   :  { %831 = vst.msk [vmem:[#allocation2] sm:$0xff] %vm22_vm2, %v766_v47  ;;  %v767_v56 = vadd.f32 %v514_v54, %v88_v45  ;;  %863 = vst.msk [vmem:[#allocation2 + $0x100] sm:$0xff] %vm22_vm2, %v798_v51  ;;  %v799_v58 = vadd.f32 %v642_v57, %v120_v50  ;;  %v95_v45 = vld [vmem:[#allocation2 + $0x40] sm:$0xff] }
  0xde   :  { %834 = vst.msk [vmem:[#allocation2 + $0x18] sm:$0xff] %vm22_vm2, %v769_v52  ;;  %866 = vst.msk [vmem:[#allocation2 + $0x118] sm:$0xff] %vm22_vm2, %v801_v55  ;;  %v127_v51 = vld [vmem:[#allocation2 + $0x140] sm:$0xff]  ;;  %v98_v52 = vld [vmem:[#allocation2 + $0x58] sm:$0xff] }
  0xdf   :  { %832 = vst.msk [vmem:[#allocation2 + $0x8] sm:$0xff] %vm22_vm2, %v767_v56  ;;  %864 = vst.msk [vmem:[#allocation2 + $0x108] sm:$0xff] %vm22_vm2, %v799_v58 }
  0xe1   :  { %v1343_v63 = vpop.f32.mrb[4].mxu0  ;;  %v1375_v3 = vpop.f32.mrb[4].mxu1 }
  0xe2   :  { %v772_v2 = vadd.f32 %v1343_v63, %v93_v59  ;;  %v527_v4 = vpop.f32.mrb[5].mxu0  ;;  %v804_v9 = vadd.f32 %v1375_v3, %v125_v60  ;;  %v655_v11 = vpop.f32.mrb[5].mxu1  ;;  %v130_v59 = vld [vmem:[#allocation2 + $0x158] sm:$0xff]  ;;  %v96_v60 = vld [vmem:[#allocation2 + $0x48] sm:$0xff] }
  0xe3   :  { %v900_v7 = vld [vmem:[#allocation2 + $0x10] sm:$0xff]  ;;  %v770_v10 = vadd.f32 %v527_v4, %v91_v61  ;;  %v1344_v12 = vpop.f32.mrb[6].mxu0  ;;  %v802_v17 = vadd.f32 %v655_v11, %v123_v0  ;;  %v1376_v19 = vpop.f32.mrb[6].mxu1 }
  0xe4   :  { %v971_v14 = vmul.f32 %v1744_v62, %v900_v7  ;;  %v932_v15 = vld [vmem:[#allocation2 + $0x110] sm:$0xff]  ;;  %v898_v16 = vld [vmem:[#allocation2] sm:$0xff]  ;;  %837 = vst.msk [vmem:[#allocation2 + $0x30] sm:$0xff] %vm22_vm2, %v772_v2  ;;  %v773_v18 = vadd.f32 %v1344_v12, %v94_v1  ;;  %v530_v20 = vpop.f32.mrb[7].mxu0  ;;  %869 = vst.msk [vmem:[#allocation2 + $0x130] sm:$0xff] %vm22_vm2, %v804_v9  ;;  %v805_v25 = vadd.f32 %v1376_v19, %v126_v5  ;;  %v658_v27 = vpop.f32.mrb[7].mxu1 }
  0xe5   :  { %v1003_v21 = vmul.f32 %v1744_v62, %v932_v15  ;;  %v969_v22 = vmul.f32 %v1744_v62, %v898_v16  ;;  %v930_v23 = vld [vmem:[#allocation2 + $0x100] sm:$0xff]  ;;  %v901_v24 = vld [vmem:[#allocation2 + $0x18] sm:$0xff]  ;;  %835 = vst.msk [vmem:[#allocation2 + $0x20] sm:$0xff] %vm22_vm2, %v770_v10  ;;  %v771_v26 = vadd.f32 %v530_v20, %v92_v6  ;;  %867 = vst.msk [vmem:[#allocation2 + $0x120] sm:$0xff] %vm22_vm2, %v802_v17 }
  0xe6   :  { %v1042_v28 = vadd.f32 %v1749_v8, %v971_v14  ;;  %v1001_v29 = vmul.f32 %v1744_v62, %v930_v23  ;;  %v972_v30 = vmul.f32 %v1744_v62, %v901_v24  ;;  %v933_v31 = vld [vmem:[#allocation2 + $0x118] sm:$0xff]  ;;  %v899_v32 = vld [vmem:[#allocation2 + $0x8] sm:$0xff]  ;;  %838 = vst.msk [vmem:[#allocation2 + $0x38] sm:$0xff] %vm22_vm2, %v773_v18  ;;  %v803_v33 = vadd.f32 %v658_v27, %v124_v13 }
  0xe7   :  { %v1074_v34 = vadd.f32 %v1749_v8, %v1003_v21  ;;  %v1040_v35 = vadd.f32 %v1749_v8, %v969_v22  ;;  %v1004_v36 = vmul.f32 %v1744_v62, %v933_v31  ;;  %v970_v37 = vmul.f32 %v1744_v62, %v899_v32  ;;  %v931_v38 = vld [vmem:[#allocation2 + $0x108] sm:$0xff]  ;;  %870 = vst.msk [vmem:[#allocation2 + $0x138] sm:$0xff] %vm22_vm2, %v805_v25 }
  0xe8   :  { %836 = vst.msk [vmem:[#allocation2 + $0x28] sm:$0xff] %vm22_vm2, %v771_v26  ;;  %v1106_v40 = vmax.f32 %v1042_v28, 0.0  ;;  %v1072_v41 = vadd.f32 %v1749_v8, %v1001_v29  ;;  %v1043_v42 = vadd.f32 %v1749_v8, %v972_v30  ;;  %v1002_v43 = vmul.f32 %v1744_v62, %v931_v38  ;;  %868 = vst.msk [vmem:[#allocation2 + $0x128] sm:$0xff] %vm22_vm2, %v803_v33  ;;  %v128_v5 = vld [vmem:[#allocation2 + $0x148] sm:$0xff]  ;;  %v101_v33 = vld [vmem:[#allocation2 + $0x70] sm:$0xff] }
  0xe9   :  { %v1138_v46 = vmax.f32 %v1074_v34, 0.0  ;;  %v1104_v47 = vmax.f32 %v1040_v35, 0.0  ;;  %v1075_v48 = vadd.f32 %v1749_v8, %v1004_v36  ;;  %v1041_v49 = vadd.f32 %v1749_v8, %v970_v37  ;;  %v1347_v50 = vpop.f32.mrb[8].mxu0  ;;  %v1379_v57 = vpop.f32.mrb[8].mxu1  ;;  %v133_v38 = vld [vmem:[#allocation2 + $0x170] sm:$0xff] }
  0xea   :  { %1170 = vst.msk [vmem:[%s2191_s4 + $0x10] sm:$0xff] %vm22_vm2, %v1106_v40  ;;  %v1136_v53 = vmax.f32 %v1072_v41, 0.0  ;;  %v1107_v54 = vmax.f32 %v1043_v42, 0.0  ;;  %v1073_v55 = vadd.f32 %v1749_v8, %v1002_v43  ;;  %v776_v56 = vadd.f32 %v1347_v50, %v97_v39  ;;  %v543_v58 = vpop.f32.mrb[9].mxu0  ;;  %v671_v3 = vpop.f32.mrb[9].mxu1  ;;  %v99_v39 = vld [vmem:[#allocation2 + $0x60] sm:$0xff] }
  0xeb   :  { %1202 = vst.msk [vmem:[%s2191_s4 + $0x110] sm:$0xff] %vm22_vm2, %v1138_v46  ;;  %1168 = vst.msk [vmem:[%s2191_s4] sm:$0xff] %vm22_vm2, %v1104_v47  ;;  %v1139_v61 = vmax.f32 %v1075_v48, 0.0  ;;  %v1105_v63 = vmax.f32 %v1041_v49, 0.0  ;;  %v904_v0 = vld [vmem:[#allocation2 + $0x30] sm:$0xff]  ;;  %v808_v1 = vadd.f32 %v1379_v57, %v129_v44  ;;  %v774_v2 = vadd.f32 %v543_v58, %v95_v45  ;;  %v1348_v4 = vpop.f32.mrb[10].mxu0 }
  0xec   :  { %1200 = vst.msk [vmem:[%s2191_s4 + $0x100] sm:$0xff] %vm22_vm2, %v1136_v53  ;;  %1171 = vst.msk [vmem:[%s2191_s4 + $0x18] sm:$0xff] %vm22_vm2, %v1107_v54  ;;  %v1137_v6 = vmax.f32 %v1073_v55, 0.0  ;;  %v975_v7 = vmul.f32 %v1744_v62, %v904_v0  ;;  %v936_v9 = vld [vmem:[#allocation2 + $0x130] sm:$0xff]  ;;  %v902_v10 = vld [vmem:[#allocation2 + $0x20] sm:$0xff]  ;;  %v806_v11 = vadd.f32 %v671_v3, %v127_v51  ;;  %v777_v12 = vadd.f32 %v1348_v4, %v98_v52  ;;  %v1380_v13 = vpop.f32.mrb[10].mxu1 }
  0xed   :  { %841 = vst.msk [vmem:[#allocation2 + $0x50] sm:$0xff] %vm22_vm2, %v776_v56  ;;  %v546_v14 = vpop.f32.mrb[11].mxu0  ;;  %1203 = vst.msk [vmem:[%s2191_s4 + $0x118] sm:$0xff] %vm22_vm2, %v1139_v61  ;;  %v1007_v15 = vmul.f32 %v1744_v62, %v936_v9  ;;  %v973_v16 = vmul.f32 %v1744_v62, %v902_v10  ;;  %v934_v17 = vld [vmem:[#allocation2 + $0x120] sm:$0xff]  ;;  %v905_v18 = vld [vmem:[#allocation2 + $0x38] sm:$0xff]  ;;  %v809_v19 = vadd.f32 %v1380_v13, %v130_v59  ;;  %v674_v21 = vpop.f32.mrb[11].mxu1 }
  0xee   :  { %1169 = vst.msk [vmem:[%s2191_s4 + $0x8] sm:$0xff] %vm22_vm2, %v1105_v63  ;;  %873 = vst.msk [vmem:[#allocation2 + $0x150] sm:$0xff] %vm22_vm2, %v808_v1  ;;  %v775_v20 = vadd.f32 %v546_v14, %v96_v60  ;;  %v1046_v22 = vadd.f32 %v1749_v8, %v975_v7  ;;  %v1005_v23 = vmul.f32 %v1744_v62, %v934_v17  ;;  %v937_v25 = vld [vmem:[#allocation2 + $0x138] sm:$0xff]  ;;  %v131_v45 = vld [vmem:[#allocation2 + $0x160] sm:$0xff] }
  0xef   :  { %839 = vst.msk [vmem:[#allocation2 + $0x40] sm:$0xff] %vm22_vm2, %v774_v2  ;;  %1201 = vst.msk [vmem:[%s2191_s4 + $0x108] sm:$0xff] %vm22_vm2, %v1137_v6  ;;  %v976_v24 = vmul.f32 %v1744_v62, %v905_v18  ;;  %v903_v26 = vld [vmem:[#allocation2 + $0x28] sm:$0xff]  ;;  %v807_v27 = vadd.f32 %v674_v21, %v128_v5  ;;  %v1078_v28 = vadd.f32 %v1749_v8, %v1007_v15  ;;  %v102_v46 = vld [vmem:[#allocation2 + $0x78] sm:$0xff] }
  0xf0   :  { %871 = vst.msk [vmem:[#allocation2 + $0x140] sm:$0xff] %vm22_vm2, %v806_v11  ;;  %842 = vst.msk [vmem:[#allocation2 + $0x58] sm:$0xff] %vm22_vm2, %v777_v12  ;;  %v1044_v29 = vadd.f32 %v1749_v8, %v973_v16  ;;  %v1008_v30 = vmul.f32 %v1744_v62, %v937_v25  ;;  %v974_v31 = vmul.f32 %v1744_v62, %v903_v26  ;;  %v935_v32 = vld [vmem:[#allocation2 + $0x128] sm:$0xff]  ;;  %v1110_v34 = vmax.f32 %v1046_v22, 0.0  ;;  %v134_v53 = vld [vmem:[#allocation2 + $0x178] sm:$0xff] }
  0xf1   :  { %874 = vst.msk [vmem:[#allocation2 + $0x158] sm:$0xff] %vm22_vm2, %v809_v19  ;;  %840 = vst.msk [vmem:[#allocation2 + $0x48] sm:$0xff] %vm22_vm2, %v775_v20  ;;  %v1076_v35 = vadd.f32 %v1749_v8, %v1005_v23  ;;  %v1047_v36 = vadd.f32 %v1749_v8, %v976_v24  ;;  %v1006_v37 = vmul.f32 %v1744_v62, %v935_v32  ;;  %v1142_v40 = vmax.f32 %v1078_v28, 0.0  ;;  %v1351_v44 = vpop.f32.mrb[12].mxu0  ;;  %v1383_v51 = vpop.f32.mrb[12].mxu1  ;;  %v100_v54 = vld [vmem:[#allocation2 + $0x68] sm:$0xff] }
  0xf2   :  { %872 = vst.msk [vmem:[#allocation2 + $0x148] sm:$0xff] %vm22_vm2, %v807_v27  ;;  %v1108_v41 = vmax.f32 %v1044_v29, 0.0  ;;  %v1079_v42 = vadd.f32 %v1749_v8, %v1008_v30  ;;  %v1045_v43 = vadd.f32 %v1749_v8, %v974_v31  ;;  %1174 = vst.msk [vmem:[%s2191_s4 + $0x30] sm:$0xff] %vm22_vm2, %v1110_v34  ;;  %v780_v50 = vadd.f32 %v1351_v44, %v101_v33  ;;  %v559_v52 = vpop.f32.mrb[13].mxu0  ;;  %v687_v60 = vpop.f32.mrb[13].mxu1  ;;  %v132_v63 = vld [vmem:[#allocation2 + $0x168] sm:$0xff] }
  0xf3   :  { %v1140_v47 = vmax.f32 %v1076_v35, 0.0  ;;  %v1111_v48 = vmax.f32 %v1047_v36, 0.0  ;;  %v1077_v49 = vadd.f32 %v1749_v8, %v1006_v37  ;;  %1206 = vst.msk [vmem:[%s2191_s4 + $0x130] sm:$0xff] %vm22_vm2, %v1142_v40  ;;  %v812_v58 = vadd.f32 %v1383_v51, %v133_v38  ;;  %v1352_v61 = vpop.f32.mrb[14].mxu0  ;;  %v1384_v6 = vpop.f32.mrb[14].mxu1  ;;  %v105_v27 = vld [vmem:[#allocation2 + $0x90] sm:$0xff] }
  0xf4   :  { %1172 = vst.msk [vmem:[%s2191_s4 + $0x20] sm:$0xff] %vm22_vm2, %v1108_v41  ;;  %v1143_v55 = vmax.f32 %v1079_v42, 0.0  ;;  %v1109_v56 = vmax.f32 %v1045_v43, 0.0  ;;  %v908_v57 = vld [vmem:[#allocation2 + $0x50] sm:$0xff]  ;;  %v778_v59 = vadd.f32 %v559_v52, %v99_v39  ;;  %845 = vst.msk [vmem:[#allocation2 + $0x70] sm:$0xff] %vm22_vm2, %v780_v50  ;;  %v810_v4 = vadd.f32 %v687_v60, %v131_v45  ;;  %v562_v7 = vpop.f32.mrb[15].mxu0 }
  0xf5   :  { %1204 = vst.msk [vmem:[%s2191_s4 + $0x120] sm:$0xff] %vm22_vm2, %v1140_v47  ;;  %1175 = vst.msk [vmem:[%s2191_s4 + $0x38] sm:$0xff] %vm22_vm2, %v1111_v48  ;;  %v1141_v0 = vmax.f32 %v1077_v49, 0.0  ;;  %v979_v1 = vmul.f32 %v1744_v62, %v908_v57  ;;  %v940_v2 = vld [vmem:[#allocation2 + $0x150] sm:$0xff]  ;;  %v781_v5 = vadd.f32 %v1352_v61, %v102_v46  ;;  %v813_v13 = vadd.f32 %v1384_v6, %v134_v53  ;;  %v690_v15 = vpop.f32.mrb[15].mxu1  ;;  %v103_v33 = vld [vmem:[#allocation2 + $0x80] sm:$0xff] }
  0xf6   :  { %v906_v3 = vld [vmem:[#allocation2 + $0x40] sm:$0xff]  ;;  %1207 = vst.msk [vmem:[%s2191_s4 + $0x138] sm:$0xff] %vm22_vm2, %v1143_v55  ;;  %1173 = vst.msk [vmem:[%s2191_s4 + $0x28] sm:$0xff] %vm22_vm2, %v1109_v56  ;;  %v1011_v9 = vmul.f32 %v1744_v62, %v940_v2  ;;  %v779_v14 = vadd.f32 %v562_v7, %v100_v54  ;;  %v811_v21 = vadd.f32 %v690_v15, %v132_v63  ;;  %v137_v32 = vld [vmem:[#allocation2 + $0x190] sm:$0xff] }
  0xf7   :  { %v977_v10 = vmul.f32 %v1744_v62, %v906_v3  ;;  %v938_v11 = vld [vmem:[#allocation2 + $0x140] sm:$0xff]  ;;  %v909_v12 = vld [vmem:[#allocation2 + $0x58] sm:$0xff]  ;;  %877 = vst.msk [vmem:[#allocation2 + $0x170] sm:$0xff] %vm22_vm2, %v812_v58  ;;  %843 = vst.msk [vmem:[#allocation2 + $0x60] sm:$0xff] %vm22_vm2, %v778_v59  ;;  %v1050_v16 = vadd.f32 %v1749_v8, %v979_v1 }
  0xf8   :  { %1205 = vst.msk [vmem:[%s2191_s4 + $0x128] sm:$0xff] %vm22_vm2, %v1141_v0  ;;  %v1009_v17 = vmul.f32 %v1744_v62, %v938_v11  ;;  %v980_v18 = vmul.f32 %v1744_v62, %v909_v12  ;;  %v941_v19 = vld [vmem:[#allocation2 + $0x158] sm:$0xff]  ;;  %v907_v20 = vld [vmem:[#allocation2 + $0x48] sm:$0xff]  ;;  %875 = vst.msk [vmem:[#allocation2 + $0x160] sm:$0xff] %vm22_vm2, %v810_v4  ;;  %v1082_v22 = vadd.f32 %v1749_v8, %v1011_v9 }
  0xf9   :  { %846 = vst.msk [vmem:[#allocation2 + $0x78] sm:$0xff] %vm22_vm2, %v781_v5  ;;  %v1048_v23 = vadd.f32 %v1749_v8, %v977_v10  ;;  %v1012_v24 = vmul.f32 %v1744_v62, %v941_v19  ;;  %v978_v25 = vmul.f32 %v1744_v62, %v907_v20  ;;  %v939_v26 = vld [vmem:[#allocation2 + $0x148] sm:$0xff]  ;;  %878 = vst.msk [vmem:[#allocation2 + $0x178] sm:$0xff] %vm22_vm2, %v813_v13  ;;  %v1114_v28 = vmax.f32 %v1050_v16, 0.0  ;;  %v1355_v38 = vpop.f32.mrb[16].mxu0  ;;  %v135_v39 = vld [vmem:[#allocation2 + $0x180] sm:$0xff] }
  0xfa   :  { %844 = vst.msk [vmem:[#allocation2 + $0x68] sm:$0xff] %vm22_vm2, %v779_v14  ;;  %v1080_v29 = vadd.f32 %v1749_v8, %v1009_v17  ;;  %v1051_v30 = vadd.f32 %v1749_v8, %v980_v18  ;;  %v1010_v31 = vmul.f32 %v1744_v62, %v939_v26  ;;  %876 = vst.msk [vmem:[#allocation2 + $0x168] sm:$0xff] %vm22_vm2, %v811_v21  ;;  %v1146_v34 = vmax.f32 %v1082_v22, 0.0  ;;  %v106_v40 = vld [vmem:[#allocation2 + $0x98] sm:$0xff]  ;;  %v1387_v45 = vpop.f32.mrb[16].mxu1  ;;  %v575_v46 = vpop.f32.mrb[17].mxu0 }
  0xfb   :  { %v1112_v35 = vmax.f32 %v1048_v23, 0.0  ;;  %v1083_v36 = vadd.f32 %v1749_v8, %v1012_v24  ;;  %v1049_v37 = vadd.f32 %v1749_v8, %v978_v25  ;;  %1178 = vst.msk [vmem:[%s2191_s4 + $0x50] sm:$0xff] %vm22_vm2, %v1114_v28  ;;  %v784_v44 = vadd.f32 %v1355_v38, %v105_v27  ;;  %v138_v47 = vld [vmem:[#allocation2 + $0x198] sm:$0xff]  ;;  %v104_v48 = vld [vmem:[#allocation2 + $0x88] sm:$0xff]  ;;  %v912_v51 = vld [vmem:[#allocation2 + $0x70] sm:$0xff]  ;;  %v703_v54 = vpop.f32.mrb[17].mxu1 }
  0xfc   :  { %v1144_v41 = vmax.f32 %v1080_v29, 0.0  ;;  %v1115_v42 = vmax.f32 %v1051_v30, 0.0  ;;  %v1081_v43 = vadd.f32 %v1749_v8, %v1010_v31  ;;  %1210 = vst.msk [vmem:[%s2191_s4 + $0x150] sm:$0xff] %vm22_vm2, %v1146_v34  ;;  %v816_v52 = vadd.f32 %v1387_v45, %v137_v32  ;;  %v1356_v55 = vpop.f32.mrb[18].mxu0  ;;  %v136_v56 = vld [vmem:[#allocation2 + $0x188] sm:$0xff]  ;;  %v1388_v0 = vpop.f32.mrb[18].mxu1 }
  0xfd   :  { %1176 = vst.msk [vmem:[%s2191_s4 + $0x40] sm:$0xff] %vm22_vm2, %v1112_v35  ;;  %v1147_v49 = vmax.f32 %v1083_v36, 0.0  ;;  %v1113_v50 = vmax.f32 %v1049_v37, 0.0  ;;  %v782_v53 = vadd.f32 %v575_v46, %v103_v33  ;;  %v983_v58 = vmul.f32 %v1744_v62, %v912_v51  ;;  %849 = vst.msk [vmem:[#allocation2 + $0x90] sm:$0xff] %vm22_vm2, %v784_v44  ;;  %v578_v1 = vpop.f32.mrb[19].mxu0  ;;  %v706_v9 = vpop.f32.mrb[19].mxu1 }
  0xfe   :  { %1208 = vst.msk [vmem:[%s2191_s4 + $0x140] sm:$0xff] %vm22_vm2, %v1144_v41  ;;  %1179 = vst.msk [vmem:[%s2191_s4 + $0x58] sm:$0xff] %vm22_vm2, %v1115_v42  ;;  %v1145_v57 = vmax.f32 %v1081_v43, 0.0  ;;  %v944_v59 = vld [vmem:[#allocation2 + $0x170] sm:$0xff]  ;;  %v910_v60 = vld [vmem:[#allocation2 + $0x60] sm:$0xff]  ;;  %v814_v61 = vadd.f32 %v703_v54, %v135_v39  ;;  %v785_v63 = vadd.f32 %v1356_v55, %v106_v40  ;;  %v817_v6 = vadd.f32 %v1388_v0, %v138_v47 }
  0xff   :  { %1211 = vst.msk [vmem:[%s2191_s4 + $0x158] sm:$0xff] %vm22_vm2, %v1147_v49  ;;  %1177 = vst.msk [vmem:[%s2191_s4 + $0x48] sm:$0xff] %vm22_vm2, %v1113_v50  ;;  %v1015_v2 = vmul.f32 %v1744_v62, %v944_v59  ;;  %v981_v3 = vmul.f32 %v1744_v62, %v910_v60  ;;  %v942_v4 = vld [vmem:[#allocation2 + $0x160] sm:$0xff]  ;;  %v783_v7 = vadd.f32 %v578_v1, %v104_v48  ;;  %v109_v21 = vld [vmem:[#allocation2 + $0xb0] sm:$0xff] }
 0x100   :  { %v913_v5 = vld [vmem:[#allocation2 + $0x78] sm:$0xff]  ;;  %881 = vst.msk [vmem:[#allocation2 + $0x190] sm:$0xff] %vm22_vm2, %v816_v52  ;;  %847 = vst.msk [vmem:[#allocation2 + $0x80] sm:$0xff] %vm22_vm2, %v782_v53  ;;  %v1054_v10 = vadd.f32 %v1749_v8, %v983_v58  ;;  %v1013_v11 = vmul.f32 %v1744_v62, %v942_v4  ;;  %v815_v15 = vadd.f32 %v706_v9, %v136_v56  ;;  %v141_v26 = vld [vmem:[#allocation2 + $0x1b0] sm:$0xff] }
 0x101   :  { %1209 = vst.msk [vmem:[%s2191_s4 + $0x148] sm:$0xff] %vm22_vm2, %v1145_v57  ;;  %v984_v12 = vmul.f32 %v1744_v62, %v913_v5  ;;  %v945_v13 = vld [vmem:[#allocation2 + $0x178] sm:$0xff]  ;;  %v911_v14 = vld [vmem:[#allocation2 + $0x68] sm:$0xff]  ;;  %879 = vst.msk [vmem:[#allocation2 + $0x180] sm:$0xff] %vm22_vm2, %v814_v61  ;;  %v1086_v16 = vadd.f32 %v1749_v8, %v1015_v2  ;;  %v1052_v17 = vadd.f32 %v1749_v8, %v981_v3  ;;  %v1359_v32 = vpop.f32.mrb[20].mxu0  ;;  %v1391_v39 = vpop.f32.mrb[20].mxu1 }
 0x102   :  { %850 = vst.msk [vmem:[#allocation2 + $0x98] sm:$0xff] %vm22_vm2, %v785_v63  ;;  %v1016_v18 = vmul.f32 %v1744_v62, %v945_v13  ;;  %v982_v19 = vmul.f32 %v1744_v62, %v911_v14  ;;  %v943_v20 = vld [vmem:[#allocation2 + $0x168] sm:$0xff]  ;;  %882 = vst.msk [vmem:[#allocation2 + $0x198] sm:$0xff] %vm22_vm2, %v817_v6  ;;  %v1118_v22 = vmax.f32 %v1054_v10, 0.0  ;;  %v1084_v23 = vadd.f32 %v1749_v8, %v1013_v11  ;;  %v107_v27 = vld [vmem:[#allocation2 + $0xa0] sm:$0xff]  ;;  %v591_v40 = vpop.f32.mrb[21].mxu0 }
 0x103   :  { %848 = vst.msk [vmem:[#allocation2 + $0x88] sm:$0xff] %vm22_vm2, %v783_v7  ;;  %v1055_v24 = vadd.f32 %v1749_v8, %v984_v12  ;;  %v1014_v25 = vmul.f32 %v1744_v62, %v943_v20  ;;  %880 = vst.msk [vmem:[#allocation2 + $0x188] sm:$0xff] %vm22_vm2, %v815_v15  ;;  %v1150_v28 = vmax.f32 %v1086_v16, 0.0  ;;  %v1116_v29 = vmax.f32 %v1052_v17, 0.0  ;;  %v139_v33 = vld [vmem:[#allocation2 + $0x1a0] sm:$0xff]  ;;  %v110_v34 = vld [vmem:[#allocation2 + $0xb8] sm:$0xff] }
 0x104   :  { %v1087_v30 = vadd.f32 %v1749_v8, %v1016_v18  ;;  %v1053_v31 = vadd.f32 %v1749_v8, %v982_v19  ;;  %1182 = vst.msk [vmem:[%s2191_s4 + $0x70] sm:$0xff] %vm22_vm2, %v1118_v22  ;;  %v1148_v35 = vmax.f32 %v1084_v23, 0.0  ;;  %v788_v38 = vadd.f32 %v1359_v32, %v109_v21  ;;  %v142_v41 = vld [vmem:[#allocation2 + $0x1b8] sm:$0xff]  ;;  %v108_v42 = vld [vmem:[#allocation2 + $0xa8] sm:$0xff]  ;;  %v916_v45 = vld [vmem:[#allocation2 + $0x90] sm:$0xff]  ;;  %v719_v48 = vpop.f32.mrb[21].mxu1 }
 0x105   :  { %v1119_v36 = vmax.f32 %v1055_v24, 0.0  ;;  %v1085_v37 = vadd.f32 %v1749_v8, %v1014_v25  ;;  %1214 = vst.msk [vmem:[%s2191_s4 + $0x170] sm:$0xff] %vm22_vm2, %v1150_v28  ;;  %1180 = vst.msk [vmem:[%s2191_s4 + $0x60] sm:$0xff] %vm22_vm2, %v1116_v29  ;;  %v820_v46 = vadd.f32 %v1391_v39, %v141_v26  ;;  %v786_v47 = vadd.f32 %v591_v40, %v107_v27  ;;  %v1360_v49 = vpop.f32.mrb[22].mxu0  ;;  %v140_v50 = vld [vmem:[#allocation2 + $0x1a8] sm:$0xff]  ;;  %v1392_v57 = vpop.f32.mrb[22].mxu1 }
 0x106   :  { %v1151_v43 = vmax.f32 %v1087_v30, 0.0  ;;  %v1117_v44 = vmax.f32 %v1053_v31, 0.0  ;;  %1212 = vst.msk [vmem:[%s2191_s4 + $0x160] sm:$0xff] %vm22_vm2, %v1148_v35  ;;  %v987_v52 = vmul.f32 %v1744_v62, %v916_v45  ;;  %853 = vst.msk [vmem:[#allocation2 + $0xb0] sm:$0xff] %vm22_vm2, %v788_v38  ;;  %v818_v55 = vadd.f32 %v719_v48, %v139_v33  ;;  %v594_v58 = vpop.f32.mrb[23].mxu0  ;;  %v722_v2 = vpop.f32.mrb[23].mxu1 }
 0x107   :  { %1183 = vst.msk [vmem:[%s2191_s4 + $0x78] sm:$0xff] %vm22_vm2, %v1119_v36  ;;  %v1149_v51 = vmax.f32 %v1085_v37, 0.0  ;;  %v948_v53 = vld [vmem:[#allocation2 + $0x190] sm:$0xff]  ;;  %v914_v54 = vld [vmem:[#allocation2 + $0x80] sm:$0xff]  ;;  %v789_v56 = vadd.f32 %v1360_v49, %v110_v34  ;;  %885 = vst.msk [vmem:[#allocation2 + $0x1b0] sm:$0xff] %vm22_vm2, %v820_v46  ;;  %v821_v0 = vadd.f32 %v1392_v57, %v142_v41  ;;  %v787_v1 = vadd.f32 %v594_v58, %v108_v42 }
 0x108   :  { %1215 = vst.msk [vmem:[%s2191_s4 + $0x178] sm:$0xff] %vm22_vm2, %v1151_v43  ;;  %1181 = vst.msk [vmem:[%s2191_s4 + $0x68] sm:$0xff] %vm22_vm2, %v1117_v44  ;;  %v1019_v59 = vmul.f32 %v1744_v62, %v948_v53  ;;  %v985_v60 = vmul.f32 %v1744_v62, %v914_v54  ;;  %v946_v61 = vld [vmem:[#allocation2 + $0x180] sm:$0xff]  ;;  %v1058_v3 = vadd.f32 %v1749_v8, %v987_v52  ;;  %v113_v15 = vld [vmem:[#allocation2 + $0xd0] sm:$0xff] }
 0x109   :  { %v917_v63 = vld [vmem:[#allocation2 + $0x98] sm:$0xff]  ;;  %851 = vst.msk [vmem:[#allocation2 + $0xa0] sm:$0xff] %vm22_vm2, %v786_v47  ;;  %1213 = vst.msk [vmem:[%s2191_s4 + $0x168] sm:$0xff] %vm22_vm2, %v1149_v51  ;;  %v1017_v4 = vmul.f32 %v1744_v62, %v946_v61  ;;  %v819_v9 = vadd.f32 %v722_v2, %v140_v50  ;;  %v145_v20 = vld [vmem:[#allocation2 + $0x1d0] sm:$0xff]  ;;  %v1363_v26 = vpop.f32.mrb[24].mxu0  ;;  %v1395_v33 = vpop.f32.mrb[24].mxu1 }
 0x10a   :  { %v988_v5 = vmul.f32 %v1744_v62, %v917_v63  ;;  %v949_v6 = vld [vmem:[#allocation2 + $0x198] sm:$0xff]  ;;  %v915_v7 = vld [vmem:[#allocation2 + $0x88] sm:$0xff]  ;;  %883 = vst.msk [vmem:[#allocation2 + $0x1a0] sm:$0xff] %vm22_vm2, %v818_v55  ;;  %854 = vst.msk [vmem:[#allocation2 + $0xb8] sm:$0xff] %vm22_vm2, %v789_v56  ;;  %v1090_v10 = vadd.f32 %v1749_v8, %v1019_v59  ;;  %v1056_v11 = vadd.f32 %v1749_v8, %v985_v60  ;;  %v1122_v16 = vmax.f32 %v1058_v3, 0.0  ;;  %v607_v34 = vpop.f32.mrb[25].mxu0 }
 0x10b   :  { %v1020_v12 = vmul.f32 %v1744_v62, %v949_v6  ;;  %v986_v13 = vmul.f32 %v1744_v62, %v915_v7  ;;  %v947_v14 = vld [vmem:[#allocation2 + $0x188] sm:$0xff]  ;;  %886 = vst.msk [vmem:[#allocation2 + $0x1b8] sm:$0xff] %vm22_vm2, %v821_v0  ;;  %852 = vst.msk [vmem:[#allocation2 + $0xa8] sm:$0xff] %vm22_vm2, %v787_v1  ;;  %v1088_v17 = vadd.f32 %v1749_v8, %v1017_v4  ;;  %v111_v21 = vld [vmem:[#allocation2 + $0xc0] sm:$0xff]  ;;  %v735_v42 = vpop.f32.mrb[25].mxu1  ;;  %v1364_v43 = vpop.f32.mrb[26].mxu0 }
 0x10c   :  { %v1059_v18 = vadd.f32 %v1749_v8, %v988_v5  ;;  %v1018_v19 = vmul.f32 %v1744_v62, %v947_v14  ;;  %884 = vst.msk [vmem:[#allocation2 + $0x1a8] sm:$0xff] %vm22_vm2, %v819_v9  ;;  %v1154_v22 = vmax.f32 %v1090_v10, 0.0  ;;  %v1120_v23 = vmax.f32 %v1056_v11, 0.0  ;;  %v143_v27 = vld [vmem:[#allocation2 + $0x1c0] sm:$0xff]  ;;  %v114_v28 = vld [vmem:[#allocation2 + $0xd8] sm:$0xff]  ;;  %1186 = vst.msk [vmem:[%s2191_s4 + $0x90] sm:$0xff] %vm22_vm2, %v1122_v16 }
 0x10d   :  { %v1091_v24 = vadd.f32 %v1749_v8, %v1020_v12  ;;  %v1057_v25 = vadd.f32 %v1749_v8, %v986_v13  ;;  %v1152_v29 = vmax.f32 %v1088_v17, 0.0  ;;  %v792_v32 = vadd.f32 %v1363_v26, %v113_v15  ;;  %v146_v35 = vld [vmem:[#allocation2 + $0x1d8] sm:$0xff]  ;;  %v112_v36 = vld [vmem:[#allocation2 + $0xc8] sm:$0xff]  ;;  %v920_v39 = vld [vmem:[#allocation2 + $0xb0] sm:$0xff]  ;;  %v1396_v51 = vpop.f32.mrb[26].mxu1  ;;  %v610_v52 = vpop.f32.mrb[27].mxu0 }
 0x10e   :  { %v1123_v30 = vmax.f32 %v1059_v18, 0.0  ;;  %v1089_v31 = vadd.f32 %v1749_v8, %v1018_v19  ;;  %1218 = vst.msk [vmem:[%s2191_s4 + $0x190] sm:$0xff] %vm22_vm2, %v1154_v22  ;;  %1184 = vst.msk [vmem:[%s2191_s4 + $0x80] sm:$0xff] %vm22_vm2, %v1120_v23  ;;  %v824_v40 = vadd.f32 %v1395_v33, %v145_v20  ;;  %v790_v41 = vadd.f32 %v607_v34, %v111_v21  ;;  %v144_v44 = vld [vmem:[#allocation2 + $0x1c8] sm:$0xff]  ;;  %v952_v47 = vld [vmem:[#allocation2 + $0x1b0] sm:$0xff]  ;;  %v738_v59 = vpop.f32.mrb[27].mxu1 }
 0x10f   :  { %v1155_v37 = vmax.f32 %v1091_v24, 0.0  ;;  %v1121_v38 = vmax.f32 %v1057_v25, 0.0  ;;  %1216 = vst.msk [vmem:[%s2191_s4 + $0x180] sm:$0xff] %vm22_vm2, %v1152_v29  ;;  %v991_v46 = vmul.f32 %v1744_v62, %v920_v39  ;;  %857 = vst.msk [vmem:[#allocation2 + $0xd0] sm:$0xff] %vm22_vm2, %v792_v32  ;;  %v822_v49 = vadd.f32 %v735_v42, %v143_v27  ;;  %v117_v9 = vld [vmem:[#allocation2 + $0xf0] sm:$0xff]  ;;  %v115_v15 = vld [vmem:[#allocation2 + $0xe0] sm:$0xff] }
 0x110   :  { %1187 = vst.msk [vmem:[%s2191_s4 + $0x98] sm:$0xff] %vm22_vm2, %v1123_v30  ;;  %v1153_v45 = vmax.f32 %v1089_v31, 0.0  ;;  %v918_v48 = vld [vmem:[#allocation2 + $0xa0] sm:$0xff]  ;;  %v793_v50 = vadd.f32 %v1364_v43, %v114_v28  ;;  %v1023_v53 = vmul.f32 %v1744_v62, %v952_v47  ;;  %889 = vst.msk [vmem:[#allocation2 + $0x1d0] sm:$0xff] %vm22_vm2, %v824_v40  ;;  %v825_v57 = vadd.f32 %v1396_v51, %v146_v35  ;;  %v149_v14 = vld [vmem:[#allocation2 + $0x1f0] sm:$0xff] }
 0x111   :  { %1219 = vst.msk [vmem:[%s2191_s4 + $0x198] sm:$0xff] %vm22_vm2, %v1155_v37  ;;  %1185 = vst.msk [vmem:[%s2191_s4 + $0x88] sm:$0xff] %vm22_vm2, %v1121_v38  ;;  %v989_v54 = vmul.f32 %v1744_v62, %v918_v48  ;;  %v950_v55 = vld [vmem:[#allocation2 + $0x1a0] sm:$0xff]  ;;  %v921_v56 = vld [vmem:[#allocation2 + $0xb8] sm:$0xff]  ;;  %v791_v58 = vadd.f32 %v610_v52, %v112_v36  ;;  %v1062_v60 = vadd.f32 %v1749_v8, %v991_v46  ;;  %v1367_v20 = vpop.f32.mrb[28].mxu0  ;;  %v1399_v27 = vpop.f32.mrb[28].mxu1 }
 0x112   :  { %855 = vst.msk [vmem:[#allocation2 + $0xc0] sm:$0xff] %vm22_vm2, %v790_v41  ;;  %1217 = vst.msk [vmem:[%s2191_s4 + $0x188] sm:$0xff] %vm22_vm2, %v1153_v45  ;;  %v1021_v61 = vmul.f32 %v1744_v62, %v950_v55  ;;  %v992_v63 = vmul.f32 %v1744_v62, %v921_v56  ;;  %v953_v0 = vld [vmem:[#allocation2 + $0x1b8] sm:$0xff]  ;;  %v919_v1 = vld [vmem:[#allocation2 + $0xa8] sm:$0xff]  ;;  %v823_v2 = vadd.f32 %v738_v59, %v144_v44  ;;  %v623_v28 = vpop.f32.mrb[29].mxu0  ;;  %v751_v36 = vpop.f32.mrb[29].mxu1 }
 0x113   :  { %887 = vst.msk [vmem:[#allocation2 + $0x1c0] sm:$0xff] %vm22_vm2, %v822_v49  ;;  %858 = vst.msk [vmem:[#allocation2 + $0xd8] sm:$0xff] %vm22_vm2, %v793_v50  ;;  %v1094_v3 = vadd.f32 %v1749_v8, %v1023_v53  ;;  %v1060_v4 = vadd.f32 %v1749_v8, %v989_v54  ;;  %v1024_v5 = vmul.f32 %v1744_v62, %v953_v0  ;;  %v951_v7 = vld [vmem:[#allocation2 + $0x1a8] sm:$0xff]  ;;  %v1126_v10 = vmax.f32 %v1062_v60, 0.0  ;;  %v147_v21 = vld [vmem:[#allocation2 + $0x1e0] sm:$0xff]  ;;  %v1368_v37 = vpop.f32.mrb[30].mxu0 }
 0x114   :  { %v990_v6 = vmul.f32 %v1744_v62, %v919_v1  ;;  %890 = vst.msk [vmem:[#allocation2 + $0x1d8] sm:$0xff] %vm22_vm2, %v825_v57  ;;  %856 = vst.msk [vmem:[#allocation2 + $0xc8] sm:$0xff] %vm22_vm2, %v791_v58  ;;  %v1092_v11 = vadd.f32 %v1749_v8, %v1021_v61  ;;  %v1063_v12 = vadd.f32 %v1749_v8, %v992_v63  ;;  %v118_v22 = vld [vmem:[#allocation2 + $0xf8] sm:$0xff]  ;;  %v116_v30 = vld [vmem:[#allocation2 + $0xe8] sm:$0xff]  ;;  %v1400_v45 = vpop.f32.mrb[30].mxu1  ;;  %v626_v46 = vpop.f32.mrb[31].mxu0 }
 0x115   :  { %v1022_v13 = vmul.f32 %v1744_v62, %v951_v7  ;;  %888 = vst.msk [vmem:[#allocation2 + $0x1c8] sm:$0xff] %vm22_vm2, %v823_v2  ;;  %v1158_v16 = vmax.f32 %v1094_v3, 0.0  ;;  %v1124_v17 = vmax.f32 %v1060_v4, 0.0  ;;  %v1095_v18 = vadd.f32 %v1749_v8, %v1024_v5  ;;  %1190 = vst.msk [vmem:[%s2191_s4 + $0xb0] sm:$0xff] %vm22_vm2, %v1126_v10  ;;  %v150_v29 = vld [vmem:[#allocation2 + $0x1f8] sm:$0xff]  ;;  %v148_v38 = vld [vmem:[#allocation2 + $0x1e8] sm:$0xff] }
 0x116   :  { %v1061_v19 = vadd.f32 %v1749_v8, %v990_v6  ;;  %v1156_v23 = vmax.f32 %v1092_v11, 0.0  ;;  %v1127_v24 = vmax.f32 %v1063_v12, 0.0  ;;  %v796_v26 = vadd.f32 %v1367_v20, %v117_v9  ;;  %v924_v33 = vld [vmem:[#allocation2 + $0xd0] sm:$0xff]  ;;  %v754_v53 = vpop.f32.mrb[31].mxu1 }
 0x117   :  { %v1093_v25 = vadd.f32 %v1749_v8, %v1022_v13  ;;  %1222 = vst.msk [vmem:[%s2191_s4 + $0x1b0] sm:$0xff] %vm22_vm2, %v1158_v16  ;;  %1188 = vst.msk [vmem:[%s2191_s4 + $0xa0] sm:$0xff] %vm22_vm2, %v1124_v17  ;;  %v1159_v31 = vmax.f32 %v1095_v18, 0.0  ;;  %v828_v34 = vadd.f32 %v1399_v27, %v149_v14  ;;  %v794_v35 = vadd.f32 %v623_v28, %v115_v15  ;;  %v956_v41 = vld [vmem:[#allocation2 + $0x1d0] sm:$0xff] }
 0x118   :  { %v1125_v32 = vmax.f32 %v1061_v19, 0.0  ;;  %1220 = vst.msk [vmem:[%s2191_s4 + $0x1a0] sm:$0xff] %vm22_vm2, %v1156_v23  ;;  %1191 = vst.msk [vmem:[%s2191_s4 + $0xb8] sm:$0xff] %vm22_vm2, %v1127_v24  ;;  %v995_v40 = vmul.f32 %v1744_v62, %v924_v33  ;;  %v826_v43 = vadd.f32 %v751_v36, %v147_v21  ;;  %v797_v44 = vadd.f32 %v1368_v37, %v118_v22  ;;  %v1439_v36 = vld [vmem:[%s2190_s3] ss:$0 sm:$0xff] }
 0x119   :  { %v1157_v39 = vmax.f32 %v1093_v25, 0.0  ;;  %v922_v42 = vld [vmem:[#allocation2 + $0xc0] sm:$0xff]  ;;  %861 = vst.msk [vmem:[#allocation2 + $0xf0] sm:$0xff] %vm22_vm2, %v796_v26  ;;  %1223 = vst.msk [vmem:[%s2191_s4 + $0x1b8] sm:$0xff] %vm22_vm2, %v1159_v31  ;;  %v1027_v47 = vmul.f32 %v1744_v62, %v956_v41  ;;  %v829_v51 = vadd.f32 %v1400_v45, %v150_v29  ;;  %v795_v52 = vadd.f32 %v626_v46, %v116_v30 }
 0x11a   :  { %1189 = vst.msk [vmem:[%s2191_s4 + $0xa8] sm:$0xff] %vm22_vm2, %v1125_v32  ;;  %v993_v48 = vmul.f32 %v1744_v62, %v922_v42  ;;  %v954_v49 = vld [vmem:[#allocation2 + $0x1c0] sm:$0xff]  ;;  %v925_v50 = vld [vmem:[#allocation2 + $0xd8] sm:$0xff]  ;;  %893 = vst.msk [vmem:[#allocation2 + $0x1f0] sm:$0xff] %vm22_vm2, %v828_v34  ;;  %v1066_v54 = vadd.f32 %v1749_v8, %v995_v40  ;;  %v827_v59 = vadd.f32 %v754_v53, %v148_v38 }
 0x11b   :  { %859 = vst.msk [vmem:[#allocation2 + $0xe0] sm:$0xff] %vm22_vm2, %v794_v35  ;;  %1221 = vst.msk [vmem:[%s2191_s4 + $0x1a8] sm:$0xff] %vm22_vm2, %v1157_v39  ;;  %v1025_v55 = vmul.f32 %v1744_v62, %v954_v49  ;;  %v996_v56 = vmul.f32 %v1744_v62, %v925_v50  ;;  %v957_v57 = vld [vmem:[#allocation2 + $0x1d8] sm:$0xff]  ;;  %v923_v58 = vld [vmem:[#allocation2 + $0xc8] sm:$0xff]  ;;  %v1098_v60 = vadd.f32 %v1749_v8, %v1027_v47 }
 0x11c   :  { %891 = vst.msk [vmem:[#allocation2 + $0x1e0] sm:$0xff] %vm22_vm2, %v826_v43  ;;  %862 = vst.msk [vmem:[#allocation2 + $0xf8] sm:$0xff] %vm22_vm2, %v797_v44  ;;  %v1064_v61 = vadd.f32 %v1749_v8, %v993_v48  ;;  %v1028_v63 = vmul.f32 %v1744_v62, %v957_v57  ;;  %v994_v0 = vmul.f32 %v1744_v62, %v923_v58  ;;  %v955_v1 = vld [vmem:[#allocation2 + $0x1c8] sm:$0xff]  ;;  %v1130_v2 = vmax.f32 %v1066_v54, 0.0  ;;  %v1438_v26 = vld [vmem:[%s2189_s2] ss:$0 sm:$0xff] }
 0x11d   :  { %894 = vst.msk [vmem:[#allocation2 + $0x1f8] sm:$0xff] %vm22_vm2, %v829_v51  ;;  %860 = vst.msk [vmem:[#allocation2 + $0xe8] sm:$0xff] %vm22_vm2, %v795_v52  ;;  %v1096_v3 = vadd.f32 %v1749_v8, %v1025_v55  ;;  %v1067_v4 = vadd.f32 %v1749_v8, %v996_v56  ;;  %v1026_v5 = vmul.f32 %v1744_v62, %v955_v1  ;;  %v1162_v6 = vmax.f32 %v1098_v60, 0.0 }
 0x11e   :  { %892 = vst.msk [vmem:[#allocation2 + $0x1e8] sm:$0xff] %vm22_vm2, %v827_v59  ;;  %v1128_v7 = vmax.f32 %v1064_v61, 0.0  ;;  %v1099_v9 = vadd.f32 %v1749_v8, %v1028_v63  ;;  %v1065_v10 = vadd.f32 %v1749_v8, %v994_v0  ;;  %1194 = vst.msk [vmem:[%s2191_s4 + $0xd0] sm:$0xff] %vm22_vm2, %v1130_v2 }
 0x11f   :  { %v1160_v11 = vmax.f32 %v1096_v3, 0.0  ;;  %v1131_v12 = vmax.f32 %v1067_v4, 0.0  ;;  %v1097_v13 = vadd.f32 %v1749_v8, %v1026_v5  ;;  %1226 = vst.msk [vmem:[%s2191_s4 + $0x1d0] sm:$0xff] %vm22_vm2, %v1162_v6 }
 0x120   :  { %1192 = vst.msk [vmem:[%s2191_s4 + $0xc0] sm:$0xff] %vm22_vm2, %v1128_v7  ;;  %v1163_v14 = vmax.f32 %v1099_v9, 0.0  ;;  %v1129_v15 = vmax.f32 %v1065_v10, 0.0  ;;  %v928_v16 = vld [vmem:[#allocation2 + $0xf0] sm:$0xff] }
 0x121   :  { %1224 = vst.msk [vmem:[%s2191_s4 + $0x1c0] sm:$0xff] %vm22_vm2, %v1160_v11  ;;  %1195 = vst.msk [vmem:[%s2191_s4 + $0xd8] sm:$0xff] %vm22_vm2, %v1131_v12  ;;  %v1161_v17 = vmax.f32 %v1097_v13, 0.0  ;;  %v999_v18 = vmul.f32 %v1744_v62, %v928_v16  ;;  %v960_v19 = vld [vmem:[#allocation2 + $0x1f0] sm:$0xff] }
 0x122   :  { %v926_v20 = vld [vmem:[#allocation2 + $0xe0] sm:$0xff]  ;;  %1227 = vst.msk [vmem:[%s2191_s4 + $0x1d8] sm:$0xff] %vm22_vm2, %v1163_v14  ;;  %1193 = vst.msk [vmem:[%s2191_s4 + $0xc8] sm:$0xff] %vm22_vm2, %v1129_v15  ;;  %v1031_v21 = vmul.f32 %v1744_v62, %v960_v19 }
 0x123   :  { %v997_v22 = vmul.f32 %v1744_v62, %v926_v20  ;;  %v958_v23 = vld [vmem:[#allocation2 + $0x1e0] sm:$0xff]  ;;  %v929_v24 = vld [vmem:[#allocation2 + $0xf8] sm:$0xff]  ;;  %1225 = vst.msk [vmem:[%s2191_s4 + $0x1c8] sm:$0xff] %vm22_vm2, %v1161_v17  ;;  %v1070_v25 = vadd.f32 %v1749_v8, %v999_v18 }
 0x124   :  { %v1029_v27 = vmul.f32 %v1438_v26, %v958_v23  ;;  %v1000_v28 = vmul.f32 %v1438_v26, %v929_v24  ;;  %v961_v29 = vld [vmem:[#allocation2 + $0x1f8] sm:$0xff]  ;;  %v927_v30 = vld [vmem:[#allocation2 + $0xe8] sm:$0xff]  ;;  %v1102_v31 = vadd.f32 %v1749_v8, %v1031_v21 }
 0x125   :  { %v1068_v62 = vadd.f32 %v1749_v8, %v997_v22  ;;  %v1032_v32 = vmul.f32 %v1438_v26, %v961_v29  ;;  %v998_v33 = vmul.f32 %v1438_v26, %v927_v30  ;;  %v959_v34 = vld [vmem:[#allocation2 + $0x1e8] sm:$0xff]  ;;  %v1134_v35 = vmax.f32 %v1070_v25, 0.0 }
 0x126   :  { %v1100_v37 = vadd.f32 %v1439_v36, %v1029_v27  ;;  %v1071_v38 = vadd.f32 %v1439_v36, %v1000_v28  ;;  %v1030_v39 = vmul.f32 %v1438_v26, %v959_v34  ;;  %v1166_v40 = vmax.f32 %v1102_v31, 0.0 }
 0x127   :  { %v1132_v41 = vmax.f32 %v1068_v62, 0.0  ;;  %v1103_v42 = vadd.f32 %v1439_v36, %v1032_v32  ;;  %v1069_v43 = vadd.f32 %v1439_v36, %v998_v33  ;;  %1198 = vst.msk [vmem:[%s2191_s4 + $0xf0] sm:$0xff] %vm22_vm2, %v1134_v35 }
 0x128   :  { %v1164_v8 = vmax.f32 %v1100_v37, 0.0  ;;  %v1135_v44 = vmax.f32 %v1071_v38, 0.0  ;;  %v1101_v45 = vadd.f32 %v1439_v36, %v1030_v39  ;;  %1230 = vst.msk [vmem:[%s2191_s4 + $0x1f0] sm:$0xff] %vm22_vm2, %v1166_v40 }
 0x129   :  { %1196 = vst.msk [vmem:[%s2191_s4 + $0xe0] sm:$0xff] %vm22_vm2, %v1132_v41  ;;  %v1167_v46 = vmax.f32 %v1103_v42, 0.0  ;;  %v1133_v47 = vmax.f32 %v1069_v43, 0.0 }
 0x12a   :  { %1228 = vst.msk [vmem:[%s2191_s4 + $0x1e0] sm:$0xff] %vm22_vm2, %v1164_v8  ;;  %1199 = vst.msk [vmem:[%s2191_s4 + $0xf8] sm:$0xff] %vm22_vm2, %v1135_v44  ;;  %v1165_v48 = vmax.f32 %v1101_v45, 0.0 }
 0x12b   :  { %1231 = vst.msk [vmem:[%s2191_s4 + $0x1f8] sm:$0xff] %vm22_vm2, %v1167_v46  ;;  %1197 = vst.msk [vmem:[%s2191_s4 + $0xe8] sm:$0xff] %vm22_vm2, %v1133_v47 }
 0x12c   :  { %1229 = vst.msk [vmem:[%s2191_s4 + $0x1e8] sm:$0xff] %vm22_vm2, %v1165_v48 }

// kernel: forward.39
= control target key start
LH: loop header
LB: loop body
LE: loop exit
PB: predicated region body
PF: predicated region fallthrough
CT: control target
= control target key end

     0   :  { %vm473_vm0 = vcmask 1041408   ;;  %vm376_vm1 = vcmask 31744   ;;  %vm22_vm2 = vcmask 130048   ;;  %v1374_v1 = vmov 0.0   ;;  %s2125_s1 = inlined_call_operand.vmem [shape: bf16[4,16], index: 1, kind: input, shape index: {}]   ;;  %s2126_s0 = inlined_call_operand.vmem [shape: bf16[512,4], index: 0, kind: input, shape index: {}]   ;;  %s2127_s2 = inlined_call_operand.vmem [shape: f32[1,16], index: 2, kind: input, shape index: {}]   ;;  %s2128_s3 = inlined_call_operand.vmem [shape: f32[1,16], index: 3, kind: input, shape index: {}]   ;;  %s2129_s4 = inlined_call_operand.vmem [shape: f32[512,16], index: 4, kind: output, shape index: {}]  }
   0x1   :  { %v1403_v0 = vld [vmem:[%s2125_s1] sm:$0x3]  ;;  %25 = vst.msk [vmem:[#allocation2 + $0x10] sm:$0xff] %vm22_vm2, %v1374_v1  ;;  %23 = vst.msk [vmem:[#allocation2] sm:$0xff] %vm22_vm2, %v1374_v1  ;;  %v1344_v5 = vld [vmem:[%s2126_s0 + $0x8] sm:$0xff]  }
   0x2   :  { %24 = vst.msk [vmem:[#allocation2 + $0x8] sm:$0xff] %vm22_vm2, %v1374_v1  ;;  %26 = vst.msk [vmem:[#allocation2 + $0x18] sm:$0xff] %vm22_vm2, %v1374_v1  ;;  %1339 = vmatprep.subr.msk.bf16.mxu0 %vm473_vm0, %v1403_v0  ;;  %1340 = vmatprep.subr.msk.bf16.mxu1 %vm473_vm0, %v1403_v0  ;;  %v475_v2 = vsel %vm473_vm0, %v1403_v0, 0  ;;  %v1342_v3 = vld [vmem:[%s2126_s0] sm:$0xff]   ;;  %v1345_v6 = vld [vmem:[%s2126_s0 + $0x88] sm:$0xff]  }
   0x3   :  { %27 = vst.msk [vmem:[#allocation2 + $0x20] sm:$0xff] %vm22_vm2, %v1374_v1  ;;  %28 = vst.msk [vmem:[#allocation2 + $0x28] sm:$0xff] %vm22_vm2, %v1374_v1  ;;  %1272 = vmatpush3.bf16.msra.mxu0 %v475_v2  ;;  %1338 = vmatpush3.bf16.msra.mxu1 %v475_v2  ;;  %v1343_v4 = vld [vmem:[%s2126_s0 + $0x80] sm:$0xff]   ;;  %v1346_v7 = vld [vmem:[%s2126_s0 + $0x10] sm:$0xff]  }
   0x4   :  { %29 = vst.msk [vmem:[#allocation2 + $0x30] sm:$0xff] %vm22_vm2, %v1374_v1  ;;  %30 = vst.msk [vmem:[#allocation2 + $0x38] sm:$0xff] %vm22_vm2, %v1374_v1  ;;  %1273 = vmatprep.mubr.msk.bf16.mxu0 %vm376_vm1, %v1342_v3  ;;  %1305 = vmatprep.mubr.msk.bf16.mxu1 %vm376_vm1, %v1343_v4  ;;  %v1347_v8 = vld [vmem:[%s2126_s0 + $0x90] sm:$0xff]   ;;  %v1348_v9 = vld [vmem:[%s2126_s0 + $0x18] sm:$0xff]  }
   0x5   :  { %31 = vst.msk [vmem:[#allocation2 + $0x40] sm:$0xff] %vm22_vm2, %v1374_v1  ;;  %32 = vst.msk [vmem:[#allocation2 + $0x48] sm:$0xff] %vm22_vm2, %v1374_v1  ;;  %v1349_v10 = vld [vmem:[%s2126_s0 + $0x98] sm:$0xff]   ;;  %v1350_v11 = vld [vmem:[%s2126_s0 + $0x20] sm:$0xff]  }
   0x6   :  { %33 = vst.msk [vmem:[#allocation2 + $0x50] sm:$0xff] %vm22_vm2, %v1374_v1  ;;  %34 = vst.msk [vmem:[#allocation2 + $0x58] sm:$0xff] %vm22_vm2, %v1374_v1  ;;  %1274 = vmatmul.mubr.msk.bf16.vlgmr.msra.gmra.mrb[0].mxu0 %vm376_vm1, %v1344_v5  ;;  %1306 = vmatmul.mubr.msk.bf16.vlgmr.msra.gmra.mrb[0].mxu1 %vm376_vm1, %v1345_v6  ;;  %v1351_v12 = vld [vmem:[%s2126_s0 + $0xa0] sm:$0xff]   ;;  %v1352_v13 = vld [vmem:[%s2126_s0 + $0x28] sm:$0xff]  }
   0x7   :  { %35 = vst.msk [vmem:[#allocation2 + $0x60] sm:$0xff] %vm22_vm2, %v1374_v1  ;;  %36 = vst.msk [vmem:[#allocation2 + $0x68] sm:$0xff] %vm22_vm2, %v1374_v1  ;;  %1277 = vmatprep.mubr.msk.bf16.mxu0 %vm376_vm1, %v1346_v7  ;;  %1309 = vmatprep.mubr.msk.bf16.mxu1 %vm376_vm1, %v1347_v8  ;;  %v1353_v14 = vld [vmem:[%s2126_s0 + $0xa8] sm:$0xff]   ;;  %v1354_v15 = vld [vmem:[%s2126_s0 + $0x30] sm:$0xff]  }
   0x8   :  { %37 = vst.msk [vmem:[#allocation2 + $0x70] sm:$0xff] %vm22_vm2, %v1374_v1  ;;  %38 = vst.msk [vmem:[#allocation2 + $0x78] sm:$0xff] %vm22_vm2, %v1374_v1  ;;  %v1355_v16 = vld [vmem:[%s2126_s0 + $0xb0] sm:$0xff]   ;;  %v1356_v17 = vld [vmem:[%s2126_s0 + $0x38] sm:$0xff]  }
   0x9   :  { %39 = vst.msk [vmem:[#allocation2 + $0x80] sm:$0xff] %vm22_vm2, %v1374_v1  ;;  %40 = vst.msk [vmem:[#allocation2 + $0x88] sm:$0xff] %vm22_vm2, %v1374_v1  ;;  %v1357_v18 = vld [vmem:[%s2126_s0 + $0xb8] sm:$0xff]   ;;  %v1358_v19 = vld [vmem:[%s2126_s0 + $0x40] sm:$0xff]  }
   0xa   :  { %41 = vst.msk [vmem:[#allocation2 + $0x90] sm:$0xff] %vm22_vm2, %v1374_v1  ;;  %42 = vst.msk [vmem:[#allocation2 + $0x98] sm:$0xff] %vm22_vm2, %v1374_v1  ;;  %v1359_v20 = vld [vmem:[%s2126_s0 + $0xc0] sm:$0xff]   ;;  %v1360_v21 = vld [vmem:[%s2126_s0 + $0x48] sm:$0xff]  }
   0xb   :  { %43 = vst.msk [vmem:[#allocation2 + $0xa0] sm:$0xff] %vm22_vm2, %v1374_v1  ;;  %44 = vst.msk [vmem:[#allocation2 + $0xa8] sm:$0xff] %vm22_vm2, %v1374_v1  ;;  %v1361_v22 = vld [vmem:[%s2126_s0 + $0xc8] sm:$0xff]   ;;  %v1362_v23 = vld [vmem:[%s2126_s0 + $0x50] sm:$0xff]  }
   0xc   :  { %45 = vst.msk [vmem:[#allocation2 + $0xb0] sm:$0xff] %vm22_vm2, %v1374_v1  ;;  %46 = vst.msk [vmem:[#allocation2 + $0xb8] sm:$0xff] %vm22_vm2, %v1374_v1  ;;  %v1363_v24 = vld [vmem:[%s2126_s0 + $0xd0] sm:$0xff]   ;;  %v1364_v25 = vld [vmem:[%s2126_s0 + $0x58] sm:$0xff]  }
   0xd   :  { %47 = vst.msk [vmem:[#allocation2 + $0xc0] sm:$0xff] %vm22_vm2, %v1374_v1  ;;  %48 = vst.msk [vmem:[#allocation2 + $0xc8] sm:$0xff] %vm22_vm2, %v1374_v1  ;;  %v1365_v26 = vld [vmem:[%s2126_s0 + $0xd8] sm:$0xff]   ;;  %v1366_v27 = vld [vmem:[%s2126_s0 + $0x60] sm:$0xff]  }
   0xe   :  { %49 = vst.msk [vmem:[#allocation2 + $0xd0] sm:$0xff] %vm22_vm2, %v1374_v1  ;;  %50 = vst.msk [vmem:[#allocation2 + $0xd8] sm:$0xff] %vm22_vm2, %v1374_v1  ;;  %1278 = vmatmul.mubr.msk.bf16.gmra.mrb[4].mxu0 %vm376_vm1, %v1348_v9  ;;  %1310 = vmatmul.mubr.msk.bf16.gmra.mrb[4].mxu1 %vm376_vm1, %v1349_v10  ;;  %v1367_v28 = vld [vmem:[%s2126_s0 + $0xe0] sm:$0xff]   ;;  %v1368_v29 = vld [vmem:[%s2126_s0 + $0x68] sm:$0xff]  }
   0xf   :  { %51 = vst.msk [vmem:[#allocation2 + $0xe0] sm:$0xff] %vm22_vm2, %v1374_v1  ;;  %52 = vst.msk [vmem:[#allocation2 + $0xe8] sm:$0xff] %vm22_vm2, %v1374_v1  ;;  %1281 = vmatprep.mubr.msk.bf16.mxu0 %vm376_vm1, %v1350_v11  ;;  %1313 = vmatprep.mubr.msk.bf16.mxu1 %vm376_vm1, %v1351_v12  ;;  %v1369_v30 = vld [vmem:[%s2126_s0 + $0xe8] sm:$0xff]   ;;  %v1370_v31 = vld [vmem:[%s2126_s0 + $0x70] sm:$0xff]  }
  0x10   :  { %53 = vst.msk [vmem:[#allocation2 + $0xf0] sm:$0xff] %vm22_vm2, %v1374_v1  ;;  %54 = vst.msk [vmem:[#allocation2 + $0xf8] sm:$0xff] %vm22_vm2, %v1374_v1  ;;  %v1371_v32 = vld [vmem:[%s2126_s0 + $0xf0] sm:$0xff]   ;;  %v1372_v33 = vld [vmem:[%s2126_s0 + $0x78] sm:$0xff]  }
  0x11   :  { %55 = vst.msk [vmem:[#allocation2 + $0x100] sm:$0xff] %vm22_vm2, %v1374_v1  ;;  %56 = vst.msk [vmem:[#allocation2 + $0x108] sm:$0xff] %vm22_vm2, %v1374_v1  ;;  %v1373_v34 = vld [vmem:[%s2126_s0 + $0xf8] sm:$0xff]   ;;  %v89_v35 = vld [vmem:[#allocation2 + $0x10] sm:$0xff] }
  0x12   :  { %57 = vst.msk [vmem:[#allocation2 + $0x110] sm:$0xff] %vm22_vm2, %v1374_v1  ;;  %58 = vst.msk [vmem:[#allocation2 + $0x118] sm:$0xff] %vm22_vm2, %v1374_v1  ;;  %v87_v37 = vld [vmem:[#allocation2] sm:$0xff]  ;;  %v90_v40 = vld [vmem:[#allocation2 + $0x18] sm:$0xff] }
  0x13   :  { %59 = vst.msk [vmem:[#allocation2 + $0x120] sm:$0xff] %vm22_vm2, %v1374_v1  ;;  %60 = vst.msk [vmem:[#allocation2 + $0x128] sm:$0xff] %vm22_vm2, %v1374_v1  ;;  %v88_v45 = vld [vmem:[#allocation2 + $0x8] sm:$0xff]  ;;  %v93_v59 = vld [vmem:[#allocation2 + $0x30] sm:$0xff] }
  0x14   :  { %61 = vst.msk [vmem:[#allocation2 + $0x130] sm:$0xff] %vm22_vm2, %v1374_v1  ;;  %62 = vst.msk [vmem:[#allocation2 + $0x138] sm:$0xff] %vm22_vm2, %v1374_v1  ;;  %v91_v61 = vld [vmem:[#allocation2 + $0x20] sm:$0xff]  ;;  %v92_v6 = vld [vmem:[#allocation2 + $0x28] sm:$0xff] }
  0x15   :  { %63 = vst.msk [vmem:[#allocation2 + $0x140] sm:$0xff] %vm22_vm2, %v1374_v1  ;;  %64 = vst.msk [vmem:[#allocation2 + $0x148] sm:$0xff] %vm22_vm2, %v1374_v1  ;;  %v1678_v62 = vld [vmem:[%s2127_s2] ss:$0 sm:$0xff] }
  0x16   :  { %65 = vst.msk [vmem:[#allocation2 + $0x150] sm:$0xff] %vm22_vm2, %v1374_v1  ;;  %66 = vst.msk [vmem:[#allocation2 + $0x158] sm:$0xff] %vm22_vm2, %v1374_v1  ;;  %1282 = vmatmul.mubr.msk.bf16.gmra.mrb[8].mxu0 %vm376_vm1, %v1352_v13  ;;  %1314 = vmatmul.mubr.msk.bf16.gmra.mrb[8].mxu1 %vm376_vm1, %v1353_v14  ;;  %v1683_v8 = vld [vmem:[%s2128_s3] ss:$0 sm:$0xff] }
  0x17   :  { %67 = vst.msk [vmem:[#allocation2 + $0x160] sm:$0xff] %vm22_vm2, %v1374_v1  ;;  %68 = vst.msk [vmem:[#allocation2 + $0x168] sm:$0xff] %vm22_vm2, %v1374_v1  ;;  %1285 = vmatprep.mubr.msk.bf16.mxu0 %vm376_vm1, %v1354_v15  ;;  %1317 = vmatprep.mubr.msk.bf16.mxu1 %vm376_vm1, %v1355_v16 }
  0x18   :  { %69 = vst.msk [vmem:[#allocation2 + $0x170] sm:$0xff] %vm22_vm2, %v1374_v1  ;;  %70 = vst.msk [vmem:[#allocation2 + $0x178] sm:$0xff] %vm22_vm2, %v1374_v1  ;;  %v119_v39 = vld [vmem:[#allocation2 + $0x100] sm:$0xff]  ;;  %v120_v50 = vld [vmem:[#allocation2 + $0x108] sm:$0xff] }
  0x19   :  { %71 = vst.msk [vmem:[#allocation2 + $0x180] sm:$0xff] %vm22_vm2, %v1374_v1  ;;  %72 = vst.msk [vmem:[#allocation2 + $0x188] sm:$0xff] %vm22_vm2, %v1374_v1  ;;  %v121_v36 = vld [vmem:[#allocation2 + $0x110] sm:$0xff]  ;;  %v122_v44 = vld [vmem:[#allocation2 + $0x118] sm:$0xff] }
  0x1a   :  { %73 = vst.msk [vmem:[#allocation2 + $0x190] sm:$0xff] %vm22_vm2, %v1374_v1  ;;  %74 = vst.msk [vmem:[#allocation2 + $0x198] sm:$0xff] %vm22_vm2, %v1374_v1  ;;  %v123_v0 = vld [vmem:[#allocation2 + $0x120] sm:$0xff]  ;;  %v124_v13 = vld [vmem:[#allocation2 + $0x128] sm:$0xff] }
  0x1b   :  { %75 = vst.msk [vmem:[#allocation2 + $0x1a0] sm:$0xff] %vm22_vm2, %v1374_v1  ;;  %76 = vst.msk [vmem:[#allocation2 + $0x1a8] sm:$0xff] %vm22_vm2, %v1374_v1  ;;  %v125_v60 = vld [vmem:[#allocation2 + $0x130] sm:$0xff]  ;;  %v126_v5 = vld [vmem:[#allocation2 + $0x138] sm:$0xff] }
  0x1c   :  { %77 = vst.msk [vmem:[#allocation2 + $0x1b0] sm:$0xff] %vm22_vm2, %v1374_v1  ;;  %78 = vst.msk [vmem:[#allocation2 + $0x1b8] sm:$0xff] %vm22_vm2, %v1374_v1 }
  0x1d   :  { %79 = vst.msk [vmem:[#allocation2 + $0x1c0] sm:$0xff] %vm22_vm2, %v1374_v1  ;;  %80 = vst.msk [vmem:[#allocation2 + $0x1c8] sm:$0xff] %vm22_vm2, %v1374_v1 }
  0x1e   :  { %81 = vst.msk [vmem:[#allocation2 + $0x1d0] sm:$0xff] %vm22_vm2, %v1374_v1  ;;  %82 = vst.msk [vmem:[#allocation2 + $0x1d8] sm:$0xff] %vm22_vm2, %v1374_v1  ;;  %1286 = vmatmul.mubr.msk.bf16.gmra.mrb[12].mxu0 %vm376_vm1, %v1356_v17  ;;  %1318 = vmatmul.mubr.msk.bf16.gmra.mrb[12].mxu1 %vm376_vm1, %v1357_v18 }
  0x1f   :  { %83 = vst.msk [vmem:[#allocation2 + $0x1e0] sm:$0xff] %vm22_vm2, %v1374_v1  ;;  %84 = vst.msk [vmem:[#allocation2 + $0x1e8] sm:$0xff] %vm22_vm2, %v1374_v1  ;;  %1289 = vmatprep.mubr.msk.bf16.mxu0 %vm376_vm1, %v1358_v19  ;;  %1321 = vmatprep.mubr.msk.bf16.mxu1 %vm376_vm1, %v1359_v20 }
  0x20   :  { %85 = vst.msk [vmem:[#allocation2 + $0x1f0] sm:$0xff] %vm22_vm2, %v1374_v1  ;;  %86 = vst.msk [vmem:[#allocation2 + $0x1f8] sm:$0xff] %vm22_vm2, %v1374_v1  ;;  %v94_v1 = vld [vmem:[#allocation2 + $0x38] sm:$0xff] }
  0x26   :  { %1290 = vmatmul.mubr.msk.bf16.gmra.mrb[16].mxu0 %vm376_vm1, %v1360_v21  ;;  %1322 = vmatmul.mubr.msk.bf16.gmra.mrb[16].mxu1 %vm376_vm1, %v1361_v22 }
  0x27   :  { %1293 = vmatprep.mubr.msk.bf16.mxu0 %vm376_vm1, %v1362_v23  ;;  %1325 = vmatprep.mubr.msk.bf16.mxu1 %vm376_vm1, %v1363_v24 }
  0x2e   :  { %1294 = vmatmul.mubr.msk.bf16.gmra.mrb[20].mxu0 %vm376_vm1, %v1364_v25  ;;  %1326 = vmatmul.mubr.msk.bf16.gmra.mrb[20].mxu1 %vm376_vm1, %v1365_v26 }
  0x2f   :  { %1297 = vmatprep.mubr.msk.bf16.mxu0 %vm376_vm1, %v1366_v27  ;;  %1329 = vmatprep.mubr.msk.bf16.mxu1 %vm376_vm1, %v1367_v28 }
  0x36   :  { %1298 = vmatmul.mubr.msk.bf16.gmra.mrb[24].mxu0 %vm376_vm1, %v1368_v29  ;;  %1330 = vmatmul.mubr.msk.bf16.gmra.mrb[24].mxu1 %vm376_vm1, %v1369_v30 }
  0x37   :  { %1301 = vmatprep.mubr.msk.bf16.mxu0 %vm376_vm1, %v1370_v31  ;;  %1333 = vmatprep.mubr.msk.bf16.mxu1 %vm376_vm1, %v1371_v32 }
  0x3e   :  { %1302 = vmatmul.mubr.msk.bf16.gmra.mrb[28].mxu0 %vm376_vm1, %v1372_v33  ;;  %1334 = vmatmul.mubr.msk.bf16.gmra.mrb[28].mxu1 %vm376_vm1, %v1373_v34 }
  0xd9   :  { %v1275_v38 = vpop.f32.mrb[0].mxu0  ;;  %v1307_v42 = vpop.f32.mrb[0].mxu1 }
  0xda   :  { %v768_v41 = vadd.f32 %v1275_v38, %v89_v35  ;;  %v511_v43 = vpop.f32.mrb[1].mxu0  ;;  %v800_v46 = vadd.f32 %v1307_v42, %v121_v36  ;;  %v639_v48 = vpop.f32.mrb[1].mxu1 }
  0xdb   :  { %v766_v47 = vadd.f32 %v511_v43, %v87_v37  ;;  %v1276_v49 = vpop.f32.mrb[2].mxu0  ;;  %v798_v51 = vadd.f32 %v639_v48, %v119_v39  ;;  %v1308_v53 = vpop.f32.mrb[2].mxu1  ;;  %v97_v39 = vld [vmem:[#allocation2 + $0x50] sm:$0xff]  ;;  %v127_v48 = vld [vmem:[#allocation2 + $0x140] sm:$0xff] }
  0xdc   :  { %833 = vst.msk [vmem:[#allocation2 + $0x10] sm:$0xff] %vm22_vm2, %v768_v41  ;;  %v769_v52 = vadd.f32 %v1276_v49, %v90_v40  ;;  %v514_v54 = vpop.f32.mrb[3].mxu0  ;;  %865 = vst.msk [vmem:[#allocation2 + $0x110] sm:$0xff] %vm22_vm2, %v800_v46  ;;  %v801_v55 = vadd.f32 %v1308_v53, %v122_v44  ;;  %v642_v57 = vpop.f32.mrb[3].mxu1  ;;  %v129_v43 = vld [vmem:[#allocation2 + $0x150] sm:$0xff]  ;;  %v95_v44 = vld [vmem:[#allocation2 + $0x40] sm:$0xff] }
  0xdd   :  { %831 = vst.msk [vmem:[#allocation2] sm:$0xff] %vm22_vm2, %v766_v47  ;;  %v767_v56 = vadd.f32 %v514_v54, %v88_v45  ;;  %863 = vst.msk [vmem:[#allocation2 + $0x100] sm:$0xff] %vm22_vm2, %v798_v51  ;;  %v799_v58 = vadd.f32 %v642_v57, %v120_v50  ;;  %v98_v49 = vld [vmem:[#allocation2 + $0x58] sm:$0xff] }
  0xde   :  { %834 = vst.msk [vmem:[#allocation2 + $0x18] sm:$0xff] %vm22_vm2, %v769_v52  ;;  %866 = vst.msk [vmem:[#allocation2 + $0x118] sm:$0xff] %vm22_vm2, %v801_v55  ;;  %v130_v54 = vld [vmem:[#allocation2 + $0x158] sm:$0xff]  ;;  %v96_v55 = vld [vmem:[#allocation2 + $0x48] sm:$0xff] }
  0xdf   :  { %832 = vst.msk [vmem:[#allocation2 + $0x8] sm:$0xff] %vm22_vm2, %v767_v56  ;;  %864 = vst.msk [vmem:[#allocation2 + $0x108] sm:$0xff] %vm22_vm2, %v799_v58 }
  0xe1   :  { %v1279_v63 = vpop.f32.mrb[4].mxu0  ;;  %v1311_v3 = vpop.f32.mrb[4].mxu1 }
  0xe2   :  { %v772_v2 = vadd.f32 %v1279_v63, %v93_v59  ;;  %v527_v4 = vpop.f32.mrb[5].mxu0  ;;  %v804_v9 = vadd.f32 %v1311_v3, %v125_v60  ;;  %v655_v11 = vpop.f32.mrb[5].mxu1 }
  0xe3   :  { %v900_v7 = vld [vmem:[#allocation2 + $0x10] sm:$0xff]  ;;  %v770_v10 = vadd.f32 %v527_v4, %v91_v61  ;;  %v1280_v12 = vpop.f32.mrb[6].mxu0  ;;  %v802_v17 = vadd.f32 %v655_v11, %v123_v0  ;;  %v1312_v19 = vpop.f32.mrb[6].mxu1  ;;  %v128_v61 = vld [vmem:[#allocation2 + $0x148] sm:$0xff] }
  0xe4   :  { %v971_v14 = vmul.f32 %v1678_v62, %v900_v7  ;;  %v932_v15 = vld [vmem:[#allocation2 + $0x110] sm:$0xff]  ;;  %v898_v16 = vld [vmem:[#allocation2] sm:$0xff]  ;;  %837 = vst.msk [vmem:[#allocation2 + $0x30] sm:$0xff] %vm22_vm2, %v772_v2  ;;  %v773_v18 = vadd.f32 %v1280_v12, %v94_v1  ;;  %v530_v20 = vpop.f32.mrb[7].mxu0  ;;  %869 = vst.msk [vmem:[#allocation2 + $0x130] sm:$0xff] %vm22_vm2, %v804_v9  ;;  %v805_v25 = vadd.f32 %v1312_v19, %v126_v5  ;;  %v658_v27 = vpop.f32.mrb[7].mxu1 }
  0xe5   :  { %v1003_v21 = vmul.f32 %v1678_v62, %v932_v15  ;;  %v969_v22 = vmul.f32 %v1678_v62, %v898_v16  ;;  %v930_v23 = vld [vmem:[#allocation2 + $0x100] sm:$0xff]  ;;  %v901_v24 = vld [vmem:[#allocation2 + $0x18] sm:$0xff]  ;;  %835 = vst.msk [vmem:[#allocation2 + $0x20] sm:$0xff] %vm22_vm2, %v770_v10  ;;  %v771_v26 = vadd.f32 %v530_v20, %v92_v6  ;;  %867 = vst.msk [vmem:[#allocation2 + $0x120] sm:$0xff] %vm22_vm2, %v802_v17 }
  0xe6   :  { %v1042_v28 = vadd.f32 %v1683_v8, %v971_v14  ;;  %v1001_v29 = vmul.f32 %v1678_v62, %v930_v23  ;;  %v972_v30 = vmul.f32 %v1678_v62, %v901_v24  ;;  %v933_v31 = vld [vmem:[#allocation2 + $0x118] sm:$0xff]  ;;  %v899_v32 = vld [vmem:[#allocation2 + $0x8] sm:$0xff]  ;;  %838 = vst.msk [vmem:[#allocation2 + $0x38] sm:$0xff] %vm22_vm2, %v773_v18  ;;  %v803_v33 = vadd.f32 %v658_v27, %v124_v13 }
  0xe7   :  { %v1074_v34 = vadd.f32 %v1683_v8, %v1003_v21  ;;  %v1040_v35 = vadd.f32 %v1683_v8, %v969_v22  ;;  %v1004_v36 = vmul.f32 %v1678_v62, %v933_v31  ;;  %v970_v37 = vmul.f32 %v1678_v62, %v899_v32  ;;  %v931_v38 = vld [vmem:[#allocation2 + $0x108] sm:$0xff]  ;;  %870 = vst.msk [vmem:[#allocation2 + $0x138] sm:$0xff] %vm22_vm2, %v805_v25  ;;  %v101_v25 = vld [vmem:[#allocation2 + $0x70] sm:$0xff] }
  0xe8   :  { %836 = vst.msk [vmem:[#allocation2 + $0x28] sm:$0xff] %vm22_vm2, %v771_v26  ;;  %1106 = vst.msk [vmem:[%s2129_s4 + $0x10] sm:$0xff] %vm22_vm2, %v1042_v28  ;;  %v1072_v40 = vadd.f32 %v1683_v8, %v1001_v29  ;;  %v1043_v41 = vadd.f32 %v1683_v8, %v972_v30  ;;  %v1002_v42 = vmul.f32 %v1678_v62, %v931_v38  ;;  %v133_v29 = vld [vmem:[#allocation2 + $0x170] sm:$0xff]  ;;  %v99_v30 = vld [vmem:[#allocation2 + $0x60] sm:$0xff] }
  0xe9   :  { %868 = vst.msk [vmem:[#allocation2 + $0x128] sm:$0xff] %vm22_vm2, %v803_v33  ;;  %1138 = vst.msk [vmem:[%s2129_s4 + $0x110] sm:$0xff] %vm22_vm2, %v1074_v34  ;;  %v1075_v45 = vadd.f32 %v1683_v8, %v1004_v36  ;;  %v1041_v46 = vadd.f32 %v1683_v8, %v970_v37  ;;  %v1283_v47 = vpop.f32.mrb[8].mxu0  ;;  %v1315_v52 = vpop.f32.mrb[8].mxu1  ;;  %v131_v34 = vld [vmem:[#allocation2 + $0x160] sm:$0xff] }
  0xea   :  { %1104 = vst.msk [vmem:[%s2129_s4] sm:$0xff] %vm22_vm2, %v1040_v35  ;;  %1136 = vst.msk [vmem:[%s2129_s4 + $0x100] sm:$0xff] %vm22_vm2, %v1072_v40  ;;  %v1073_v50 = vadd.f32 %v1683_v8, %v1002_v42  ;;  %v776_v51 = vadd.f32 %v1283_v47, %v97_v39  ;;  %v543_v53 = vpop.f32.mrb[9].mxu0  ;;  %v808_v57 = vadd.f32 %v1315_v52, %v129_v43  ;;  %v671_v59 = vpop.f32.mrb[9].mxu1  ;;  %v102_v35 = vld [vmem:[#allocation2 + $0x78] sm:$0xff]  ;;  %v132_v47 = vld [vmem:[#allocation2 + $0x168] sm:$0xff] }
  0xeb   :  { %1107 = vst.msk [vmem:[%s2129_s4 + $0x18] sm:$0xff] %vm22_vm2, %v1043_v41  ;;  %1139 = vst.msk [vmem:[%s2129_s4 + $0x118] sm:$0xff] %vm22_vm2, %v1075_v45  ;;  %v904_v56 = vld [vmem:[#allocation2 + $0x30] sm:$0xff]  ;;  %v774_v58 = vadd.f32 %v543_v53, %v95_v44  ;;  %v1284_v60 = vpop.f32.mrb[10].mxu0  ;;  %v806_v2 = vadd.f32 %v671_v59, %v127_v48  ;;  %v1316_v4 = vpop.f32.mrb[10].mxu1  ;;  %v134_v40 = vld [vmem:[#allocation2 + $0x178] sm:$0xff] }
  0xec   :  { %1105 = vst.msk [vmem:[%s2129_s4 + $0x8] sm:$0xff] %vm22_vm2, %v1041_v46  ;;  %1137 = vst.msk [vmem:[%s2129_s4 + $0x108] sm:$0xff] %vm22_vm2, %v1073_v50  ;;  %v975_v63 = vmul.f32 %v1678_v62, %v904_v56  ;;  %v936_v0 = vld [vmem:[#allocation2 + $0x130] sm:$0xff]  ;;  %v902_v1 = vld [vmem:[#allocation2 + $0x20] sm:$0xff]  ;;  %v777_v3 = vadd.f32 %v1284_v60, %v98_v49  ;;  %v546_v5 = vpop.f32.mrb[11].mxu0  ;;  %v809_v11 = vadd.f32 %v1316_v4, %v130_v54  ;;  %v674_v13 = vpop.f32.mrb[11].mxu1 }
  0xed   :  { %841 = vst.msk [vmem:[#allocation2 + $0x50] sm:$0xff] %vm22_vm2, %v776_v51  ;;  %v1007_v6 = vmul.f32 %v1678_v62, %v936_v0  ;;  %v973_v7 = vmul.f32 %v1678_v62, %v902_v1  ;;  %v934_v9 = vld [vmem:[#allocation2 + $0x120] sm:$0xff]  ;;  %v905_v10 = vld [vmem:[#allocation2 + $0x38] sm:$0xff]  ;;  %873 = vst.msk [vmem:[#allocation2 + $0x150] sm:$0xff] %vm22_vm2, %v808_v57  ;;  %v775_v12 = vadd.f32 %v546_v5, %v96_v55 }
  0xee   :  { %839 = vst.msk [vmem:[#allocation2 + $0x40] sm:$0xff] %vm22_vm2, %v774_v58  ;;  %v1046_v14 = vadd.f32 %v1683_v8, %v975_v63  ;;  %v1005_v15 = vmul.f32 %v1678_v62, %v934_v9  ;;  %v976_v16 = vmul.f32 %v1678_v62, %v905_v10  ;;  %v937_v17 = vld [vmem:[#allocation2 + $0x138] sm:$0xff]  ;;  %871 = vst.msk [vmem:[#allocation2 + $0x140] sm:$0xff] %vm22_vm2, %v806_v2  ;;  %v100_v41 = vld [vmem:[#allocation2 + $0x68] sm:$0xff] }
  0xef   :  { %v903_v18 = vld [vmem:[#allocation2 + $0x28] sm:$0xff]  ;;  %842 = vst.msk [vmem:[#allocation2 + $0x58] sm:$0xff] %vm22_vm2, %v777_v3  ;;  %v807_v19 = vadd.f32 %v674_v13, %v128_v61  ;;  %v1078_v20 = vadd.f32 %v1683_v8, %v1007_v6  ;;  %v1044_v21 = vadd.f32 %v1683_v8, %v973_v7  ;;  %v1008_v22 = vmul.f32 %v1678_v62, %v937_v17 }
  0xf0   :  { %v974_v23 = vmul.f32 %v1678_v62, %v903_v18  ;;  %v935_v24 = vld [vmem:[#allocation2 + $0x128] sm:$0xff]  ;;  %874 = vst.msk [vmem:[#allocation2 + $0x158] sm:$0xff] %vm22_vm2, %v809_v11  ;;  %840 = vst.msk [vmem:[#allocation2 + $0x48] sm:$0xff] %vm22_vm2, %v775_v12  ;;  %v1076_v26 = vadd.f32 %v1683_v8, %v1005_v15  ;;  %v1047_v27 = vadd.f32 %v1683_v8, %v976_v16  ;;  %v105_v11 = vld [vmem:[#allocation2 + $0x90] sm:$0xff] }
  0xf1   :  { %1110 = vst.msk [vmem:[%s2129_s4 + $0x30] sm:$0xff] %vm22_vm2, %v1046_v14  ;;  %v1006_v28 = vmul.f32 %v1678_v62, %v935_v24  ;;  %872 = vst.msk [vmem:[#allocation2 + $0x148] sm:$0xff] %vm22_vm2, %v807_v19  ;;  %v1079_v31 = vadd.f32 %v1683_v8, %v1008_v22  ;;  %v1287_v33 = vpop.f32.mrb[12].mxu0  ;;  %v1319_v38 = vpop.f32.mrb[12].mxu1  ;;  %v137_v15 = vld [vmem:[#allocation2 + $0x190] sm:$0xff]  ;;  %v103_v16 = vld [vmem:[#allocation2 + $0x80] sm:$0xff] }
  0xf2   :  { %1142 = vst.msk [vmem:[%s2129_s4 + $0x130] sm:$0xff] %vm22_vm2, %v1078_v20  ;;  %1108 = vst.msk [vmem:[%s2129_s4 + $0x20] sm:$0xff] %vm22_vm2, %v1044_v21  ;;  %v1045_v32 = vadd.f32 %v1683_v8, %v974_v23  ;;  %v780_v37 = vadd.f32 %v1287_v33, %v101_v25  ;;  %v559_v39 = vpop.f32.mrb[13].mxu0  ;;  %v812_v43 = vadd.f32 %v1319_v38, %v133_v29  ;;  %v687_v45 = vpop.f32.mrb[13].mxu1  ;;  %v135_v20 = vld [vmem:[#allocation2 + $0x180] sm:$0xff]  ;;  %v106_v21 = vld [vmem:[#allocation2 + $0x98] sm:$0xff] }
  0xf3   :  { %1140 = vst.msk [vmem:[%s2129_s4 + $0x120] sm:$0xff] %vm22_vm2, %v1076_v26  ;;  %1111 = vst.msk [vmem:[%s2129_s4 + $0x38] sm:$0xff] %vm22_vm2, %v1047_v27  ;;  %v1077_v36 = vadd.f32 %v1683_v8, %v1006_v28  ;;  %v778_v44 = vadd.f32 %v559_v39, %v99_v30  ;;  %v1288_v46 = vpop.f32.mrb[14].mxu0  ;;  %v810_v51 = vadd.f32 %v687_v45, %v131_v34  ;;  %v1320_v53 = vpop.f32.mrb[14].mxu1  ;;  %v138_v26 = vld [vmem:[#allocation2 + $0x198] sm:$0xff]  ;;  %v104_v27 = vld [vmem:[#allocation2 + $0x88] sm:$0xff] }
  0xf4   :  { %1143 = vst.msk [vmem:[%s2129_s4 + $0x138] sm:$0xff] %vm22_vm2, %v1079_v31  ;;  %1109 = vst.msk [vmem:[%s2129_s4 + $0x28] sm:$0xff] %vm22_vm2, %v1045_v32  ;;  %v908_v42 = vld [vmem:[#allocation2 + $0x50] sm:$0xff]  ;;  %v781_v52 = vadd.f32 %v1288_v46, %v102_v35  ;;  %v562_v54 = vpop.f32.mrb[15].mxu0  ;;  %v813_v59 = vadd.f32 %v1320_v53, %v134_v40  ;;  %v690_v61 = vpop.f32.mrb[15].mxu1  ;;  %v136_v33 = vld [vmem:[#allocation2 + $0x188] sm:$0xff] }
  0xf5   :  { %1141 = vst.msk [vmem:[%s2129_s4 + $0x128] sm:$0xff] %vm22_vm2, %v1077_v36  ;;  %v979_v48 = vmul.f32 %v1678_v62, %v908_v42  ;;  %v940_v49 = vld [vmem:[#allocation2 + $0x150] sm:$0xff]  ;;  %v906_v50 = vld [vmem:[#allocation2 + $0x40] sm:$0xff]  ;;  %845 = vst.msk [vmem:[#allocation2 + $0x70] sm:$0xff] %vm22_vm2, %v780_v37  ;;  %v779_v60 = vadd.f32 %v562_v54, %v100_v41  ;;  %v811_v4 = vadd.f32 %v690_v61, %v132_v47 }
  0xf6   :  { %v1011_v55 = vmul.f32 %v1678_v62, %v940_v49  ;;  %v977_v56 = vmul.f32 %v1678_v62, %v906_v50  ;;  %v938_v57 = vld [vmem:[#allocation2 + $0x140] sm:$0xff]  ;;  %v909_v58 = vld [vmem:[#allocation2 + $0x58] sm:$0xff]  ;;  %877 = vst.msk [vmem:[#allocation2 + $0x170] sm:$0xff] %vm22_vm2, %v812_v43  ;;  %843 = vst.msk [vmem:[#allocation2 + $0x60] sm:$0xff] %vm22_vm2, %v778_v44 }
  0xf7   :  { %v1050_v63 = vadd.f32 %v1683_v8, %v979_v48  ;;  %v1009_v0 = vmul.f32 %v1678_v62, %v938_v57  ;;  %v980_v1 = vmul.f32 %v1678_v62, %v909_v58  ;;  %v941_v2 = vld [vmem:[#allocation2 + $0x158] sm:$0xff]  ;;  %v907_v3 = vld [vmem:[#allocation2 + $0x48] sm:$0xff]  ;;  %875 = vst.msk [vmem:[#allocation2 + $0x160] sm:$0xff] %vm22_vm2, %v810_v51  ;;  %846 = vst.msk [vmem:[#allocation2 + $0x78] sm:$0xff] %vm22_vm2, %v781_v52 }
  0xf8   :  { %v1082_v5 = vadd.f32 %v1683_v8, %v1011_v55  ;;  %v1048_v6 = vadd.f32 %v1683_v8, %v977_v56  ;;  %v1012_v7 = vmul.f32 %v1678_v62, %v941_v2  ;;  %v978_v9 = vmul.f32 %v1678_v62, %v907_v3  ;;  %v939_v10 = vld [vmem:[#allocation2 + $0x148] sm:$0xff]  ;;  %878 = vst.msk [vmem:[#allocation2 + $0x178] sm:$0xff] %vm22_vm2, %v813_v59  ;;  %v109_v59 = vld [vmem:[#allocation2 + $0xb0] sm:$0xff] }
  0xf9   :  { %844 = vst.msk [vmem:[#allocation2 + $0x68] sm:$0xff] %vm22_vm2, %v779_v60  ;;  %1114 = vst.msk [vmem:[%s2129_s4 + $0x50] sm:$0xff] %vm22_vm2, %v1050_v63  ;;  %v1080_v12 = vadd.f32 %v1683_v8, %v1009_v0  ;;  %v1051_v13 = vadd.f32 %v1683_v8, %v980_v1  ;;  %v1010_v14 = vmul.f32 %v1678_v62, %v939_v10  ;;  %v1291_v19 = vpop.f32.mrb[16].mxu0  ;;  %v1323_v24 = vpop.f32.mrb[16].mxu1  ;;  %v141_v0 = vld [vmem:[#allocation2 + $0x1b0] sm:$0xff]  ;;  %v107_v1 = vld [vmem:[#allocation2 + $0xa0] sm:$0xff] }
  0xfa   :  { %876 = vst.msk [vmem:[#allocation2 + $0x168] sm:$0xff] %vm22_vm2, %v811_v4  ;;  %1146 = vst.msk [vmem:[%s2129_s4 + $0x150] sm:$0xff] %vm22_vm2, %v1082_v5  ;;  %v1083_v17 = vadd.f32 %v1683_v8, %v1012_v7  ;;  %v1049_v18 = vadd.f32 %v1683_v8, %v978_v9  ;;  %v784_v23 = vadd.f32 %v1291_v19, %v105_v11  ;;  %v575_v25 = vpop.f32.mrb[17].mxu0  ;;  %v703_v31 = vpop.f32.mrb[17].mxu1  ;;  %v139_v5 = vld [vmem:[#allocation2 + $0x1a0] sm:$0xff]  ;;  %v140_v19 = vld [vmem:[#allocation2 + $0x1a8] sm:$0xff] }
  0xfb   :  { %1112 = vst.msk [vmem:[%s2129_s4 + $0x40] sm:$0xff] %vm22_vm2, %v1048_v6  ;;  %1144 = vst.msk [vmem:[%s2129_s4 + $0x140] sm:$0xff] %vm22_vm2, %v1080_v12  ;;  %v1081_v22 = vadd.f32 %v1683_v8, %v1010_v14  ;;  %v816_v29 = vadd.f32 %v1323_v24, %v137_v15  ;;  %v782_v30 = vadd.f32 %v575_v25, %v103_v16  ;;  %v1292_v32 = vpop.f32.mrb[18].mxu0  ;;  %v1324_v39 = vpop.f32.mrb[18].mxu1  ;;  %v110_v6 = vld [vmem:[#allocation2 + $0xb8] sm:$0xff] }
  0xfc   :  { %1115 = vst.msk [vmem:[%s2129_s4 + $0x58] sm:$0xff] %vm22_vm2, %v1051_v13  ;;  %1147 = vst.msk [vmem:[%s2129_s4 + $0x158] sm:$0xff] %vm22_vm2, %v1083_v17  ;;  %v912_v28 = vld [vmem:[#allocation2 + $0x70] sm:$0xff]  ;;  %v814_v37 = vadd.f32 %v703_v31, %v135_v20  ;;  %v785_v38 = vadd.f32 %v1292_v32, %v106_v21  ;;  %v578_v40 = vpop.f32.mrb[19].mxu0  ;;  %v817_v45 = vadd.f32 %v1324_v39, %v138_v26  ;;  %v706_v47 = vpop.f32.mrb[19].mxu1  ;;  %v142_v12 = vld [vmem:[#allocation2 + $0x1b8] sm:$0xff] }
  0xfd   :  { %1113 = vst.msk [vmem:[%s2129_s4 + $0x48] sm:$0xff] %vm22_vm2, %v1049_v18  ;;  %1145 = vst.msk [vmem:[%s2129_s4 + $0x148] sm:$0xff] %vm22_vm2, %v1081_v22  ;;  %v983_v34 = vmul.f32 %v1678_v62, %v912_v28  ;;  %v944_v35 = vld [vmem:[#allocation2 + $0x170] sm:$0xff]  ;;  %v910_v36 = vld [vmem:[#allocation2 + $0x60] sm:$0xff]  ;;  %v783_v46 = vadd.f32 %v578_v40, %v104_v27  ;;  %v815_v53 = vadd.f32 %v706_v47, %v136_v33 }
  0xfe   :  { %849 = vst.msk [vmem:[#allocation2 + $0x90] sm:$0xff] %vm22_vm2, %v784_v23  ;;  %v1015_v41 = vmul.f32 %v1678_v62, %v944_v35  ;;  %v981_v42 = vmul.f32 %v1678_v62, %v910_v36  ;;  %v942_v43 = vld [vmem:[#allocation2 + $0x160] sm:$0xff]  ;;  %v913_v44 = vld [vmem:[#allocation2 + $0x78] sm:$0xff]  ;;  %881 = vst.msk [vmem:[#allocation2 + $0x190] sm:$0xff] %vm22_vm2, %v816_v29 }
  0xff   :  { %847 = vst.msk [vmem:[#allocation2 + $0x80] sm:$0xff] %vm22_vm2, %v782_v30  ;;  %v1054_v48 = vadd.f32 %v1683_v8, %v983_v34  ;;  %v1013_v49 = vmul.f32 %v1678_v62, %v942_v43  ;;  %v984_v50 = vmul.f32 %v1678_v62, %v913_v44  ;;  %v945_v51 = vld [vmem:[#allocation2 + $0x178] sm:$0xff]  ;;  %879 = vst.msk [vmem:[#allocation2 + $0x180] sm:$0xff] %vm22_vm2, %v814_v37  ;;  %v108_v13 = vld [vmem:[#allocation2 + $0xa8] sm:$0xff] }
 0x100   :  { %v911_v52 = vld [vmem:[#allocation2 + $0x68] sm:$0xff]  ;;  %850 = vst.msk [vmem:[#allocation2 + $0x98] sm:$0xff] %vm22_vm2, %v785_v38  ;;  %v1086_v54 = vadd.f32 %v1683_v8, %v1015_v41  ;;  %v1052_v55 = vadd.f32 %v1683_v8, %v981_v42  ;;  %v1016_v56 = vmul.f32 %v1678_v62, %v945_v51  ;;  %882 = vst.msk [vmem:[#allocation2 + $0x198] sm:$0xff] %vm22_vm2, %v817_v45  ;;  %v113_v45 = vld [vmem:[#allocation2 + $0xd0] sm:$0xff] }
 0x101   :  { %v982_v57 = vmul.f32 %v1678_v62, %v911_v52  ;;  %v943_v58 = vld [vmem:[#allocation2 + $0x168] sm:$0xff]  ;;  %848 = vst.msk [vmem:[#allocation2 + $0x88] sm:$0xff] %vm22_vm2, %v783_v46  ;;  %1118 = vst.msk [vmem:[%s2129_s4 + $0x70] sm:$0xff] %vm22_vm2, %v1054_v48  ;;  %v1084_v60 = vadd.f32 %v1683_v8, %v1013_v49  ;;  %v1055_v61 = vadd.f32 %v1683_v8, %v984_v50  ;;  %v1295_v4 = vpop.f32.mrb[20].mxu0  ;;  %v1327_v10 = vpop.f32.mrb[20].mxu1  ;;  %v145_v49 = vld [vmem:[#allocation2 + $0x1d0] sm:$0xff] }
 0x102   :  { %v1014_v63 = vmul.f32 %v1678_v62, %v943_v58  ;;  %880 = vst.msk [vmem:[#allocation2 + $0x188] sm:$0xff] %vm22_vm2, %v815_v53  ;;  %1150 = vst.msk [vmem:[%s2129_s4 + $0x170] sm:$0xff] %vm22_vm2, %v1086_v54  ;;  %v1087_v2 = vadd.f32 %v1683_v8, %v1016_v56  ;;  %v788_v9 = vadd.f32 %v1295_v4, %v109_v59  ;;  %v591_v11 = vpop.f32.mrb[21].mxu0  ;;  %v719_v17 = vpop.f32.mrb[21].mxu1  ;;  %v111_v50 = vld [vmem:[#allocation2 + $0xc0] sm:$0xff]  ;;  %v144_v4 = vld [vmem:[#allocation2 + $0x1c8] sm:$0xff] }
 0x103   :  { %1116 = vst.msk [vmem:[%s2129_s4 + $0x60] sm:$0xff] %vm22_vm2, %v1052_v55  ;;  %v1053_v3 = vadd.f32 %v1683_v8, %v982_v57  ;;  %1148 = vst.msk [vmem:[%s2129_s4 + $0x160] sm:$0xff] %vm22_vm2, %v1084_v60  ;;  %v820_v15 = vadd.f32 %v1327_v10, %v141_v0  ;;  %v786_v16 = vadd.f32 %v591_v11, %v107_v1  ;;  %v1296_v18 = vpop.f32.mrb[22].mxu0  ;;  %v1328_v25 = vpop.f32.mrb[22].mxu1  ;;  %v143_v54 = vld [vmem:[#allocation2 + $0x1c0] sm:$0xff]  ;;  %v114_v55 = vld [vmem:[#allocation2 + $0xd8] sm:$0xff] }
 0x104   :  { %1119 = vst.msk [vmem:[%s2129_s4 + $0x78] sm:$0xff] %vm22_vm2, %v1055_v61  ;;  %v1085_v7 = vadd.f32 %v1683_v8, %v1014_v63  ;;  %1151 = vst.msk [vmem:[%s2129_s4 + $0x178] sm:$0xff] %vm22_vm2, %v1087_v2  ;;  %v818_v23 = vadd.f32 %v719_v17, %v139_v5  ;;  %v789_v24 = vadd.f32 %v1296_v18, %v110_v6  ;;  %v594_v26 = vpop.f32.mrb[23].mxu0  ;;  %v722_v33 = vpop.f32.mrb[23].mxu1  ;;  %v146_v60 = vld [vmem:[#allocation2 + $0x1d8] sm:$0xff]  ;;  %v112_v61 = vld [vmem:[#allocation2 + $0xc8] sm:$0xff] }
 0x105   :  { %1117 = vst.msk [vmem:[%s2129_s4 + $0x68] sm:$0xff] %vm22_vm2, %v1053_v3  ;;  %v916_v14 = vld [vmem:[#allocation2 + $0x90] sm:$0xff]  ;;  %853 = vst.msk [vmem:[#allocation2 + $0xb0] sm:$0xff] %vm22_vm2, %v788_v9  ;;  %v821_v31 = vadd.f32 %v1328_v25, %v142_v12  ;;  %v787_v32 = vadd.f32 %v594_v26, %v108_v13  ;;  %v819_v39 = vadd.f32 %v722_v33, %v140_v19 }
 0x106   :  { %1149 = vst.msk [vmem:[%s2129_s4 + $0x168] sm:$0xff] %vm22_vm2, %v1085_v7  ;;  %v987_v20 = vmul.f32 %v1678_v62, %v916_v14  ;;  %v948_v21 = vld [vmem:[#allocation2 + $0x190] sm:$0xff]  ;;  %v914_v22 = vld [vmem:[#allocation2 + $0x80] sm:$0xff]  ;;  %885 = vst.msk [vmem:[#allocation2 + $0x1b0] sm:$0xff] %vm22_vm2, %v820_v15 }
 0x107   :  { %v1019_v27 = vmul.f32 %v1678_v62, %v948_v21  ;;  %v985_v28 = vmul.f32 %v1678_v62, %v914_v22  ;;  %v946_v29 = vld [vmem:[#allocation2 + $0x180] sm:$0xff]  ;;  %v917_v30 = vld [vmem:[#allocation2 + $0x98] sm:$0xff]  ;;  %851 = vst.msk [vmem:[#allocation2 + $0xa0] sm:$0xff] %vm22_vm2, %v786_v16  ;;  %883 = vst.msk [vmem:[#allocation2 + $0x1a0] sm:$0xff] %vm22_vm2, %v818_v23 }
 0x108   :  { %v1058_v34 = vadd.f32 %v1683_v8, %v987_v20  ;;  %v1017_v35 = vmul.f32 %v1678_v62, %v946_v29  ;;  %v988_v36 = vmul.f32 %v1678_v62, %v917_v30  ;;  %v949_v37 = vld [vmem:[#allocation2 + $0x198] sm:$0xff]  ;;  %v915_v38 = vld [vmem:[#allocation2 + $0x88] sm:$0xff]  ;;  %854 = vst.msk [vmem:[#allocation2 + $0xb8] sm:$0xff] %vm22_vm2, %v789_v24  ;;  %886 = vst.msk [vmem:[#allocation2 + $0x1b8] sm:$0xff] %vm22_vm2, %v821_v31 }
 0x109   :  { %v1090_v40 = vadd.f32 %v1683_v8, %v1019_v27  ;;  %v1056_v41 = vadd.f32 %v1683_v8, %v985_v28  ;;  %v1020_v42 = vmul.f32 %v1678_v62, %v949_v37  ;;  %v986_v43 = vmul.f32 %v1678_v62, %v915_v38  ;;  %v947_v44 = vld [vmem:[#allocation2 + $0x188] sm:$0xff]  ;;  %852 = vst.msk [vmem:[#allocation2 + $0xa8] sm:$0xff] %vm22_vm2, %v787_v32  ;;  %v1299_v53 = vpop.f32.mrb[24].mxu0  ;;  %v1331_v58 = vpop.f32.mrb[24].mxu1  ;;  %v117_v31 = vld [vmem:[#allocation2 + $0xf0] sm:$0xff] }
 0x10a   :  { %1122 = vst.msk [vmem:[%s2129_s4 + $0x90] sm:$0xff] %vm22_vm2, %v1058_v34  ;;  %v1088_v46 = vadd.f32 %v1683_v8, %v1017_v35  ;;  %v1059_v47 = vadd.f32 %v1683_v8, %v988_v36  ;;  %v1018_v48 = vmul.f32 %v1678_v62, %v947_v44  ;;  %884 = vst.msk [vmem:[#allocation2 + $0x1a8] sm:$0xff] %vm22_vm2, %v819_v39  ;;  %v607_v59 = vpop.f32.mrb[25].mxu0  ;;  %v735_v2 = vpop.f32.mrb[25].mxu1  ;;  %v149_v35 = vld [vmem:[#allocation2 + $0x1f0] sm:$0xff]  ;;  %v115_v36 = vld [vmem:[#allocation2 + $0xe0] sm:$0xff] }
 0x10b   :  { %1154 = vst.msk [vmem:[%s2129_s4 + $0x190] sm:$0xff] %vm22_vm2, %v1090_v40  ;;  %1120 = vst.msk [vmem:[%s2129_s4 + $0x80] sm:$0xff] %vm22_vm2, %v1056_v41  ;;  %v1091_v51 = vadd.f32 %v1683_v8, %v1020_v42  ;;  %v1057_v52 = vadd.f32 %v1683_v8, %v986_v43  ;;  %v792_v57 = vadd.f32 %v1299_v53, %v113_v45  ;;  %v1300_v3 = vpop.f32.mrb[26].mxu0  ;;  %v1332_v11 = vpop.f32.mrb[26].mxu1  ;;  %v147_v40 = vld [vmem:[#allocation2 + $0x1e0] sm:$0xff]  ;;  %v118_v41 = vld [vmem:[#allocation2 + $0xf8] sm:$0xff] }
 0x10c   :  { %1152 = vst.msk [vmem:[%s2129_s4 + $0x180] sm:$0xff] %vm22_vm2, %v1088_v46  ;;  %1123 = vst.msk [vmem:[%s2129_s4 + $0x98] sm:$0xff] %vm22_vm2, %v1059_v47  ;;  %v1089_v56 = vadd.f32 %v1683_v8, %v1018_v48  ;;  %v920_v63 = vld [vmem:[#allocation2 + $0xb0] sm:$0xff]  ;;  %v824_v0 = vadd.f32 %v1331_v58, %v145_v49  ;;  %v790_v1 = vadd.f32 %v607_v59, %v111_v50  ;;  %v610_v12 = vpop.f32.mrb[27].mxu0  ;;  %v738_v19 = vpop.f32.mrb[27].mxu1  ;;  %v150_v46 = vld [vmem:[#allocation2 + $0x1f8] sm:$0xff] }
 0x10d   :  { %1155 = vst.msk [vmem:[%s2129_s4 + $0x198] sm:$0xff] %vm22_vm2, %v1091_v51  ;;  %1121 = vst.msk [vmem:[%s2129_s4 + $0x88] sm:$0xff] %vm22_vm2, %v1057_v52  ;;  %v991_v5 = vmul.f32 %v1678_v62, %v920_v63  ;;  %v952_v6 = vld [vmem:[#allocation2 + $0x1b0] sm:$0xff]  ;;  %v822_v9 = vadd.f32 %v735_v2, %v143_v54  ;;  %v793_v10 = vadd.f32 %v1300_v3, %v114_v55  ;;  %v116_v47 = vld [vmem:[#allocation2 + $0xe8] sm:$0xff] }
 0x10e   :  { %1153 = vst.msk [vmem:[%s2129_s4 + $0x188] sm:$0xff] %vm22_vm2, %v1089_v56  ;;  %v918_v7 = vld [vmem:[#allocation2 + $0xa0] sm:$0xff]  ;;  %857 = vst.msk [vmem:[#allocation2 + $0xd0] sm:$0xff] %vm22_vm2, %v792_v57  ;;  %v1023_v13 = vmul.f32 %v1678_v62, %v952_v6  ;;  %v825_v17 = vadd.f32 %v1332_v11, %v146_v60  ;;  %v791_v18 = vadd.f32 %v610_v12, %v112_v61  ;;  %v148_v53 = vld [vmem:[#allocation2 + $0x1e8] sm:$0xff] }
 0x10f   :  { %v989_v14 = vmul.f32 %v1678_v62, %v918_v7  ;;  %v950_v15 = vld [vmem:[#allocation2 + $0x1a0] sm:$0xff]  ;;  %v921_v16 = vld [vmem:[#allocation2 + $0xb8] sm:$0xff]  ;;  %889 = vst.msk [vmem:[#allocation2 + $0x1d0] sm:$0xff] %vm22_vm2, %v824_v0  ;;  %855 = vst.msk [vmem:[#allocation2 + $0xc0] sm:$0xff] %vm22_vm2, %v790_v1  ;;  %v1062_v20 = vadd.f32 %v1683_v8, %v991_v5  ;;  %v823_v25 = vadd.f32 %v738_v19, %v144_v4 }
 0x110   :  { %v1021_v21 = vmul.f32 %v1678_v62, %v950_v15  ;;  %v992_v22 = vmul.f32 %v1678_v62, %v921_v16  ;;  %v953_v23 = vld [vmem:[#allocation2 + $0x1b8] sm:$0xff]  ;;  %v919_v24 = vld [vmem:[#allocation2 + $0xa8] sm:$0xff]  ;;  %887 = vst.msk [vmem:[#allocation2 + $0x1c0] sm:$0xff] %vm22_vm2, %v822_v9  ;;  %858 = vst.msk [vmem:[#allocation2 + $0xd8] sm:$0xff] %vm22_vm2, %v793_v10  ;;  %v1094_v26 = vadd.f32 %v1683_v8, %v1023_v13 }
 0x111   :  { %v1060_v27 = vadd.f32 %v1683_v8, %v989_v14  ;;  %v1024_v28 = vmul.f32 %v1678_v62, %v953_v23  ;;  %v990_v29 = vmul.f32 %v1678_v62, %v919_v24  ;;  %v951_v30 = vld [vmem:[#allocation2 + $0x1a8] sm:$0xff]  ;;  %890 = vst.msk [vmem:[#allocation2 + $0x1d8] sm:$0xff] %vm22_vm2, %v825_v17  ;;  %856 = vst.msk [vmem:[#allocation2 + $0xc8] sm:$0xff] %vm22_vm2, %v791_v18  ;;  %v1303_v39 = vpop.f32.mrb[28].mxu0  ;;  %v1335_v44 = vpop.f32.mrb[28].mxu1 }
 0x112   :  { %1126 = vst.msk [vmem:[%s2129_s4 + $0xb0] sm:$0xff] %vm22_vm2, %v1062_v20  ;;  %v1092_v32 = vadd.f32 %v1683_v8, %v1021_v21  ;;  %v1063_v33 = vadd.f32 %v1683_v8, %v992_v22  ;;  %v1022_v34 = vmul.f32 %v1678_v62, %v951_v30  ;;  %888 = vst.msk [vmem:[#allocation2 + $0x1c8] sm:$0xff] %vm22_vm2, %v823_v25  ;;  %v623_v45 = vpop.f32.mrb[29].mxu0  ;;  %v751_v51 = vpop.f32.mrb[29].mxu1 }
 0x113   :  { %1158 = vst.msk [vmem:[%s2129_s4 + $0x1b0] sm:$0xff] %vm22_vm2, %v1094_v26  ;;  %1124 = vst.msk [vmem:[%s2129_s4 + $0xa0] sm:$0xff] %vm22_vm2, %v1060_v27  ;;  %v1095_v37 = vadd.f32 %v1683_v8, %v1024_v28  ;;  %v1061_v38 = vadd.f32 %v1683_v8, %v990_v29  ;;  %v796_v43 = vadd.f32 %v1303_v39, %v117_v31  ;;  %v1304_v52 = vpop.f32.mrb[30].mxu0  ;;  %v1336_v59 = vpop.f32.mrb[30].mxu1 }
 0x114   :  { %1156 = vst.msk [vmem:[%s2129_s4 + $0x1a0] sm:$0xff] %vm22_vm2, %v1092_v32  ;;  %1127 = vst.msk [vmem:[%s2129_s4 + $0xb8] sm:$0xff] %vm22_vm2, %v1063_v33  ;;  %v1093_v42 = vadd.f32 %v1683_v8, %v1022_v34  ;;  %v828_v49 = vadd.f32 %v1335_v44, %v149_v35  ;;  %v794_v50 = vadd.f32 %v623_v45, %v115_v36  ;;  %v626_v60 = vpop.f32.mrb[31].mxu0  ;;  %v754_v4 = vpop.f32.mrb[31].mxu1 }
 0x115   :  { %1159 = vst.msk [vmem:[%s2129_s4 + $0x1b8] sm:$0xff] %vm22_vm2, %v1095_v37  ;;  %1125 = vst.msk [vmem:[%s2129_s4 + $0xa8] sm:$0xff] %vm22_vm2, %v1061_v38  ;;  %v924_v48 = vld [vmem:[#allocation2 + $0xd0] sm:$0xff]  ;;  %v826_v57 = vadd.f32 %v751_v51, %v147_v40  ;;  %v797_v58 = vadd.f32 %v1304_v52, %v118_v41  ;;  %v829_v2 = vadd.f32 %v1336_v59, %v150_v46 }
 0x116   :  { %1157 = vst.msk [vmem:[%s2129_s4 + $0x1a8] sm:$0xff] %vm22_vm2, %v1093_v42  ;;  %v995_v54 = vmul.f32 %v1678_v62, %v924_v48  ;;  %v956_v55 = vld [vmem:[#allocation2 + $0x1d0] sm:$0xff]  ;;  %v922_v56 = vld [vmem:[#allocation2 + $0xc0] sm:$0xff]  ;;  %861 = vst.msk [vmem:[#allocation2 + $0xf0] sm:$0xff] %vm22_vm2, %v796_v43  ;;  %v795_v3 = vadd.f32 %v626_v60, %v116_v47  ;;  %v827_v11 = vadd.f32 %v754_v4, %v148_v53 }
 0x117   :  { %v1027_v61 = vmul.f32 %v1678_v62, %v956_v55  ;;  %v993_v63 = vmul.f32 %v1678_v62, %v922_v56  ;;  %v954_v0 = vld [vmem:[#allocation2 + $0x1c0] sm:$0xff]  ;;  %v925_v1 = vld [vmem:[#allocation2 + $0xd8] sm:$0xff]  ;;  %893 = vst.msk [vmem:[#allocation2 + $0x1f0] sm:$0xff] %vm22_vm2, %v828_v49  ;;  %859 = vst.msk [vmem:[#allocation2 + $0xe0] sm:$0xff] %vm22_vm2, %v794_v50 }
 0x118   :  { %v1066_v5 = vadd.f32 %v1683_v8, %v995_v54  ;;  %v1025_v6 = vmul.f32 %v1678_v62, %v954_v0  ;;  %v996_v7 = vmul.f32 %v1678_v62, %v925_v1  ;;  %v957_v9 = vld [vmem:[#allocation2 + $0x1d8] sm:$0xff]  ;;  %v923_v10 = vld [vmem:[#allocation2 + $0xc8] sm:$0xff]  ;;  %891 = vst.msk [vmem:[#allocation2 + $0x1e0] sm:$0xff] %vm22_vm2, %v826_v57  ;;  %862 = vst.msk [vmem:[#allocation2 + $0xf8] sm:$0xff] %vm22_vm2, %v797_v58 }
 0x119   :  { %v1098_v12 = vadd.f32 %v1683_v8, %v1027_v61  ;;  %v1064_v13 = vadd.f32 %v1683_v8, %v993_v63  ;;  %v1028_v14 = vmul.f32 %v1678_v62, %v957_v9  ;;  %v994_v15 = vmul.f32 %v1678_v62, %v923_v10  ;;  %v955_v16 = vld [vmem:[#allocation2 + $0x1c8] sm:$0xff]  ;;  %894 = vst.msk [vmem:[#allocation2 + $0x1f8] sm:$0xff] %vm22_vm2, %v829_v2 }
 0x11a   :  { %860 = vst.msk [vmem:[#allocation2 + $0xe8] sm:$0xff] %vm22_vm2, %v795_v3  ;;  %1130 = vst.msk [vmem:[%s2129_s4 + $0xd0] sm:$0xff] %vm22_vm2, %v1066_v5  ;;  %v1096_v17 = vadd.f32 %v1683_v8, %v1025_v6  ;;  %v1067_v18 = vadd.f32 %v1683_v8, %v996_v7  ;;  %v1026_v19 = vmul.f32 %v1678_v62, %v955_v16 }
 0x11b   :  { %892 = vst.msk [vmem:[#allocation2 + $0x1e8] sm:$0xff] %vm22_vm2, %v827_v11  ;;  %1162 = vst.msk [vmem:[%s2129_s4 + $0x1d0] sm:$0xff] %vm22_vm2, %v1098_v12  ;;  %v1099_v20 = vadd.f32 %v1683_v8, %v1028_v14  ;;  %v1065_v21 = vadd.f32 %v1683_v8, %v994_v15 }
 0x11c   :  { %1128 = vst.msk [vmem:[%s2129_s4 + $0xc0] sm:$0xff] %vm22_vm2, %v1064_v13  ;;  %1160 = vst.msk [vmem:[%s2129_s4 + $0x1c0] sm:$0xff] %vm22_vm2, %v1096_v17  ;;  %v1097_v22 = vadd.f32 %v1683_v8, %v1026_v19 }
 0x11d   :  { %1131 = vst.msk [vmem:[%s2129_s4 + $0xd8] sm:$0xff] %vm22_vm2, %v1067_v18  ;;  %1163 = vst.msk [vmem:[%s2129_s4 + $0x1d8] sm:$0xff] %vm22_vm2, %v1099_v20  ;;  %v928_v23 = vld [vmem:[#allocation2 + $0xf0] sm:$0xff] }
 0x11e   :  { %1129 = vst.msk [vmem:[%s2129_s4 + $0xc8] sm:$0xff] %vm22_vm2, %v1065_v21  ;;  %1161 = vst.msk [vmem:[%s2129_s4 + $0x1c8] sm:$0xff] %vm22_vm2, %v1097_v22  ;;  %v999_v24 = vmul.f32 %v1678_v62, %v928_v23  ;;  %v960_v25 = vld [vmem:[#allocation2 + $0x1f0] sm:$0xff]  ;;  %v926_v26 = vld [vmem:[#allocation2 + $0xe0] sm:$0xff] }
 0x11f   :  { %v1031_v27 = vmul.f32 %v1678_v62, %v960_v25  ;;  %v997_v28 = vmul.f32 %v1678_v62, %v926_v26  ;;  %v958_v29 = vld [vmem:[#allocation2 + $0x1e0] sm:$0xff]  ;;  %v929_v30 = vld [vmem:[#allocation2 + $0xf8] sm:$0xff] }
 0x120   :  { %v1070_v31 = vadd.f32 %v1683_v8, %v999_v24  ;;  %v1029_v32 = vmul.f32 %v1678_v62, %v958_v29  ;;  %v1000_v33 = vmul.f32 %v1678_v62, %v929_v30  ;;  %v961_v34 = vld [vmem:[#allocation2 + $0x1f8] sm:$0xff] }
 0x121   :  { %v927_v35 = vld [vmem:[#allocation2 + $0xe8] sm:$0xff]  ;;  %v1102_v36 = vadd.f32 %v1683_v8, %v1031_v27  ;;  %v1068_v37 = vadd.f32 %v1683_v8, %v997_v28  ;;  %v1032_v38 = vmul.f32 %v1678_v62, %v961_v34 }
 0x122   :  { %v998_v39 = vmul.f32 %v1678_v62, %v927_v35  ;;  %v959_v40 = vld [vmem:[#allocation2 + $0x1e8] sm:$0xff]  ;;  %1134 = vst.msk [vmem:[%s2129_s4 + $0xf0] sm:$0xff] %vm22_vm2, %v1070_v31  ;;  %v1100_v41 = vadd.f32 %v1683_v8, %v1029_v32  ;;  %v1071_v42 = vadd.f32 %v1683_v8, %v1000_v33 }
 0x123   :  { %v1030_v43 = vmul.f32 %v1678_v62, %v959_v40  ;;  %1166 = vst.msk [vmem:[%s2129_s4 + $0x1f0] sm:$0xff] %vm22_vm2, %v1102_v36  ;;  %1132 = vst.msk [vmem:[%s2129_s4 + $0xe0] sm:$0xff] %vm22_vm2, %v1068_v37  ;;  %v1103_v44 = vadd.f32 %v1683_v8, %v1032_v38 }
 0x124   :  { %v1069_v45 = vadd.f32 %v1683_v8, %v998_v39  ;;  %1164 = vst.msk [vmem:[%s2129_s4 + $0x1e0] sm:$0xff] %vm22_vm2, %v1100_v41  ;;  %1135 = vst.msk [vmem:[%s2129_s4 + $0xf8] sm:$0xff] %vm22_vm2, %v1071_v42 }
 0x125   :  { %v1101_v62 = vadd.f32 %v1683_v8, %v1030_v43  ;;  %1167 = vst.msk [vmem:[%s2129_s4 + $0x1f8] sm:$0xff] %vm22_vm2, %v1103_v44 }
 0x126   :  { %1133 = vst.msk [vmem:[%s2129_s4 + $0xe8] sm:$0xff] %vm22_vm2, %v1069_v45 }
 0x127   :  { %1165 = vst.msk [vmem:[%s2129_s4 + $0x1e8] sm:$0xff] %vm22_vm2, %v1101_v62 }

// kernel: forward.38
= control target key start
LH: loop header
LB: loop body
LE: loop exit
PB: predicated region body
PF: predicated region fallthrough
CT: control target
= control target key end

     0   :  { %vm473_vm0 = vcmask 1043456   ;;  %vm376_vm1 = vcmask 64512   ;;  %vm22_vm2 = vcmask 130048   ;;  %v1374_v1 = vmov 0.0   ;;  %s2125_s1 = inlined_call_operand.vmem [shape: bf16[8,16], index: 1, kind: input, shape index: {}]   ;;  %s2126_s0 = inlined_call_operand.vmem [shape: bf16[512,8], index: 0, kind: input, shape index: {}]   ;;  %s2127_s2 = inlined_call_operand.vmem [shape: f32[1,16], index: 2, kind: input, shape index: {}]   ;;  %s2128_s3 = inlined_call_operand.vmem [shape: f32[1,16], index: 3, kind: input, shape index: {}]   ;;  %s2129_s4 = inlined_call_operand.vmem [shape: f32[512,16], index: 4, kind: output, shape index: {}]  }
   0x1   :  { %v1403_v0 = vld [vmem:[%s2125_s1] sm:$0xf]  ;;  %25 = vst.msk [vmem:[#allocation2 + $0x10] sm:$0xff] %vm22_vm2, %v1374_v1  ;;  %23 = vst.msk [vmem:[#allocation2] sm:$0xff] %vm22_vm2, %v1374_v1  ;;  %v1344_v5 = vld [vmem:[%s2126_s0 + $0x8] sm:$0xff]  }
   0x2   :  { %24 = vst.msk [vmem:[#allocation2 + $0x8] sm:$0xff] %vm22_vm2, %v1374_v1  ;;  %26 = vst.msk [vmem:[#allocation2 + $0x18] sm:$0xff] %vm22_vm2, %v1374_v1  ;;  %1339 = vmatprep.subr.msk.bf16.mxu0 %vm473_vm0, %v1403_v0  ;;  %1340 = vmatprep.subr.msk.bf16.mxu1 %vm473_vm0, %v1403_v0  ;;  %v475_v2 = vsel %vm473_vm0, %v1403_v0, 0  ;;  %v1342_v3 = vld [vmem:[%s2126_s0] sm:$0xff]   ;;  %v1345_v6 = vld [vmem:[%s2126_s0 + $0x88] sm:$0xff]  }
   0x3   :  { %27 = vst.msk [vmem:[#allocation2 + $0x20] sm:$0xff] %vm22_vm2, %v1374_v1  ;;  %28 = vst.msk [vmem:[#allocation2 + $0x28] sm:$0xff] %vm22_vm2, %v1374_v1  ;;  %1272 = vmatpush3.bf16.msra.mxu0 %v475_v2  ;;  %1338 = vmatpush3.bf16.msra.mxu1 %v475_v2  ;;  %v1343_v4 = vld [vmem:[%s2126_s0 + $0x80] sm:$0xff]   ;;  %v1346_v7 = vld [vmem:[%s2126_s0 + $0x10] sm:$0xff]  }
   0x4   :  { %29 = vst.msk [vmem:[#allocation2 + $0x30] sm:$0xff] %vm22_vm2, %v1374_v1  ;;  %30 = vst.msk [vmem:[#allocation2 + $0x38] sm:$0xff] %vm22_vm2, %v1374_v1  ;;  %1273 = vmatprep.mubr.msk.bf16.mxu0 %vm376_vm1, %v1342_v3  ;;  %1305 = vmatprep.mubr.msk.bf16.mxu1 %vm376_vm1, %v1343_v4  ;;  %v1347_v8 = vld [vmem:[%s2126_s0 + $0x90] sm:$0xff]   ;;  %v1348_v9 = vld [vmem:[%s2126_s0 + $0x18] sm:$0xff]  }
   0x5   :  { %31 = vst.msk [vmem:[#allocation2 + $0x40] sm:$0xff] %vm22_vm2, %v1374_v1  ;;  %32 = vst.msk [vmem:[#allocation2 + $0x48] sm:$0xff] %vm22_vm2, %v1374_v1  ;;  %v1349_v10 = vld [vmem:[%s2126_s0 + $0x98] sm:$0xff]   ;;  %v1350_v11 = vld [vmem:[%s2126_s0 + $0x20] sm:$0xff]  }
   0x6   :  { %33 = vst.msk [vmem:[#allocation2 + $0x50] sm:$0xff] %vm22_vm2, %v1374_v1  ;;  %34 = vst.msk [vmem:[#allocation2 + $0x58] sm:$0xff] %vm22_vm2, %v1374_v1  ;;  %1274 = vmatmul.mubr.msk.bf16.vlgmr.msra.gmra.mrb[0].mxu0 %vm376_vm1, %v1344_v5  ;;  %1306 = vmatmul.mubr.msk.bf16.vlgmr.msra.gmra.mrb[0].mxu1 %vm376_vm1, %v1345_v6  ;;  %v1351_v12 = vld [vmem:[%s2126_s0 + $0xa0] sm:$0xff]   ;;  %v1352_v13 = vld [vmem:[%s2126_s0 + $0x28] sm:$0xff]  }
   0x7   :  { %35 = vst.msk [vmem:[#allocation2 + $0x60] sm:$0xff] %vm22_vm2, %v1374_v1  ;;  %36 = vst.msk [vmem:[#allocation2 + $0x68] sm:$0xff] %vm22_vm2, %v1374_v1  ;;  %1277 = vmatprep.mubr.msk.bf16.mxu0 %vm376_vm1, %v1346_v7  ;;  %1309 = vmatprep.mubr.msk.bf16.mxu1 %vm376_vm1, %v1347_v8  ;;  %v1353_v14 = vld [vmem:[%s2126_s0 + $0xa8] sm:$0xff]   ;;  %v1354_v15 = vld [vmem:[%s2126_s0 + $0x30] sm:$0xff]  }
   0x8   :  { %37 = vst.msk [vmem:[#allocation2 + $0x70] sm:$0xff] %vm22_vm2, %v1374_v1  ;;  %38 = vst.msk [vmem:[#allocation2 + $0x78] sm:$0xff] %vm22_vm2, %v1374_v1  ;;  %v1355_v16 = vld [vmem:[%s2126_s0 + $0xb0] sm:$0xff]   ;;  %v1356_v17 = vld [vmem:[%s2126_s0 + $0x38] sm:$0xff]  }
   0x9   :  { %39 = vst.msk [vmem:[#allocation2 + $0x80] sm:$0xff] %vm22_vm2, %v1374_v1  ;;  %40 = vst.msk [vmem:[#allocation2 + $0x88] sm:$0xff] %vm22_vm2, %v1374_v1  ;;  %v1357_v18 = vld [vmem:[%s2126_s0 + $0xb8] sm:$0xff]   ;;  %v1358_v19 = vld [vmem:[%s2126_s0 + $0x40] sm:$0xff]  }
   0xa   :  { %41 = vst.msk [vmem:[#allocation2 + $0x90] sm:$0xff] %vm22_vm2, %v1374_v1  ;;  %42 = vst.msk [vmem:[#allocation2 + $0x98] sm:$0xff] %vm22_vm2, %v1374_v1  ;;  %v1359_v20 = vld [vmem:[%s2126_s0 + $0xc0] sm:$0xff]   ;;  %v1360_v21 = vld [vmem:[%s2126_s0 + $0x48] sm:$0xff]  }
   0xb   :  { %43 = vst.msk [vmem:[#allocation2 + $0xa0] sm:$0xff] %vm22_vm2, %v1374_v1  ;;  %44 = vst.msk [vmem:[#allocation2 + $0xa8] sm:$0xff] %vm22_vm2, %v1374_v1  ;;  %v1361_v22 = vld [vmem:[%s2126_s0 + $0xc8] sm:$0xff]   ;;  %v1362_v23 = vld [vmem:[%s2126_s0 + $0x50] sm:$0xff]  }
   0xc   :  { %45 = vst.msk [vmem:[#allocation2 + $0xb0] sm:$0xff] %vm22_vm2, %v1374_v1  ;;  %46 = vst.msk [vmem:[#allocation2 + $0xb8] sm:$0xff] %vm22_vm2, %v1374_v1  ;;  %v1363_v24 = vld [vmem:[%s2126_s0 + $0xd0] sm:$0xff]   ;;  %v1364_v25 = vld [vmem:[%s2126_s0 + $0x58] sm:$0xff]  }
   0xd   :  { %47 = vst.msk [vmem:[#allocation2 + $0xc0] sm:$0xff] %vm22_vm2, %v1374_v1  ;;  %48 = vst.msk [vmem:[#allocation2 + $0xc8] sm:$0xff] %vm22_vm2, %v1374_v1  ;;  %v1365_v26 = vld [vmem:[%s2126_s0 + $0xd8] sm:$0xff]   ;;  %v1366_v27 = vld [vmem:[%s2126_s0 + $0x60] sm:$0xff]  }
   0xe   :  { %49 = vst.msk [vmem:[#allocation2 + $0xd0] sm:$0xff] %vm22_vm2, %v1374_v1  ;;  %50 = vst.msk [vmem:[#allocation2 + $0xd8] sm:$0xff] %vm22_vm2, %v1374_v1  ;;  %1278 = vmatmul.mubr.msk.bf16.gmra.mrb[4].mxu0 %vm376_vm1, %v1348_v9  ;;  %1310 = vmatmul.mubr.msk.bf16.gmra.mrb[4].mxu1 %vm376_vm1, %v1349_v10  ;;  %v1367_v28 = vld [vmem:[%s2126_s0 + $0xe0] sm:$0xff]   ;;  %v1368_v29 = vld [vmem:[%s2126_s0 + $0x68] sm:$0xff]  }
   0xf   :  { %51 = vst.msk [vmem:[#allocation2 + $0xe0] sm:$0xff] %vm22_vm2, %v1374_v1  ;;  %52 = vst.msk [vmem:[#allocation2 + $0xe8] sm:$0xff] %vm22_vm2, %v1374_v1  ;;  %1281 = vmatprep.mubr.msk.bf16.mxu0 %vm376_vm1, %v1350_v11  ;;  %1313 = vmatprep.mubr.msk.bf16.mxu1 %vm376_vm1, %v1351_v12  ;;  %v1369_v30 = vld [vmem:[%s2126_s0 + $0xe8] sm:$0xff]   ;;  %v1370_v31 = vld [vmem:[%s2126_s0 + $0x70] sm:$0xff]  }
  0x10   :  { %53 = vst.msk [vmem:[#allocation2 + $0xf0] sm:$0xff] %vm22_vm2, %v1374_v1  ;;  %54 = vst.msk [vmem:[#allocation2 + $0xf8] sm:$0xff] %vm22_vm2, %v1374_v1  ;;  %v1371_v32 = vld [vmem:[%s2126_s0 + $0xf0] sm:$0xff]   ;;  %v1372_v33 = vld [vmem:[%s2126_s0 + $0x78] sm:$0xff]  }
  0x11   :  { %55 = vst.msk [vmem:[#allocation2 + $0x100] sm:$0xff] %vm22_vm2, %v1374_v1  ;;  %56 = vst.msk [vmem:[#allocation2 + $0x108] sm:$0xff] %vm22_vm2, %v1374_v1  ;;  %v1373_v34 = vld [vmem:[%s2126_s0 + $0xf8] sm:$0xff]   ;;  %v89_v35 = vld [vmem:[#allocation2 + $0x10] sm:$0xff] }
  0x12   :  { %57 = vst.msk [vmem:[#allocation2 + $0x110] sm:$0xff] %vm22_vm2, %v1374_v1  ;;  %58 = vst.msk [vmem:[#allocation2 + $0x118] sm:$0xff] %vm22_vm2, %v1374_v1  ;;  %v87_v37 = vld [vmem:[#allocation2] sm:$0xff]  ;;  %v90_v40 = vld [vmem:[#allocation2 + $0x18] sm:$0xff] }
  0x13   :  { %59 = vst.msk [vmem:[#allocation2 + $0x120] sm:$0xff] %vm22_vm2, %v1374_v1  ;;  %60 = vst.msk [vmem:[#allocation2 + $0x128] sm:$0xff] %vm22_vm2, %v1374_v1  ;;  %v88_v45 = vld [vmem:[#allocation2 + $0x8] sm:$0xff]  ;;  %v93_v59 = vld [vmem:[#allocation2 + $0x30] sm:$0xff] }
  0x14   :  { %61 = vst.msk [vmem:[#allocation2 + $0x130] sm:$0xff] %vm22_vm2, %v1374_v1  ;;  %62 = vst.msk [vmem:[#allocation2 + $0x138] sm:$0xff] %vm22_vm2, %v1374_v1  ;;  %v91_v61 = vld [vmem:[#allocation2 + $0x20] sm:$0xff]  ;;  %v92_v6 = vld [vmem:[#allocation2 + $0x28] sm:$0xff] }
  0x15   :  { %63 = vst.msk [vmem:[#allocation2 + $0x140] sm:$0xff] %vm22_vm2, %v1374_v1  ;;  %64 = vst.msk [vmem:[#allocation2 + $0x148] sm:$0xff] %vm22_vm2, %v1374_v1  ;;  %v1678_v62 = vld [vmem:[%s2127_s2] ss:$0 sm:$0xff] }
  0x16   :  { %65 = vst.msk [vmem:[#allocation2 + $0x150] sm:$0xff] %vm22_vm2, %v1374_v1  ;;  %66 = vst.msk [vmem:[#allocation2 + $0x158] sm:$0xff] %vm22_vm2, %v1374_v1  ;;  %1282 = vmatmul.mubr.msk.bf16.gmra.mrb[8].mxu0 %vm376_vm1, %v1352_v13  ;;  %1314 = vmatmul.mubr.msk.bf16.gmra.mrb[8].mxu1 %vm376_vm1, %v1353_v14  ;;  %v1683_v8 = vld [vmem:[%s2128_s3] ss:$0 sm:$0xff] }
  0x17   :  { %67 = vst.msk [vmem:[#allocation2 + $0x160] sm:$0xff] %vm22_vm2, %v1374_v1  ;;  %68 = vst.msk [vmem:[#allocation2 + $0x168] sm:$0xff] %vm22_vm2, %v1374_v1  ;;  %1285 = vmatprep.mubr.msk.bf16.mxu0 %vm376_vm1, %v1354_v15  ;;  %1317 = vmatprep.mubr.msk.bf16.mxu1 %vm376_vm1, %v1355_v16 }
  0x18   :  { %69 = vst.msk [vmem:[#allocation2 + $0x170] sm:$0xff] %vm22_vm2, %v1374_v1  ;;  %70 = vst.msk [vmem:[#allocation2 + $0x178] sm:$0xff] %vm22_vm2, %v1374_v1  ;;  %v119_v39 = vld [vmem:[#allocation2 + $0x100] sm:$0xff]  ;;  %v120_v50 = vld [vmem:[#allocation2 + $0x108] sm:$0xff] }
  0x19   :  { %71 = vst.msk [vmem:[#allocation2 + $0x180] sm:$0xff] %vm22_vm2, %v1374_v1  ;;  %72 = vst.msk [vmem:[#allocation2 + $0x188] sm:$0xff] %vm22_vm2, %v1374_v1  ;;  %v121_v36 = vld [vmem:[#allocation2 + $0x110] sm:$0xff]  ;;  %v122_v44 = vld [vmem:[#allocation2 + $0x118] sm:$0xff] }
  0x1a   :  { %73 = vst.msk [vmem:[#allocation2 + $0x190] sm:$0xff] %vm22_vm2, %v1374_v1  ;;  %74 = vst.msk [vmem:[#allocation2 + $0x198] sm:$0xff] %vm22_vm2, %v1374_v1  ;;  %v123_v0 = vld [vmem:[#allocation2 + $0x120] sm:$0xff]  ;;  %v124_v13 = vld [vmem:[#allocation2 + $0x128] sm:$0xff] }
  0x1b   :  { %75 = vst.msk [vmem:[#allocation2 + $0x1a0] sm:$0xff] %vm22_vm2, %v1374_v1  ;;  %76 = vst.msk [vmem:[#allocation2 + $0x1a8] sm:$0xff] %vm22_vm2, %v1374_v1  ;;  %v125_v60 = vld [vmem:[#allocation2 + $0x130] sm:$0xff]  ;;  %v126_v5 = vld [vmem:[#allocation2 + $0x138] sm:$0xff] }
  0x1c   :  { %77 = vst.msk [vmem:[#allocation2 + $0x1b0] sm:$0xff] %vm22_vm2, %v1374_v1  ;;  %78 = vst.msk [vmem:[#allocation2 + $0x1b8] sm:$0xff] %vm22_vm2, %v1374_v1 }
  0x1d   :  { %79 = vst.msk [vmem:[#allocation2 + $0x1c0] sm:$0xff] %vm22_vm2, %v1374_v1  ;;  %80 = vst.msk [vmem:[#allocation2 + $0x1c8] sm:$0xff] %vm22_vm2, %v1374_v1 }
  0x1e   :  { %81 = vst.msk [vmem:[#allocation2 + $0x1d0] sm:$0xff] %vm22_vm2, %v1374_v1  ;;  %82 = vst.msk [vmem:[#allocation2 + $0x1d8] sm:$0xff] %vm22_vm2, %v1374_v1  ;;  %1286 = vmatmul.mubr.msk.bf16.gmra.mrb[12].mxu0 %vm376_vm1, %v1356_v17  ;;  %1318 = vmatmul.mubr.msk.bf16.gmra.mrb[12].mxu1 %vm376_vm1, %v1357_v18 }
  0x1f   :  { %83 = vst.msk [vmem:[#allocation2 + $0x1e0] sm:$0xff] %vm22_vm2, %v1374_v1  ;;  %84 = vst.msk [vmem:[#allocation2 + $0x1e8] sm:$0xff] %vm22_vm2, %v1374_v1  ;;  %1289 = vmatprep.mubr.msk.bf16.mxu0 %vm376_vm1, %v1358_v19  ;;  %1321 = vmatprep.mubr.msk.bf16.mxu1 %vm376_vm1, %v1359_v20 }
  0x20   :  { %85 = vst.msk [vmem:[#allocation2 + $0x1f0] sm:$0xff] %vm22_vm2, %v1374_v1  ;;  %86 = vst.msk [vmem:[#allocation2 + $0x1f8] sm:$0xff] %vm22_vm2, %v1374_v1  ;;  %v94_v1 = vld [vmem:[#allocation2 + $0x38] sm:$0xff] }
  0x26   :  { %1290 = vmatmul.mubr.msk.bf16.gmra.mrb[16].mxu0 %vm376_vm1, %v1360_v21  ;;  %1322 = vmatmul.mubr.msk.bf16.gmra.mrb[16].mxu1 %vm376_vm1, %v1361_v22 }
  0x27   :  { %1293 = vmatprep.mubr.msk.bf16.mxu0 %vm376_vm1, %v1362_v23  ;;  %1325 = vmatprep.mubr.msk.bf16.mxu1 %vm376_vm1, %v1363_v24 }
  0x2e   :  { %1294 = vmatmul.mubr.msk.bf16.gmra.mrb[20].mxu0 %vm376_vm1, %v1364_v25  ;;  %1326 = vmatmul.mubr.msk.bf16.gmra.mrb[20].mxu1 %vm376_vm1, %v1365_v26 }
  0x2f   :  { %1297 = vmatprep.mubr.msk.bf16.mxu0 %vm376_vm1, %v1366_v27  ;;  %1329 = vmatprep.mubr.msk.bf16.mxu1 %vm376_vm1, %v1367_v28 }
  0x36   :  { %1298 = vmatmul.mubr.msk.bf16.gmra.mrb[24].mxu0 %vm376_vm1, %v1368_v29  ;;  %1330 = vmatmul.mubr.msk.bf16.gmra.mrb[24].mxu1 %vm376_vm1, %v1369_v30 }
  0x37   :  { %1301 = vmatprep.mubr.msk.bf16.mxu0 %vm376_vm1, %v1370_v31  ;;  %1333 = vmatprep.mubr.msk.bf16.mxu1 %vm376_vm1, %v1371_v32 }
  0x3e   :  { %1302 = vmatmul.mubr.msk.bf16.gmra.mrb[28].mxu0 %vm376_vm1, %v1372_v33  ;;  %1334 = vmatmul.mubr.msk.bf16.gmra.mrb[28].mxu1 %vm376_vm1, %v1373_v34 }
  0xd9   :  { %v1275_v38 = vpop.f32.mrb[0].mxu0  ;;  %v1307_v42 = vpop.f32.mrb[0].mxu1 }
  0xda   :  { %v768_v41 = vadd.f32 %v1275_v38, %v89_v35  ;;  %v511_v43 = vpop.f32.mrb[1].mxu0  ;;  %v800_v46 = vadd.f32 %v1307_v42, %v121_v36  ;;  %v639_v48 = vpop.f32.mrb[1].mxu1 }
  0xdb   :  { %v766_v47 = vadd.f32 %v511_v43, %v87_v37  ;;  %v1276_v49 = vpop.f32.mrb[2].mxu0  ;;  %v798_v51 = vadd.f32 %v639_v48, %v119_v39  ;;  %v1308_v53 = vpop.f32.mrb[2].mxu1  ;;  %v97_v39 = vld [vmem:[#allocation2 + $0x50] sm:$0xff]  ;;  %v127_v48 = vld [vmem:[#allocation2 + $0x140] sm:$0xff] }
  0xdc   :  { %833 = vst.msk [vmem:[#allocation2 + $0x10] sm:$0xff] %vm22_vm2, %v768_v41  ;;  %v769_v52 = vadd.f32 %v1276_v49, %v90_v40  ;;  %v514_v54 = vpop.f32.mrb[3].mxu0  ;;  %865 = vst.msk [vmem:[#allocation2 + $0x110] sm:$0xff] %vm22_vm2, %v800_v46  ;;  %v801_v55 = vadd.f32 %v1308_v53, %v122_v44  ;;  %v642_v57 = vpop.f32.mrb[3].mxu1  ;;  %v129_v43 = vld [vmem:[#allocation2 + $0x150] sm:$0xff]  ;;  %v95_v44 = vld [vmem:[#allocation2 + $0x40] sm:$0xff] }
  0xdd   :  { %831 = vst.msk [vmem:[#allocation2] sm:$0xff] %vm22_vm2, %v766_v47  ;;  %v767_v56 = vadd.f32 %v514_v54, %v88_v45  ;;  %863 = vst.msk [vmem:[#allocation2 + $0x100] sm:$0xff] %vm22_vm2, %v798_v51  ;;  %v799_v58 = vadd.f32 %v642_v57, %v120_v50  ;;  %v98_v49 = vld [vmem:[#allocation2 + $0x58] sm:$0xff] }
  0xde   :  { %834 = vst.msk [vmem:[#allocation2 + $0x18] sm:$0xff] %vm22_vm2, %v769_v52  ;;  %866 = vst.msk [vmem:[#allocation2 + $0x118] sm:$0xff] %vm22_vm2, %v801_v55  ;;  %v130_v54 = vld [vmem:[#allocation2 + $0x158] sm:$0xff]  ;;  %v96_v55 = vld [vmem:[#allocation2 + $0x48] sm:$0xff] }
  0xdf   :  { %832 = vst.msk [vmem:[#allocation2 + $0x8] sm:$0xff] %vm22_vm2, %v767_v56  ;;  %864 = vst.msk [vmem:[#allocation2 + $0x108] sm:$0xff] %vm22_vm2, %v799_v58 }
  0xe1   :  { %v1279_v63 = vpop.f32.mrb[4].mxu0  ;;  %v1311_v3 = vpop.f32.mrb[4].mxu1 }
  0xe2   :  { %v772_v2 = vadd.f32 %v1279_v63, %v93_v59  ;;  %v527_v4 = vpop.f32.mrb[5].mxu0  ;;  %v804_v9 = vadd.f32 %v1311_v3, %v125_v60  ;;  %v655_v11 = vpop.f32.mrb[5].mxu1 }
  0xe3   :  { %v900_v7 = vld [vmem:[#allocation2 + $0x10] sm:$0xff]  ;;  %v770_v10 = vadd.f32 %v527_v4, %v91_v61  ;;  %v1280_v12 = vpop.f32.mrb[6].mxu0  ;;  %v802_v17 = vadd.f32 %v655_v11, %v123_v0  ;;  %v1312_v19 = vpop.f32.mrb[6].mxu1  ;;  %v128_v61 = vld [vmem:[#allocation2 + $0x148] sm:$0xff] }
  0xe4   :  { %v971_v14 = vmul.f32 %v1678_v62, %v900_v7  ;;  %v932_v15 = vld [vmem:[#allocation2 + $0x110] sm:$0xff]  ;;  %v898_v16 = vld [vmem:[#allocation2] sm:$0xff]  ;;  %837 = vst.msk [vmem:[#allocation2 + $0x30] sm:$0xff] %vm22_vm2, %v772_v2  ;;  %v773_v18 = vadd.f32 %v1280_v12, %v94_v1  ;;  %v530_v20 = vpop.f32.mrb[7].mxu0  ;;  %869 = vst.msk [vmem:[#allocation2 + $0x130] sm:$0xff] %vm22_vm2, %v804_v9  ;;  %v805_v25 = vadd.f32 %v1312_v19, %v126_v5  ;;  %v658_v27 = vpop.f32.mrb[7].mxu1 }
  0xe5   :  { %v1003_v21 = vmul.f32 %v1678_v62, %v932_v15  ;;  %v969_v22 = vmul.f32 %v1678_v62, %v898_v16  ;;  %v930_v23 = vld [vmem:[#allocation2 + $0x100] sm:$0xff]  ;;  %v901_v24 = vld [vmem:[#allocation2 + $0x18] sm:$0xff]  ;;  %835 = vst.msk [vmem:[#allocation2 + $0x20] sm:$0xff] %vm22_vm2, %v770_v10  ;;  %v771_v26 = vadd.f32 %v530_v20, %v92_v6  ;;  %867 = vst.msk [vmem:[#allocation2 + $0x120] sm:$0xff] %vm22_vm2, %v802_v17 }
  0xe6   :  { %v1042_v28 = vadd.f32 %v1683_v8, %v971_v14  ;;  %v1001_v29 = vmul.f32 %v1678_v62, %v930_v23  ;;  %v972_v30 = vmul.f32 %v1678_v62, %v901_v24  ;;  %v933_v31 = vld [vmem:[#allocation2 + $0x118] sm:$0xff]  ;;  %v899_v32 = vld [vmem:[#allocation2 + $0x8] sm:$0xff]  ;;  %838 = vst.msk [vmem:[#allocation2 + $0x38] sm:$0xff] %vm22_vm2, %v773_v18  ;;  %v803_v33 = vadd.f32 %v658_v27, %v124_v13 }
  0xe7   :  { %v1074_v34 = vadd.f32 %v1683_v8, %v1003_v21  ;;  %v1040_v35 = vadd.f32 %v1683_v8, %v969_v22  ;;  %v1004_v36 = vmul.f32 %v1678_v62, %v933_v31  ;;  %v970_v37 = vmul.f32 %v1678_v62, %v899_v32  ;;  %v931_v38 = vld [vmem:[#allocation2 + $0x108] sm:$0xff]  ;;  %870 = vst.msk [vmem:[#allocation2 + $0x138] sm:$0xff] %vm22_vm2, %v805_v25  ;;  %v101_v25 = vld [vmem:[#allocation2 + $0x70] sm:$0xff] }
  0xe8   :  { %836 = vst.msk [vmem:[#allocation2 + $0x28] sm:$0xff] %vm22_vm2, %v771_v26  ;;  %1106 = vst.msk [vmem:[%s2129_s4 + $0x10] sm:$0xff] %vm22_vm2, %v1042_v28  ;;  %v1072_v40 = vadd.f32 %v1683_v8, %v1001_v29  ;;  %v1043_v41 = vadd.f32 %v1683_v8, %v972_v30  ;;  %v1002_v42 = vmul.f32 %v1678_v62, %v931_v38  ;;  %v133_v29 = vld [vmem:[#allocation2 + $0x170] sm:$0xff]  ;;  %v99_v30 = vld [vmem:[#allocation2 + $0x60] sm:$0xff] }
  0xe9   :  { %868 = vst.msk [vmem:[#allocation2 + $0x128] sm:$0xff] %vm22_vm2, %v803_v33  ;;  %1138 = vst.msk [vmem:[%s2129_s4 + $0x110] sm:$0xff] %vm22_vm2, %v1074_v34  ;;  %v1075_v45 = vadd.f32 %v1683_v8, %v1004_v36  ;;  %v1041_v46 = vadd.f32 %v1683_v8, %v970_v37  ;;  %v1283_v47 = vpop.f32.mrb[8].mxu0  ;;  %v1315_v52 = vpop.f32.mrb[8].mxu1  ;;  %v131_v34 = vld [vmem:[#allocation2 + $0x160] sm:$0xff] }
  0xea   :  { %1104 = vst.msk [vmem:[%s2129_s4] sm:$0xff] %vm22_vm2, %v1040_v35  ;;  %1136 = vst.msk [vmem:[%s2129_s4 + $0x100] sm:$0xff] %vm22_vm2, %v1072_v40  ;;  %v1073_v50 = vadd.f32 %v1683_v8, %v1002_v42  ;;  %v776_v51 = vadd.f32 %v1283_v47, %v97_v39  ;;  %v543_v53 = vpop.f32.mrb[9].mxu0  ;;  %v808_v57 = vadd.f32 %v1315_v52, %v129_v43  ;;  %v671_v59 = vpop.f32.mrb[9].mxu1  ;;  %v102_v35 = vld [vmem:[#allocation2 + $0x78] sm:$0xff]  ;;  %v132_v47 = vld [vmem:[#allocation2 + $0x168] sm:$0xff] }
  0xeb   :  { %1107 = vst.msk [vmem:[%s2129_s4 + $0x18] sm:$0xff] %vm22_vm2, %v1043_v41  ;;  %1139 = vst.msk [vmem:[%s2129_s4 + $0x118] sm:$0xff] %vm22_vm2, %v1075_v45  ;;  %v904_v56 = vld [vmem:[#allocation2 + $0x30] sm:$0xff]  ;;  %v774_v58 = vadd.f32 %v543_v53, %v95_v44  ;;  %v1284_v60 = vpop.f32.mrb[10].mxu0  ;;  %v806_v2 = vadd.f32 %v671_v59, %v127_v48  ;;  %v1316_v4 = vpop.f32.mrb[10].mxu1  ;;  %v134_v40 = vld [vmem:[#allocation2 + $0x178] sm:$0xff] }
  0xec   :  { %1105 = vst.msk [vmem:[%s2129_s4 + $0x8] sm:$0xff] %vm22_vm2, %v1041_v46  ;;  %1137 = vst.msk [vmem:[%s2129_s4 + $0x108] sm:$0xff] %vm22_vm2, %v1073_v50  ;;  %v975_v63 = vmul.f32 %v1678_v62, %v904_v56  ;;  %v936_v0 = vld [vmem:[#allocation2 + $0x130] sm:$0xff]  ;;  %v902_v1 = vld [vmem:[#allocation2 + $0x20] sm:$0xff]  ;;  %v777_v3 = vadd.f32 %v1284_v60, %v98_v49  ;;  %v546_v5 = vpop.f32.mrb[11].mxu0  ;;  %v809_v11 = vadd.f32 %v1316_v4, %v130_v54  ;;  %v674_v13 = vpop.f32.mrb[11].mxu1 }
  0xed   :  { %841 = vst.msk [vmem:[#allocation2 + $0x50] sm:$0xff] %vm22_vm2, %v776_v51  ;;  %v1007_v6 = vmul.f32 %v1678_v62, %v936_v0  ;;  %v973_v7 = vmul.f32 %v1678_v62, %v902_v1  ;;  %v934_v9 = vld [vmem:[#allocation2 + $0x120] sm:$0xff]  ;;  %v905_v10 = vld [vmem:[#allocation2 + $0x38] sm:$0xff]  ;;  %873 = vst.msk [vmem:[#allocation2 + $0x150] sm:$0xff] %vm22_vm2, %v808_v57  ;;  %v775_v12 = vadd.f32 %v546_v5, %v96_v55 }
  0xee   :  { %839 = vst.msk [vmem:[#allocation2 + $0x40] sm:$0xff] %vm22_vm2, %v774_v58  ;;  %v1046_v14 = vadd.f32 %v1683_v8, %v975_v63  ;;  %v1005_v15 = vmul.f32 %v1678_v62, %v934_v9  ;;  %v976_v16 = vmul.f32 %v1678_v62, %v905_v10  ;;  %v937_v17 = vld [vmem:[#allocation2 + $0x138] sm:$0xff]  ;;  %871 = vst.msk [vmem:[#allocation2 + $0x140] sm:$0xff] %vm22_vm2, %v806_v2  ;;  %v100_v41 = vld [vmem:[#allocation2 + $0x68] sm:$0xff] }
  0xef   :  { %v903_v18 = vld [vmem:[#allocation2 + $0x28] sm:$0xff]  ;;  %842 = vst.msk [vmem:[#allocation2 + $0x58] sm:$0xff] %vm22_vm2, %v777_v3  ;;  %v807_v19 = vadd.f32 %v674_v13, %v128_v61  ;;  %v1078_v20 = vadd.f32 %v1683_v8, %v1007_v6  ;;  %v1044_v21 = vadd.f32 %v1683_v8, %v973_v7  ;;  %v1008_v22 = vmul.f32 %v1678_v62, %v937_v17 }
  0xf0   :  { %v974_v23 = vmul.f32 %v1678_v62, %v903_v18  ;;  %v935_v24 = vld [vmem:[#allocation2 + $0x128] sm:$0xff]  ;;  %874 = vst.msk [vmem:[#allocation2 + $0x158] sm:$0xff] %vm22_vm2, %v809_v11  ;;  %840 = vst.msk [vmem:[#allocation2 + $0x48] sm:$0xff] %vm22_vm2, %v775_v12  ;;  %v1076_v26 = vadd.f32 %v1683_v8, %v1005_v15  ;;  %v1047_v27 = vadd.f32 %v1683_v8, %v976_v16  ;;  %v105_v11 = vld [vmem:[#allocation2 + $0x90] sm:$0xff] }
  0xf1   :  { %1110 = vst.msk [vmem:[%s2129_s4 + $0x30] sm:$0xff] %vm22_vm2, %v1046_v14  ;;  %v1006_v28 = vmul.f32 %v1678_v62, %v935_v24  ;;  %872 = vst.msk [vmem:[#allocation2 + $0x148] sm:$0xff] %vm22_vm2, %v807_v19  ;;  %v1079_v31 = vadd.f32 %v1683_v8, %v1008_v22  ;;  %v1287_v33 = vpop.f32.mrb[12].mxu0  ;;  %v1319_v38 = vpop.f32.mrb[12].mxu1  ;;  %v137_v15 = vld [vmem:[#allocation2 + $0x190] sm:$0xff]  ;;  %v103_v16 = vld [vmem:[#allocation2 + $0x80] sm:$0xff] }
  0xf2   :  { %1142 = vst.msk [vmem:[%s2129_s4 + $0x130] sm:$0xff] %vm22_vm2, %v1078_v20  ;;  %1108 = vst.msk [vmem:[%s2129_s4 + $0x20] sm:$0xff] %vm22_vm2, %v1044_v21  ;;  %v1045_v32 = vadd.f32 %v1683_v8, %v974_v23  ;;  %v780_v37 = vadd.f32 %v1287_v33, %v101_v25  ;;  %v559_v39 = vpop.f32.mrb[13].mxu0  ;;  %v812_v43 = vadd.f32 %v1319_v38, %v133_v29  ;;  %v687_v45 = vpop.f32.mrb[13].mxu1  ;;  %v135_v20 = vld [vmem:[#allocation2 + $0x180] sm:$0xff]  ;;  %v106_v21 = vld [vmem:[#allocation2 + $0x98] sm:$0xff] }
  0xf3   :  { %1140 = vst.msk [vmem:[%s2129_s4 + $0x120] sm:$0xff] %vm22_vm2, %v1076_v26  ;;  %1111 = vst.msk [vmem:[%s2129_s4 + $0x38] sm:$0xff] %vm22_vm2, %v1047_v27  ;;  %v1077_v36 = vadd.f32 %v1683_v8, %v1006_v28  ;;  %v778_v44 = vadd.f32 %v559_v39, %v99_v30  ;;  %v1288_v46 = vpop.f32.mrb[14].mxu0  ;;  %v810_v51 = vadd.f32 %v687_v45, %v131_v34  ;;  %v1320_v53 = vpop.f32.mrb[14].mxu1  ;;  %v138_v26 = vld [vmem:[#allocation2 + $0x198] sm:$0xff]  ;;  %v104_v27 = vld [vmem:[#allocation2 + $0x88] sm:$0xff] }
  0xf4   :  { %1143 = vst.msk [vmem:[%s2129_s4 + $0x138] sm:$0xff] %vm22_vm2, %v1079_v31  ;;  %1109 = vst.msk [vmem:[%s2129_s4 + $0x28] sm:$0xff] %vm22_vm2, %v1045_v32  ;;  %v908_v42 = vld [vmem:[#allocation2 + $0x50] sm:$0xff]  ;;  %v781_v52 = vadd.f32 %v1288_v46, %v102_v35  ;;  %v562_v54 = vpop.f32.mrb[15].mxu0  ;;  %v813_v59 = vadd.f32 %v1320_v53, %v134_v40  ;;  %v690_v61 = vpop.f32.mrb[15].mxu1  ;;  %v136_v33 = vld [vmem:[#allocation2 + $0x188] sm:$0xff] }
  0xf5   :  { %1141 = vst.msk [vmem:[%s2129_s4 + $0x128] sm:$0xff] %vm22_vm2, %v1077_v36  ;;  %v979_v48 = vmul.f32 %v1678_v62, %v908_v42  ;;  %v940_v49 = vld [vmem:[#allocation2 + $0x150] sm:$0xff]  ;;  %v906_v50 = vld [vmem:[#allocation2 + $0x40] sm:$0xff]  ;;  %845 = vst.msk [vmem:[#allocation2 + $0x70] sm:$0xff] %vm22_vm2, %v780_v37  ;;  %v779_v60 = vadd.f32 %v562_v54, %v100_v41  ;;  %v811_v4 = vadd.f32 %v690_v61, %v132_v47 }
  0xf6   :  { %v1011_v55 = vmul.f32 %v1678_v62, %v940_v49  ;;  %v977_v56 = vmul.f32 %v1678_v62, %v906_v50  ;;  %v938_v57 = vld [vmem:[#allocation2 + $0x140] sm:$0xff]  ;;  %v909_v58 = vld [vmem:[#allocation2 + $0x58] sm:$0xff]  ;;  %877 = vst.msk [vmem:[#allocation2 + $0x170] sm:$0xff] %vm22_vm2, %v812_v43  ;;  %843 = vst.msk [vmem:[#allocation2 + $0x60] sm:$0xff] %vm22_vm2, %v778_v44 }
  0xf7   :  { %v1050_v63 = vadd.f32 %v1683_v8, %v979_v48  ;;  %v1009_v0 = vmul.f32 %v1678_v62, %v938_v57  ;;  %v980_v1 = vmul.f32 %v1678_v62, %v909_v58  ;;  %v941_v2 = vld [vmem:[#allocation2 + $0x158] sm:$0xff]  ;;  %v907_v3 = vld [vmem:[#allocation2 + $0x48] sm:$0xff]  ;;  %875 = vst.msk [vmem:[#allocation2 + $0x160] sm:$0xff] %vm22_vm2, %v810_v51  ;;  %846 = vst.msk [vmem:[#allocation2 + $0x78] sm:$0xff] %vm22_vm2, %v781_v52 }
  0xf8   :  { %v1082_v5 = vadd.f32 %v1683_v8, %v1011_v55  ;;  %v1048_v6 = vadd.f32 %v1683_v8, %v977_v56  ;;  %v1012_v7 = vmul.f32 %v1678_v62, %v941_v2  ;;  %v978_v9 = vmul.f32 %v1678_v62, %v907_v3  ;;  %v939_v10 = vld [vmem:[#allocation2 + $0x148] sm:$0xff]  ;;  %878 = vst.msk [vmem:[#allocation2 + $0x178] sm:$0xff] %vm22_vm2, %v813_v59  ;;  %v109_v59 = vld [vmem:[#allocation2 + $0xb0] sm:$0xff] }
  0xf9   :  { %844 = vst.msk [vmem:[#allocation2 + $0x68] sm:$0xff] %vm22_vm2, %v779_v60  ;;  %1114 = vst.msk [vmem:[%s2129_s4 + $0x50] sm:$0xff] %vm22_vm2, %v1050_v63  ;;  %v1080_v12 = vadd.f32 %v1683_v8, %v1009_v0  ;;  %v1051_v13 = vadd.f32 %v1683_v8, %v980_v1  ;;  %v1010_v14 = vmul.f32 %v1678_v62, %v939_v10  ;;  %v1291_v19 = vpop.f32.mrb[16].mxu0  ;;  %v1323_v24 = vpop.f32.mrb[16].mxu1  ;;  %v141_v0 = vld [vmem:[#allocation2 + $0x1b0] sm:$0xff]  ;;  %v107_v1 = vld [vmem:[#allocation2 + $0xa0] sm:$0xff] }
  0xfa   :  { %876 = vst.msk [vmem:[#allocation2 + $0x168] sm:$0xff] %vm22_vm2, %v811_v4  ;;  %1146 = vst.msk [vmem:[%s2129_s4 + $0x150] sm:$0xff] %vm22_vm2, %v1082_v5  ;;  %v1083_v17 = vadd.f32 %v1683_v8, %v1012_v7  ;;  %v1049_v18 = vadd.f32 %v1683_v8, %v978_v9  ;;  %v784_v23 = vadd.f32 %v1291_v19, %v105_v11  ;;  %v575_v25 = vpop.f32.mrb[17].mxu0  ;;  %v703_v31 = vpop.f32.mrb[17].mxu1  ;;  %v139_v5 = vld [vmem:[#allocation2 + $0x1a0] sm:$0xff]  ;;  %v140_v19 = vld [vmem:[#allocation2 + $0x1a8] sm:$0xff] }
  0xfb   :  { %1112 = vst.msk [vmem:[%s2129_s4 + $0x40] sm:$0xff] %vm22_vm2, %v1048_v6  ;;  %1144 = vst.msk [vmem:[%s2129_s4 + $0x140] sm:$0xff] %vm22_vm2, %v1080_v12  ;;  %v1081_v22 = vadd.f32 %v1683_v8, %v1010_v14  ;;  %v816_v29 = vadd.f32 %v1323_v24, %v137_v15  ;;  %v782_v30 = vadd.f32 %v575_v25, %v103_v16  ;;  %v1292_v32 = vpop.f32.mrb[18].mxu0  ;;  %v1324_v39 = vpop.f32.mrb[18].mxu1  ;;  %v110_v6 = vld [vmem:[#allocation2 + $0xb8] sm:$0xff] }
  0xfc   :  { %1115 = vst.msk [vmem:[%s2129_s4 + $0x58] sm:$0xff] %vm22_vm2, %v1051_v13  ;;  %1147 = vst.msk [vmem:[%s2129_s4 + $0x158] sm:$0xff] %vm22_vm2, %v1083_v17  ;;  %v912_v28 = vld [vmem:[#allocation2 + $0x70] sm:$0xff]  ;;  %v814_v37 = vadd.f32 %v703_v31, %v135_v20  ;;  %v785_v38 = vadd.f32 %v1292_v32, %v106_v21  ;;  %v578_v40 = vpop.f32.mrb[19].mxu0  ;;  %v817_v45 = vadd.f32 %v1324_v39, %v138_v26  ;;  %v706_v47 = vpop.f32.mrb[19].mxu1  ;;  %v142_v12 = vld [vmem:[#allocation2 + $0x1b8] sm:$0xff] }
  0xfd   :  { %1113 = vst.msk [vmem:[%s2129_s4 + $0x48] sm:$0xff] %vm22_vm2, %v1049_v18  ;;  %1145 = vst.msk [vmem:[%s2129_s4 + $0x148] sm:$0xff] %vm22_vm2, %v1081_v22  ;;  %v983_v34 = vmul.f32 %v1678_v62, %v912_v28  ;;  %v944_v35 = vld [vmem:[#allocation2 + $0x170] sm:$0xff]  ;;  %v910_v36 = vld [vmem:[#allocation2 + $0x60] sm:$0xff]  ;;  %v783_v46 = vadd.f32 %v578_v40, %v104_v27  ;;  %v815_v53 = vadd.f32 %v706_v47, %v136_v33 }
  0xfe   :  { %849 = vst.msk [vmem:[#allocation2 + $0x90] sm:$0xff] %vm22_vm2, %v784_v23  ;;  %v1015_v41 = vmul.f32 %v1678_v62, %v944_v35  ;;  %v981_v42 = vmul.f32 %v1678_v62, %v910_v36  ;;  %v942_v43 = vld [vmem:[#allocation2 + $0x160] sm:$0xff]  ;;  %v913_v44 = vld [vmem:[#allocation2 + $0x78] sm:$0xff]  ;;  %881 = vst.msk [vmem:[#allocation2 + $0x190] sm:$0xff] %vm22_vm2, %v816_v29 }
  0xff   :  { %847 = vst.msk [vmem:[#allocation2 + $0x80] sm:$0xff] %vm22_vm2, %v782_v30  ;;  %v1054_v48 = vadd.f32 %v1683_v8, %v983_v34  ;;  %v1013_v49 = vmul.f32 %v1678_v62, %v942_v43  ;;  %v984_v50 = vmul.f32 %v1678_v62, %v913_v44  ;;  %v945_v51 = vld [vmem:[#allocation2 + $0x178] sm:$0xff]  ;;  %879 = vst.msk [vmem:[#allocation2 + $0x180] sm:$0xff] %vm22_vm2, %v814_v37  ;;  %v108_v13 = vld [vmem:[#allocation2 + $0xa8] sm:$0xff] }
 0x100   :  { %v911_v52 = vld [vmem:[#allocation2 + $0x68] sm:$0xff]  ;;  %850 = vst.msk [vmem:[#allocation2 + $0x98] sm:$0xff] %vm22_vm2, %v785_v38  ;;  %v1086_v54 = vadd.f32 %v1683_v8, %v1015_v41  ;;  %v1052_v55 = vadd.f32 %v1683_v8, %v981_v42  ;;  %v1016_v56 = vmul.f32 %v1678_v62, %v945_v51  ;;  %882 = vst.msk [vmem:[#allocation2 + $0x198] sm:$0xff] %vm22_vm2, %v817_v45  ;;  %v113_v45 = vld [vmem:[#allocation2 + $0xd0] sm:$0xff] }
 0x101   :  { %v982_v57 = vmul.f32 %v1678_v62, %v911_v52  ;;  %v943_v58 = vld [vmem:[#allocation2 + $0x168] sm:$0xff]  ;;  %848 = vst.msk [vmem:[#allocation2 + $0x88] sm:$0xff] %vm22_vm2, %v783_v46  ;;  %1118 = vst.msk [vmem:[%s2129_s4 + $0x70] sm:$0xff] %vm22_vm2, %v1054_v48  ;;  %v1084_v60 = vadd.f32 %v1683_v8, %v1013_v49  ;;  %v1055_v61 = vadd.f32 %v1683_v8, %v984_v50  ;;  %v1295_v4 = vpop.f32.mrb[20].mxu0  ;;  %v1327_v10 = vpop.f32.mrb[20].mxu1  ;;  %v145_v49 = vld [vmem:[#allocation2 + $0x1d0] sm:$0xff] }
 0x102   :  { %v1014_v63 = vmul.f32 %v1678_v62, %v943_v58  ;;  %880 = vst.msk [vmem:[#allocation2 + $0x188] sm:$0xff] %vm22_vm2, %v815_v53  ;;  %1150 = vst.msk [vmem:[%s2129_s4 + $0x170] sm:$0xff] %vm22_vm2, %v1086_v54  ;;  %v1087_v2 = vadd.f32 %v1683_v8, %v1016_v56  ;;  %v788_v9 = vadd.f32 %v1295_v4, %v109_v59  ;;  %v591_v11 = vpop.f32.mrb[21].mxu0  ;;  %v719_v17 = vpop.f32.mrb[21].mxu1  ;;  %v111_v50 = vld [vmem:[#allocation2 + $0xc0] sm:$0xff]  ;;  %v144_v4 = vld [vmem:[#allocation2 + $0x1c8] sm:$0xff] }
 0x103   :  { %1116 = vst.msk [vmem:[%s2129_s4 + $0x60] sm:$0xff] %vm22_vm2, %v1052_v55  ;;  %v1053_v3 = vadd.f32 %v1683_v8, %v982_v57  ;;  %1148 = vst.msk [vmem:[%s2129_s4 + $0x160] sm:$0xff] %vm22_vm2, %v1084_v60  ;;  %v820_v15 = vadd.f32 %v1327_v10, %v141_v0  ;;  %v786_v16 = vadd.f32 %v591_v11, %v107_v1  ;;  %v1296_v18 = vpop.f32.mrb[22].mxu0  ;;  %v1328_v25 = vpop.f32.mrb[22].mxu1  ;;  %v143_v54 = vld [vmem:[#allocation2 + $0x1c0] sm:$0xff]  ;;  %v114_v55 = vld [vmem:[#allocation2 + $0xd8] sm:$0xff] }
 0x104   :  { %1119 = vst.msk [vmem:[%s2129_s4 + $0x78] sm:$0xff] %vm22_vm2, %v1055_v61  ;;  %v1085_v7 = vadd.f32 %v1683_v8, %v1014_v63  ;;  %1151 = vst.msk [vmem:[%s2129_s4 + $0x178] sm:$0xff] %vm22_vm2, %v1087_v2  ;;  %v818_v23 = vadd.f32 %v719_v17, %v139_v5  ;;  %v789_v24 = vadd.f32 %v1296_v18, %v110_v6  ;;  %v594_v26 = vpop.f32.mrb[23].mxu0  ;;  %v722_v33 = vpop.f32.mrb[23].mxu1  ;;  %v146_v60 = vld [vmem:[#allocation2 + $0x1d8] sm:$0xff]  ;;  %v112_v61 = vld [vmem:[#allocation2 + $0xc8] sm:$0xff] }
 0x105   :  { %1117 = vst.msk [vmem:[%s2129_s4 + $0x68] sm:$0xff] %vm22_vm2, %v1053_v3  ;;  %v916_v14 = vld [vmem:[#allocation2 + $0x90] sm:$0xff]  ;;  %853 = vst.msk [vmem:[#allocation2 + $0xb0] sm:$0xff] %vm22_vm2, %v788_v9  ;;  %v821_v31 = vadd.f32 %v1328_v25, %v142_v12  ;;  %v787_v32 = vadd.f32 %v594_v26, %v108_v13  ;;  %v819_v39 = vadd.f32 %v722_v33, %v140_v19 }
 0x106   :  { %1149 = vst.msk [vmem:[%s2129_s4 + $0x168] sm:$0xff] %vm22_vm2, %v1085_v7  ;;  %v987_v20 = vmul.f32 %v1678_v62, %v916_v14  ;;  %v948_v21 = vld [vmem:[#allocation2 + $0x190] sm:$0xff]  ;;  %v914_v22 = vld [vmem:[#allocation2 + $0x80] sm:$0xff]  ;;  %885 = vst.msk [vmem:[#allocation2 + $0x1b0] sm:$0xff] %vm22_vm2, %v820_v15 }
 0x107   :  { %v1019_v27 = vmul.f32 %v1678_v62, %v948_v21  ;;  %v985_v28 = vmul.f32 %v1678_v62, %v914_v22  ;;  %v946_v29 = vld [vmem:[#allocation2 + $0x180] sm:$0xff]  ;;  %v917_v30 = vld [vmem:[#allocation2 + $0x98] sm:$0xff]  ;;  %851 = vst.msk [vmem:[#allocation2 + $0xa0] sm:$0xff] %vm22_vm2, %v786_v16  ;;  %883 = vst.msk [vmem:[#allocation2 + $0x1a0] sm:$0xff] %vm22_vm2, %v818_v23 }
 0x108   :  { %v1058_v34 = vadd.f32 %v1683_v8, %v987_v20  ;;  %v1017_v35 = vmul.f32 %v1678_v62, %v946_v29  ;;  %v988_v36 = vmul.f32 %v1678_v62, %v917_v30  ;;  %v949_v37 = vld [vmem:[#allocation2 + $0x198] sm:$0xff]  ;;  %v915_v38 = vld [vmem:[#allocation2 + $0x88] sm:$0xff]  ;;  %854 = vst.msk [vmem:[#allocation2 + $0xb8] sm:$0xff] %vm22_vm2, %v789_v24  ;;  %886 = vst.msk [vmem:[#allocation2 + $0x1b8] sm:$0xff] %vm22_vm2, %v821_v31 }
 0x109   :  { %v1090_v40 = vadd.f32 %v1683_v8, %v1019_v27  ;;  %v1056_v41 = vadd.f32 %v1683_v8, %v985_v28  ;;  %v1020_v42 = vmul.f32 %v1678_v62, %v949_v37  ;;  %v986_v43 = vmul.f32 %v1678_v62, %v915_v38  ;;  %v947_v44 = vld [vmem:[#allocation2 + $0x188] sm:$0xff]  ;;  %852 = vst.msk [vmem:[#allocation2 + $0xa8] sm:$0xff] %vm22_vm2, %v787_v32  ;;  %v1299_v53 = vpop.f32.mrb[24].mxu0  ;;  %v1331_v58 = vpop.f32.mrb[24].mxu1  ;;  %v117_v31 = vld [vmem:[#allocation2 + $0xf0] sm:$0xff] }
 0x10a   :  { %1122 = vst.msk [vmem:[%s2129_s4 + $0x90] sm:$0xff] %vm22_vm2, %v1058_v34  ;;  %v1088_v46 = vadd.f32 %v1683_v8, %v1017_v35  ;;  %v1059_v47 = vadd.f32 %v1683_v8, %v988_v36  ;;  %v1018_v48 = vmul.f32 %v1678_v62, %v947_v44  ;;  %884 = vst.msk [vmem:[#allocation2 + $0x1a8] sm:$0xff] %vm22_vm2, %v819_v39  ;;  %v607_v59 = vpop.f32.mrb[25].mxu0  ;;  %v735_v2 = vpop.f32.mrb[25].mxu1  ;;  %v149_v35 = vld [vmem:[#allocation2 + $0x1f0] sm:$0xff]  ;;  %v115_v36 = vld [vmem:[#allocation2 + $0xe0] sm:$0xff] }
 0x10b   :  { %1154 = vst.msk [vmem:[%s2129_s4 + $0x190] sm:$0xff] %vm22_vm2, %v1090_v40  ;;  %1120 = vst.msk [vmem:[%s2129_s4 + $0x80] sm:$0xff] %vm22_vm2, %v1056_v41  ;;  %v1091_v51 = vadd.f32 %v1683_v8, %v1020_v42  ;;  %v1057_v52 = vadd.f32 %v1683_v8, %v986_v43  ;;  %v792_v57 = vadd.f32 %v1299_v53, %v113_v45  ;;  %v1300_v3 = vpop.f32.mrb[26].mxu0  ;;  %v1332_v11 = vpop.f32.mrb[26].mxu1  ;;  %v147_v40 = vld [vmem:[#allocation2 + $0x1e0] sm:$0xff]  ;;  %v118_v41 = vld [vmem:[#allocation2 + $0xf8] sm:$0xff] }
 0x10c   :  { %1152 = vst.msk [vmem:[%s2129_s4 + $0x180] sm:$0xff] %vm22_vm2, %v1088_v46  ;;  %1123 = vst.msk [vmem:[%s2129_s4 + $0x98] sm:$0xff] %vm22_vm2, %v1059_v47  ;;  %v1089_v56 = vadd.f32 %v1683_v8, %v1018_v48  ;;  %v920_v63 = vld [vmem:[#allocation2 + $0xb0] sm:$0xff]  ;;  %v824_v0 = vadd.f32 %v1331_v58, %v145_v49  ;;  %v790_v1 = vadd.f32 %v607_v59, %v111_v50  ;;  %v610_v12 = vpop.f32.mrb[27].mxu0  ;;  %v738_v19 = vpop.f32.mrb[27].mxu1  ;;  %v150_v46 = vld [vmem:[#allocation2 + $0x1f8] sm:$0xff] }
 0x10d   :  { %1155 = vst.msk [vmem:[%s2129_s4 + $0x198] sm:$0xff] %vm22_vm2, %v1091_v51  ;;  %1121 = vst.msk [vmem:[%s2129_s4 + $0x88] sm:$0xff] %vm22_vm2, %v1057_v52  ;;  %v991_v5 = vmul.f32 %v1678_v62, %v920_v63  ;;  %v952_v6 = vld [vmem:[#allocation2 + $0x1b0] sm:$0xff]  ;;  %v822_v9 = vadd.f32 %v735_v2, %v143_v54  ;;  %v793_v10 = vadd.f32 %v1300_v3, %v114_v55  ;;  %v116_v47 = vld [vmem:[#allocation2 + $0xe8] sm:$0xff] }
 0x10e   :  { %1153 = vst.msk [vmem:[%s2129_s4 + $0x188] sm:$0xff] %vm22_vm2, %v1089_v56  ;;  %v918_v7 = vld [vmem:[#allocation2 + $0xa0] sm:$0xff]  ;;  %857 = vst.msk [vmem:[#allocation2 + $0xd0] sm:$0xff] %vm22_vm2, %v792_v57  ;;  %v1023_v13 = vmul.f32 %v1678_v62, %v952_v6  ;;  %v825_v17 = vadd.f32 %v1332_v11, %v146_v60  ;;  %v791_v18 = vadd.f32 %v610_v12, %v112_v61  ;;  %v148_v53 = vld [vmem:[#allocation2 + $0x1e8] sm:$0xff] }
 0x10f   :  { %v989_v14 = vmul.f32 %v1678_v62, %v918_v7  ;;  %v950_v15 = vld [vmem:[#allocation2 + $0x1a0] sm:$0xff]  ;;  %v921_v16 = vld [vmem:[#allocation2 + $0xb8] sm:$0xff]  ;;  %889 = vst.msk [vmem:[#allocation2 + $0x1d0] sm:$0xff] %vm22_vm2, %v824_v0  ;;  %855 = vst.msk [vmem:[#allocation2 + $0xc0] sm:$0xff] %vm22_vm2, %v790_v1  ;;  %v1062_v20 = vadd.f32 %v1683_v8, %v991_v5  ;;  %v823_v25 = vadd.f32 %v738_v19, %v144_v4 }
 0x110   :  { %v1021_v21 = vmul.f32 %v1678_v62, %v950_v15  ;;  %v992_v22 = vmul.f32 %v1678_v62, %v921_v16  ;;  %v953_v23 = vld [vmem:[#allocation2 + $0x1b8] sm:$0xff]  ;;  %v919_v24 = vld [vmem:[#allocation2 + $0xa8] sm:$0xff]  ;;  %887 = vst.msk [vmem:[#allocation2 + $0x1c0] sm:$0xff] %vm22_vm2, %v822_v9  ;;  %858 = vst.msk [vmem:[#allocation2 + $0xd8] sm:$0xff] %vm22_vm2, %v793_v10  ;;  %v1094_v26 = vadd.f32 %v1683_v8, %v1023_v13 }
 0x111   :  { %v1060_v27 = vadd.f32 %v1683_v8, %v989_v14  ;;  %v1024_v28 = vmul.f32 %v1678_v62, %v953_v23  ;;  %v990_v29 = vmul.f32 %v1678_v62, %v919_v24  ;;  %v951_v30 = vld [vmem:[#allocation2 + $0x1a8] sm:$0xff]  ;;  %890 = vst.msk [vmem:[#allocation2 + $0x1d8] sm:$0xff] %vm22_vm2, %v825_v17  ;;  %856 = vst.msk [vmem:[#allocation2 + $0xc8] sm:$0xff] %vm22_vm2, %v791_v18  ;;  %v1303_v39 = vpop.f32.mrb[28].mxu0  ;;  %v1335_v44 = vpop.f32.mrb[28].mxu1 }
 0x112   :  { %1126 = vst.msk [vmem:[%s2129_s4 + $0xb0] sm:$0xff] %vm22_vm2, %v1062_v20  ;;  %v1092_v32 = vadd.f32 %v1683_v8, %v1021_v21  ;;  %v1063_v33 = vadd.f32 %v1683_v8, %v992_v22  ;;  %v1022_v34 = vmul.f32 %v1678_v62, %v951_v30  ;;  %888 = vst.msk [vmem:[#allocation2 + $0x1c8] sm:$0xff] %vm22_vm2, %v823_v25  ;;  %v623_v45 = vpop.f32.mrb[29].mxu0  ;;  %v751_v51 = vpop.f32.mrb[29].mxu1 }
 0x113   :  { %1158 = vst.msk [vmem:[%s2129_s4 + $0x1b0] sm:$0xff] %vm22_vm2, %v1094_v26  ;;  %1124 = vst.msk [vmem:[%s2129_s4 + $0xa0] sm:$0xff] %vm22_vm2, %v1060_v27  ;;  %v1095_v37 = vadd.f32 %v1683_v8, %v1024_v28  ;;  %v1061_v38 = vadd.f32 %v1683_v8, %v990_v29  ;;  %v796_v43 = vadd.f32 %v1303_v39, %v117_v31  ;;  %v1304_v52 = vpop.f32.mrb[30].mxu0  ;;  %v1336_v59 = vpop.f32.mrb[30].mxu1 }
 0x114   :  { %1156 = vst.msk [vmem:[%s2129_s4 + $0x1a0] sm:$0xff] %vm22_vm2, %v1092_v32  ;;  %1127 = vst.msk [vmem:[%s2129_s4 + $0xb8] sm:$0xff] %vm22_vm2, %v1063_v33  ;;  %v1093_v42 = vadd.f32 %v1683_v8, %v1022_v34  ;;  %v828_v49 = vadd.f32 %v1335_v44, %v149_v35  ;;  %v794_v50 = vadd.f32 %v623_v45, %v115_v36  ;;  %v626_v60 = vpop.f32.mrb[31].mxu0  ;;  %v754_v4 = vpop.f32.mrb[31].mxu1 }
 0x115   :  { %1159 = vst.msk [vmem:[%s2129_s4 + $0x1b8] sm:$0xff] %vm22_vm2, %v1095_v37  ;;  %1125 = vst.msk [vmem:[%s2129_s4 + $0xa8] sm:$0xff] %vm22_vm2, %v1061_v38  ;;  %v924_v48 = vld [vmem:[#allocation2 + $0xd0] sm:$0xff]  ;;  %v826_v57 = vadd.f32 %v751_v51, %v147_v40  ;;  %v797_v58 = vadd.f32 %v1304_v52, %v118_v41  ;;  %v829_v2 = vadd.f32 %v1336_v59, %v150_v46 }
 0x116   :  { %1157 = vst.msk [vmem:[%s2129_s4 + $0x1a8] sm:$0xff] %vm22_vm2, %v1093_v42  ;;  %v995_v54 = vmul.f32 %v1678_v62, %v924_v48  ;;  %v956_v55 = vld [vmem:[#allocation2 + $0x1d0] sm:$0xff]  ;;  %v922_v56 = vld [vmem:[#allocation2 + $0xc0] sm:$0xff]  ;;  %861 = vst.msk [vmem:[#allocation2 + $0xf0] sm:$0xff] %vm22_vm2, %v796_v43  ;;  %v795_v3 = vadd.f32 %v626_v60, %v116_v47  ;;  %v827_v11 = vadd.f32 %v754_v4, %v148_v53 }
 0x117   :  { %v1027_v61 = vmul.f32 %v1678_v62, %v956_v55  ;;  %v993_v63 = vmul.f32 %v1678_v62, %v922_v56  ;;  %v954_v0 = vld [vmem:[#allocation2 + $0x1c0] sm:$0xff]  ;;  %v925_v1 = vld [vmem:[#allocation2 + $0xd8] sm:$0xff]  ;;  %893 = vst.msk [vmem:[#allocation2 + $0x1f0] sm:$0xff] %vm22_vm2, %v828_v49  ;;  %859 = vst.msk [vmem:[#allocation2 + $0xe0] sm:$0xff] %vm22_vm2, %v794_v50 }
 0x118   :  { %v1066_v5 = vadd.f32 %v1683_v8, %v995_v54  ;;  %v1025_v6 = vmul.f32 %v1678_v62, %v954_v0  ;;  %v996_v7 = vmul.f32 %v1678_v62, %v925_v1  ;;  %v957_v9 = vld [vmem:[#allocation2 + $0x1d8] sm:$0xff]  ;;  %v923_v10 = vld [vmem:[#allocation2 + $0xc8] sm:$0xff]  ;;  %891 = vst.msk [vmem:[#allocation2 + $0x1e0] sm:$0xff] %vm22_vm2, %v826_v57  ;;  %862 = vst.msk [vmem:[#allocation2 + $0xf8] sm:$0xff] %vm22_vm2, %v797_v58 }
 0x119   :  { %v1098_v12 = vadd.f32 %v1683_v8, %v1027_v61  ;;  %v1064_v13 = vadd.f32 %v1683_v8, %v993_v63  ;;  %v1028_v14 = vmul.f32 %v1678_v62, %v957_v9  ;;  %v994_v15 = vmul.f32 %v1678_v62, %v923_v10  ;;  %v955_v16 = vld [vmem:[#allocation2 + $0x1c8] sm:$0xff]  ;;  %894 = vst.msk [vmem:[#allocation2 + $0x1f8] sm:$0xff] %vm22_vm2, %v829_v2 }
 0x11a   :  { %860 = vst.msk [vmem:[#allocation2 + $0xe8] sm:$0xff] %vm22_vm2, %v795_v3  ;;  %1130 = vst.msk [vmem:[%s2129_s4 + $0xd0] sm:$0xff] %vm22_vm2, %v1066_v5  ;;  %v1096_v17 = vadd.f32 %v1683_v8, %v1025_v6  ;;  %v1067_v18 = vadd.f32 %v1683_v8, %v996_v7  ;;  %v1026_v19 = vmul.f32 %v1678_v62, %v955_v16 }
 0x11b   :  { %892 = vst.msk [vmem:[#allocation2 + $0x1e8] sm:$0xff] %vm22_vm2, %v827_v11  ;;  %1162 = vst.msk [vmem:[%s2129_s4 + $0x1d0] sm:$0xff] %vm22_vm2, %v1098_v12  ;;  %v1099_v20 = vadd.f32 %v1683_v8, %v1028_v14  ;;  %v1065_v21 = vadd.f32 %v1683_v8, %v994_v15 }
 0x11c   :  { %1128 = vst.msk [vmem:[%s2129_s4 + $0xc0] sm:$0xff] %vm22_vm2, %v1064_v13  ;;  %1160 = vst.msk [vmem:[%s2129_s4 + $0x1c0] sm:$0xff] %vm22_vm2, %v1096_v17  ;;  %v1097_v22 = vadd.f32 %v1683_v8, %v1026_v19 }
 0x11d   :  { %1131 = vst.msk [vmem:[%s2129_s4 + $0xd8] sm:$0xff] %vm22_vm2, %v1067_v18  ;;  %1163 = vst.msk [vmem:[%s2129_s4 + $0x1d8] sm:$0xff] %vm22_vm2, %v1099_v20  ;;  %v928_v23 = vld [vmem:[#allocation2 + $0xf0] sm:$0xff] }
 0x11e   :  { %1129 = vst.msk [vmem:[%s2129_s4 + $0xc8] sm:$0xff] %vm22_vm2, %v1065_v21  ;;  %1161 = vst.msk [vmem:[%s2129_s4 + $0x1c8] sm:$0xff] %vm22_vm2, %v1097_v22  ;;  %v999_v24 = vmul.f32 %v1678_v62, %v928_v23  ;;  %v960_v25 = vld [vmem:[#allocation2 + $0x1f0] sm:$0xff]  ;;  %v926_v26 = vld [vmem:[#allocation2 + $0xe0] sm:$0xff] }
 0x11f   :  { %v1031_v27 = vmul.f32 %v1678_v62, %v960_v25  ;;  %v997_v28 = vmul.f32 %v1678_v62, %v926_v26  ;;  %v958_v29 = vld [vmem:[#allocation2 + $0x1e0] sm:$0xff]  ;;  %v929_v30 = vld [vmem:[#allocation2 + $0xf8] sm:$0xff] }
 0x120   :  { %v1070_v31 = vadd.f32 %v1683_v8, %v999_v24  ;;  %v1029_v32 = vmul.f32 %v1678_v62, %v958_v29  ;;  %v1000_v33 = vmul.f32 %v1678_v62, %v929_v30  ;;  %v961_v34 = vld [vmem:[#allocation2 + $0x1f8] sm:$0xff] }
 0x121   :  { %v927_v35 = vld [vmem:[#allocation2 + $0xe8] sm:$0xff]  ;;  %v1102_v36 = vadd.f32 %v1683_v8, %v1031_v27  ;;  %v1068_v37 = vadd.f32 %v1683_v8, %v997_v28  ;;  %v1032_v38 = vmul.f32 %v1678_v62, %v961_v34 }
 0x122   :  { %v998_v39 = vmul.f32 %v1678_v62, %v927_v35  ;;  %v959_v40 = vld [vmem:[#allocation2 + $0x1e8] sm:$0xff]  ;;  %1134 = vst.msk [vmem:[%s2129_s4 + $0xf0] sm:$0xff] %vm22_vm2, %v1070_v31  ;;  %v1100_v41 = vadd.f32 %v1683_v8, %v1029_v32  ;;  %v1071_v42 = vadd.f32 %v1683_v8, %v1000_v33 }
 0x123   :  { %v1030_v43 = vmul.f32 %v1678_v62, %v959_v40  ;;  %1166 = vst.msk [vmem:[%s2129_s4 + $0x1f0] sm:$0xff] %vm22_vm2, %v1102_v36  ;;  %1132 = vst.msk [vmem:[%s2129_s4 + $0xe0] sm:$0xff] %vm22_vm2, %v1068_v37  ;;  %v1103_v44 = vadd.f32 %v1683_v8, %v1032_v38 }
 0x124   :  { %v1069_v45 = vadd.f32 %v1683_v8, %v998_v39  ;;  %1164 = vst.msk [vmem:[%s2129_s4 + $0x1e0] sm:$0xff] %vm22_vm2, %v1100_v41  ;;  %1135 = vst.msk [vmem:[%s2129_s4 + $0xf8] sm:$0xff] %vm22_vm2, %v1071_v42 }
 0x125   :  { %v1101_v62 = vadd.f32 %v1683_v8, %v1030_v43  ;;  %1167 = vst.msk [vmem:[%s2129_s4 + $0x1f8] sm:$0xff] %vm22_vm2, %v1103_v44 }
 0x126   :  { %1133 = vst.msk [vmem:[%s2129_s4 + $0xe8] sm:$0xff] %vm22_vm2, %v1069_v45 }
 0x127   :  { %1165 = vst.msk [vmem:[%s2129_s4 + $0x1e8] sm:$0xff] %vm22_vm2, %v1101_v62 }

// kernel: forward.40
= control target key start
LH: loop header
LB: loop body
LE: loop exit
PB: predicated region body
PF: predicated region fallthrough
CT: control target
= control target key end

     0   :  { %vm22_vm0 = vcmask 64512   ;;  %v1443_v1 = vmov 0.0   ;;  %vm383_vm1 = vcmask 130048   ;;  %s2190_s1 = inlined_call_operand.vmem [shape: bf16[16,8], index: 1, kind: input, shape index: {}]   ;;  %s2191_s0 = inlined_call_operand.vmem [shape: bf16[512,16], index: 0, kind: input, shape index: {}]   ;;  %s2192_s2 = inlined_call_operand.vmem [shape: f32[1,8], index: 2, kind: input, shape index: {}]   ;;  %s2193_s3 = inlined_call_operand.vmem [shape: f32[1,8], index: 3, kind: input, shape index: {}]   ;;  %s2194_s4 = inlined_call_operand.vmem [shape: f32[512,8], index: 4, kind: output, shape index: {}]  }
   0x1   :  { %v1472_v0 = vld [vmem:[%s2190_s1] sm:$0xff]   ;;  %25 = vst.msk [vmem:[#allocation2 + $0x10] sm:$0xff] %vm22_vm0, %v1443_v1  ;;  %23 = vst.msk [vmem:[#allocation2] sm:$0xff] %vm22_vm0, %v1443_v1  ;;  %v1411_v4 = vld [vmem:[%s2191_s0 + $0x8] sm:$0xff]  }
   0x2   :  { %24 = vst.msk [vmem:[#allocation2 + $0x8] sm:$0xff] %vm22_vm0, %v1443_v1  ;;  %26 = vst.msk [vmem:[#allocation2 + $0x18] sm:$0xff] %vm22_vm0, %v1443_v1  ;;  %v1409_v2 = vld [vmem:[%s2191_s0] sm:$0xff]   ;;  %1339 = vmatprep.subr.bf16.mxu0 %v1472_v0  ;;  %1405 = vmatprep.subr.bf16.mxu1 %v1472_v0  ;;  %v1412_v5 = vld [vmem:[%s2191_s0 + $0x88] sm:$0xff]  }
   0x3   :  { %27 = vst.msk [vmem:[#allocation2 + $0x20] sm:$0xff] %vm22_vm0, %v1443_v1  ;;  %28 = vst.msk [vmem:[#allocation2 + $0x28] sm:$0xff] %vm22_vm0, %v1443_v1  ;;  %v1410_v3 = vld [vmem:[%s2191_s0 + $0x80] sm:$0xff]   ;;  %1340 = vmatpush3.bf16.msra.mxu0 %v1472_v0  ;;  %1406 = vmatpush3.bf16.msra.mxu1 %v1472_v0  ;;  %v1413_v6 = vld [vmem:[%s2191_s0 + $0x10] sm:$0xff]  }
   0x4   :  { %29 = vst.msk [vmem:[#allocation2 + $0x30] sm:$0xff] %vm22_vm0, %v1443_v1  ;;  %30 = vst.msk [vmem:[#allocation2 + $0x38] sm:$0xff] %vm22_vm0, %v1443_v1  ;;  %1341 = vmatprep.mubr.msk.bf16.mxu0 %vm383_vm1, %v1409_v2  ;;  %1373 = vmatprep.mubr.msk.bf16.mxu1 %vm383_vm1, %v1410_v3  ;;  %v1414_v7 = vld [vmem:[%s2191_s0 + $0x90] sm:$0xff]   ;;  %v1415_v8 = vld [vmem:[%s2191_s0 + $0x18] sm:$0xff]  }
   0x5   :  { %31 = vst.msk [vmem:[#allocation2 + $0x40] sm:$0xff] %vm22_vm0, %v1443_v1  ;;  %32 = vst.msk [vmem:[#allocation2 + $0x48] sm:$0xff] %vm22_vm0, %v1443_v1  ;;  %v1416_v9 = vld [vmem:[%s2191_s0 + $0x98] sm:$0xff]   ;;  %v1417_v10 = vld [vmem:[%s2191_s0 + $0x20] sm:$0xff]  }
   0x6   :  { %33 = vst.msk [vmem:[#allocation2 + $0x50] sm:$0xff] %vm22_vm0, %v1443_v1  ;;  %34 = vst.msk [vmem:[#allocation2 + $0x58] sm:$0xff] %vm22_vm0, %v1443_v1  ;;  %1342 = vmatmul.mubr.msk.bf16.vlgmr.msra.gmra.mrb[0].mxu0 %vm383_vm1, %v1411_v4  ;;  %1374 = vmatmul.mubr.msk.bf16.vlgmr.msra.gmra.mrb[0].mxu1 %vm383_vm1, %v1412_v5  ;;  %v1418_v11 = vld [vmem:[%s2191_s0 + $0xa0] sm:$0xff]   ;;  %v1419_v12 = vld [vmem:[%s2191_s0 + $0x28] sm:$0xff]  }
   0x7   :  { %35 = vst.msk [vmem:[#allocation2 + $0x60] sm:$0xff] %vm22_vm0, %v1443_v1  ;;  %36 = vst.msk [vmem:[#allocation2 + $0x68] sm:$0xff] %vm22_vm0, %v1443_v1  ;;  %1345 = vmatprep.mubr.msk.bf16.mxu0 %vm383_vm1, %v1413_v6  ;;  %1377 = vmatprep.mubr.msk.bf16.mxu1 %vm383_vm1, %v1414_v7  ;;  %v1420_v13 = vld [vmem:[%s2191_s0 + $0xa8] sm:$0xff]   ;;  %v1421_v14 = vld [vmem:[%s2191_s0 + $0x30] sm:$0xff]  }
   0x8   :  { %37 = vst.msk [vmem:[#allocation2 + $0x70] sm:$0xff] %vm22_vm0, %v1443_v1  ;;  %38 = vst.msk [vmem:[#allocation2 + $0x78] sm:$0xff] %vm22_vm0, %v1443_v1  ;;  %v1422_v15 = vld [vmem:[%s2191_s0 + $0xb0] sm:$0xff]   ;;  %v1423_v16 = vld [vmem:[%s2191_s0 + $0x38] sm:$0xff]  }
   0x9   :  { %39 = vst.msk [vmem:[#allocation2 + $0x80] sm:$0xff] %vm22_vm0, %v1443_v1  ;;  %40 = vst.msk [vmem:[#allocation2 + $0x88] sm:$0xff] %vm22_vm0, %v1443_v1  ;;  %v1424_v17 = vld [vmem:[%s2191_s0 + $0xb8] sm:$0xff]   ;;  %v1425_v18 = vld [vmem:[%s2191_s0 + $0x40] sm:$0xff]  }
   0xa   :  { %41 = vst.msk [vmem:[#allocation2 + $0x90] sm:$0xff] %vm22_vm0, %v1443_v1  ;;  %42 = vst.msk [vmem:[#allocation2 + $0x98] sm:$0xff] %vm22_vm0, %v1443_v1  ;;  %v1426_v19 = vld [vmem:[%s2191_s0 + $0xc0] sm:$0xff]   ;;  %v1427_v20 = vld [vmem:[%s2191_s0 + $0x48] sm:$0xff]  }
   0xb   :  { %43 = vst.msk [vmem:[#allocation2 + $0xa0] sm:$0xff] %vm22_vm0, %v1443_v1  ;;  %44 = vst.msk [vmem:[#allocation2 + $0xa8] sm:$0xff] %vm22_vm0, %v1443_v1  ;;  %v1428_v21 = vld [vmem:[%s2191_s0 + $0xc8] sm:$0xff]   ;;  %v1429_v22 = vld [vmem:[%s2191_s0 + $0x50] sm:$0xff]  }
   0xc   :  { %45 = vst.msk [vmem:[#allocation2 + $0xb0] sm:$0xff] %vm22_vm0, %v1443_v1  ;;  %46 = vst.msk [vmem:[#allocation2 + $0xb8] sm:$0xff] %vm22_vm0, %v1443_v1  ;;  %v1430_v23 = vld [vmem:[%s2191_s0 + $0xd0] sm:$0xff]   ;;  %v1431_v24 = vld [vmem:[%s2191_s0 + $0x58] sm:$0xff]  }
   0xd   :  { %47 = vst.msk [vmem:[#allocation2 + $0xc0] sm:$0xff] %vm22_vm0, %v1443_v1  ;;  %48 = vst.msk [vmem:[#allocation2 + $0xc8] sm:$0xff] %vm22_vm0, %v1443_v1  ;;  %v1432_v25 = vld [vmem:[%s2191_s0 + $0xd8] sm:$0xff]   ;;  %v1433_v26 = vld [vmem:[%s2191_s0 + $0x60] sm:$0xff]  }
   0xe   :  { %49 = vst.msk [vmem:[#allocation2 + $0xd0] sm:$0xff] %vm22_vm0, %v1443_v1  ;;  %50 = vst.msk [vmem:[#allocation2 + $0xd8] sm:$0xff] %vm22_vm0, %v1443_v1  ;;  %1346 = vmatmul.mubr.msk.bf16.gmra.mrb[4].mxu0 %vm383_vm1, %v1415_v8  ;;  %1378 = vmatmul.mubr.msk.bf16.gmra.mrb[4].mxu1 %vm383_vm1, %v1416_v9  ;;  %v1434_v27 = vld [vmem:[%s2191_s0 + $0xe0] sm:$0xff]   ;;  %v1435_v28 = vld [vmem:[%s2191_s0 + $0x68] sm:$0xff]  }
   0xf   :  { %51 = vst.msk [vmem:[#allocation2 + $0xe0] sm:$0xff] %vm22_vm0, %v1443_v1  ;;  %52 = vst.msk [vmem:[#allocation2 + $0xe8] sm:$0xff] %vm22_vm0, %v1443_v1  ;;  %1349 = vmatprep.mubr.msk.bf16.mxu0 %vm383_vm1, %v1417_v10  ;;  %1381 = vmatprep.mubr.msk.bf16.mxu1 %vm383_vm1, %v1418_v11  ;;  %v1436_v29 = vld [vmem:[%s2191_s0 + $0xe8] sm:$0xff]   ;;  %v1437_v30 = vld [vmem:[%s2191_s0 + $0x70] sm:$0xff]  }
  0x10   :  { %53 = vst.msk [vmem:[#allocation2 + $0xf0] sm:$0xff] %vm22_vm0, %v1443_v1  ;;  %54 = vst.msk [vmem:[#allocation2 + $0xf8] sm:$0xff] %vm22_vm0, %v1443_v1  ;;  %v1438_v31 = vld [vmem:[%s2191_s0 + $0xf0] sm:$0xff]   ;;  %v1439_v32 = vld [vmem:[%s2191_s0 + $0x78] sm:$0xff]  }
  0x11   :  { %55 = vst.msk [vmem:[#allocation2 + $0x100] sm:$0xff] %vm22_vm0, %v1443_v1  ;;  %56 = vst.msk [vmem:[#allocation2 + $0x108] sm:$0xff] %vm22_vm0, %v1443_v1  ;;  %v1440_v33 = vld [vmem:[%s2191_s0 + $0xf8] sm:$0xff]   ;;  %v89_v34 = vld [vmem:[#allocation2 + $0x10] sm:$0xff] }
  0x12   :  { %57 = vst.msk [vmem:[#allocation2 + $0x110] sm:$0xff] %vm22_vm0, %v1443_v1  ;;  %58 = vst.msk [vmem:[#allocation2 + $0x118] sm:$0xff] %vm22_vm0, %v1443_v1  ;;  %v87_v36 = vld [vmem:[#allocation2] sm:$0xff]  ;;  %v90_v40 = vld [vmem:[#allocation2 + $0x18] sm:$0xff] }
  0x13   :  { %59 = vst.msk [vmem:[#allocation2 + $0x120] sm:$0xff] %vm22_vm0, %v1443_v1  ;;  %60 = vst.msk [vmem:[#allocation2 + $0x128] sm:$0xff] %vm22_vm0, %v1443_v1  ;;  %v88_v46 = vld [vmem:[#allocation2 + $0x8] sm:$0xff]  ;;  %v93_v58 = vld [vmem:[#allocation2 + $0x30] sm:$0xff] }
  0x14   :  { %61 = vst.msk [vmem:[#allocation2 + $0x130] sm:$0xff] %vm22_vm0, %v1443_v1  ;;  %62 = vst.msk [vmem:[#allocation2 + $0x138] sm:$0xff] %vm22_vm0, %v1443_v1  ;;  %v91_v60 = vld [vmem:[#allocation2 + $0x20] sm:$0xff]  ;;  %v92_v7 = vld [vmem:[#allocation2 + $0x28] sm:$0xff] }
  0x15   :  { %63 = vst.msk [vmem:[#allocation2 + $0x140] sm:$0xff] %vm22_vm0, %v1443_v1  ;;  %64 = vst.msk [vmem:[#allocation2 + $0x148] sm:$0xff] %vm22_vm0, %v1443_v1  ;;  %v1745_v62 = vld [vmem:[%s2192_s2] ss:$0 sm:$0xff] }
  0x16   :  { %65 = vst.msk [vmem:[#allocation2 + $0x150] sm:$0xff] %vm22_vm0, %v1443_v1  ;;  %66 = vst.msk [vmem:[#allocation2 + $0x158] sm:$0xff] %vm22_vm0, %v1443_v1  ;;  %1350 = vmatmul.mubr.msk.bf16.gmra.mrb[8].mxu0 %vm383_vm1, %v1419_v12  ;;  %1382 = vmatmul.mubr.msk.bf16.gmra.mrb[8].mxu1 %vm383_vm1, %v1420_v13  ;;  %v1750_v10 = vld [vmem:[%s2193_s3] ss:$0 sm:$0xff] }
  0x17   :  { %67 = vst.msk [vmem:[#allocation2 + $0x160] sm:$0xff] %vm22_vm0, %v1443_v1  ;;  %68 = vst.msk [vmem:[#allocation2 + $0x168] sm:$0xff] %vm22_vm0, %v1443_v1  ;;  %1353 = vmatprep.mubr.msk.bf16.mxu0 %vm383_vm1, %v1421_v14  ;;  %1385 = vmatprep.mubr.msk.bf16.mxu1 %vm383_vm1, %v1422_v15 }
  0x18   :  { %69 = vst.msk [vmem:[#allocation2 + $0x170] sm:$0xff] %vm22_vm0, %v1443_v1  ;;  %70 = vst.msk [vmem:[#allocation2 + $0x178] sm:$0xff] %vm22_vm0, %v1443_v1  ;;  %v119_v37 = vld [vmem:[#allocation2 + $0x100] sm:$0xff]  ;;  %v120_v47 = vld [vmem:[#allocation2 + $0x108] sm:$0xff] }
  0x19   :  { %71 = vst.msk [vmem:[#allocation2 + $0x180] sm:$0xff] %vm22_vm0, %v1443_v1  ;;  %72 = vst.msk [vmem:[#allocation2 + $0x188] sm:$0xff] %vm22_vm0, %v1443_v1  ;;  %v121_v35 = vld [vmem:[#allocation2 + $0x110] sm:$0xff]  ;;  %v122_v41 = vld [vmem:[#allocation2 + $0x118] sm:$0xff] }
  0x1a   :  { %73 = vst.msk [vmem:[#allocation2 + $0x190] sm:$0xff] %vm22_vm0, %v1443_v1  ;;  %74 = vst.msk [vmem:[#allocation2 + $0x198] sm:$0xff] %vm22_vm0, %v1443_v1  ;;  %v123_v61 = vld [vmem:[#allocation2 + $0x120] sm:$0xff]  ;;  %v124_v8 = vld [vmem:[#allocation2 + $0x128] sm:$0xff] }
  0x1b   :  { %75 = vst.msk [vmem:[#allocation2 + $0x1a0] sm:$0xff] %vm22_vm0, %v1443_v1  ;;  %76 = vst.msk [vmem:[#allocation2 + $0x1a8] sm:$0xff] %vm22_vm0, %v1443_v1  ;;  %v125_v59 = vld [vmem:[#allocation2 + $0x130] sm:$0xff]  ;;  %v126_v2 = vld [vmem:[#allocation2 + $0x138] sm:$0xff] }
  0x1c   :  { %77 = vst.msk [vmem:[#allocation2 + $0x1b0] sm:$0xff] %vm22_vm0, %v1443_v1  ;;  %78 = vst.msk [vmem:[#allocation2 + $0x1b8] sm:$0xff] %vm22_vm0, %v1443_v1 }
  0x1d   :  { %79 = vst.msk [vmem:[#allocation2 + $0x1c0] sm:$0xff] %vm22_vm0, %v1443_v1  ;;  %80 = vst.msk [vmem:[#allocation2 + $0x1c8] sm:$0xff] %vm22_vm0, %v1443_v1 }
  0x1e   :  { %81 = vst.msk [vmem:[#allocation2 + $0x1d0] sm:$0xff] %vm22_vm0, %v1443_v1  ;;  %82 = vst.msk [vmem:[#allocation2 + $0x1d8] sm:$0xff] %vm22_vm0, %v1443_v1  ;;  %1354 = vmatmul.mubr.msk.bf16.gmra.mrb[12].mxu0 %vm383_vm1, %v1423_v16  ;;  %1386 = vmatmul.mubr.msk.bf16.gmra.mrb[12].mxu1 %vm383_vm1, %v1424_v17 }
  0x1f   :  { %83 = vst.msk [vmem:[#allocation2 + $0x1e0] sm:$0xff] %vm22_vm0, %v1443_v1  ;;  %84 = vst.msk [vmem:[#allocation2 + $0x1e8] sm:$0xff] %vm22_vm0, %v1443_v1  ;;  %1357 = vmatprep.mubr.msk.bf16.mxu0 %vm383_vm1, %v1425_v18  ;;  %1389 = vmatprep.mubr.msk.bf16.mxu1 %vm383_vm1, %v1426_v19 }
  0x20   :  { %85 = vst.msk [vmem:[#allocation2 + $0x1f0] sm:$0xff] %vm22_vm0, %v1443_v1  ;;  %86 = vst.msk [vmem:[#allocation2 + $0x1f8] sm:$0xff] %vm22_vm0, %v1443_v1  ;;  %v94_v1 = vld [vmem:[#allocation2 + $0x38] sm:$0xff] }
  0x26   :  { %1358 = vmatmul.mubr.msk.bf16.gmra.mrb[16].mxu0 %vm383_vm1, %v1427_v20  ;;  %1390 = vmatmul.mubr.msk.bf16.gmra.mrb[16].mxu1 %vm383_vm1, %v1428_v21 }
  0x27   :  { %1361 = vmatprep.mubr.msk.bf16.mxu0 %vm383_vm1, %v1429_v22  ;;  %1393 = vmatprep.mubr.msk.bf16.mxu1 %vm383_vm1, %v1430_v23 }
  0x2e   :  { %1362 = vmatmul.mubr.msk.bf16.gmra.mrb[20].mxu0 %vm383_vm1, %v1431_v24  ;;  %1394 = vmatmul.mubr.msk.bf16.gmra.mrb[20].mxu1 %vm383_vm1, %v1432_v25 }
  0x2f   :  { %1365 = vmatprep.mubr.msk.bf16.mxu0 %vm383_vm1, %v1433_v26  ;;  %1397 = vmatprep.mubr.msk.bf16.mxu1 %vm383_vm1, %v1434_v27 }
  0x36   :  { %1366 = vmatmul.mubr.msk.bf16.gmra.mrb[24].mxu0 %vm383_vm1, %v1435_v28  ;;  %1398 = vmatmul.mubr.msk.bf16.gmra.mrb[24].mxu1 %vm383_vm1, %v1436_v29 }
  0x37   :  { %1369 = vmatprep.mubr.msk.bf16.mxu0 %vm383_vm1, %v1437_v30  ;;  %1401 = vmatprep.mubr.msk.bf16.mxu1 %vm383_vm1, %v1438_v31 }
  0x3e   :  { %1370 = vmatmul.mubr.msk.bf16.gmra.mrb[28].mxu0 %vm383_vm1, %v1439_v32  ;;  %1402 = vmatmul.mubr.msk.bf16.gmra.mrb[28].mxu1 %vm383_vm1, %v1440_v33 }
  0xd9   :  { %v1343_v38 = vpop.f32.mrb[0].mxu0  ;;  %v1375_v39 = vpop.f32.mrb[0].mxu1 }
  0xda   :  { %v771_v42 = vadd.f32 %v1343_v38, %v89_v34  ;;  %v803_v43 = vadd.f32 %v1375_v39, %v121_v35  ;;  %v514_v44 = vpop.f32.mrb[1].mxu0  ;;  %v642_v45 = vpop.f32.mrb[1].mxu1 }
  0xdb   :  { %v769_v48 = vadd.f32 %v514_v44, %v87_v36  ;;  %v801_v49 = vadd.f32 %v642_v45, %v119_v37  ;;  %v1344_v50 = vpop.f32.mrb[2].mxu0  ;;  %v1376_v51 = vpop.f32.mrb[2].mxu1 }
  0xdc   :  { %836 = vst.msk [vmem:[#allocation2 + $0x10] sm:$0xff] %vm22_vm0, %v771_v42  ;;  %868 = vst.msk [vmem:[#allocation2 + $0x110] sm:$0xff] %vm22_vm0, %v803_v43  ;;  %v772_v52 = vadd.f32 %v1344_v50, %v90_v40  ;;  %v804_v53 = vadd.f32 %v1376_v51, %v122_v41  ;;  %v517_v54 = vpop.f32.mrb[3].mxu0  ;;  %v645_v55 = vpop.f32.mrb[3].mxu1  ;;  %v97_v40 = vld [vmem:[#allocation2 + $0x50] sm:$0xff] }
  0xdd   :  { %834 = vst.msk [vmem:[#allocation2] sm:$0xff] %vm22_vm0, %v769_v48  ;;  %866 = vst.msk [vmem:[#allocation2 + $0x100] sm:$0xff] %vm22_vm0, %v801_v49  ;;  %v770_v56 = vadd.f32 %v517_v54, %v88_v46  ;;  %v802_v57 = vadd.f32 %v645_v55, %v120_v47  ;;  %v129_v41 = vld [vmem:[#allocation2 + $0x150] sm:$0xff]  ;;  %v95_v46 = vld [vmem:[#allocation2 + $0x40] sm:$0xff] }
  0xde   :  { %837 = vst.msk [vmem:[#allocation2 + $0x18] sm:$0xff] %vm22_vm0, %v772_v52  ;;  %869 = vst.msk [vmem:[#allocation2 + $0x118] sm:$0xff] %vm22_vm0, %v804_v53  ;;  %v127_v47 = vld [vmem:[#allocation2 + $0x140] sm:$0xff]  ;;  %v98_v54 = vld [vmem:[#allocation2 + $0x58] sm:$0xff] }
  0xdf   :  { %835 = vst.msk [vmem:[#allocation2 + $0x8] sm:$0xff] %vm22_vm0, %v770_v56  ;;  %867 = vst.msk [vmem:[#allocation2 + $0x108] sm:$0xff] %vm22_vm0, %v802_v57  ;;  %v130_v55 = vld [vmem:[#allocation2 + $0x158] sm:$0xff] }
  0xe1   :  { %v1347_v63 = vpop.f32.mrb[4].mxu0  ;;  %v1379_v0 = vpop.f32.mrb[4].mxu1 }
  0xe2   :  { %v775_v3 = vadd.f32 %v1347_v63, %v93_v58  ;;  %v807_v4 = vadd.f32 %v1379_v0, %v125_v59  ;;  %v530_v5 = vpop.f32.mrb[5].mxu0  ;;  %v658_v6 = vpop.f32.mrb[5].mxu1  ;;  %v96_v63 = vld [vmem:[#allocation2 + $0x48] sm:$0xff] }
  0xe3   :  { %v903_v9 = vld [vmem:[#allocation2 + $0x10] sm:$0xff]  ;;  %v773_v12 = vadd.f32 %v530_v5, %v91_v60  ;;  %v805_v13 = vadd.f32 %v658_v6, %v123_v61  ;;  %v1348_v14 = vpop.f32.mrb[6].mxu0  ;;  %v1380_v15 = vpop.f32.mrb[6].mxu1  ;;  %v128_v0 = vld [vmem:[#allocation2 + $0x148] sm:$0xff] }
  0xe4   :  { %v935_v11 = vld [vmem:[#allocation2 + $0x110] sm:$0xff]  ;;  %v974_v16 = vmul.f32 %v1745_v62, %v903_v9  ;;  %v901_v18 = vld [vmem:[#allocation2] sm:$0xff]  ;;  %840 = vst.msk [vmem:[#allocation2 + $0x30] sm:$0xff] %vm22_vm0, %v775_v3  ;;  %872 = vst.msk [vmem:[#allocation2 + $0x130] sm:$0xff] %vm22_vm0, %v807_v4  ;;  %v776_v20 = vadd.f32 %v1348_v14, %v94_v1  ;;  %v808_v21 = vadd.f32 %v1380_v15, %v126_v2  ;;  %v533_v22 = vpop.f32.mrb[7].mxu0  ;;  %v661_v23 = vpop.f32.mrb[7].mxu1 }
  0xe5   :  { %v1006_v17 = vmul.f32 %v1745_v62, %v935_v11  ;;  %v933_v19 = vld [vmem:[#allocation2 + $0x100] sm:$0xff]  ;;  %v972_v24 = vmul.f32 %v1745_v62, %v901_v18  ;;  %v904_v26 = vld [vmem:[#allocation2 + $0x18] sm:$0xff]  ;;  %838 = vst.msk [vmem:[#allocation2 + $0x20] sm:$0xff] %vm22_vm0, %v773_v12  ;;  %870 = vst.msk [vmem:[#allocation2 + $0x120] sm:$0xff] %vm22_vm0, %v805_v13  ;;  %v774_v28 = vadd.f32 %v533_v22, %v92_v7 }
  0xe6   :  { %v1004_v25 = vmul.f32 %v1745_v62, %v933_v19  ;;  %v936_v27 = vld [vmem:[#allocation2 + $0x118] sm:$0xff]  ;;  %v806_v29 = vadd.f32 %v661_v23, %v124_v8  ;;  %v1045_v30 = vadd.f32 %v1750_v10, %v974_v16  ;;  %v975_v32 = vmul.f32 %v1745_v62, %v904_v26  ;;  %v902_v34 = vld [vmem:[#allocation2 + $0x8] sm:$0xff]  ;;  %841 = vst.msk [vmem:[#allocation2 + $0x38] sm:$0xff] %vm22_vm0, %v776_v20 }
  0xe7   :  { %v1077_v31 = vadd.f32 %v1750_v10, %v1006_v17  ;;  %v1007_v33 = vmul.f32 %v1745_v62, %v936_v27  ;;  %v934_v35 = vld [vmem:[#allocation2 + $0x108] sm:$0xff]  ;;  %873 = vst.msk [vmem:[#allocation2 + $0x138] sm:$0xff] %vm22_vm0, %v808_v21  ;;  %v1043_v36 = vadd.f32 %v1750_v10, %v972_v24  ;;  %v973_v38 = vmul.f32 %v1745_v62, %v902_v34  ;;  %v101_v34 = vld [vmem:[#allocation2 + $0x70] sm:$0xff] }
  0xe8   :  { %v1075_v37 = vadd.f32 %v1750_v10, %v1004_v25  ;;  %v1005_v39 = vmul.f32 %v1745_v62, %v934_v35  ;;  %839 = vst.msk [vmem:[#allocation2 + $0x28] sm:$0xff] %vm22_vm0, %v774_v28  ;;  %871 = vst.msk [vmem:[#allocation2 + $0x128] sm:$0xff] %vm22_vm0, %v806_v29  ;;  %v1109_v42 = vmax.f32 %v1045_v30, 0.0  ;;  %v1046_v44 = vadd.f32 %v1750_v10, %v975_v32  ;;  %v133_v35 = vld [vmem:[#allocation2 + $0x170] sm:$0xff] }
  0xe9   :  { %v1141_v43 = vmax.f32 %v1077_v31, 0.0  ;;  %v1078_v45 = vadd.f32 %v1750_v10, %v1007_v33  ;;  %v1107_v48 = vmax.f32 %v1043_v36, 0.0  ;;  %v1044_v50 = vadd.f32 %v1750_v10, %v973_v38  ;;  %v1351_v52 = vpop.f32.mrb[8].mxu0  ;;  %v1383_v53 = vpop.f32.mrb[8].mxu1 }
  0xea   :  { %v1139_v49 = vmax.f32 %v1075_v37, 0.0  ;;  %v1076_v51 = vadd.f32 %v1750_v10, %v1005_v39  ;;  %1173 = vst.msk [vmem:[%s2194_s4 + $0x10] sm:$0xff] %vm22_vm0, %v1109_v42  ;;  %v1110_v56 = vmax.f32 %v1046_v44, 0.0  ;;  %v779_v58 = vadd.f32 %v1351_v52, %v97_v40  ;;  %v546_v60 = vpop.f32.mrb[9].mxu0  ;;  %v674_v61 = vpop.f32.mrb[9].mxu1  ;;  %v99_v40 = vld [vmem:[#allocation2 + $0x60] sm:$0xff] }
  0xeb   :  { %1205 = vst.msk [vmem:[%s2194_s4 + $0x110] sm:$0xff] %vm22_vm0, %v1141_v43  ;;  %v1142_v57 = vmax.f32 %v1078_v45, 0.0  ;;  %v811_v59 = vadd.f32 %v1383_v53, %v129_v41  ;;  %1171 = vst.msk [vmem:[%s2194_s4] sm:$0xff] %vm22_vm0, %v1107_v48  ;;  %v1108_v1 = vmax.f32 %v1044_v50, 0.0  ;;  %v907_v3 = vld [vmem:[#allocation2 + $0x30] sm:$0xff]  ;;  %v777_v5 = vadd.f32 %v546_v60, %v95_v46  ;;  %v1352_v7 = vpop.f32.mrb[10].mxu0 }
  0xec   :  { %1203 = vst.msk [vmem:[%s2194_s4 + $0x100] sm:$0xff] %vm22_vm0, %v1139_v49  ;;  %v1140_v2 = vmax.f32 %v1076_v51, 0.0  ;;  %v939_v4 = vld [vmem:[#allocation2 + $0x130] sm:$0xff]  ;;  %v809_v6 = vadd.f32 %v674_v61, %v127_v47  ;;  %v1384_v8 = vpop.f32.mrb[10].mxu1  ;;  %1174 = vst.msk [vmem:[%s2194_s4 + $0x18] sm:$0xff] %vm22_vm0, %v1110_v56  ;;  %v978_v9 = vmul.f32 %v1745_v62, %v907_v3  ;;  %v905_v12 = vld [vmem:[#allocation2 + $0x20] sm:$0xff]  ;;  %v780_v14 = vadd.f32 %v1352_v7, %v98_v54 }
  0xed   :  { %1206 = vst.msk [vmem:[%s2194_s4 + $0x118] sm:$0xff] %vm22_vm0, %v1142_v57  ;;  %v1010_v11 = vmul.f32 %v1745_v62, %v939_v4  ;;  %v937_v13 = vld [vmem:[#allocation2 + $0x120] sm:$0xff]  ;;  %844 = vst.msk [vmem:[#allocation2 + $0x50] sm:$0xff] %vm22_vm0, %v779_v58  ;;  %v812_v15 = vadd.f32 %v1384_v8, %v130_v55  ;;  %v549_v16 = vpop.f32.mrb[11].mxu0  ;;  %v677_v17 = vpop.f32.mrb[11].mxu1  ;;  %v976_v18 = vmul.f32 %v1745_v62, %v905_v12  ;;  %v908_v20 = vld [vmem:[#allocation2 + $0x38] sm:$0xff] }
  0xee   :  { %876 = vst.msk [vmem:[#allocation2 + $0x150] sm:$0xff] %vm22_vm0, %v811_v59  ;;  %1172 = vst.msk [vmem:[%s2194_s4 + $0x8] sm:$0xff] %vm22_vm0, %v1108_v1  ;;  %v1008_v19 = vmul.f32 %v1745_v62, %v937_v13  ;;  %v940_v21 = vld [vmem:[#allocation2 + $0x138] sm:$0xff]  ;;  %v778_v22 = vadd.f32 %v549_v16, %v96_v63  ;;  %v810_v23 = vadd.f32 %v677_v17, %v128_v0  ;;  %v131_v41 = vld [vmem:[#allocation2 + $0x160] sm:$0xff] }
  0xef   :  { %1204 = vst.msk [vmem:[%s2194_s4 + $0x108] sm:$0xff] %vm22_vm0, %v1140_v2  ;;  %842 = vst.msk [vmem:[#allocation2 + $0x40] sm:$0xff] %vm22_vm0, %v777_v5  ;;  %v1049_v24 = vadd.f32 %v1750_v10, %v978_v9  ;;  %v1081_v25 = vadd.f32 %v1750_v10, %v1010_v11  ;;  %v979_v26 = vmul.f32 %v1745_v62, %v908_v20  ;;  %v906_v28 = vld [vmem:[#allocation2 + $0x28] sm:$0xff]  ;;  %v102_v48 = vld [vmem:[#allocation2 + $0x78] sm:$0xff] }
  0xf0   :  { %874 = vst.msk [vmem:[#allocation2 + $0x140] sm:$0xff] %vm22_vm0, %v809_v6  ;;  %v1011_v27 = vmul.f32 %v1745_v62, %v940_v21  ;;  %v938_v29 = vld [vmem:[#allocation2 + $0x128] sm:$0xff]  ;;  %845 = vst.msk [vmem:[#allocation2 + $0x58] sm:$0xff] %vm22_vm0, %v780_v14  ;;  %v1047_v30 = vadd.f32 %v1750_v10, %v976_v18  ;;  %v1079_v31 = vadd.f32 %v1750_v10, %v1008_v19  ;;  %v134_v49 = vld [vmem:[#allocation2 + $0x178] sm:$0xff] }
  0xf1   :  { %877 = vst.msk [vmem:[#allocation2 + $0x158] sm:$0xff] %vm22_vm0, %v812_v15  ;;  %v977_v32 = vmul.f32 %v1745_v62, %v906_v28  ;;  %v1009_v33 = vmul.f32 %v1745_v62, %v938_v29  ;;  %843 = vst.msk [vmem:[#allocation2 + $0x48] sm:$0xff] %vm22_vm0, %v778_v22  ;;  %v1113_v36 = vmax.f32 %v1049_v24, 0.0  ;;  %v1145_v37 = vmax.f32 %v1081_v25, 0.0  ;;  %v1355_v46 = vpop.f32.mrb[12].mxu0  ;;  %v1387_v47 = vpop.f32.mrb[12].mxu1 }
  0xf2   :  { %875 = vst.msk [vmem:[#allocation2 + $0x148] sm:$0xff] %vm22_vm0, %v810_v23  ;;  %v1050_v38 = vadd.f32 %v1750_v10, %v979_v26  ;;  %v1082_v39 = vadd.f32 %v1750_v10, %v1011_v27  ;;  %v1111_v42 = vmax.f32 %v1047_v30, 0.0  ;;  %v1143_v43 = vmax.f32 %v1079_v31, 0.0  ;;  %v562_v54 = vpop.f32.mrb[13].mxu0  ;;  %v690_v55 = vpop.f32.mrb[13].mxu1  ;;  %v100_v56 = vld [vmem:[#allocation2 + $0x68] sm:$0xff] }
  0xf3   :  { %v1048_v44 = vadd.f32 %v1750_v10, %v977_v32  ;;  %v1080_v45 = vadd.f32 %v1750_v10, %v1009_v33  ;;  %1177 = vst.msk [vmem:[%s2194_s4 + $0x30] sm:$0xff] %vm22_vm0, %v1113_v36  ;;  %1209 = vst.msk [vmem:[%s2194_s4 + $0x130] sm:$0xff] %vm22_vm0, %v1145_v37  ;;  %v783_v52 = vadd.f32 %v1355_v46, %v101_v34  ;;  %v132_v57 = vld [vmem:[#allocation2 + $0x168] sm:$0xff]  ;;  %v1356_v1 = vpop.f32.mrb[14].mxu0  ;;  %v1388_v2 = vpop.f32.mrb[14].mxu1  ;;  %v105_v28 = vld [vmem:[#allocation2 + $0x90] sm:$0xff] }
  0xf4   :  { %v1114_v50 = vmax.f32 %v1050_v38, 0.0  ;;  %v1146_v51 = vmax.f32 %v1082_v39, 0.0  ;;  %v815_v53 = vadd.f32 %v1387_v47, %v133_v35  ;;  %1175 = vst.msk [vmem:[%s2194_s4 + $0x20] sm:$0xff] %vm22_vm0, %v1111_v42  ;;  %1207 = vst.msk [vmem:[%s2194_s4 + $0x120] sm:$0xff] %vm22_vm0, %v1143_v43  ;;  %v911_v60 = vld [vmem:[#allocation2 + $0x50] sm:$0xff]  ;;  %v781_v63 = vadd.f32 %v562_v54, %v99_v40  ;;  %v565_v9 = vpop.f32.mrb[15].mxu0 }
  0xf5   :  { %v1112_v58 = vmax.f32 %v1048_v44, 0.0  ;;  %v1144_v59 = vmax.f32 %v1080_v45, 0.0  ;;  %v943_v61 = vld [vmem:[#allocation2 + $0x150] sm:$0xff]  ;;  %v813_v0 = vadd.f32 %v690_v55, %v131_v41  ;;  %v982_v3 = vmul.f32 %v1745_v62, %v911_v60  ;;  %848 = vst.msk [vmem:[#allocation2 + $0x70] sm:$0xff] %vm22_vm0, %v783_v52  ;;  %v693_v11 = vpop.f32.mrb[15].mxu1  ;;  %v103_v34 = vld [vmem:[#allocation2 + $0x80] sm:$0xff] }
  0xf6   :  { %1178 = vst.msk [vmem:[%s2194_s4 + $0x38] sm:$0xff] %vm22_vm0, %v1114_v50  ;;  %1210 = vst.msk [vmem:[%s2194_s4 + $0x138] sm:$0xff] %vm22_vm0, %v1146_v51  ;;  %v1014_v4 = vmul.f32 %v1745_v62, %v943_v61  ;;  %v909_v5 = vld [vmem:[#allocation2 + $0x40] sm:$0xff]  ;;  %v784_v7 = vadd.f32 %v1356_v1, %v102_v48  ;;  %v816_v8 = vadd.f32 %v1388_v2, %v134_v49  ;;  %v137_v29 = vld [vmem:[#allocation2 + $0x190] sm:$0xff] }
  0xf7   :  { %v941_v6 = vld [vmem:[#allocation2 + $0x140] sm:$0xff]  ;;  %880 = vst.msk [vmem:[#allocation2 + $0x170] sm:$0xff] %vm22_vm0, %v815_v53  ;;  %1176 = vst.msk [vmem:[%s2194_s4 + $0x28] sm:$0xff] %vm22_vm0, %v1112_v58  ;;  %v980_v12 = vmul.f32 %v1745_v62, %v909_v5  ;;  %v912_v14 = vld [vmem:[#allocation2 + $0x58] sm:$0xff]  ;;  %v782_v16 = vadd.f32 %v565_v9, %v100_v56  ;;  %v814_v17 = vadd.f32 %v693_v11, %v132_v57 }
  0xf8   :  { %1208 = vst.msk [vmem:[%s2194_s4 + $0x128] sm:$0xff] %vm22_vm0, %v1144_v59  ;;  %v1012_v13 = vmul.f32 %v1745_v62, %v941_v6  ;;  %v944_v15 = vld [vmem:[#allocation2 + $0x158] sm:$0xff]  ;;  %846 = vst.msk [vmem:[#allocation2 + $0x60] sm:$0xff] %vm22_vm0, %v781_v63  ;;  %v1053_v18 = vadd.f32 %v1750_v10, %v982_v3  ;;  %v1085_v19 = vadd.f32 %v1750_v10, %v1014_v4  ;;  %v910_v22 = vld [vmem:[#allocation2 + $0x48] sm:$0xff] }
  0xf9   :  { %878 = vst.msk [vmem:[#allocation2 + $0x160] sm:$0xff] %vm22_vm0, %v813_v0  ;;  %v983_v20 = vmul.f32 %v1745_v62, %v912_v14  ;;  %v1015_v21 = vmul.f32 %v1745_v62, %v944_v15  ;;  %v942_v23 = vld [vmem:[#allocation2 + $0x148] sm:$0xff]  ;;  %849 = vst.msk [vmem:[#allocation2 + $0x78] sm:$0xff] %vm22_vm0, %v784_v7  ;;  %v1051_v24 = vadd.f32 %v1750_v10, %v980_v12  ;;  %v135_v35 = vld [vmem:[#allocation2 + $0x180] sm:$0xff]  ;;  %v1359_v40 = vpop.f32.mrb[16].mxu0  ;;  %v1391_v41 = vpop.f32.mrb[16].mxu1 }
  0xfa   :  { %881 = vst.msk [vmem:[#allocation2 + $0x178] sm:$0xff] %vm22_vm0, %v816_v8  ;;  %v1083_v25 = vadd.f32 %v1750_v10, %v1012_v13  ;;  %v981_v26 = vmul.f32 %v1745_v62, %v910_v22  ;;  %v1013_v27 = vmul.f32 %v1745_v62, %v942_v23  ;;  %847 = vst.msk [vmem:[#allocation2 + $0x68] sm:$0xff] %vm22_vm0, %v782_v16  ;;  %v1117_v30 = vmax.f32 %v1053_v18, 0.0  ;;  %v106_v42 = vld [vmem:[#allocation2 + $0x98] sm:$0xff]  ;;  %v578_v48 = vpop.f32.mrb[17].mxu0  ;;  %v706_v49 = vpop.f32.mrb[17].mxu1 }
  0xfb   :  { %879 = vst.msk [vmem:[#allocation2 + $0x168] sm:$0xff] %vm22_vm0, %v814_v17  ;;  %v1149_v31 = vmax.f32 %v1085_v19, 0.0  ;;  %v1054_v32 = vadd.f32 %v1750_v10, %v983_v20  ;;  %v1086_v33 = vadd.f32 %v1750_v10, %v1015_v21  ;;  %v1115_v36 = vmax.f32 %v1051_v24, 0.0  ;;  %v138_v43 = vld [vmem:[#allocation2 + $0x198] sm:$0xff]  ;;  %v104_v50 = vld [vmem:[#allocation2 + $0x88] sm:$0xff]  ;;  %v1360_v58 = vpop.f32.mrb[18].mxu0 }
  0xfc   :  { %v1147_v37 = vmax.f32 %v1083_v25, 0.0  ;;  %v1052_v38 = vadd.f32 %v1750_v10, %v981_v26  ;;  %v1084_v39 = vadd.f32 %v1750_v10, %v1013_v27  ;;  %1181 = vst.msk [vmem:[%s2194_s4 + $0x50] sm:$0xff] %vm22_vm0, %v1117_v30  ;;  %v787_v46 = vadd.f32 %v1359_v40, %v105_v28  ;;  %v136_v51 = vld [vmem:[#allocation2 + $0x188] sm:$0xff]  ;;  %v915_v54 = vld [vmem:[#allocation2 + $0x70] sm:$0xff]  ;;  %v1392_v59 = vpop.f32.mrb[18].mxu1  ;;  %v581_v3 = vpop.f32.mrb[19].mxu0 }
  0xfd   :  { %1213 = vst.msk [vmem:[%s2194_s4 + $0x150] sm:$0xff] %vm22_vm0, %v1149_v31  ;;  %v1118_v44 = vmax.f32 %v1054_v32, 0.0  ;;  %v1150_v45 = vmax.f32 %v1086_v33, 0.0  ;;  %v819_v47 = vadd.f32 %v1391_v41, %v137_v29  ;;  %1179 = vst.msk [vmem:[%s2194_s4 + $0x40] sm:$0xff] %vm22_vm0, %v1115_v36  ;;  %v785_v56 = vadd.f32 %v578_v48, %v103_v34  ;;  %v709_v4 = vpop.f32.mrb[19].mxu1  ;;  %v109_v22 = vld [vmem:[#allocation2 + $0xb0] sm:$0xff] }
  0xfe   :  { %1211 = vst.msk [vmem:[%s2194_s4 + $0x140] sm:$0xff] %vm22_vm0, %v1147_v37  ;;  %v1116_v52 = vmax.f32 %v1052_v38, 0.0  ;;  %v1148_v53 = vmax.f32 %v1084_v39, 0.0  ;;  %v947_v55 = vld [vmem:[#allocation2 + $0x170] sm:$0xff]  ;;  %v817_v57 = vadd.f32 %v706_v49, %v135_v35  ;;  %v986_v60 = vmul.f32 %v1745_v62, %v915_v54  ;;  %852 = vst.msk [vmem:[#allocation2 + $0x90] sm:$0xff] %vm22_vm0, %v787_v46  ;;  %v107_v28 = vld [vmem:[#allocation2 + $0xa0] sm:$0xff] }
  0xff   :  { %1182 = vst.msk [vmem:[%s2194_s4 + $0x58] sm:$0xff] %vm22_vm0, %v1118_v44  ;;  %1214 = vst.msk [vmem:[%s2194_s4 + $0x158] sm:$0xff] %vm22_vm0, %v1150_v45  ;;  %v1018_v61 = vmul.f32 %v1745_v62, %v947_v55  ;;  %v913_v63 = vld [vmem:[#allocation2 + $0x60] sm:$0xff]  ;;  %v788_v1 = vadd.f32 %v1360_v58, %v106_v42  ;;  %v820_v2 = vadd.f32 %v1392_v59, %v138_v43  ;;  %v141_v23 = vld [vmem:[#allocation2 + $0x1b0] sm:$0xff] }
 0x100   :  { %v945_v0 = vld [vmem:[#allocation2 + $0x160] sm:$0xff]  ;;  %884 = vst.msk [vmem:[#allocation2 + $0x190] sm:$0xff] %vm22_vm0, %v819_v47  ;;  %1180 = vst.msk [vmem:[%s2194_s4 + $0x48] sm:$0xff] %vm22_vm0, %v1116_v52  ;;  %v984_v5 = vmul.f32 %v1745_v62, %v913_v63  ;;  %v916_v7 = vld [vmem:[#allocation2 + $0x78] sm:$0xff]  ;;  %v786_v9 = vadd.f32 %v581_v3, %v104_v50  ;;  %v818_v11 = vadd.f32 %v709_v4, %v136_v51 }
 0x101   :  { %1212 = vst.msk [vmem:[%s2194_s4 + $0x148] sm:$0xff] %vm22_vm0, %v1148_v53  ;;  %v1016_v6 = vmul.f32 %v1745_v62, %v945_v0  ;;  %v948_v8 = vld [vmem:[#allocation2 + $0x178] sm:$0xff]  ;;  %850 = vst.msk [vmem:[#allocation2 + $0x80] sm:$0xff] %vm22_vm0, %v785_v56  ;;  %v1057_v12 = vadd.f32 %v1750_v10, %v986_v60  ;;  %v1089_v13 = vadd.f32 %v1750_v10, %v1018_v61  ;;  %v914_v16 = vld [vmem:[#allocation2 + $0x68] sm:$0xff]  ;;  %v1363_v34 = vpop.f32.mrb[20].mxu0  ;;  %v1395_v35 = vpop.f32.mrb[20].mxu1 }
 0x102   :  { %882 = vst.msk [vmem:[#allocation2 + $0x180] sm:$0xff] %vm22_vm0, %v817_v57  ;;  %v987_v14 = vmul.f32 %v1745_v62, %v916_v7  ;;  %v1019_v15 = vmul.f32 %v1745_v62, %v948_v8  ;;  %v946_v17 = vld [vmem:[#allocation2 + $0x168] sm:$0xff]  ;;  %853 = vst.msk [vmem:[#allocation2 + $0x98] sm:$0xff] %vm22_vm0, %v788_v1  ;;  %v1055_v18 = vadd.f32 %v1750_v10, %v984_v5  ;;  %v139_v29 = vld [vmem:[#allocation2 + $0x1a0] sm:$0xff]  ;;  %v594_v42 = vpop.f32.mrb[21].mxu0  ;;  %v722_v43 = vpop.f32.mrb[21].mxu1 }
 0x103   :  { %885 = vst.msk [vmem:[#allocation2 + $0x198] sm:$0xff] %vm22_vm0, %v820_v2  ;;  %v1087_v19 = vadd.f32 %v1750_v10, %v1016_v6  ;;  %v985_v20 = vmul.f32 %v1745_v62, %v914_v16  ;;  %v1017_v21 = vmul.f32 %v1745_v62, %v946_v17  ;;  %851 = vst.msk [vmem:[#allocation2 + $0x88] sm:$0xff] %vm22_vm0, %v786_v9  ;;  %v1121_v24 = vmax.f32 %v1057_v12, 0.0  ;;  %v110_v36 = vld [vmem:[#allocation2 + $0xb8] sm:$0xff]  ;;  %v108_v44 = vld [vmem:[#allocation2 + $0xa8] sm:$0xff]  ;;  %v1364_v52 = vpop.f32.mrb[22].mxu0 }
 0x104   :  { %883 = vst.msk [vmem:[#allocation2 + $0x188] sm:$0xff] %vm22_vm0, %v818_v11  ;;  %v1153_v25 = vmax.f32 %v1089_v13, 0.0  ;;  %v1058_v26 = vadd.f32 %v1750_v10, %v987_v14  ;;  %v1090_v27 = vadd.f32 %v1750_v10, %v1019_v15  ;;  %v1119_v30 = vmax.f32 %v1055_v18, 0.0  ;;  %v142_v37 = vld [vmem:[#allocation2 + $0x1b8] sm:$0xff]  ;;  %v140_v45 = vld [vmem:[#allocation2 + $0x1a8] sm:$0xff]  ;;  %v1396_v53 = vpop.f32.mrb[22].mxu1 }
 0x105   :  { %v1151_v31 = vmax.f32 %v1087_v19, 0.0  ;;  %v1056_v32 = vadd.f32 %v1750_v10, %v985_v20  ;;  %v1088_v33 = vadd.f32 %v1750_v10, %v1017_v21  ;;  %1185 = vst.msk [vmem:[%s2194_s4 + $0x70] sm:$0xff] %vm22_vm0, %v1121_v24  ;;  %v791_v40 = vadd.f32 %v1363_v34, %v109_v22  ;;  %v919_v48 = vld [vmem:[#allocation2 + $0x90] sm:$0xff]  ;;  %v597_v60 = vpop.f32.mrb[23].mxu0  ;;  %v725_v61 = vpop.f32.mrb[23].mxu1  ;;  %v111_v22 = vld [vmem:[#allocation2 + $0xc0] sm:$0xff] }
 0x106   :  { %1217 = vst.msk [vmem:[%s2194_s4 + $0x170] sm:$0xff] %vm22_vm0, %v1153_v25  ;;  %v1122_v38 = vmax.f32 %v1058_v26, 0.0  ;;  %v1154_v39 = vmax.f32 %v1090_v27, 0.0  ;;  %v823_v41 = vadd.f32 %v1395_v35, %v141_v23  ;;  %1183 = vst.msk [vmem:[%s2194_s4 + $0x60] sm:$0xff] %vm22_vm0, %v1119_v30  ;;  %v789_v50 = vadd.f32 %v594_v42, %v107_v28  ;;  %v113_v16 = vld [vmem:[#allocation2 + $0xd0] sm:$0xff]  ;;  %v143_v23 = vld [vmem:[#allocation2 + $0x1c0] sm:$0xff] }
 0x107   :  { %1215 = vst.msk [vmem:[%s2194_s4 + $0x160] sm:$0xff] %vm22_vm0, %v1151_v31  ;;  %v1120_v46 = vmax.f32 %v1056_v32, 0.0  ;;  %v1152_v47 = vmax.f32 %v1088_v33, 0.0  ;;  %v951_v49 = vld [vmem:[#allocation2 + $0x190] sm:$0xff]  ;;  %v821_v51 = vadd.f32 %v722_v43, %v139_v29  ;;  %v990_v54 = vmul.f32 %v1745_v62, %v919_v48  ;;  %856 = vst.msk [vmem:[#allocation2 + $0xb0] sm:$0xff] %vm22_vm0, %v791_v40  ;;  %v114_v30 = vld [vmem:[#allocation2 + $0xd8] sm:$0xff] }
 0x108   :  { %1186 = vst.msk [vmem:[%s2194_s4 + $0x78] sm:$0xff] %vm22_vm0, %v1122_v38  ;;  %1218 = vst.msk [vmem:[%s2194_s4 + $0x178] sm:$0xff] %vm22_vm0, %v1154_v39  ;;  %v1022_v55 = vmul.f32 %v1745_v62, %v951_v49  ;;  %v917_v56 = vld [vmem:[#allocation2 + $0x80] sm:$0xff]  ;;  %v792_v58 = vadd.f32 %v1364_v52, %v110_v36  ;;  %v824_v59 = vadd.f32 %v1396_v53, %v142_v37  ;;  %v145_v17 = vld [vmem:[#allocation2 + $0x1d0] sm:$0xff] }
 0x109   :  { %v949_v57 = vld [vmem:[#allocation2 + $0x180] sm:$0xff]  ;;  %888 = vst.msk [vmem:[#allocation2 + $0x1b0] sm:$0xff] %vm22_vm0, %v823_v41  ;;  %1184 = vst.msk [vmem:[%s2194_s4 + $0x68] sm:$0xff] %vm22_vm0, %v1120_v46  ;;  %v988_v63 = vmul.f32 %v1745_v62, %v917_v56  ;;  %v920_v1 = vld [vmem:[#allocation2 + $0x98] sm:$0xff]  ;;  %v790_v3 = vadd.f32 %v597_v60, %v108_v44  ;;  %v822_v4 = vadd.f32 %v725_v61, %v140_v45  ;;  %v1367_v28 = vpop.f32.mrb[24].mxu0  ;;  %v1399_v29 = vpop.f32.mrb[24].mxu1 }
 0x10a   :  { %1216 = vst.msk [vmem:[%s2194_s4 + $0x168] sm:$0xff] %vm22_vm0, %v1152_v47  ;;  %v1020_v0 = vmul.f32 %v1745_v62, %v949_v57  ;;  %v952_v2 = vld [vmem:[#allocation2 + $0x198] sm:$0xff]  ;;  %854 = vst.msk [vmem:[#allocation2 + $0xa0] sm:$0xff] %vm22_vm0, %v789_v50  ;;  %v1061_v5 = vadd.f32 %v1750_v10, %v990_v54  ;;  %v1093_v6 = vadd.f32 %v1750_v10, %v1022_v55  ;;  %v918_v9 = vld [vmem:[#allocation2 + $0x88] sm:$0xff]  ;;  %v610_v36 = vpop.f32.mrb[25].mxu0  ;;  %v738_v37 = vpop.f32.mrb[25].mxu1 }
 0x10b   :  { %886 = vst.msk [vmem:[#allocation2 + $0x1a0] sm:$0xff] %vm22_vm0, %v821_v51  ;;  %v991_v7 = vmul.f32 %v1745_v62, %v920_v1  ;;  %v1023_v8 = vmul.f32 %v1745_v62, %v952_v2  ;;  %v950_v11 = vld [vmem:[#allocation2 + $0x188] sm:$0xff]  ;;  %857 = vst.msk [vmem:[#allocation2 + $0xb8] sm:$0xff] %vm22_vm0, %v792_v58  ;;  %v1059_v12 = vadd.f32 %v1750_v10, %v988_v63  ;;  %v146_v31 = vld [vmem:[#allocation2 + $0x1d8] sm:$0xff]  ;;  %v1368_v46 = vpop.f32.mrb[26].mxu0  ;;  %v1400_v47 = vpop.f32.mrb[26].mxu1 }
 0x10c   :  { %889 = vst.msk [vmem:[#allocation2 + $0x1b8] sm:$0xff] %vm22_vm0, %v824_v59  ;;  %v1091_v13 = vadd.f32 %v1750_v10, %v1020_v0  ;;  %v989_v14 = vmul.f32 %v1745_v62, %v918_v9  ;;  %v1021_v15 = vmul.f32 %v1745_v62, %v950_v11  ;;  %855 = vst.msk [vmem:[#allocation2 + $0xa8] sm:$0xff] %vm22_vm0, %v790_v3  ;;  %v1125_v18 = vmax.f32 %v1061_v5, 0.0  ;;  %v112_v38 = vld [vmem:[#allocation2 + $0xc8] sm:$0xff]  ;;  %v613_v54 = vpop.f32.mrb[27].mxu0  ;;  %v741_v55 = vpop.f32.mrb[27].mxu1 }
 0x10d   :  { %887 = vst.msk [vmem:[#allocation2 + $0x1a8] sm:$0xff] %vm22_vm0, %v822_v4  ;;  %v1157_v19 = vmax.f32 %v1093_v6, 0.0  ;;  %v1062_v20 = vadd.f32 %v1750_v10, %v991_v7  ;;  %v1094_v21 = vadd.f32 %v1750_v10, %v1023_v8  ;;  %v1123_v24 = vmax.f32 %v1059_v12, 0.0  ;;  %v144_v39 = vld [vmem:[#allocation2 + $0x1c8] sm:$0xff]  ;;  %v117_v9 = vld [vmem:[#allocation2 + $0xf0] sm:$0xff] }
 0x10e   :  { %v1155_v25 = vmax.f32 %v1091_v13, 0.0  ;;  %v1060_v26 = vadd.f32 %v1750_v10, %v989_v14  ;;  %v1092_v27 = vadd.f32 %v1750_v10, %v1021_v15  ;;  %1189 = vst.msk [vmem:[%s2194_s4 + $0x90] sm:$0xff] %vm22_vm0, %v1125_v18  ;;  %v795_v34 = vadd.f32 %v1367_v28, %v113_v16  ;;  %v923_v42 = vld [vmem:[#allocation2 + $0xb0] sm:$0xff]  ;;  %v115_v16 = vld [vmem:[#allocation2 + $0xe0] sm:$0xff] }
 0x10f   :  { %1221 = vst.msk [vmem:[%s2194_s4 + $0x190] sm:$0xff] %vm22_vm0, %v1157_v19  ;;  %v1126_v32 = vmax.f32 %v1062_v20, 0.0  ;;  %v1158_v33 = vmax.f32 %v1094_v21, 0.0  ;;  %v827_v35 = vadd.f32 %v1399_v29, %v145_v17  ;;  %1187 = vst.msk [vmem:[%s2194_s4 + $0x80] sm:$0xff] %vm22_vm0, %v1123_v24  ;;  %v793_v44 = vadd.f32 %v610_v36, %v111_v22  ;;  %v149_v11 = vld [vmem:[#allocation2 + $0x1f0] sm:$0xff]  ;;  %v147_v17 = vld [vmem:[#allocation2 + $0x1e0] sm:$0xff] }
 0x110   :  { %1219 = vst.msk [vmem:[%s2194_s4 + $0x180] sm:$0xff] %vm22_vm0, %v1155_v25  ;;  %v1124_v40 = vmax.f32 %v1060_v26, 0.0  ;;  %v1156_v41 = vmax.f32 %v1092_v27, 0.0  ;;  %v955_v43 = vld [vmem:[#allocation2 + $0x1b0] sm:$0xff]  ;;  %v825_v45 = vadd.f32 %v738_v37, %v143_v23  ;;  %v994_v48 = vmul.f32 %v1745_v62, %v923_v42  ;;  %860 = vst.msk [vmem:[#allocation2 + $0xd0] sm:$0xff] %vm22_vm0, %v795_v34  ;;  %v118_v24 = vld [vmem:[#allocation2 + $0xf8] sm:$0xff] }
 0x111   :  { %1190 = vst.msk [vmem:[%s2194_s4 + $0x98] sm:$0xff] %vm22_vm0, %v1126_v32  ;;  %1222 = vst.msk [vmem:[%s2194_s4 + $0x198] sm:$0xff] %vm22_vm0, %v1158_v33  ;;  %v1026_v49 = vmul.f32 %v1745_v62, %v955_v43  ;;  %v921_v50 = vld [vmem:[#allocation2 + $0xa0] sm:$0xff]  ;;  %v796_v52 = vadd.f32 %v1368_v46, %v114_v30  ;;  %v828_v53 = vadd.f32 %v1400_v47, %v146_v31  ;;  %v1371_v22 = vpop.f32.mrb[28].mxu0  ;;  %v1403_v23 = vpop.f32.mrb[28].mxu1  ;;  %v150_v25 = vld [vmem:[#allocation2 + $0x1f8] sm:$0xff] }
 0x112   :  { %v953_v51 = vld [vmem:[#allocation2 + $0x1a0] sm:$0xff]  ;;  %892 = vst.msk [vmem:[#allocation2 + $0x1d0] sm:$0xff] %vm22_vm0, %v827_v35  ;;  %1188 = vst.msk [vmem:[%s2194_s4 + $0x88] sm:$0xff] %vm22_vm0, %v1124_v40  ;;  %v992_v56 = vmul.f32 %v1745_v62, %v921_v50  ;;  %v924_v58 = vld [vmem:[#allocation2 + $0xb8] sm:$0xff]  ;;  %v794_v60 = vadd.f32 %v613_v54, %v112_v38  ;;  %v826_v61 = vadd.f32 %v741_v55, %v144_v39  ;;  %v626_v30 = vpop.f32.mrb[29].mxu0  ;;  %v754_v31 = vpop.f32.mrb[29].mxu1 }
 0x113   :  { %1220 = vst.msk [vmem:[%s2194_s4 + $0x188] sm:$0xff] %vm22_vm0, %v1156_v41  ;;  %v1024_v57 = vmul.f32 %v1745_v62, %v953_v51  ;;  %v956_v59 = vld [vmem:[#allocation2 + $0x1b8] sm:$0xff]  ;;  %858 = vst.msk [vmem:[#allocation2 + $0xc0] sm:$0xff] %vm22_vm0, %v793_v44  ;;  %v1065_v63 = vadd.f32 %v1750_v10, %v994_v48  ;;  %v1097_v0 = vadd.f32 %v1750_v10, %v1026_v49  ;;  %v922_v3 = vld [vmem:[#allocation2 + $0xa8] sm:$0xff]  ;;  %v1372_v40 = vpop.f32.mrb[30].mxu0  ;;  %v1404_v41 = vpop.f32.mrb[30].mxu1 }
 0x114   :  { %890 = vst.msk [vmem:[#allocation2 + $0x1c0] sm:$0xff] %vm22_vm0, %v825_v45  ;;  %v995_v1 = vmul.f32 %v1745_v62, %v924_v58  ;;  %v1027_v2 = vmul.f32 %v1745_v62, %v956_v59  ;;  %v954_v4 = vld [vmem:[#allocation2 + $0x1a8] sm:$0xff]  ;;  %861 = vst.msk [vmem:[#allocation2 + $0xd8] sm:$0xff] %vm22_vm0, %v796_v52  ;;  %v1063_v5 = vadd.f32 %v1750_v10, %v992_v56  ;;  %v629_v48 = vpop.f32.mrb[31].mxu0  ;;  %v757_v49 = vpop.f32.mrb[31].mxu1 }
 0x115   :  { %893 = vst.msk [vmem:[#allocation2 + $0x1d8] sm:$0xff] %vm22_vm0, %v828_v53  ;;  %v1095_v6 = vadd.f32 %v1750_v10, %v1024_v57  ;;  %v993_v7 = vmul.f32 %v1745_v62, %v922_v3  ;;  %v1025_v8 = vmul.f32 %v1745_v62, %v954_v4  ;;  %859 = vst.msk [vmem:[#allocation2 + $0xc8] sm:$0xff] %vm22_vm0, %v794_v60  ;;  %v1129_v12 = vmax.f32 %v1065_v63, 0.0  ;;  %v116_v32 = vld [vmem:[#allocation2 + $0xe8] sm:$0xff] }
 0x116   :  { %891 = vst.msk [vmem:[#allocation2 + $0x1c8] sm:$0xff] %vm22_vm0, %v826_v61  ;;  %v1161_v13 = vmax.f32 %v1097_v0, 0.0  ;;  %v1066_v14 = vadd.f32 %v1750_v10, %v995_v1  ;;  %v1098_v15 = vadd.f32 %v1750_v10, %v1027_v2  ;;  %v1127_v18 = vmax.f32 %v1063_v5, 0.0  ;;  %v148_v33 = vld [vmem:[#allocation2 + $0x1e8] sm:$0xff] }
 0x117   :  { %v1159_v19 = vmax.f32 %v1095_v6, 0.0  ;;  %v1064_v20 = vadd.f32 %v1750_v10, %v993_v7  ;;  %v1096_v21 = vadd.f32 %v1750_v10, %v1025_v8  ;;  %1193 = vst.msk [vmem:[%s2194_s4 + $0xb0] sm:$0xff] %vm22_vm0, %v1129_v12  ;;  %v799_v28 = vadd.f32 %v1371_v22, %v117_v9  ;;  %v927_v36 = vld [vmem:[#allocation2 + $0xd0] sm:$0xff] }
 0x118   :  { %1225 = vst.msk [vmem:[%s2194_s4 + $0x1b0] sm:$0xff] %vm22_vm0, %v1161_v13  ;;  %v1130_v26 = vmax.f32 %v1066_v14, 0.0  ;;  %v1162_v27 = vmax.f32 %v1098_v15, 0.0  ;;  %v831_v29 = vadd.f32 %v1403_v23, %v149_v11  ;;  %1191 = vst.msk [vmem:[%s2194_s4 + $0xa0] sm:$0xff] %vm22_vm0, %v1127_v18  ;;  %v797_v38 = vadd.f32 %v626_v30, %v115_v16 }
 0x119   :  { %1223 = vst.msk [vmem:[%s2194_s4 + $0x1a0] sm:$0xff] %vm22_vm0, %v1159_v19  ;;  %v1128_v34 = vmax.f32 %v1064_v20, 0.0  ;;  %v1160_v35 = vmax.f32 %v1096_v21, 0.0  ;;  %v959_v37 = vld [vmem:[#allocation2 + $0x1d0] sm:$0xff]  ;;  %v829_v39 = vadd.f32 %v754_v31, %v147_v17  ;;  %v998_v42 = vmul.f32 %v1745_v62, %v927_v36  ;;  %864 = vst.msk [vmem:[#allocation2 + $0xf0] sm:$0xff] %vm22_vm0, %v799_v28 }
 0x11a   :  { %1194 = vst.msk [vmem:[%s2194_s4 + $0xb8] sm:$0xff] %vm22_vm0, %v1130_v26  ;;  %1226 = vst.msk [vmem:[%s2194_s4 + $0x1b8] sm:$0xff] %vm22_vm0, %v1162_v27  ;;  %v1030_v43 = vmul.f32 %v1745_v62, %v959_v37  ;;  %v925_v44 = vld [vmem:[#allocation2 + $0xc0] sm:$0xff]  ;;  %v800_v46 = vadd.f32 %v1372_v40, %v118_v24  ;;  %v832_v47 = vadd.f32 %v1404_v41, %v150_v25 }
 0x11b   :  { %v957_v45 = vld [vmem:[#allocation2 + $0x1c0] sm:$0xff]  ;;  %896 = vst.msk [vmem:[#allocation2 + $0x1f0] sm:$0xff] %vm22_vm0, %v831_v29  ;;  %1192 = vst.msk [vmem:[%s2194_s4 + $0xa8] sm:$0xff] %vm22_vm0, %v1128_v34  ;;  %v996_v50 = vmul.f32 %v1745_v62, %v925_v44  ;;  %v928_v52 = vld [vmem:[#allocation2 + $0xd8] sm:$0xff]  ;;  %v798_v54 = vadd.f32 %v629_v48, %v116_v32  ;;  %v830_v55 = vadd.f32 %v757_v49, %v148_v33 }
 0x11c   :  { %1224 = vst.msk [vmem:[%s2194_s4 + $0x1a8] sm:$0xff] %vm22_vm0, %v1160_v35  ;;  %v1028_v51 = vmul.f32 %v1745_v62, %v957_v45  ;;  %v960_v53 = vld [vmem:[#allocation2 + $0x1d8] sm:$0xff]  ;;  %862 = vst.msk [vmem:[#allocation2 + $0xe0] sm:$0xff] %vm22_vm0, %v797_v38  ;;  %v1069_v56 = vadd.f32 %v1750_v10, %v998_v42  ;;  %v1101_v57 = vadd.f32 %v1750_v10, %v1030_v43  ;;  %v926_v60 = vld [vmem:[#allocation2 + $0xc8] sm:$0xff] }
 0x11d   :  { %894 = vst.msk [vmem:[#allocation2 + $0x1e0] sm:$0xff] %vm22_vm0, %v829_v39  ;;  %v999_v58 = vmul.f32 %v1745_v62, %v928_v52  ;;  %v1031_v59 = vmul.f32 %v1745_v62, %v960_v53  ;;  %v958_v61 = vld [vmem:[#allocation2 + $0x1c8] sm:$0xff]  ;;  %865 = vst.msk [vmem:[#allocation2 + $0xf8] sm:$0xff] %vm22_vm0, %v800_v46  ;;  %v1067_v63 = vadd.f32 %v1750_v10, %v996_v50  ;;  %v1441_v28 = vld [vmem:[%s2192_s2] ss:$0 sm:$0xff] }
 0x11e   :  { %897 = vst.msk [vmem:[#allocation2 + $0x1f8] sm:$0xff] %vm22_vm0, %v832_v47  ;;  %v1099_v0 = vadd.f32 %v1750_v10, %v1028_v51  ;;  %v997_v1 = vmul.f32 %v1745_v62, %v926_v60  ;;  %v1029_v2 = vmul.f32 %v1745_v62, %v958_v61  ;;  %863 = vst.msk [vmem:[#allocation2 + $0xe8] sm:$0xff] %vm22_vm0, %v798_v54  ;;  %v1133_v3 = vmax.f32 %v1069_v56, 0.0  ;;  %v1442_v38 = vld [vmem:[%s2193_s3] ss:$0 sm:$0xff] }
 0x11f   :  { %895 = vst.msk [vmem:[#allocation2 + $0x1e8] sm:$0xff] %vm22_vm0, %v830_v55  ;;  %v1165_v4 = vmax.f32 %v1101_v57, 0.0  ;;  %v1070_v5 = vadd.f32 %v1750_v10, %v999_v58  ;;  %v1102_v6 = vadd.f32 %v1750_v10, %v1031_v59  ;;  %v1131_v7 = vmax.f32 %v1067_v63, 0.0 }
 0x120   :  { %v1163_v8 = vmax.f32 %v1099_v0, 0.0  ;;  %v1068_v9 = vadd.f32 %v1750_v10, %v997_v1  ;;  %v1100_v11 = vadd.f32 %v1750_v10, %v1029_v2  ;;  %1197 = vst.msk [vmem:[%s2194_s4 + $0xd0] sm:$0xff] %vm22_vm0, %v1133_v3  ;;  %v931_v16 = vld [vmem:[#allocation2 + $0xf0] sm:$0xff] }
 0x121   :  { %1229 = vst.msk [vmem:[%s2194_s4 + $0x1d0] sm:$0xff] %vm22_vm0, %v1165_v4  ;;  %v1134_v12 = vmax.f32 %v1070_v5, 0.0  ;;  %v1166_v13 = vmax.f32 %v1102_v6, 0.0  ;;  %1195 = vst.msk [vmem:[%s2194_s4 + $0xc0] sm:$0xff] %vm22_vm0, %v1131_v7  ;;  %v1002_v18 = vmul.f32 %v1745_v62, %v931_v16 }
 0x122   :  { %1227 = vst.msk [vmem:[%s2194_s4 + $0x1c0] sm:$0xff] %vm22_vm0, %v1163_v8  ;;  %v1132_v14 = vmax.f32 %v1068_v9, 0.0  ;;  %v1164_v15 = vmax.f32 %v1100_v11, 0.0  ;;  %v963_v17 = vld [vmem:[#allocation2 + $0x1f0] sm:$0xff] }
 0x123   :  { %1198 = vst.msk [vmem:[%s2194_s4 + $0xd8] sm:$0xff] %vm22_vm0, %v1134_v12  ;;  %1230 = vst.msk [vmem:[%s2194_s4 + $0x1d8] sm:$0xff] %vm22_vm0, %v1166_v13  ;;  %v1034_v19 = vmul.f32 %v1745_v62, %v963_v17  ;;  %v929_v20 = vld [vmem:[#allocation2 + $0xe0] sm:$0xff]  ;;  %v1073_v26 = vadd.f32 %v1750_v10, %v1002_v18 }
 0x124   :  { %v961_v21 = vld [vmem:[#allocation2 + $0x1e0] sm:$0xff]  ;;  %1196 = vst.msk [vmem:[%s2194_s4 + $0xc8] sm:$0xff] %vm22_vm0, %v1132_v14  ;;  %1228 = vst.msk [vmem:[%s2194_s4 + $0x1c8] sm:$0xff] %vm22_vm0, %v1164_v15  ;;  %v1000_v22 = vmul.f32 %v1745_v62, %v929_v20  ;;  %v932_v24 = vld [vmem:[#allocation2 + $0xf8] sm:$0xff] }
 0x125   :  { %v1032_v23 = vmul.f32 %v1745_v62, %v961_v21  ;;  %v964_v25 = vld [vmem:[#allocation2 + $0x1f8] sm:$0xff]  ;;  %v1105_v27 = vadd.f32 %v1750_v10, %v1034_v19  ;;  %v1003_v29 = vmul.f32 %v1441_v28, %v932_v24  ;;  %v930_v31 = vld [vmem:[#allocation2 + $0xe8] sm:$0xff]  ;;  %v1137_v36 = vmax.f32 %v1073_v26, 0.0 }
 0x126   :  { %v1035_v30 = vmul.f32 %v1441_v28, %v964_v25  ;;  %v962_v32 = vld [vmem:[#allocation2 + $0x1e8] sm:$0xff]  ;;  %v1071_v33 = vadd.f32 %v1750_v10, %v1000_v22  ;;  %v1001_v35 = vmul.f32 %v1441_v28, %v930_v31 }
 0x127   :  { %v1103_v34 = vadd.f32 %v1750_v10, %v1032_v23  ;;  %v1033_v62 = vmul.f32 %v1441_v28, %v962_v32  ;;  %v1169_v37 = vmax.f32 %v1105_v27, 0.0  ;;  %v1074_v39 = vadd.f32 %v1442_v38, %v1003_v29  ;;  %1201 = vst.msk [vmem:[%s2194_s4 + $0xf0] sm:$0xff] %vm22_vm0, %v1137_v36 }
 0x128   :  { %v1106_v40 = vadd.f32 %v1442_v38, %v1035_v30  ;;  %v1135_v41 = vmax.f32 %v1071_v33, 0.0  ;;  %v1072_v43 = vadd.f32 %v1442_v38, %v1001_v35 }
 0x129   :  { %v1167_v42 = vmax.f32 %v1103_v34, 0.0  ;;  %v1104_v44 = vadd.f32 %v1442_v38, %v1033_v62  ;;  %1233 = vst.msk [vmem:[%s2194_s4 + $0x1f0] sm:$0xff] %vm22_vm0, %v1169_v37  ;;  %v1138_v10 = vmax.f32 %v1074_v39, 0.0 }
 0x12a   :  { %v1170_v45 = vmax.f32 %v1106_v40, 0.0  ;;  %1199 = vst.msk [vmem:[%s2194_s4 + $0xe0] sm:$0xff] %vm22_vm0, %v1135_v41  ;;  %v1136_v46 = vmax.f32 %v1072_v43, 0.0 }
 0x12b   :  { %1231 = vst.msk [vmem:[%s2194_s4 + $0x1e0] sm:$0xff] %vm22_vm0, %v1167_v42  ;;  %v1168_v47 = vmax.f32 %v1104_v44, 0.0  ;;  %1202 = vst.msk [vmem:[%s2194_s4 + $0xf8] sm:$0xff] %vm22_vm0, %v1138_v10 }
 0x12c   :  { %1234 = vst.msk [vmem:[%s2194_s4 + $0x1f8] sm:$0xff] %vm22_vm0, %v1170_v45  ;;  %1200 = vst.msk [vmem:[%s2194_s4 + $0xe8] sm:$0xff] %vm22_vm0, %v1136_v46 }
 0x12d   :  { %1232 = vst.msk [vmem:[%s2194_s4 + $0x1e8] sm:$0xff] %vm22_vm0, %v1168_v47 }

// kernel: forward.44
= control target key start
LH: loop header
LB: loop body
LE: loop exit
PB: predicated region body
PF: predicated region fallthrough
CT: control target
= control target key end

     0   :  { %vm22_vm0 = vcmask 130048   ;;  %v1442_v1 = vmov 0.0   ;;  %s2189_s1 = inlined_call_operand.vmem [shape: bf16[16,16], index: 1, kind: input, shape index: {}]   ;;  %s2190_s0 = inlined_call_operand.vmem [shape: bf16[512,16], index: 0, kind: input, shape index: {}]   ;;  %s2191_s2 = inlined_call_operand.vmem [shape: f32[1,16], index: 2, kind: input, shape index: {}]   ;;  %s2192_s3 = inlined_call_operand.vmem [shape: f32[1,16], index: 3, kind: input, shape index: {}]   ;;  %s2193_s4 = inlined_call_operand.vmem [shape: f32[512,16], index: 4, kind: output, shape index: {}]  }
   0x1   :  { %v1471_v0 = vld [vmem:[%s2189_s1] sm:$0xff]   ;;  %25 = vst.msk [vmem:[#allocation2 + $0x10] sm:$0xff] %vm22_vm0, %v1442_v1  ;;  %23 = vst.msk [vmem:[#allocation2] sm:$0xff] %vm22_vm0, %v1442_v1  ;;  %v1410_v4 = vld [vmem:[%s2190_s0 + $0x8] sm:$0xff]  }
   0x2   :  { %24 = vst.msk [vmem:[#allocation2 + $0x8] sm:$0xff] %vm22_vm0, %v1442_v1  ;;  %26 = vst.msk [vmem:[#allocation2 + $0x18] sm:$0xff] %vm22_vm0, %v1442_v1  ;;  %v1408_v2 = vld [vmem:[%s2190_s0] sm:$0xff]   ;;  %1338 = vmatprep.subr.bf16.mxu0 %v1471_v0  ;;  %1404 = vmatprep.subr.bf16.mxu1 %v1471_v0  ;;  %v1411_v5 = vld [vmem:[%s2190_s0 + $0x88] sm:$0xff]  }
   0x3   :  { %27 = vst.msk [vmem:[#allocation2 + $0x20] sm:$0xff] %vm22_vm0, %v1442_v1  ;;  %28 = vst.msk [vmem:[#allocation2 + $0x28] sm:$0xff] %vm22_vm0, %v1442_v1  ;;  %v1409_v3 = vld [vmem:[%s2190_s0 + $0x80] sm:$0xff]   ;;  %1339 = vmatpush3.bf16.msra.mxu0 %v1471_v0  ;;  %1405 = vmatpush3.bf16.msra.mxu1 %v1471_v0  ;;  %v1412_v6 = vld [vmem:[%s2190_s0 + $0x10] sm:$0xff]  }
   0x4   :  { %29 = vst.msk [vmem:[#allocation2 + $0x30] sm:$0xff] %vm22_vm0, %v1442_v1  ;;  %30 = vst.msk [vmem:[#allocation2 + $0x38] sm:$0xff] %vm22_vm0, %v1442_v1  ;;  %1340 = vmatprep.mubr.msk.bf16.mxu0 %vm22_vm0, %v1408_v2  ;;  %1372 = vmatprep.mubr.msk.bf16.mxu1 %vm22_vm0, %v1409_v3  ;;  %v1413_v7 = vld [vmem:[%s2190_s0 + $0x90] sm:$0xff]   ;;  %v1414_v8 = vld [vmem:[%s2190_s0 + $0x18] sm:$0xff]  }
   0x5   :  { %31 = vst.msk [vmem:[#allocation2 + $0x40] sm:$0xff] %vm22_vm0, %v1442_v1  ;;  %32 = vst.msk [vmem:[#allocation2 + $0x48] sm:$0xff] %vm22_vm0, %v1442_v1  ;;  %v1415_v9 = vld [vmem:[%s2190_s0 + $0x98] sm:$0xff]   ;;  %v1416_v10 = vld [vmem:[%s2190_s0 + $0x20] sm:$0xff]  }
   0x6   :  { %33 = vst.msk [vmem:[#allocation2 + $0x50] sm:$0xff] %vm22_vm0, %v1442_v1  ;;  %34 = vst.msk [vmem:[#allocation2 + $0x58] sm:$0xff] %vm22_vm0, %v1442_v1  ;;  %1341 = vmatmul.mubr.msk.bf16.vlgmr.msra.gmra.mrb[0].mxu0 %vm22_vm0, %v1410_v4  ;;  %1373 = vmatmul.mubr.msk.bf16.vlgmr.msra.gmra.mrb[0].mxu1 %vm22_vm0, %v1411_v5  ;;  %v1417_v11 = vld [vmem:[%s2190_s0 + $0xa0] sm:$0xff]   ;;  %v1418_v12 = vld [vmem:[%s2190_s0 + $0x28] sm:$0xff]  }
   0x7   :  { %35 = vst.msk [vmem:[#allocation2 + $0x60] sm:$0xff] %vm22_vm0, %v1442_v1  ;;  %36 = vst.msk [vmem:[#allocation2 + $0x68] sm:$0xff] %vm22_vm0, %v1442_v1  ;;  %1344 = vmatprep.mubr.msk.bf16.mxu0 %vm22_vm0, %v1412_v6  ;;  %1376 = vmatprep.mubr.msk.bf16.mxu1 %vm22_vm0, %v1413_v7  ;;  %v1419_v13 = vld [vmem:[%s2190_s0 + $0xa8] sm:$0xff]   ;;  %v1420_v14 = vld [vmem:[%s2190_s0 + $0x30] sm:$0xff]  }
   0x8   :  { %37 = vst.msk [vmem:[#allocation2 + $0x70] sm:$0xff] %vm22_vm0, %v1442_v1  ;;  %38 = vst.msk [vmem:[#allocation2 + $0x78] sm:$0xff] %vm22_vm0, %v1442_v1  ;;  %v1421_v15 = vld [vmem:[%s2190_s0 + $0xb0] sm:$0xff]   ;;  %v1422_v16 = vld [vmem:[%s2190_s0 + $0x38] sm:$0xff]  }
   0x9   :  { %39 = vst.msk [vmem:[#allocation2 + $0x80] sm:$0xff] %vm22_vm0, %v1442_v1  ;;  %40 = vst.msk [vmem:[#allocation2 + $0x88] sm:$0xff] %vm22_vm0, %v1442_v1  ;;  %v1423_v17 = vld [vmem:[%s2190_s0 + $0xb8] sm:$0xff]   ;;  %v1424_v18 = vld [vmem:[%s2190_s0 + $0x40] sm:$0xff]  }
   0xa   :  { %41 = vst.msk [vmem:[#allocation2 + $0x90] sm:$0xff] %vm22_vm0, %v1442_v1  ;;  %42 = vst.msk [vmem:[#allocation2 + $0x98] sm:$0xff] %vm22_vm0, %v1442_v1  ;;  %v1425_v19 = vld [vmem:[%s2190_s0 + $0xc0] sm:$0xff]   ;;  %v1426_v20 = vld [vmem:[%s2190_s0 + $0x48] sm:$0xff]  }
   0xb   :  { %43 = vst.msk [vmem:[#allocation2 + $0xa0] sm:$0xff] %vm22_vm0, %v1442_v1  ;;  %44 = vst.msk [vmem:[#allocation2 + $0xa8] sm:$0xff] %vm22_vm0, %v1442_v1  ;;  %v1427_v21 = vld [vmem:[%s2190_s0 + $0xc8] sm:$0xff]   ;;  %v1428_v22 = vld [vmem:[%s2190_s0 + $0x50] sm:$0xff]  }
   0xc   :  { %45 = vst.msk [vmem:[#allocation2 + $0xb0] sm:$0xff] %vm22_vm0, %v1442_v1  ;;  %46 = vst.msk [vmem:[#allocation2 + $0xb8] sm:$0xff] %vm22_vm0, %v1442_v1  ;;  %v1429_v23 = vld [vmem:[%s2190_s0 + $0xd0] sm:$0xff]   ;;  %v1430_v24 = vld [vmem:[%s2190_s0 + $0x58] sm:$0xff]  }
   0xd   :  { %47 = vst.msk [vmem:[#allocation2 + $0xc0] sm:$0xff] %vm22_vm0, %v1442_v1  ;;  %48 = vst.msk [vmem:[#allocation2 + $0xc8] sm:$0xff] %vm22_vm0, %v1442_v1  ;;  %v1431_v25 = vld [vmem:[%s2190_s0 + $0xd8] sm:$0xff]   ;;  %v1432_v26 = vld [vmem:[%s2190_s0 + $0x60] sm:$0xff]  }
   0xe   :  { %49 = vst.msk [vmem:[#allocation2 + $0xd0] sm:$0xff] %vm22_vm0, %v1442_v1  ;;  %50 = vst.msk [vmem:[#allocation2 + $0xd8] sm:$0xff] %vm22_vm0, %v1442_v1  ;;  %1345 = vmatmul.mubr.msk.bf16.gmra.mrb[4].mxu0 %vm22_vm0, %v1414_v8  ;;  %1377 = vmatmul.mubr.msk.bf16.gmra.mrb[4].mxu1 %vm22_vm0, %v1415_v9  ;;  %v1433_v27 = vld [vmem:[%s2190_s0 + $0xe0] sm:$0xff]   ;;  %v1434_v28 = vld [vmem:[%s2190_s0 + $0x68] sm:$0xff]  }
   0xf   :  { %51 = vst.msk [vmem:[#allocation2 + $0xe0] sm:$0xff] %vm22_vm0, %v1442_v1  ;;  %52 = vst.msk [vmem:[#allocation2 + $0xe8] sm:$0xff] %vm22_vm0, %v1442_v1  ;;  %1348 = vmatprep.mubr.msk.bf16.mxu0 %vm22_vm0, %v1416_v10  ;;  %1380 = vmatprep.mubr.msk.bf16.mxu1 %vm22_vm0, %v1417_v11  ;;  %v1435_v29 = vld [vmem:[%s2190_s0 + $0xe8] sm:$0xff]   ;;  %v1436_v30 = vld [vmem:[%s2190_s0 + $0x70] sm:$0xff]  }
  0x10   :  { %53 = vst.msk [vmem:[#allocation2 + $0xf0] sm:$0xff] %vm22_vm0, %v1442_v1  ;;  %54 = vst.msk [vmem:[#allocation2 + $0xf8] sm:$0xff] %vm22_vm0, %v1442_v1  ;;  %v1437_v31 = vld [vmem:[%s2190_s0 + $0xf0] sm:$0xff]   ;;  %v1438_v32 = vld [vmem:[%s2190_s0 + $0x78] sm:$0xff]  }
  0x11   :  { %55 = vst.msk [vmem:[#allocation2 + $0x100] sm:$0xff] %vm22_vm0, %v1442_v1  ;;  %56 = vst.msk [vmem:[#allocation2 + $0x108] sm:$0xff] %vm22_vm0, %v1442_v1  ;;  %v1439_v33 = vld [vmem:[%s2190_s0 + $0xf8] sm:$0xff]   ;;  %v89_v34 = vld [vmem:[#allocation2 + $0x10] sm:$0xff] }
  0x12   :  { %57 = vst.msk [vmem:[#allocation2 + $0x110] sm:$0xff] %vm22_vm0, %v1442_v1  ;;  %58 = vst.msk [vmem:[#allocation2 + $0x118] sm:$0xff] %vm22_vm0, %v1442_v1  ;;  %v87_v36 = vld [vmem:[#allocation2] sm:$0xff]  ;;  %v90_v40 = vld [vmem:[#allocation2 + $0x18] sm:$0xff] }
  0x13   :  { %59 = vst.msk [vmem:[#allocation2 + $0x120] sm:$0xff] %vm22_vm0, %v1442_v1  ;;  %60 = vst.msk [vmem:[#allocation2 + $0x128] sm:$0xff] %vm22_vm0, %v1442_v1  ;;  %v88_v46 = vld [vmem:[#allocation2 + $0x8] sm:$0xff]  ;;  %v93_v58 = vld [vmem:[#allocation2 + $0x30] sm:$0xff] }
  0x14   :  { %61 = vst.msk [vmem:[#allocation2 + $0x130] sm:$0xff] %vm22_vm0, %v1442_v1  ;;  %62 = vst.msk [vmem:[#allocation2 + $0x138] sm:$0xff] %vm22_vm0, %v1442_v1  ;;  %v91_v60 = vld [vmem:[#allocation2 + $0x20] sm:$0xff]  ;;  %v92_v7 = vld [vmem:[#allocation2 + $0x28] sm:$0xff] }
  0x15   :  { %63 = vst.msk [vmem:[#allocation2 + $0x140] sm:$0xff] %vm22_vm0, %v1442_v1  ;;  %64 = vst.msk [vmem:[#allocation2 + $0x148] sm:$0xff] %vm22_vm0, %v1442_v1  ;;  %v1744_v62 = vld [vmem:[%s2191_s2] ss:$0 sm:$0xff] }
  0x16   :  { %65 = vst.msk [vmem:[#allocation2 + $0x150] sm:$0xff] %vm22_vm0, %v1442_v1  ;;  %66 = vst.msk [vmem:[#allocation2 + $0x158] sm:$0xff] %vm22_vm0, %v1442_v1  ;;  %1349 = vmatmul.mubr.msk.bf16.gmra.mrb[8].mxu0 %vm22_vm0, %v1418_v12  ;;  %1381 = vmatmul.mubr.msk.bf16.gmra.mrb[8].mxu1 %vm22_vm0, %v1419_v13  ;;  %v1749_v10 = vld [vmem:[%s2192_s3] ss:$0 sm:$0xff] }
  0x17   :  { %67 = vst.msk [vmem:[#allocation2 + $0x160] sm:$0xff] %vm22_vm0, %v1442_v1  ;;  %68 = vst.msk [vmem:[#allocation2 + $0x168] sm:$0xff] %vm22_vm0, %v1442_v1  ;;  %1352 = vmatprep.mubr.msk.bf16.mxu0 %vm22_vm0, %v1420_v14  ;;  %1384 = vmatprep.mubr.msk.bf16.mxu1 %vm22_vm0, %v1421_v15 }
  0x18   :  { %69 = vst.msk [vmem:[#allocation2 + $0x170] sm:$0xff] %vm22_vm0, %v1442_v1  ;;  %70 = vst.msk [vmem:[#allocation2 + $0x178] sm:$0xff] %vm22_vm0, %v1442_v1  ;;  %v119_v37 = vld [vmem:[#allocation2 + $0x100] sm:$0xff]  ;;  %v120_v47 = vld [vmem:[#allocation2 + $0x108] sm:$0xff] }
  0x19   :  { %71 = vst.msk [vmem:[#allocation2 + $0x180] sm:$0xff] %vm22_vm0, %v1442_v1  ;;  %72 = vst.msk [vmem:[#allocation2 + $0x188] sm:$0xff] %vm22_vm0, %v1442_v1  ;;  %v121_v35 = vld [vmem:[#allocation2 + $0x110] sm:$0xff]  ;;  %v122_v41 = vld [vmem:[#allocation2 + $0x118] sm:$0xff] }
  0x1a   :  { %73 = vst.msk [vmem:[#allocation2 + $0x190] sm:$0xff] %vm22_vm0, %v1442_v1  ;;  %74 = vst.msk [vmem:[#allocation2 + $0x198] sm:$0xff] %vm22_vm0, %v1442_v1  ;;  %v123_v61 = vld [vmem:[#allocation2 + $0x120] sm:$0xff]  ;;  %v124_v8 = vld [vmem:[#allocation2 + $0x128] sm:$0xff] }
  0x1b   :  { %75 = vst.msk [vmem:[#allocation2 + $0x1a0] sm:$0xff] %vm22_vm0, %v1442_v1  ;;  %76 = vst.msk [vmem:[#allocation2 + $0x1a8] sm:$0xff] %vm22_vm0, %v1442_v1  ;;  %v125_v59 = vld [vmem:[#allocation2 + $0x130] sm:$0xff]  ;;  %v126_v2 = vld [vmem:[#allocation2 + $0x138] sm:$0xff] }
  0x1c   :  { %77 = vst.msk [vmem:[#allocation2 + $0x1b0] sm:$0xff] %vm22_vm0, %v1442_v1  ;;  %78 = vst.msk [vmem:[#allocation2 + $0x1b8] sm:$0xff] %vm22_vm0, %v1442_v1 }
  0x1d   :  { %79 = vst.msk [vmem:[#allocation2 + $0x1c0] sm:$0xff] %vm22_vm0, %v1442_v1  ;;  %80 = vst.msk [vmem:[#allocation2 + $0x1c8] sm:$0xff] %vm22_vm0, %v1442_v1 }
  0x1e   :  { %81 = vst.msk [vmem:[#allocation2 + $0x1d0] sm:$0xff] %vm22_vm0, %v1442_v1  ;;  %82 = vst.msk [vmem:[#allocation2 + $0x1d8] sm:$0xff] %vm22_vm0, %v1442_v1  ;;  %1353 = vmatmul.mubr.msk.bf16.gmra.mrb[12].mxu0 %vm22_vm0, %v1422_v16  ;;  %1385 = vmatmul.mubr.msk.bf16.gmra.mrb[12].mxu1 %vm22_vm0, %v1423_v17 }
  0x1f   :  { %83 = vst.msk [vmem:[#allocation2 + $0x1e0] sm:$0xff] %vm22_vm0, %v1442_v1  ;;  %84 = vst.msk [vmem:[#allocation2 + $0x1e8] sm:$0xff] %vm22_vm0, %v1442_v1  ;;  %1356 = vmatprep.mubr.msk.bf16.mxu0 %vm22_vm0, %v1424_v18  ;;  %1388 = vmatprep.mubr.msk.bf16.mxu1 %vm22_vm0, %v1425_v19 }
  0x20   :  { %85 = vst.msk [vmem:[#allocation2 + $0x1f0] sm:$0xff] %vm22_vm0, %v1442_v1  ;;  %86 = vst.msk [vmem:[#allocation2 + $0x1f8] sm:$0xff] %vm22_vm0, %v1442_v1  ;;  %v94_v1 = vld [vmem:[#allocation2 + $0x38] sm:$0xff] }
  0x26   :  { %1357 = vmatmul.mubr.msk.bf16.gmra.mrb[16].mxu0 %vm22_vm0, %v1426_v20  ;;  %1389 = vmatmul.mubr.msk.bf16.gmra.mrb[16].mxu1 %vm22_vm0, %v1427_v21 }
  0x27   :  { %1360 = vmatprep.mubr.msk.bf16.mxu0 %vm22_vm0, %v1428_v22  ;;  %1392 = vmatprep.mubr.msk.bf16.mxu1 %vm22_vm0, %v1429_v23 }
  0x2e   :  { %1361 = vmatmul.mubr.msk.bf16.gmra.mrb[20].mxu0 %vm22_vm0, %v1430_v24  ;;  %1393 = vmatmul.mubr.msk.bf16.gmra.mrb[20].mxu1 %vm22_vm0, %v1431_v25 }
  0x2f   :  { %1364 = vmatprep.mubr.msk.bf16.mxu0 %vm22_vm0, %v1432_v26  ;;  %1396 = vmatprep.mubr.msk.bf16.mxu1 %vm22_vm0, %v1433_v27 }
  0x36   :  { %1365 = vmatmul.mubr.msk.bf16.gmra.mrb[24].mxu0 %vm22_vm0, %v1434_v28  ;;  %1397 = vmatmul.mubr.msk.bf16.gmra.mrb[24].mxu1 %vm22_vm0, %v1435_v29 }
  0x37   :  { %1368 = vmatprep.mubr.msk.bf16.mxu0 %vm22_vm0, %v1436_v30  ;;  %1400 = vmatprep.mubr.msk.bf16.mxu1 %vm22_vm0, %v1437_v31 }
  0x3e   :  { %1369 = vmatmul.mubr.msk.bf16.gmra.mrb[28].mxu0 %vm22_vm0, %v1438_v32  ;;  %1401 = vmatmul.mubr.msk.bf16.gmra.mrb[28].mxu1 %vm22_vm0, %v1439_v33 }
  0xd9   :  { %v1342_v38 = vpop.f32.mrb[0].mxu0  ;;  %v1374_v39 = vpop.f32.mrb[0].mxu1 }
  0xda   :  { %v771_v42 = vadd.f32 %v1342_v38, %v89_v34  ;;  %v803_v43 = vadd.f32 %v1374_v39, %v121_v35  ;;  %v514_v44 = vpop.f32.mrb[1].mxu0  ;;  %v642_v45 = vpop.f32.mrb[1].mxu1 }
  0xdb   :  { %v769_v48 = vadd.f32 %v514_v44, %v87_v36  ;;  %v801_v49 = vadd.f32 %v642_v45, %v119_v37  ;;  %v1343_v50 = vpop.f32.mrb[2].mxu0  ;;  %v1375_v51 = vpop.f32.mrb[2].mxu1 }
  0xdc   :  { %835 = vst.msk [vmem:[#allocation2 + $0x10] sm:$0xff] %vm22_vm0, %v771_v42  ;;  %867 = vst.msk [vmem:[#allocation2 + $0x110] sm:$0xff] %vm22_vm0, %v803_v43  ;;  %v772_v52 = vadd.f32 %v1343_v50, %v90_v40  ;;  %v804_v53 = vadd.f32 %v1375_v51, %v122_v41  ;;  %v517_v54 = vpop.f32.mrb[3].mxu0  ;;  %v645_v55 = vpop.f32.mrb[3].mxu1  ;;  %v97_v40 = vld [vmem:[#allocation2 + $0x50] sm:$0xff] }
  0xdd   :  { %833 = vst.msk [vmem:[#allocation2] sm:$0xff] %vm22_vm0, %v769_v48  ;;  %865 = vst.msk [vmem:[#allocation2 + $0x100] sm:$0xff] %vm22_vm0, %v801_v49  ;;  %v770_v56 = vadd.f32 %v517_v54, %v88_v46  ;;  %v802_v57 = vadd.f32 %v645_v55, %v120_v47  ;;  %v129_v41 = vld [vmem:[#allocation2 + $0x150] sm:$0xff]  ;;  %v95_v46 = vld [vmem:[#allocation2 + $0x40] sm:$0xff] }
  0xde   :  { %836 = vst.msk [vmem:[#allocation2 + $0x18] sm:$0xff] %vm22_vm0, %v772_v52  ;;  %868 = vst.msk [vmem:[#allocation2 + $0x118] sm:$0xff] %vm22_vm0, %v804_v53  ;;  %v127_v47 = vld [vmem:[#allocation2 + $0x140] sm:$0xff]  ;;  %v98_v54 = vld [vmem:[#allocation2 + $0x58] sm:$0xff] }
  0xdf   :  { %834 = vst.msk [vmem:[#allocation2 + $0x8] sm:$0xff] %vm22_vm0, %v770_v56  ;;  %866 = vst.msk [vmem:[#allocation2 + $0x108] sm:$0xff] %vm22_vm0, %v802_v57  ;;  %v130_v55 = vld [vmem:[#allocation2 + $0x158] sm:$0xff] }
  0xe1   :  { %v1346_v63 = vpop.f32.mrb[4].mxu0  ;;  %v1378_v0 = vpop.f32.mrb[4].mxu1 }
  0xe2   :  { %v775_v3 = vadd.f32 %v1346_v63, %v93_v58  ;;  %v807_v4 = vadd.f32 %v1378_v0, %v125_v59  ;;  %v530_v5 = vpop.f32.mrb[5].mxu0  ;;  %v658_v6 = vpop.f32.mrb[5].mxu1  ;;  %v96_v63 = vld [vmem:[#allocation2 + $0x48] sm:$0xff] }
  0xe3   :  { %v902_v9 = vld [vmem:[#allocation2 + $0x10] sm:$0xff]  ;;  %v773_v12 = vadd.f32 %v530_v5, %v91_v60  ;;  %v805_v13 = vadd.f32 %v658_v6, %v123_v61  ;;  %v1347_v14 = vpop.f32.mrb[6].mxu0  ;;  %v1379_v15 = vpop.f32.mrb[6].mxu1  ;;  %v128_v0 = vld [vmem:[#allocation2 + $0x148] sm:$0xff] }
  0xe4   :  { %v934_v11 = vld [vmem:[#allocation2 + $0x110] sm:$0xff]  ;;  %v973_v16 = vmul.f32 %v1744_v62, %v902_v9  ;;  %v900_v18 = vld [vmem:[#allocation2] sm:$0xff]  ;;  %839 = vst.msk [vmem:[#allocation2 + $0x30] sm:$0xff] %vm22_vm0, %v775_v3  ;;  %871 = vst.msk [vmem:[#allocation2 + $0x130] sm:$0xff] %vm22_vm0, %v807_v4  ;;  %v776_v20 = vadd.f32 %v1347_v14, %v94_v1  ;;  %v808_v21 = vadd.f32 %v1379_v15, %v126_v2  ;;  %v533_v22 = vpop.f32.mrb[7].mxu0  ;;  %v661_v23 = vpop.f32.mrb[7].mxu1 }
  0xe5   :  { %v1005_v17 = vmul.f32 %v1744_v62, %v934_v11  ;;  %v932_v19 = vld [vmem:[#allocation2 + $0x100] sm:$0xff]  ;;  %v971_v24 = vmul.f32 %v1744_v62, %v900_v18  ;;  %v903_v26 = vld [vmem:[#allocation2 + $0x18] sm:$0xff]  ;;  %837 = vst.msk [vmem:[#allocation2 + $0x20] sm:$0xff] %vm22_vm0, %v773_v12  ;;  %869 = vst.msk [vmem:[#allocation2 + $0x120] sm:$0xff] %vm22_vm0, %v805_v13  ;;  %v774_v28 = vadd.f32 %v533_v22, %v92_v7 }
  0xe6   :  { %v1003_v25 = vmul.f32 %v1744_v62, %v932_v19  ;;  %v935_v27 = vld [vmem:[#allocation2 + $0x118] sm:$0xff]  ;;  %v806_v29 = vadd.f32 %v661_v23, %v124_v8  ;;  %v1044_v30 = vadd.f32 %v1749_v10, %v973_v16  ;;  %v974_v32 = vmul.f32 %v1744_v62, %v903_v26  ;;  %v901_v34 = vld [vmem:[#allocation2 + $0x8] sm:$0xff]  ;;  %840 = vst.msk [vmem:[#allocation2 + $0x38] sm:$0xff] %vm22_vm0, %v776_v20 }
  0xe7   :  { %v1076_v31 = vadd.f32 %v1749_v10, %v1005_v17  ;;  %v1006_v33 = vmul.f32 %v1744_v62, %v935_v27  ;;  %v933_v35 = vld [vmem:[#allocation2 + $0x108] sm:$0xff]  ;;  %872 = vst.msk [vmem:[#allocation2 + $0x138] sm:$0xff] %vm22_vm0, %v808_v21  ;;  %v1042_v36 = vadd.f32 %v1749_v10, %v971_v24  ;;  %v972_v38 = vmul.f32 %v1744_v62, %v901_v34  ;;  %v101_v34 = vld [vmem:[#allocation2 + $0x70] sm:$0xff] }
  0xe8   :  { %v1074_v37 = vadd.f32 %v1749_v10, %v1003_v25  ;;  %v1004_v39 = vmul.f32 %v1744_v62, %v933_v35  ;;  %838 = vst.msk [vmem:[#allocation2 + $0x28] sm:$0xff] %vm22_vm0, %v774_v28  ;;  %870 = vst.msk [vmem:[#allocation2 + $0x128] sm:$0xff] %vm22_vm0, %v806_v29  ;;  %v1108_v42 = vmax.f32 %v1044_v30, 0.0  ;;  %v1045_v44 = vadd.f32 %v1749_v10, %v974_v32  ;;  %v133_v35 = vld [vmem:[#allocation2 + $0x170] sm:$0xff] }
  0xe9   :  { %v1140_v43 = vmax.f32 %v1076_v31, 0.0  ;;  %v1077_v45 = vadd.f32 %v1749_v10, %v1006_v33  ;;  %v1106_v48 = vmax.f32 %v1042_v36, 0.0  ;;  %v1043_v50 = vadd.f32 %v1749_v10, %v972_v38  ;;  %v1350_v52 = vpop.f32.mrb[8].mxu0  ;;  %v1382_v53 = vpop.f32.mrb[8].mxu1 }
  0xea   :  { %v1138_v49 = vmax.f32 %v1074_v37, 0.0  ;;  %v1075_v51 = vadd.f32 %v1749_v10, %v1004_v39  ;;  %1172 = vst.msk [vmem:[%s2193_s4 + $0x10] sm:$0xff] %vm22_vm0, %v1108_v42  ;;  %v1109_v56 = vmax.f32 %v1045_v44, 0.0  ;;  %v779_v58 = vadd.f32 %v1350_v52, %v97_v40  ;;  %v546_v60 = vpop.f32.mrb[9].mxu0  ;;  %v674_v61 = vpop.f32.mrb[9].mxu1  ;;  %v99_v40 = vld [vmem:[#allocation2 + $0x60] sm:$0xff] }
  0xeb   :  { %1204 = vst.msk [vmem:[%s2193_s4 + $0x110] sm:$0xff] %vm22_vm0, %v1140_v43  ;;  %v1141_v57 = vmax.f32 %v1077_v45, 0.0  ;;  %v811_v59 = vadd.f32 %v1382_v53, %v129_v41  ;;  %1170 = vst.msk [vmem:[%s2193_s4] sm:$0xff] %vm22_vm0, %v1106_v48  ;;  %v1107_v1 = vmax.f32 %v1043_v50, 0.0  ;;  %v906_v3 = vld [vmem:[#allocation2 + $0x30] sm:$0xff]  ;;  %v777_v5 = vadd.f32 %v546_v60, %v95_v46  ;;  %v1351_v7 = vpop.f32.mrb[10].mxu0 }
  0xec   :  { %1202 = vst.msk [vmem:[%s2193_s4 + $0x100] sm:$0xff] %vm22_vm0, %v1138_v49  ;;  %v1139_v2 = vmax.f32 %v1075_v51, 0.0  ;;  %v938_v4 = vld [vmem:[#allocation2 + $0x130] sm:$0xff]  ;;  %v809_v6 = vadd.f32 %v674_v61, %v127_v47  ;;  %v1383_v8 = vpop.f32.mrb[10].mxu1  ;;  %1173 = vst.msk [vmem:[%s2193_s4 + $0x18] sm:$0xff] %vm22_vm0, %v1109_v56  ;;  %v977_v9 = vmul.f32 %v1744_v62, %v906_v3  ;;  %v904_v12 = vld [vmem:[#allocation2 + $0x20] sm:$0xff]  ;;  %v780_v14 = vadd.f32 %v1351_v7, %v98_v54 }
  0xed   :  { %1205 = vst.msk [vmem:[%s2193_s4 + $0x118] sm:$0xff] %vm22_vm0, %v1141_v57  ;;  %v1009_v11 = vmul.f32 %v1744_v62, %v938_v4  ;;  %v936_v13 = vld [vmem:[#allocation2 + $0x120] sm:$0xff]  ;;  %843 = vst.msk [vmem:[#allocation2 + $0x50] sm:$0xff] %vm22_vm0, %v779_v58  ;;  %v812_v15 = vadd.f32 %v1383_v8, %v130_v55  ;;  %v549_v16 = vpop.f32.mrb[11].mxu0  ;;  %v677_v17 = vpop.f32.mrb[11].mxu1  ;;  %v975_v18 = vmul.f32 %v1744_v62, %v904_v12  ;;  %v907_v20 = vld [vmem:[#allocation2 + $0x38] sm:$0xff] }
  0xee   :  { %875 = vst.msk [vmem:[#allocation2 + $0x150] sm:$0xff] %vm22_vm0, %v811_v59  ;;  %1171 = vst.msk [vmem:[%s2193_s4 + $0x8] sm:$0xff] %vm22_vm0, %v1107_v1  ;;  %v1007_v19 = vmul.f32 %v1744_v62, %v936_v13  ;;  %v939_v21 = vld [vmem:[#allocation2 + $0x138] sm:$0xff]  ;;  %v778_v22 = vadd.f32 %v549_v16, %v96_v63  ;;  %v810_v23 = vadd.f32 %v677_v17, %v128_v0  ;;  %v131_v41 = vld [vmem:[#allocation2 + $0x160] sm:$0xff] }
  0xef   :  { %1203 = vst.msk [vmem:[%s2193_s4 + $0x108] sm:$0xff] %vm22_vm0, %v1139_v2  ;;  %841 = vst.msk [vmem:[#allocation2 + $0x40] sm:$0xff] %vm22_vm0, %v777_v5  ;;  %v1048_v24 = vadd.f32 %v1749_v10, %v977_v9  ;;  %v1080_v25 = vadd.f32 %v1749_v10, %v1009_v11  ;;  %v978_v26 = vmul.f32 %v1744_v62, %v907_v20  ;;  %v905_v28 = vld [vmem:[#allocation2 + $0x28] sm:$0xff]  ;;  %v102_v48 = vld [vmem:[#allocation2 + $0x78] sm:$0xff] }
  0xf0   :  { %873 = vst.msk [vmem:[#allocation2 + $0x140] sm:$0xff] %vm22_vm0, %v809_v6  ;;  %v1010_v27 = vmul.f32 %v1744_v62, %v939_v21  ;;  %v937_v29 = vld [vmem:[#allocation2 + $0x128] sm:$0xff]  ;;  %844 = vst.msk [vmem:[#allocation2 + $0x58] sm:$0xff] %vm22_vm0, %v780_v14  ;;  %v1046_v30 = vadd.f32 %v1749_v10, %v975_v18  ;;  %v1078_v31 = vadd.f32 %v1749_v10, %v1007_v19  ;;  %v134_v49 = vld [vmem:[#allocation2 + $0x178] sm:$0xff] }
  0xf1   :  { %876 = vst.msk [vmem:[#allocation2 + $0x158] sm:$0xff] %vm22_vm0, %v812_v15  ;;  %v976_v32 = vmul.f32 %v1744_v62, %v905_v28  ;;  %v1008_v33 = vmul.f32 %v1744_v62, %v937_v29  ;;  %842 = vst.msk [vmem:[#allocation2 + $0x48] sm:$0xff] %vm22_vm0, %v778_v22  ;;  %v1112_v36 = vmax.f32 %v1048_v24, 0.0  ;;  %v1144_v37 = vmax.f32 %v1080_v25, 0.0  ;;  %v1354_v46 = vpop.f32.mrb[12].mxu0  ;;  %v1386_v47 = vpop.f32.mrb[12].mxu1 }
  0xf2   :  { %874 = vst.msk [vmem:[#allocation2 + $0x148] sm:$0xff] %vm22_vm0, %v810_v23  ;;  %v1049_v38 = vadd.f32 %v1749_v10, %v978_v26  ;;  %v1081_v39 = vadd.f32 %v1749_v10, %v1010_v27  ;;  %v1110_v42 = vmax.f32 %v1046_v30, 0.0  ;;  %v1142_v43 = vmax.f32 %v1078_v31, 0.0  ;;  %v562_v54 = vpop.f32.mrb[13].mxu0  ;;  %v690_v55 = vpop.f32.mrb[13].mxu1  ;;  %v100_v56 = vld [vmem:[#allocation2 + $0x68] sm:$0xff] }
  0xf3   :  { %v1047_v44 = vadd.f32 %v1749_v10, %v976_v32  ;;  %v1079_v45 = vadd.f32 %v1749_v10, %v1008_v33  ;;  %1176 = vst.msk [vmem:[%s2193_s4 + $0x30] sm:$0xff] %vm22_vm0, %v1112_v36  ;;  %1208 = vst.msk [vmem:[%s2193_s4 + $0x130] sm:$0xff] %vm22_vm0, %v1144_v37  ;;  %v783_v52 = vadd.f32 %v1354_v46, %v101_v34  ;;  %v132_v57 = vld [vmem:[#allocation2 + $0x168] sm:$0xff]  ;;  %v1355_v1 = vpop.f32.mrb[14].mxu0  ;;  %v1387_v2 = vpop.f32.mrb[14].mxu1  ;;  %v105_v28 = vld [vmem:[#allocation2 + $0x90] sm:$0xff] }
  0xf4   :  { %v1113_v50 = vmax.f32 %v1049_v38, 0.0  ;;  %v1145_v51 = vmax.f32 %v1081_v39, 0.0  ;;  %v815_v53 = vadd.f32 %v1386_v47, %v133_v35  ;;  %1174 = vst.msk [vmem:[%s2193_s4 + $0x20] sm:$0xff] %vm22_vm0, %v1110_v42  ;;  %1206 = vst.msk [vmem:[%s2193_s4 + $0x120] sm:$0xff] %vm22_vm0, %v1142_v43  ;;  %v910_v60 = vld [vmem:[#allocation2 + $0x50] sm:$0xff]  ;;  %v781_v63 = vadd.f32 %v562_v54, %v99_v40  ;;  %v565_v9 = vpop.f32.mrb[15].mxu0 }
  0xf5   :  { %v1111_v58 = vmax.f32 %v1047_v44, 0.0  ;;  %v1143_v59 = vmax.f32 %v1079_v45, 0.0  ;;  %v942_v61 = vld [vmem:[#allocation2 + $0x150] sm:$0xff]  ;;  %v813_v0 = vadd.f32 %v690_v55, %v131_v41  ;;  %v981_v3 = vmul.f32 %v1744_v62, %v910_v60  ;;  %847 = vst.msk [vmem:[#allocation2 + $0x70] sm:$0xff] %vm22_vm0, %v783_v52  ;;  %v693_v11 = vpop.f32.mrb[15].mxu1  ;;  %v103_v34 = vld [vmem:[#allocation2 + $0x80] sm:$0xff] }
  0xf6   :  { %1177 = vst.msk [vmem:[%s2193_s4 + $0x38] sm:$0xff] %vm22_vm0, %v1113_v50  ;;  %1209 = vst.msk [vmem:[%s2193_s4 + $0x138] sm:$0xff] %vm22_vm0, %v1145_v51  ;;  %v1013_v4 = vmul.f32 %v1744_v62, %v942_v61  ;;  %v908_v5 = vld [vmem:[#allocation2 + $0x40] sm:$0xff]  ;;  %v784_v7 = vadd.f32 %v1355_v1, %v102_v48  ;;  %v816_v8 = vadd.f32 %v1387_v2, %v134_v49  ;;  %v137_v29 = vld [vmem:[#allocation2 + $0x190] sm:$0xff] }
  0xf7   :  { %v940_v6 = vld [vmem:[#allocation2 + $0x140] sm:$0xff]  ;;  %879 = vst.msk [vmem:[#allocation2 + $0x170] sm:$0xff] %vm22_vm0, %v815_v53  ;;  %1175 = vst.msk [vmem:[%s2193_s4 + $0x28] sm:$0xff] %vm22_vm0, %v1111_v58  ;;  %v979_v12 = vmul.f32 %v1744_v62, %v908_v5  ;;  %v911_v14 = vld [vmem:[#allocation2 + $0x58] sm:$0xff]  ;;  %v782_v16 = vadd.f32 %v565_v9, %v100_v56  ;;  %v814_v17 = vadd.f32 %v693_v11, %v132_v57 }
  0xf8   :  { %1207 = vst.msk [vmem:[%s2193_s4 + $0x128] sm:$0xff] %vm22_vm0, %v1143_v59  ;;  %v1011_v13 = vmul.f32 %v1744_v62, %v940_v6  ;;  %v943_v15 = vld [vmem:[#allocation2 + $0x158] sm:$0xff]  ;;  %845 = vst.msk [vmem:[#allocation2 + $0x60] sm:$0xff] %vm22_vm0, %v781_v63  ;;  %v1052_v18 = vadd.f32 %v1749_v10, %v981_v3  ;;  %v1084_v19 = vadd.f32 %v1749_v10, %v1013_v4  ;;  %v909_v22 = vld [vmem:[#allocation2 + $0x48] sm:$0xff] }
  0xf9   :  { %877 = vst.msk [vmem:[#allocation2 + $0x160] sm:$0xff] %vm22_vm0, %v813_v0  ;;  %v982_v20 = vmul.f32 %v1744_v62, %v911_v14  ;;  %v1014_v21 = vmul.f32 %v1744_v62, %v943_v15  ;;  %v941_v23 = vld [vmem:[#allocation2 + $0x148] sm:$0xff]  ;;  %848 = vst.msk [vmem:[#allocation2 + $0x78] sm:$0xff] %vm22_vm0, %v784_v7  ;;  %v1050_v24 = vadd.f32 %v1749_v10, %v979_v12  ;;  %v135_v35 = vld [vmem:[#allocation2 + $0x180] sm:$0xff]  ;;  %v1358_v40 = vpop.f32.mrb[16].mxu0  ;;  %v1390_v41 = vpop.f32.mrb[16].mxu1 }
  0xfa   :  { %880 = vst.msk [vmem:[#allocation2 + $0x178] sm:$0xff] %vm22_vm0, %v816_v8  ;;  %v1082_v25 = vadd.f32 %v1749_v10, %v1011_v13  ;;  %v980_v26 = vmul.f32 %v1744_v62, %v909_v22  ;;  %v1012_v27 = vmul.f32 %v1744_v62, %v941_v23  ;;  %846 = vst.msk [vmem:[#allocation2 + $0x68] sm:$0xff] %vm22_vm0, %v782_v16  ;;  %v1116_v30 = vmax.f32 %v1052_v18, 0.0  ;;  %v106_v42 = vld [vmem:[#allocation2 + $0x98] sm:$0xff]  ;;  %v578_v48 = vpop.f32.mrb[17].mxu0  ;;  %v706_v49 = vpop.f32.mrb[17].mxu1 }
  0xfb   :  { %878 = vst.msk [vmem:[#allocation2 + $0x168] sm:$0xff] %vm22_vm0, %v814_v17  ;;  %v1148_v31 = vmax.f32 %v1084_v19, 0.0  ;;  %v1053_v32 = vadd.f32 %v1749_v10, %v982_v20  ;;  %v1085_v33 = vadd.f32 %v1749_v10, %v1014_v21  ;;  %v1114_v36 = vmax.f32 %v1050_v24, 0.0  ;;  %v138_v43 = vld [vmem:[#allocation2 + $0x198] sm:$0xff]  ;;  %v104_v50 = vld [vmem:[#allocation2 + $0x88] sm:$0xff]  ;;  %v1359_v58 = vpop.f32.mrb[18].mxu0 }
  0xfc   :  { %v1146_v37 = vmax.f32 %v1082_v25, 0.0  ;;  %v1051_v38 = vadd.f32 %v1749_v10, %v980_v26  ;;  %v1083_v39 = vadd.f32 %v1749_v10, %v1012_v27  ;;  %1180 = vst.msk [vmem:[%s2193_s4 + $0x50] sm:$0xff] %vm22_vm0, %v1116_v30  ;;  %v787_v46 = vadd.f32 %v1358_v40, %v105_v28  ;;  %v136_v51 = vld [vmem:[#allocation2 + $0x188] sm:$0xff]  ;;  %v914_v54 = vld [vmem:[#allocation2 + $0x70] sm:$0xff]  ;;  %v1391_v59 = vpop.f32.mrb[18].mxu1  ;;  %v581_v3 = vpop.f32.mrb[19].mxu0 }
  0xfd   :  { %1212 = vst.msk [vmem:[%s2193_s4 + $0x150] sm:$0xff] %vm22_vm0, %v1148_v31  ;;  %v1117_v44 = vmax.f32 %v1053_v32, 0.0  ;;  %v1149_v45 = vmax.f32 %v1085_v33, 0.0  ;;  %v819_v47 = vadd.f32 %v1390_v41, %v137_v29  ;;  %1178 = vst.msk [vmem:[%s2193_s4 + $0x40] sm:$0xff] %vm22_vm0, %v1114_v36  ;;  %v785_v56 = vadd.f32 %v578_v48, %v103_v34  ;;  %v709_v4 = vpop.f32.mrb[19].mxu1  ;;  %v109_v22 = vld [vmem:[#allocation2 + $0xb0] sm:$0xff] }
  0xfe   :  { %1210 = vst.msk [vmem:[%s2193_s4 + $0x140] sm:$0xff] %vm22_vm0, %v1146_v37  ;;  %v1115_v52 = vmax.f32 %v1051_v38, 0.0  ;;  %v1147_v53 = vmax.f32 %v1083_v39, 0.0  ;;  %v946_v55 = vld [vmem:[#allocation2 + $0x170] sm:$0xff]  ;;  %v817_v57 = vadd.f32 %v706_v49, %v135_v35  ;;  %v985_v60 = vmul.f32 %v1744_v62, %v914_v54  ;;  %851 = vst.msk [vmem:[#allocation2 + $0x90] sm:$0xff] %vm22_vm0, %v787_v46  ;;  %v107_v28 = vld [vmem:[#allocation2 + $0xa0] sm:$0xff] }
  0xff   :  { %1181 = vst.msk [vmem:[%s2193_s4 + $0x58] sm:$0xff] %vm22_vm0, %v1117_v44  ;;  %1213 = vst.msk [vmem:[%s2193_s4 + $0x158] sm:$0xff] %vm22_vm0, %v1149_v45  ;;  %v1017_v61 = vmul.f32 %v1744_v62, %v946_v55  ;;  %v912_v63 = vld [vmem:[#allocation2 + $0x60] sm:$0xff]  ;;  %v788_v1 = vadd.f32 %v1359_v58, %v106_v42  ;;  %v820_v2 = vadd.f32 %v1391_v59, %v138_v43  ;;  %v141_v23 = vld [vmem:[#allocation2 + $0x1b0] sm:$0xff] }
 0x100   :  { %v944_v0 = vld [vmem:[#allocation2 + $0x160] sm:$0xff]  ;;  %883 = vst.msk [vmem:[#allocation2 + $0x190] sm:$0xff] %vm22_vm0, %v819_v47  ;;  %1179 = vst.msk [vmem:[%s2193_s4 + $0x48] sm:$0xff] %vm22_vm0, %v1115_v52  ;;  %v983_v5 = vmul.f32 %v1744_v62, %v912_v63  ;;  %v915_v7 = vld [vmem:[#allocation2 + $0x78] sm:$0xff]  ;;  %v786_v9 = vadd.f32 %v581_v3, %v104_v50  ;;  %v818_v11 = vadd.f32 %v709_v4, %v136_v51 }
 0x101   :  { %1211 = vst.msk [vmem:[%s2193_s4 + $0x148] sm:$0xff] %vm22_vm0, %v1147_v53  ;;  %v1015_v6 = vmul.f32 %v1744_v62, %v944_v0  ;;  %v947_v8 = vld [vmem:[#allocation2 + $0x178] sm:$0xff]  ;;  %849 = vst.msk [vmem:[#allocation2 + $0x80] sm:$0xff] %vm22_vm0, %v785_v56  ;;  %v1056_v12 = vadd.f32 %v1749_v10, %v985_v60  ;;  %v1088_v13 = vadd.f32 %v1749_v10, %v1017_v61  ;;  %v913_v16 = vld [vmem:[#allocation2 + $0x68] sm:$0xff]  ;;  %v1362_v34 = vpop.f32.mrb[20].mxu0  ;;  %v1394_v35 = vpop.f32.mrb[20].mxu1 }
 0x102   :  { %881 = vst.msk [vmem:[#allocation2 + $0x180] sm:$0xff] %vm22_vm0, %v817_v57  ;;  %v986_v14 = vmul.f32 %v1744_v62, %v915_v7  ;;  %v1018_v15 = vmul.f32 %v1744_v62, %v947_v8  ;;  %v945_v17 = vld [vmem:[#allocation2 + $0x168] sm:$0xff]  ;;  %852 = vst.msk [vmem:[#allocation2 + $0x98] sm:$0xff] %vm22_vm0, %v788_v1  ;;  %v1054_v18 = vadd.f32 %v1749_v10, %v983_v5  ;;  %v139_v29 = vld [vmem:[#allocation2 + $0x1a0] sm:$0xff]  ;;  %v594_v42 = vpop.f32.mrb[21].mxu0  ;;  %v722_v43 = vpop.f32.mrb[21].mxu1 }
 0x103   :  { %884 = vst.msk [vmem:[#allocation2 + $0x198] sm:$0xff] %vm22_vm0, %v820_v2  ;;  %v1086_v19 = vadd.f32 %v1749_v10, %v1015_v6  ;;  %v984_v20 = vmul.f32 %v1744_v62, %v913_v16  ;;  %v1016_v21 = vmul.f32 %v1744_v62, %v945_v17  ;;  %850 = vst.msk [vmem:[#allocation2 + $0x88] sm:$0xff] %vm22_vm0, %v786_v9  ;;  %v1120_v24 = vmax.f32 %v1056_v12, 0.0  ;;  %v110_v36 = vld [vmem:[#allocation2 + $0xb8] sm:$0xff]  ;;  %v108_v44 = vld [vmem:[#allocation2 + $0xa8] sm:$0xff]  ;;  %v1363_v52 = vpop.f32.mrb[22].mxu0 }
 0x104   :  { %882 = vst.msk [vmem:[#allocation2 + $0x188] sm:$0xff] %vm22_vm0, %v818_v11  ;;  %v1152_v25 = vmax.f32 %v1088_v13, 0.0  ;;  %v1057_v26 = vadd.f32 %v1749_v10, %v986_v14  ;;  %v1089_v27 = vadd.f32 %v1749_v10, %v1018_v15  ;;  %v1118_v30 = vmax.f32 %v1054_v18, 0.0  ;;  %v142_v37 = vld [vmem:[#allocation2 + $0x1b8] sm:$0xff]  ;;  %v140_v45 = vld [vmem:[#allocation2 + $0x1a8] sm:$0xff]  ;;  %v1395_v53 = vpop.f32.mrb[22].mxu1 }
 0x105   :  { %v1150_v31 = vmax.f32 %v1086_v19, 0.0  ;;  %v1055_v32 = vadd.f32 %v1749_v10, %v984_v20  ;;  %v1087_v33 = vadd.f32 %v1749_v10, %v1016_v21  ;;  %1184 = vst.msk [vmem:[%s2193_s4 + $0x70] sm:$0xff] %vm22_vm0, %v1120_v24  ;;  %v791_v40 = vadd.f32 %v1362_v34, %v109_v22  ;;  %v918_v48 = vld [vmem:[#allocation2 + $0x90] sm:$0xff]  ;;  %v597_v60 = vpop.f32.mrb[23].mxu0  ;;  %v725_v61 = vpop.f32.mrb[23].mxu1  ;;  %v111_v22 = vld [vmem:[#allocation2 + $0xc0] sm:$0xff] }
 0x106   :  { %1216 = vst.msk [vmem:[%s2193_s4 + $0x170] sm:$0xff] %vm22_vm0, %v1152_v25  ;;  %v1121_v38 = vmax.f32 %v1057_v26, 0.0  ;;  %v1153_v39 = vmax.f32 %v1089_v27, 0.0  ;;  %v823_v41 = vadd.f32 %v1394_v35, %v141_v23  ;;  %1182 = vst.msk [vmem:[%s2193_s4 + $0x60] sm:$0xff] %vm22_vm0, %v1118_v30  ;;  %v789_v50 = vadd.f32 %v594_v42, %v107_v28  ;;  %v113_v16 = vld [vmem:[#allocation2 + $0xd0] sm:$0xff]  ;;  %v143_v23 = vld [vmem:[#allocation2 + $0x1c0] sm:$0xff] }
 0x107   :  { %1214 = vst.msk [vmem:[%s2193_s4 + $0x160] sm:$0xff] %vm22_vm0, %v1150_v31  ;;  %v1119_v46 = vmax.f32 %v1055_v32, 0.0  ;;  %v1151_v47 = vmax.f32 %v1087_v33, 0.0  ;;  %v950_v49 = vld [vmem:[#allocation2 + $0x190] sm:$0xff]  ;;  %v821_v51 = vadd.f32 %v722_v43, %v139_v29  ;;  %v989_v54 = vmul.f32 %v1744_v62, %v918_v48  ;;  %855 = vst.msk [vmem:[#allocation2 + $0xb0] sm:$0xff] %vm22_vm0, %v791_v40  ;;  %v114_v30 = vld [vmem:[#allocation2 + $0xd8] sm:$0xff] }
 0x108   :  { %1185 = vst.msk [vmem:[%s2193_s4 + $0x78] sm:$0xff] %vm22_vm0, %v1121_v38  ;;  %1217 = vst.msk [vmem:[%s2193_s4 + $0x178] sm:$0xff] %vm22_vm0, %v1153_v39  ;;  %v1021_v55 = vmul.f32 %v1744_v62, %v950_v49  ;;  %v916_v56 = vld [vmem:[#allocation2 + $0x80] sm:$0xff]  ;;  %v792_v58 = vadd.f32 %v1363_v52, %v110_v36  ;;  %v824_v59 = vadd.f32 %v1395_v53, %v142_v37  ;;  %v145_v17 = vld [vmem:[#allocation2 + $0x1d0] sm:$0xff] }
 0x109   :  { %v948_v57 = vld [vmem:[#allocation2 + $0x180] sm:$0xff]  ;;  %887 = vst.msk [vmem:[#allocation2 + $0x1b0] sm:$0xff] %vm22_vm0, %v823_v41  ;;  %1183 = vst.msk [vmem:[%s2193_s4 + $0x68] sm:$0xff] %vm22_vm0, %v1119_v46  ;;  %v987_v63 = vmul.f32 %v1744_v62, %v916_v56  ;;  %v919_v1 = vld [vmem:[#allocation2 + $0x98] sm:$0xff]  ;;  %v790_v3 = vadd.f32 %v597_v60, %v108_v44  ;;  %v822_v4 = vadd.f32 %v725_v61, %v140_v45  ;;  %v1366_v28 = vpop.f32.mrb[24].mxu0  ;;  %v1398_v29 = vpop.f32.mrb[24].mxu1 }
 0x10a   :  { %1215 = vst.msk [vmem:[%s2193_s4 + $0x168] sm:$0xff] %vm22_vm0, %v1151_v47  ;;  %v1019_v0 = vmul.f32 %v1744_v62, %v948_v57  ;;  %v951_v2 = vld [vmem:[#allocation2 + $0x198] sm:$0xff]  ;;  %853 = vst.msk [vmem:[#allocation2 + $0xa0] sm:$0xff] %vm22_vm0, %v789_v50  ;;  %v1060_v5 = vadd.f32 %v1749_v10, %v989_v54  ;;  %v1092_v6 = vadd.f32 %v1749_v10, %v1021_v55  ;;  %v917_v9 = vld [vmem:[#allocation2 + $0x88] sm:$0xff]  ;;  %v610_v36 = vpop.f32.mrb[25].mxu0  ;;  %v738_v37 = vpop.f32.mrb[25].mxu1 }
 0x10b   :  { %885 = vst.msk [vmem:[#allocation2 + $0x1a0] sm:$0xff] %vm22_vm0, %v821_v51  ;;  %v990_v7 = vmul.f32 %v1744_v62, %v919_v1  ;;  %v1022_v8 = vmul.f32 %v1744_v62, %v951_v2  ;;  %v949_v11 = vld [vmem:[#allocation2 + $0x188] sm:$0xff]  ;;  %856 = vst.msk [vmem:[#allocation2 + $0xb8] sm:$0xff] %vm22_vm0, %v792_v58  ;;  %v1058_v12 = vadd.f32 %v1749_v10, %v987_v63  ;;  %v146_v31 = vld [vmem:[#allocation2 + $0x1d8] sm:$0xff]  ;;  %v1367_v46 = vpop.f32.mrb[26].mxu0  ;;  %v1399_v47 = vpop.f32.mrb[26].mxu1 }
 0x10c   :  { %888 = vst.msk [vmem:[#allocation2 + $0x1b8] sm:$0xff] %vm22_vm0, %v824_v59  ;;  %v1090_v13 = vadd.f32 %v1749_v10, %v1019_v0  ;;  %v988_v14 = vmul.f32 %v1744_v62, %v917_v9  ;;  %v1020_v15 = vmul.f32 %v1744_v62, %v949_v11  ;;  %854 = vst.msk [vmem:[#allocation2 + $0xa8] sm:$0xff] %vm22_vm0, %v790_v3  ;;  %v1124_v18 = vmax.f32 %v1060_v5, 0.0  ;;  %v112_v38 = vld [vmem:[#allocation2 + $0xc8] sm:$0xff]  ;;  %v613_v54 = vpop.f32.mrb[27].mxu0  ;;  %v741_v55 = vpop.f32.mrb[27].mxu1 }
 0x10d   :  { %886 = vst.msk [vmem:[#allocation2 + $0x1a8] sm:$0xff] %vm22_vm0, %v822_v4  ;;  %v1156_v19 = vmax.f32 %v1092_v6, 0.0  ;;  %v1061_v20 = vadd.f32 %v1749_v10, %v990_v7  ;;  %v1093_v21 = vadd.f32 %v1749_v10, %v1022_v8  ;;  %v1122_v24 = vmax.f32 %v1058_v12, 0.0  ;;  %v144_v39 = vld [vmem:[#allocation2 + $0x1c8] sm:$0xff]  ;;  %v117_v9 = vld [vmem:[#allocation2 + $0xf0] sm:$0xff] }
 0x10e   :  { %v1154_v25 = vmax.f32 %v1090_v13, 0.0  ;;  %v1059_v26 = vadd.f32 %v1749_v10, %v988_v14  ;;  %v1091_v27 = vadd.f32 %v1749_v10, %v1020_v15  ;;  %1188 = vst.msk [vmem:[%s2193_s4 + $0x90] sm:$0xff] %vm22_vm0, %v1124_v18  ;;  %v795_v34 = vadd.f32 %v1366_v28, %v113_v16  ;;  %v922_v42 = vld [vmem:[#allocation2 + $0xb0] sm:$0xff]  ;;  %v115_v16 = vld [vmem:[#allocation2 + $0xe0] sm:$0xff] }
 0x10f   :  { %1220 = vst.msk [vmem:[%s2193_s4 + $0x190] sm:$0xff] %vm22_vm0, %v1156_v19  ;;  %v1125_v32 = vmax.f32 %v1061_v20, 0.0  ;;  %v1157_v33 = vmax.f32 %v1093_v21, 0.0  ;;  %v827_v35 = vadd.f32 %v1398_v29, %v145_v17  ;;  %1186 = vst.msk [vmem:[%s2193_s4 + $0x80] sm:$0xff] %vm22_vm0, %v1122_v24  ;;  %v793_v44 = vadd.f32 %v610_v36, %v111_v22  ;;  %v149_v11 = vld [vmem:[#allocation2 + $0x1f0] sm:$0xff]  ;;  %v147_v17 = vld [vmem:[#allocation2 + $0x1e0] sm:$0xff] }
 0x110   :  { %1218 = vst.msk [vmem:[%s2193_s4 + $0x180] sm:$0xff] %vm22_vm0, %v1154_v25  ;;  %v1123_v40 = vmax.f32 %v1059_v26, 0.0  ;;  %v1155_v41 = vmax.f32 %v1091_v27, 0.0  ;;  %v954_v43 = vld [vmem:[#allocation2 + $0x1b0] sm:$0xff]  ;;  %v825_v45 = vadd.f32 %v738_v37, %v143_v23  ;;  %v993_v48 = vmul.f32 %v1744_v62, %v922_v42  ;;  %859 = vst.msk [vmem:[#allocation2 + $0xd0] sm:$0xff] %vm22_vm0, %v795_v34  ;;  %v118_v24 = vld [vmem:[#allocation2 + $0xf8] sm:$0xff] }
 0x111   :  { %1189 = vst.msk [vmem:[%s2193_s4 + $0x98] sm:$0xff] %vm22_vm0, %v1125_v32  ;;  %1221 = vst.msk [vmem:[%s2193_s4 + $0x198] sm:$0xff] %vm22_vm0, %v1157_v33  ;;  %v1025_v49 = vmul.f32 %v1744_v62, %v954_v43  ;;  %v920_v50 = vld [vmem:[#allocation2 + $0xa0] sm:$0xff]  ;;  %v796_v52 = vadd.f32 %v1367_v46, %v114_v30  ;;  %v828_v53 = vadd.f32 %v1399_v47, %v146_v31  ;;  %v1370_v22 = vpop.f32.mrb[28].mxu0  ;;  %v1402_v23 = vpop.f32.mrb[28].mxu1  ;;  %v150_v25 = vld [vmem:[#allocation2 + $0x1f8] sm:$0xff] }
 0x112   :  { %v952_v51 = vld [vmem:[#allocation2 + $0x1a0] sm:$0xff]  ;;  %891 = vst.msk [vmem:[#allocation2 + $0x1d0] sm:$0xff] %vm22_vm0, %v827_v35  ;;  %1187 = vst.msk [vmem:[%s2193_s4 + $0x88] sm:$0xff] %vm22_vm0, %v1123_v40  ;;  %v991_v56 = vmul.f32 %v1744_v62, %v920_v50  ;;  %v923_v58 = vld [vmem:[#allocation2 + $0xb8] sm:$0xff]  ;;  %v794_v60 = vadd.f32 %v613_v54, %v112_v38  ;;  %v826_v61 = vadd.f32 %v741_v55, %v144_v39  ;;  %v626_v30 = vpop.f32.mrb[29].mxu0  ;;  %v754_v31 = vpop.f32.mrb[29].mxu1 }
 0x113   :  { %1219 = vst.msk [vmem:[%s2193_s4 + $0x188] sm:$0xff] %vm22_vm0, %v1155_v41  ;;  %v1023_v57 = vmul.f32 %v1744_v62, %v952_v51  ;;  %v955_v59 = vld [vmem:[#allocation2 + $0x1b8] sm:$0xff]  ;;  %857 = vst.msk [vmem:[#allocation2 + $0xc0] sm:$0xff] %vm22_vm0, %v793_v44  ;;  %v1064_v63 = vadd.f32 %v1749_v10, %v993_v48  ;;  %v1096_v0 = vadd.f32 %v1749_v10, %v1025_v49  ;;  %v921_v3 = vld [vmem:[#allocation2 + $0xa8] sm:$0xff]  ;;  %v1371_v40 = vpop.f32.mrb[30].mxu0  ;;  %v1403_v41 = vpop.f32.mrb[30].mxu1 }
 0x114   :  { %889 = vst.msk [vmem:[#allocation2 + $0x1c0] sm:$0xff] %vm22_vm0, %v825_v45  ;;  %v994_v1 = vmul.f32 %v1744_v62, %v923_v58  ;;  %v1026_v2 = vmul.f32 %v1744_v62, %v955_v59  ;;  %v953_v4 = vld [vmem:[#allocation2 + $0x1a8] sm:$0xff]  ;;  %860 = vst.msk [vmem:[#allocation2 + $0xd8] sm:$0xff] %vm22_vm0, %v796_v52  ;;  %v1062_v5 = vadd.f32 %v1749_v10, %v991_v56  ;;  %v629_v48 = vpop.f32.mrb[31].mxu0  ;;  %v757_v49 = vpop.f32.mrb[31].mxu1 }
 0x115   :  { %892 = vst.msk [vmem:[#allocation2 + $0x1d8] sm:$0xff] %vm22_vm0, %v828_v53  ;;  %v1094_v6 = vadd.f32 %v1749_v10, %v1023_v57  ;;  %v992_v7 = vmul.f32 %v1744_v62, %v921_v3  ;;  %v1024_v8 = vmul.f32 %v1744_v62, %v953_v4  ;;  %858 = vst.msk [vmem:[#allocation2 + $0xc8] sm:$0xff] %vm22_vm0, %v794_v60  ;;  %v1128_v12 = vmax.f32 %v1064_v63, 0.0  ;;  %v116_v32 = vld [vmem:[#allocation2 + $0xe8] sm:$0xff] }
 0x116   :  { %890 = vst.msk [vmem:[#allocation2 + $0x1c8] sm:$0xff] %vm22_vm0, %v826_v61  ;;  %v1160_v13 = vmax.f32 %v1096_v0, 0.0  ;;  %v1065_v14 = vadd.f32 %v1749_v10, %v994_v1  ;;  %v1097_v15 = vadd.f32 %v1749_v10, %v1026_v2  ;;  %v1126_v18 = vmax.f32 %v1062_v5, 0.0  ;;  %v148_v33 = vld [vmem:[#allocation2 + $0x1e8] sm:$0xff] }
 0x117   :  { %v1158_v19 = vmax.f32 %v1094_v6, 0.0  ;;  %v1063_v20 = vadd.f32 %v1749_v10, %v992_v7  ;;  %v1095_v21 = vadd.f32 %v1749_v10, %v1024_v8  ;;  %1192 = vst.msk [vmem:[%s2193_s4 + $0xb0] sm:$0xff] %vm22_vm0, %v1128_v12  ;;  %v799_v28 = vadd.f32 %v1370_v22, %v117_v9  ;;  %v926_v36 = vld [vmem:[#allocation2 + $0xd0] sm:$0xff] }
 0x118   :  { %1224 = vst.msk [vmem:[%s2193_s4 + $0x1b0] sm:$0xff] %vm22_vm0, %v1160_v13  ;;  %v1129_v26 = vmax.f32 %v1065_v14, 0.0  ;;  %v1161_v27 = vmax.f32 %v1097_v15, 0.0  ;;  %v831_v29 = vadd.f32 %v1402_v23, %v149_v11  ;;  %1190 = vst.msk [vmem:[%s2193_s4 + $0xa0] sm:$0xff] %vm22_vm0, %v1126_v18  ;;  %v797_v38 = vadd.f32 %v626_v30, %v115_v16 }
 0x119   :  { %1222 = vst.msk [vmem:[%s2193_s4 + $0x1a0] sm:$0xff] %vm22_vm0, %v1158_v19  ;;  %v1127_v34 = vmax.f32 %v1063_v20, 0.0  ;;  %v1159_v35 = vmax.f32 %v1095_v21, 0.0  ;;  %v958_v37 = vld [vmem:[#allocation2 + $0x1d0] sm:$0xff]  ;;  %v829_v39 = vadd.f32 %v754_v31, %v147_v17  ;;  %v997_v42 = vmul.f32 %v1744_v62, %v926_v36  ;;  %863 = vst.msk [vmem:[#allocation2 + $0xf0] sm:$0xff] %vm22_vm0, %v799_v28 }
 0x11a   :  { %1193 = vst.msk [vmem:[%s2193_s4 + $0xb8] sm:$0xff] %vm22_vm0, %v1129_v26  ;;  %1225 = vst.msk [vmem:[%s2193_s4 + $0x1b8] sm:$0xff] %vm22_vm0, %v1161_v27  ;;  %v1029_v43 = vmul.f32 %v1744_v62, %v958_v37  ;;  %v924_v44 = vld [vmem:[#allocation2 + $0xc0] sm:$0xff]  ;;  %v800_v46 = vadd.f32 %v1371_v40, %v118_v24  ;;  %v832_v47 = vadd.f32 %v1403_v41, %v150_v25 }
 0x11b   :  { %v956_v45 = vld [vmem:[#allocation2 + $0x1c0] sm:$0xff]  ;;  %895 = vst.msk [vmem:[#allocation2 + $0x1f0] sm:$0xff] %vm22_vm0, %v831_v29  ;;  %1191 = vst.msk [vmem:[%s2193_s4 + $0xa8] sm:$0xff] %vm22_vm0, %v1127_v34  ;;  %v995_v50 = vmul.f32 %v1744_v62, %v924_v44  ;;  %v927_v52 = vld [vmem:[#allocation2 + $0xd8] sm:$0xff]  ;;  %v798_v54 = vadd.f32 %v629_v48, %v116_v32  ;;  %v830_v55 = vadd.f32 %v757_v49, %v148_v33 }
 0x11c   :  { %1223 = vst.msk [vmem:[%s2193_s4 + $0x1a8] sm:$0xff] %vm22_vm0, %v1159_v35  ;;  %v1027_v51 = vmul.f32 %v1744_v62, %v956_v45  ;;  %v959_v53 = vld [vmem:[#allocation2 + $0x1d8] sm:$0xff]  ;;  %861 = vst.msk [vmem:[#allocation2 + $0xe0] sm:$0xff] %vm22_vm0, %v797_v38  ;;  %v1068_v56 = vadd.f32 %v1749_v10, %v997_v42  ;;  %v1100_v57 = vadd.f32 %v1749_v10, %v1029_v43  ;;  %v925_v60 = vld [vmem:[#allocation2 + $0xc8] sm:$0xff] }
 0x11d   :  { %893 = vst.msk [vmem:[#allocation2 + $0x1e0] sm:$0xff] %vm22_vm0, %v829_v39  ;;  %v998_v58 = vmul.f32 %v1744_v62, %v927_v52  ;;  %v1030_v59 = vmul.f32 %v1744_v62, %v959_v53  ;;  %v957_v61 = vld [vmem:[#allocation2 + $0x1c8] sm:$0xff]  ;;  %864 = vst.msk [vmem:[#allocation2 + $0xf8] sm:$0xff] %vm22_vm0, %v800_v46  ;;  %v1066_v63 = vadd.f32 %v1749_v10, %v995_v50  ;;  %v1440_v28 = vld [vmem:[%s2191_s2] ss:$0 sm:$0xff] }
 0x11e   :  { %896 = vst.msk [vmem:[#allocation2 + $0x1f8] sm:$0xff] %vm22_vm0, %v832_v47  ;;  %v1098_v0 = vadd.f32 %v1749_v10, %v1027_v51  ;;  %v996_v1 = vmul.f32 %v1744_v62, %v925_v60  ;;  %v1028_v2 = vmul.f32 %v1744_v62, %v957_v61  ;;  %862 = vst.msk [vmem:[#allocation2 + $0xe8] sm:$0xff] %vm22_vm0, %v798_v54  ;;  %v1132_v3 = vmax.f32 %v1068_v56, 0.0  ;;  %v1441_v38 = vld [vmem:[%s2192_s3] ss:$0 sm:$0xff] }
 0x11f   :  { %894 = vst.msk [vmem:[#allocation2 + $0x1e8] sm:$0xff] %vm22_vm0, %v830_v55  ;;  %v1164_v4 = vmax.f32 %v1100_v57, 0.0  ;;  %v1069_v5 = vadd.f32 %v1749_v10, %v998_v58  ;;  %v1101_v6 = vadd.f32 %v1749_v10, %v1030_v59  ;;  %v1130_v7 = vmax.f32 %v1066_v63, 0.0 }
 0x120   :  { %v1162_v8 = vmax.f32 %v1098_v0, 0.0  ;;  %v1067_v9 = vadd.f32 %v1749_v10, %v996_v1  ;;  %v1099_v11 = vadd.f32 %v1749_v10, %v1028_v2  ;;  %1196 = vst.msk [vmem:[%s2193_s4 + $0xd0] sm:$0xff] %vm22_vm0, %v1132_v3  ;;  %v930_v16 = vld [vmem:[#allocation2 + $0xf0] sm:$0xff] }
 0x121   :  { %1228 = vst.msk [vmem:[%s2193_s4 + $0x1d0] sm:$0xff] %vm22_vm0, %v1164_v4  ;;  %v1133_v12 = vmax.f32 %v1069_v5, 0.0  ;;  %v1165_v13 = vmax.f32 %v1101_v6, 0.0  ;;  %1194 = vst.msk [vmem:[%s2193_s4 + $0xc0] sm:$0xff] %vm22_vm0, %v1130_v7  ;;  %v1001_v18 = vmul.f32 %v1744_v62, %v930_v16 }
 0x122   :  { %1226 = vst.msk [vmem:[%s2193_s4 + $0x1c0] sm:$0xff] %vm22_vm0, %v1162_v8  ;;  %v1131_v14 = vmax.f32 %v1067_v9, 0.0  ;;  %v1163_v15 = vmax.f32 %v1099_v11, 0.0  ;;  %v962_v17 = vld [vmem:[#allocation2 + $0x1f0] sm:$0xff] }
 0x123   :  { %1197 = vst.msk [vmem:[%s2193_s4 + $0xd8] sm:$0xff] %vm22_vm0, %v1133_v12  ;;  %1229 = vst.msk [vmem:[%s2193_s4 + $0x1d8] sm:$0xff] %vm22_vm0, %v1165_v13  ;;  %v1033_v19 = vmul.f32 %v1744_v62, %v962_v17  ;;  %v928_v20 = vld [vmem:[#allocation2 + $0xe0] sm:$0xff]  ;;  %v1072_v26 = vadd.f32 %v1749_v10, %v1001_v18 }
 0x124   :  { %v960_v21 = vld [vmem:[#allocation2 + $0x1e0] sm:$0xff]  ;;  %1195 = vst.msk [vmem:[%s2193_s4 + $0xc8] sm:$0xff] %vm22_vm0, %v1131_v14  ;;  %1227 = vst.msk [vmem:[%s2193_s4 + $0x1c8] sm:$0xff] %vm22_vm0, %v1163_v15  ;;  %v999_v22 = vmul.f32 %v1744_v62, %v928_v20  ;;  %v931_v24 = vld [vmem:[#allocation2 + $0xf8] sm:$0xff] }
 0x125   :  { %v1031_v23 = vmul.f32 %v1744_v62, %v960_v21  ;;  %v963_v25 = vld [vmem:[#allocation2 + $0x1f8] sm:$0xff]  ;;  %v1104_v27 = vadd.f32 %v1749_v10, %v1033_v19  ;;  %v1002_v29 = vmul.f32 %v1440_v28, %v931_v24  ;;  %v929_v31 = vld [vmem:[#allocation2 + $0xe8] sm:$0xff]  ;;  %v1136_v36 = vmax.f32 %v1072_v26, 0.0 }
 0x126   :  { %v1034_v30 = vmul.f32 %v1440_v28, %v963_v25  ;;  %v961_v32 = vld [vmem:[#allocation2 + $0x1e8] sm:$0xff]  ;;  %v1070_v33 = vadd.f32 %v1749_v10, %v999_v22  ;;  %v1000_v35 = vmul.f32 %v1440_v28, %v929_v31 }
 0x127   :  { %v1102_v34 = vadd.f32 %v1749_v10, %v1031_v23  ;;  %v1032_v62 = vmul.f32 %v1440_v28, %v961_v32  ;;  %v1168_v37 = vmax.f32 %v1104_v27, 0.0  ;;  %v1073_v39 = vadd.f32 %v1441_v38, %v1002_v29  ;;  %1200 = vst.msk [vmem:[%s2193_s4 + $0xf0] sm:$0xff] %vm22_vm0, %v1136_v36 }
 0x128   :  { %v1105_v40 = vadd.f32 %v1441_v38, %v1034_v30  ;;  %v1134_v41 = vmax.f32 %v1070_v33, 0.0  ;;  %v1071_v43 = vadd.f32 %v1441_v38, %v1000_v35 }
 0x129   :  { %v1166_v42 = vmax.f32 %v1102_v34, 0.0  ;;  %v1103_v44 = vadd.f32 %v1441_v38, %v1032_v62  ;;  %1232 = vst.msk [vmem:[%s2193_s4 + $0x1f0] sm:$0xff] %vm22_vm0, %v1168_v37  ;;  %v1137_v10 = vmax.f32 %v1073_v39, 0.0 }
 0x12a   :  { %v1169_v45 = vmax.f32 %v1105_v40, 0.0  ;;  %1198 = vst.msk [vmem:[%s2193_s4 + $0xe0] sm:$0xff] %vm22_vm0, %v1134_v41  ;;  %v1135_v46 = vmax.f32 %v1071_v43, 0.0 }
 0x12b   :  { %1230 = vst.msk [vmem:[%s2193_s4 + $0x1e0] sm:$0xff] %vm22_vm0, %v1166_v42  ;;  %v1167_v47 = vmax.f32 %v1103_v44, 0.0  ;;  %1201 = vst.msk [vmem:[%s2193_s4 + $0xf8] sm:$0xff] %vm22_vm0, %v1137_v10 }
 0x12c   :  { %1233 = vst.msk [vmem:[%s2193_s4 + $0x1f8] sm:$0xff] %vm22_vm0, %v1169_v45  ;;  %1199 = vst.msk [vmem:[%s2193_s4 + $0xe8] sm:$0xff] %vm22_vm0, %v1135_v46 }
 0x12d   :  { %1231 = vst.msk [vmem:[%s2193_s4 + $0x1e8] sm:$0xff] %vm22_vm0, %v1167_v47 }

// kernel: forward.45
= control target key start
LH: loop header
LB: loop body
LE: loop exit
PB: predicated region body
PF: predicated region fallthrough
CT: control target
= control target key end

     0   :  { %vm22_vm0 = vcmask 261120   ;;  %v417_v1 = vmov 0.0   ;;  %vm119_vm1 = vcmask 130048   ;;  %s616_s1 = inlined_call_operand.vmem [shape: bf16[16,32], index: 1, kind: input, shape index: {}]   ;;  %s617_s0 = inlined_call_operand.vmem [shape: bf16[128,16], index: 0, kind: input, shape index: {}]   ;;  %s618_s2 = inlined_call_operand.vmem [shape: f32[1,32], index: 2, kind: input, shape index: {}]   ;;  %s619_s3 = inlined_call_operand.vmem [shape: f32[1,32], index: 3, kind: input, shape index: {}]   ;;  %s620_s4 = inlined_call_operand.vmem [shape: f32[128,32], index: 4, kind: output, shape index: {}]  }
   0x1   :  { %v408_v0 = vld [vmem:[%s616_s1] sm:$0xff]   ;;  %25 = vst.msk [vmem:[#allocation2 + $0x10] sm:$0xff] %vm22_vm0, %v417_v1  ;;  %23 = vst.msk [vmem:[#allocation2] sm:$0xff] %vm22_vm0, %v417_v1  ;;  %v411_v4 = vld [vmem:[%s617_s0 + $0x8] sm:$0xff]  }
   0x2   :  { %24 = vst.msk [vmem:[#allocation2 + $0x8] sm:$0xff] %vm22_vm0, %v417_v1  ;;  %26 = vst.msk [vmem:[#allocation2 + $0x18] sm:$0xff] %vm22_vm0, %v417_v1  ;;  %v409_v2 = vld [vmem:[%s617_s0] sm:$0xff]   ;;  %387 = vmatprep.subr.bf16.mxu0 %v408_v0  ;;  %405 = vmatprep.subr.bf16.mxu1 %v408_v0  ;;  %v412_v5 = vld [vmem:[%s617_s0 + $0x28] sm:$0xff]  }
   0x3   :  { %27 = vst.msk [vmem:[#allocation2 + $0x20] sm:$0xff] %vm22_vm0, %v417_v1  ;;  %28 = vst.msk [vmem:[#allocation2 + $0x28] sm:$0xff] %vm22_vm0, %v417_v1  ;;  %v410_v3 = vld [vmem:[%s617_s0 + $0x20] sm:$0xff]   ;;  %388 = vmatpush3.bf16.msra.mxu0 %v408_v0  ;;  %406 = vmatpush3.bf16.msra.mxu1 %v408_v0  ;;  %v413_v6 = vld [vmem:[%s617_s0 + $0x10] sm:$0xff]  }
   0x4   :  { %29 = vst.msk [vmem:[#allocation2 + $0x30] sm:$0xff] %vm22_vm0, %v417_v1  ;;  %30 = vst.msk [vmem:[#allocation2 + $0x38] sm:$0xff] %vm22_vm0, %v417_v1  ;;  %389 = vmatprep.mubr.msk.bf16.mxu0 %vm119_vm1, %v409_v2  ;;  %397 = vmatprep.mubr.msk.bf16.mxu1 %vm119_vm1, %v410_v3  ;;  %v414_v7 = vld [vmem:[%s617_s0 + $0x30] sm:$0xff]   ;;  %v415_v8 = vld [vmem:[%s617_s0 + $0x18] sm:$0xff]  }
   0x5   :  { %31 = vst.msk [vmem:[#allocation2 + $0x40] sm:$0xff] %vm22_vm0, %v417_v1  ;;  %32 = vst.msk [vmem:[#allocation2 + $0x48] sm:$0xff] %vm22_vm0, %v417_v1  ;;  %v416_v9 = vld [vmem:[%s617_s0 + $0x38] sm:$0xff]   ;;  %v505_v38 = vld [vmem:[%s618_s2] ss:$0 sm:$0xff] }
   0x6   :  { %33 = vst.msk [vmem:[#allocation2 + $0x50] sm:$0xff] %vm22_vm0, %v417_v1  ;;  %34 = vst.msk [vmem:[#allocation2 + $0x58] sm:$0xff] %vm22_vm0, %v417_v1  ;;  %390 = vmatmul.mubr.msk.bf16.vlgmr.msra.gmra.mrb[0].mxu0 %vm119_vm1, %v411_v4  ;;  %398 = vmatmul.mubr.msk.bf16.vlgmr.msra.gmra.mrb[0].mxu1 %vm119_vm1, %v412_v5  ;;  %v510_v50 = vld [vmem:[%s619_s3] ss:$0 sm:$0xff] }
   0x7   :  { %35 = vst.msk [vmem:[#allocation2 + $0x60] sm:$0xff] %vm22_vm0, %v417_v1  ;;  %36 = vst.msk [vmem:[#allocation2 + $0x68] sm:$0xff] %vm22_vm0, %v417_v1  ;;  %393 = vmatprep.mubr.msk.bf16.mxu0 %vm119_vm1, %v413_v6  ;;  %401 = vmatprep.mubr.msk.bf16.mxu1 %vm119_vm1, %v414_v7 }
   0x8   :  { %37 = vst.msk [vmem:[#allocation2 + $0x70] sm:$0xff] %vm22_vm0, %v417_v1  ;;  %38 = vst.msk [vmem:[#allocation2 + $0x78] sm:$0xff] %vm22_vm0, %v417_v1  ;;  %v41_v10 = vld [vmem:[#allocation2 + $0x10] sm:$0xff]  ;;  %v39_v12 = vld [vmem:[#allocation2] sm:$0xff] }
   0x9   :  { %v42_v16 = vld [vmem:[#allocation2 + $0x18] sm:$0xff]  ;;  %v40_v22 = vld [vmem:[#allocation2 + $0x8] sm:$0xff] }
   0xa   :  { %v43_v36 = vld [vmem:[#allocation2 + $0x20] sm:$0xff]  ;;  %v44_v47 = vld [vmem:[#allocation2 + $0x28] sm:$0xff] }
   0xb   :  { %v45_v34 = vld [vmem:[#allocation2 + $0x30] sm:$0xff]  ;;  %v46_v41 = vld [vmem:[#allocation2 + $0x38] sm:$0xff] }
   0xc   :  { %v47_v13 = vld [vmem:[#allocation2 + $0x40] sm:$0xff]  ;;  %v48_v23 = vld [vmem:[#allocation2 + $0x48] sm:$0xff] }
   0xd   :  { %v49_v11 = vld [vmem:[#allocation2 + $0x50] sm:$0xff]  ;;  %v50_v17 = vld [vmem:[#allocation2 + $0x58] sm:$0xff] }
   0xe   :  { %394 = vmatmul.mubr.msk.bf16.gmra.mrb[4].mxu0 %vm119_vm1, %v415_v8  ;;  %402 = vmatmul.mubr.msk.bf16.gmra.mrb[4].mxu1 %vm119_vm1, %v416_v9  ;;  %v51_v37 = vld [vmem:[#allocation2 + $0x60] sm:$0xff]  ;;  %v52_v48 = vld [vmem:[#allocation2 + $0x68] sm:$0xff] }
   0xf   :  { %v53_v35 = vld [vmem:[#allocation2 + $0x70] sm:$0xff]  ;;  %v54_v42 = vld [vmem:[#allocation2 + $0x78] sm:$0xff] }
  0xd9   :  { %v391_v14 = vpop.f32.mrb[0].mxu0  ;;  %v399_v15 = vpop.f32.mrb[0].mxu1 }
  0xda   :  { %v243_v18 = vadd.f32 %v391_v14, %v41_v10  ;;  %v251_v19 = vadd.f32 %v399_v15, %v49_v11  ;;  %v178_v20 = vpop.f32.mrb[1].mxu0  ;;  %v210_v21 = vpop.f32.mrb[1].mxu1 }
  0xdb   :  { %v241_v24 = vadd.f32 %v178_v20, %v39_v12  ;;  %v249_v25 = vadd.f32 %v210_v21, %v47_v13  ;;  %v392_v26 = vpop.f32.mrb[2].mxu0  ;;  %v400_v27 = vpop.f32.mrb[2].mxu1 }
  0xdc   :  { %260 = vst.msk [vmem:[#allocation2 + $0x10] sm:$0xff] %vm22_vm0, %v243_v18  ;;  %268 = vst.msk [vmem:[#allocation2 + $0x50] sm:$0xff] %vm22_vm0, %v251_v19  ;;  %v244_v28 = vadd.f32 %v392_v26, %v42_v16  ;;  %v252_v29 = vadd.f32 %v400_v27, %v50_v17  ;;  %v181_v30 = vpop.f32.mrb[3].mxu0  ;;  %v213_v31 = vpop.f32.mrb[3].mxu1 }
  0xdd   :  { %258 = vst.msk [vmem:[#allocation2] sm:$0xff] %vm22_vm0, %v241_v24  ;;  %266 = vst.msk [vmem:[#allocation2 + $0x40] sm:$0xff] %vm22_vm0, %v249_v25  ;;  %v242_v32 = vadd.f32 %v181_v30, %v40_v22  ;;  %v250_v33 = vadd.f32 %v213_v31, %v48_v23 }
  0xde   :  { %261 = vst.msk [vmem:[#allocation2 + $0x18] sm:$0xff] %vm22_vm0, %v244_v28  ;;  %269 = vst.msk [vmem:[#allocation2 + $0x58] sm:$0xff] %vm22_vm0, %v252_v29 }
  0xdf   :  { %259 = vst.msk [vmem:[#allocation2 + $0x8] sm:$0xff] %vm22_vm0, %v242_v32  ;;  %267 = vst.msk [vmem:[#allocation2 + $0x48] sm:$0xff] %vm22_vm0, %v250_v33 }
  0xe1   :  { %v395_v39 = vpop.f32.mrb[4].mxu0  ;;  %v403_v40 = vpop.f32.mrb[4].mxu1 }
  0xe2   :  { %v247_v43 = vadd.f32 %v395_v39, %v45_v34  ;;  %v255_v44 = vadd.f32 %v403_v40, %v53_v35  ;;  %v194_v45 = vpop.f32.mrb[5].mxu0  ;;  %v226_v46 = vpop.f32.mrb[5].mxu1 }
  0xe3   :  { %v279_v49 = vld [vmem:[#allocation2 + $0x10] sm:$0xff]  ;;  %v245_v52 = vadd.f32 %v194_v45, %v43_v36  ;;  %v253_v53 = vadd.f32 %v226_v46, %v51_v37  ;;  %v396_v54 = vpop.f32.mrb[6].mxu0  ;;  %v404_v55 = vpop.f32.mrb[6].mxu1 }
  0xe4   :  { %v287_v51 = vld [vmem:[#allocation2 + $0x50] sm:$0xff]  ;;  %v302_v56 = vmul.f32 %v505_v38, %v279_v49  ;;  %v277_v58 = vld [vmem:[#allocation2] sm:$0xff]  ;;  %264 = vst.msk [vmem:[#allocation2 + $0x30] sm:$0xff] %vm22_vm0, %v247_v43  ;;  %272 = vst.msk [vmem:[#allocation2 + $0x70] sm:$0xff] %vm22_vm0, %v255_v44  ;;  %v248_v60 = vadd.f32 %v396_v54, %v46_v41  ;;  %v256_v61 = vadd.f32 %v404_v55, %v54_v42  ;;  %v197_v62 = vpop.f32.mrb[7].mxu0  ;;  %v229_v63 = vpop.f32.mrb[7].mxu1 }
  0xe5   :  { %v310_v57 = vmul.f32 %v505_v38, %v287_v51  ;;  %v285_v59 = vld [vmem:[#allocation2 + $0x40] sm:$0xff]  ;;  %v300_v0 = vmul.f32 %v505_v38, %v277_v58  ;;  %v280_v2 = vld [vmem:[#allocation2 + $0x18] sm:$0xff]  ;;  %262 = vst.msk [vmem:[#allocation2 + $0x20] sm:$0xff] %vm22_vm0, %v245_v52  ;;  %270 = vst.msk [vmem:[#allocation2 + $0x60] sm:$0xff] %vm22_vm0, %v253_v53  ;;  %v246_v4 = vadd.f32 %v197_v62, %v44_v47 }
  0xe6   :  { %v308_v1 = vmul.f32 %v505_v38, %v285_v59  ;;  %v288_v3 = vld [vmem:[#allocation2 + $0x58] sm:$0xff]  ;;  %v254_v5 = vadd.f32 %v229_v63, %v52_v48  ;;  %v325_v6 = vadd.f32 %v510_v50, %v302_v56  ;;  %v303_v8 = vmul.f32 %v505_v38, %v280_v2  ;;  %v278_v10 = vld [vmem:[#allocation2 + $0x8] sm:$0xff]  ;;  %265 = vst.msk [vmem:[#allocation2 + $0x38] sm:$0xff] %vm22_vm0, %v248_v60 }
  0xe7   :  { %v333_v7 = vadd.f32 %v510_v50, %v310_v57  ;;  %v311_v9 = vmul.f32 %v505_v38, %v288_v3  ;;  %v286_v11 = vld [vmem:[#allocation2 + $0x48] sm:$0xff]  ;;  %273 = vst.msk [vmem:[#allocation2 + $0x78] sm:$0xff] %vm22_vm0, %v256_v61  ;;  %v323_v12 = vadd.f32 %v510_v50, %v300_v0  ;;  %v301_v14 = vmul.f32 %v505_v38, %v278_v10 }
  0xe8   :  { %v331_v13 = vadd.f32 %v510_v50, %v308_v1  ;;  %v309_v15 = vmul.f32 %v505_v38, %v286_v11  ;;  %263 = vst.msk [vmem:[#allocation2 + $0x28] sm:$0xff] %vm22_vm0, %v246_v4  ;;  %271 = vst.msk [vmem:[#allocation2 + $0x68] sm:$0xff] %vm22_vm0, %v254_v5  ;;  %v326_v16 = vadd.f32 %v510_v50, %v303_v8 }
  0xe9   :  { %341 = vst.msk [vmem:[%s620_s4 + $0x10] sm:$0xff] %vm22_vm0, %v325_v6  ;;  %349 = vst.msk [vmem:[%s620_s4 + $0x50] sm:$0xff] %vm22_vm0, %v333_v7  ;;  %v334_v17 = vadd.f32 %v510_v50, %v311_v9  ;;  %v324_v18 = vadd.f32 %v510_v50, %v301_v14 }
  0xea   :  { %339 = vst.msk [vmem:[%s620_s4] sm:$0xff] %vm22_vm0, %v323_v12  ;;  %347 = vst.msk [vmem:[%s620_s4 + $0x40] sm:$0xff] %vm22_vm0, %v331_v13  ;;  %v332_v19 = vadd.f32 %v510_v50, %v309_v15 }
  0xeb   :  { %342 = vst.msk [vmem:[%s620_s4 + $0x18] sm:$0xff] %vm22_vm0, %v326_v16  ;;  %350 = vst.msk [vmem:[%s620_s4 + $0x58] sm:$0xff] %vm22_vm0, %v334_v17  ;;  %v283_v20 = vld [vmem:[#allocation2 + $0x30] sm:$0xff] }
  0xec   :  { %340 = vst.msk [vmem:[%s620_s4 + $0x8] sm:$0xff] %vm22_vm0, %v324_v18  ;;  %348 = vst.msk [vmem:[%s620_s4 + $0x48] sm:$0xff] %vm22_vm0, %v332_v19  ;;  %v291_v21 = vld [vmem:[#allocation2 + $0x70] sm:$0xff]  ;;  %v306_v22 = vmul.f32 %v505_v38, %v283_v20  ;;  %v281_v24 = vld [vmem:[#allocation2 + $0x20] sm:$0xff] }
  0xed   :  { %v314_v23 = vmul.f32 %v505_v38, %v291_v21  ;;  %v289_v25 = vld [vmem:[#allocation2 + $0x60] sm:$0xff]  ;;  %v304_v26 = vmul.f32 %v505_v38, %v281_v24  ;;  %v284_v28 = vld [vmem:[#allocation2 + $0x38] sm:$0xff] }
  0xee   :  { %v312_v27 = vmul.f32 %v505_v38, %v289_v25  ;;  %v292_v29 = vld [vmem:[#allocation2 + $0x78] sm:$0xff]  ;;  %v329_v30 = vadd.f32 %v510_v50, %v306_v22  ;;  %v307_v32 = vmul.f32 %v505_v38, %v284_v28 }
  0xef   :  { %v337_v31 = vadd.f32 %v510_v50, %v314_v23  ;;  %v315_v33 = vmul.f32 %v505_v38, %v292_v29  ;;  %v282_v34 = vld [vmem:[#allocation2 + $0x28] sm:$0xff]  ;;  %v327_v36 = vadd.f32 %v510_v50, %v304_v26 }
  0xf0   :  { %v290_v35 = vld [vmem:[#allocation2 + $0x68] sm:$0xff]  ;;  %v335_v37 = vadd.f32 %v510_v50, %v312_v27  ;;  %v305_v39 = vmul.f32 %v505_v38, %v282_v34  ;;  %345 = vst.msk [vmem:[%s620_s4 + $0x30] sm:$0xff] %vm22_vm0, %v329_v30  ;;  %v330_v41 = vadd.f32 %v510_v50, %v307_v32 }
  0xf1   :  { %v313_v40 = vmul.f32 %v505_v38, %v290_v35  ;;  %353 = vst.msk [vmem:[%s620_s4 + $0x70] sm:$0xff] %vm22_vm0, %v337_v31  ;;  %v338_v42 = vadd.f32 %v510_v50, %v315_v33  ;;  %343 = vst.msk [vmem:[%s620_s4 + $0x20] sm:$0xff] %vm22_vm0, %v327_v36 }
  0xf2   :  { %351 = vst.msk [vmem:[%s620_s4 + $0x60] sm:$0xff] %vm22_vm0, %v335_v37  ;;  %v328_v38 = vadd.f32 %v510_v50, %v305_v39  ;;  %346 = vst.msk [vmem:[%s620_s4 + $0x38] sm:$0xff] %vm22_vm0, %v330_v41 }
  0xf3   :  { %v336_v43 = vadd.f32 %v510_v50, %v313_v40  ;;  %354 = vst.msk [vmem:[%s620_s4 + $0x78] sm:$0xff] %vm22_vm0, %v338_v42 }
  0xf4   :  { %344 = vst.msk [vmem:[%s620_s4 + $0x28] sm:$0xff] %vm22_vm0, %v328_v38 }
  0xf5   :  { %352 = vst.msk [vmem:[%s620_s4 + $0x68] sm:$0xff] %vm22_vm0, %v336_v43 }

// kernel: forward.47
= control target key start
LH: loop header
LB: loop body
LE: loop exit
PB: predicated region body
PF: predicated region fallthrough
CT: control target
= control target key end

     0   :  { %vm22_vm0 = vcmask 130048   ;;  %v448_v1 = vmov 0.0   ;;  %vm127_vm1 = vcmask 261120   ;;  %s650_s1 = inlined_call_operand.vmem [shape: bf16[32,16], index: 1, kind: input, shape index: {}]   ;;  %s651_s0 = inlined_call_operand.vmem [shape: bf16[128,32], index: 0, kind: input, shape index: {}]   ;;  %s652_s2 = inlined_call_operand.vmem [shape: f32[1,16], index: 2, kind: input, shape index: {}]   ;;  %s653_s3 = inlined_call_operand.vmem [shape: f32[1,16], index: 3, kind: input, shape index: {}]   ;;  %s654_s4 = inlined_call_operand.vmem [shape: f32[128,16], index: 4, kind: output, shape index: {}]  }
   0x1   :  { %v438_v0 = vld [vmem:[%s650_s1] sm:$0xff]   ;;  %25 = vst.msk [vmem:[#allocation2 + $0x10] sm:$0xff] %vm22_vm0, %v448_v1  ;;  %23 = vst.msk [vmem:[#allocation2] sm:$0xff] %vm22_vm0, %v448_v1  ;;  %v439_v2 = vld [vmem:[%s650_s1 + $0x8] sm:$0xff]  }
   0x2   :  { %24 = vst.msk [vmem:[#allocation2 + $0x8] sm:$0xff] %vm22_vm0, %v448_v1  ;;  %26 = vst.msk [vmem:[#allocation2 + $0x18] sm:$0xff] %vm22_vm0, %v448_v1  ;;  %413 = vmatprep.subr.bf16.mxu0 %v438_v0  ;;  %433 = vmatprep.subr.bf16.mxu1 %v438_v0  ;;  %v440_v3 = vld [vmem:[%s651_s0] sm:$0xff]   ;;  %v442_v5 = vld [vmem:[%s651_s0 + $0x8] sm:$0xff]  }
   0x3   :  { %27 = vst.msk [vmem:[#allocation2 + $0x20] sm:$0xff] %vm22_vm0, %v448_v1  ;;  %28 = vst.msk [vmem:[#allocation2 + $0x28] sm:$0xff] %vm22_vm0, %v448_v1  ;;  %414 = vmatpush3.bf16.msra.mxu0 %v438_v0  ;;  %435 = vmatpush3.bf16.msra.mxu1 %v438_v0  ;;  %v441_v4 = vld [vmem:[%s651_s0 + $0x20] sm:$0xff]   ;;  %v443_v6 = vld [vmem:[%s651_s0 + $0x28] sm:$0xff]  }
   0x4   :  { %29 = vst.msk [vmem:[#allocation2 + $0x30] sm:$0xff] %vm22_vm0, %v448_v1  ;;  %30 = vst.msk [vmem:[#allocation2 + $0x38] sm:$0xff] %vm22_vm0, %v448_v1  ;;  %415 = vmatprep.subr.bf16.mxu0 %v439_v2  ;;  %434 = vmatprep.subr.bf16.mxu1 %v439_v2  ;;  %v444_v7 = vld [vmem:[%s651_s0 + $0x10] sm:$0xff]   ;;  %v446_v9 = vld [vmem:[%s651_s0 + $0x18] sm:$0xff]  }
   0x5   :  { %31 = vst.msk [vmem:[#allocation2 + $0x40] sm:$0xff] %vm22_vm0, %v448_v1  ;;  %32 = vst.msk [vmem:[#allocation2 + $0x48] sm:$0xff] %vm22_vm0, %v448_v1  ;;  %417 = vmatprep.mubr.msk.bf16.mxu0 %vm127_vm1, %v440_v3  ;;  %425 = vmatprep.mubr.msk.bf16.mxu1 %vm127_vm1, %v441_v4  ;;  %v445_v8 = vld [vmem:[%s651_s0 + $0x30] sm:$0xff]   ;;  %v447_v10 = vld [vmem:[%s651_s0 + $0x38] sm:$0xff]  }
   0x6   :  { %33 = vst.msk [vmem:[#allocation2 + $0x50] sm:$0xff] %vm22_vm0, %v448_v1  ;;  %34 = vst.msk [vmem:[#allocation2 + $0x58] sm:$0xff] %vm22_vm0, %v448_v1  ;;  %v539_v39 = vld [vmem:[%s652_s2] ss:$0 sm:$0xff] }
   0x7   :  { %35 = vst.msk [vmem:[#allocation2 + $0x60] sm:$0xff] %vm22_vm0, %v448_v1  ;;  %36 = vst.msk [vmem:[#allocation2 + $0x68] sm:$0xff] %vm22_vm0, %v448_v1  ;;  %416 = vmatpush3.bf16.msra.mxu0 %v439_v2  ;;  %436 = vmatpush3.bf16.msra.mxu1 %v439_v2  ;;  %v544_v51 = vld [vmem:[%s653_s3] ss:$0 sm:$0xff] }
   0x8   :  { %37 = vst.msk [vmem:[#allocation2 + $0x70] sm:$0xff] %vm22_vm0, %v448_v1  ;;  %38 = vst.msk [vmem:[#allocation2 + $0x78] sm:$0xff] %vm22_vm0, %v448_v1  ;;  %v41_v11 = vld [vmem:[#allocation2 + $0x10] sm:$0xff]  ;;  %v39_v13 = vld [vmem:[#allocation2] sm:$0xff] }
   0x9   :  { %v42_v17 = vld [vmem:[#allocation2 + $0x18] sm:$0xff]  ;;  %v40_v23 = vld [vmem:[#allocation2 + $0x8] sm:$0xff] }
   0xa   :  { %418 = vmatmul.mubr.msk.bf16.vlgmr.msra.gmra.mrb[0].mxu0 %vm127_vm1, %v442_v5  ;;  %426 = vmatmul.mubr.msk.bf16.vlgmr.msra.gmra.mrb[0].mxu1 %vm127_vm1, %v443_v6  ;;  %v43_v37 = vld [vmem:[#allocation2 + $0x20] sm:$0xff]  ;;  %v44_v48 = vld [vmem:[#allocation2 + $0x28] sm:$0xff] }
   0xb   :  { %421 = vmatprep.mubr.msk.bf16.mxu0 %vm127_vm1, %v444_v7  ;;  %429 = vmatprep.mubr.msk.bf16.mxu1 %vm127_vm1, %v445_v8  ;;  %v45_v35 = vld [vmem:[#allocation2 + $0x30] sm:$0xff]  ;;  %v46_v42 = vld [vmem:[#allocation2 + $0x38] sm:$0xff] }
   0xc   :  { %v47_v14 = vld [vmem:[#allocation2 + $0x40] sm:$0xff]  ;;  %v48_v24 = vld [vmem:[#allocation2 + $0x48] sm:$0xff] }
   0xd   :  { %v49_v12 = vld [vmem:[#allocation2 + $0x50] sm:$0xff]  ;;  %v50_v18 = vld [vmem:[#allocation2 + $0x58] sm:$0xff] }
   0xe   :  { %v51_v38 = vld [vmem:[#allocation2 + $0x60] sm:$0xff]  ;;  %v52_v49 = vld [vmem:[#allocation2 + $0x68] sm:$0xff] }
   0xf   :  { %v53_v36 = vld [vmem:[#allocation2 + $0x70] sm:$0xff]  ;;  %v54_v43 = vld [vmem:[#allocation2 + $0x78] sm:$0xff] }
  0x12   :  { %422 = vmatmul.mubr.msk.bf16.gmra.mrb[4].mxu0 %vm127_vm1, %v446_v9  ;;  %430 = vmatmul.mubr.msk.bf16.gmra.mrb[4].mxu1 %vm127_vm1, %v447_v10 }
  0xdd   :  { %v419_v15 = vpop.f32.mrb[0].mxu0  ;;  %v427_v16 = vpop.f32.mrb[0].mxu1 }
  0xde   :  { %v251_v19 = vadd.f32 %v419_v15, %v41_v11  ;;  %v259_v20 = vadd.f32 %v427_v16, %v49_v12  ;;  %v186_v21 = vpop.f32.mrb[1].mxu0  ;;  %v218_v22 = vpop.f32.mrb[1].mxu1 }
  0xdf   :  { %v249_v25 = vadd.f32 %v186_v21, %v39_v13  ;;  %v257_v26 = vadd.f32 %v218_v22, %v47_v14  ;;  %v420_v27 = vpop.f32.mrb[2].mxu0  ;;  %v428_v28 = vpop.f32.mrb[2].mxu1 }
  0xe0   :  { %268 = vst.msk [vmem:[#allocation2 + $0x10] sm:$0xff] %vm22_vm0, %v251_v19  ;;  %276 = vst.msk [vmem:[#allocation2 + $0x50] sm:$0xff] %vm22_vm0, %v259_v20  ;;  %v252_v29 = vadd.f32 %v420_v27, %v42_v17  ;;  %v260_v30 = vadd.f32 %v428_v28, %v50_v18  ;;  %v189_v31 = vpop.f32.mrb[3].mxu0  ;;  %v221_v32 = vpop.f32.mrb[3].mxu1 }
  0xe1   :  { %266 = vst.msk [vmem:[#allocation2] sm:$0xff] %vm22_vm0, %v249_v25  ;;  %274 = vst.msk [vmem:[#allocation2 + $0x40] sm:$0xff] %vm22_vm0, %v257_v26  ;;  %v250_v33 = vadd.f32 %v189_v31, %v40_v23  ;;  %v258_v34 = vadd.f32 %v221_v32, %v48_v24 }
  0xe2   :  { %269 = vst.msk [vmem:[#allocation2 + $0x18] sm:$0xff] %vm22_vm0, %v252_v29  ;;  %277 = vst.msk [vmem:[#allocation2 + $0x58] sm:$0xff] %vm22_vm0, %v260_v30 }
  0xe3   :  { %267 = vst.msk [vmem:[#allocation2 + $0x8] sm:$0xff] %vm22_vm0, %v250_v33  ;;  %275 = vst.msk [vmem:[#allocation2 + $0x48] sm:$0xff] %vm22_vm0, %v258_v34 }
  0xe5   :  { %v423_v40 = vpop.f32.mrb[4].mxu0  ;;  %v431_v41 = vpop.f32.mrb[4].mxu1 }
  0xe6   :  { %v255_v44 = vadd.f32 %v423_v40, %v45_v35  ;;  %v263_v45 = vadd.f32 %v431_v41, %v53_v36  ;;  %v202_v46 = vpop.f32.mrb[5].mxu0  ;;  %v234_v47 = vpop.f32.mrb[5].mxu1 }
  0xe7   :  { %v287_v50 = vld [vmem:[#allocation2 + $0x10] sm:$0xff]  ;;  %v253_v53 = vadd.f32 %v202_v46, %v43_v37  ;;  %v261_v54 = vadd.f32 %v234_v47, %v51_v38  ;;  %v424_v55 = vpop.f32.mrb[6].mxu0  ;;  %v432_v56 = vpop.f32.mrb[6].mxu1 }
  0xe8   :  { %v295_v52 = vld [vmem:[#allocation2 + $0x50] sm:$0xff]  ;;  %v310_v57 = vmul.f32 %v539_v39, %v287_v50  ;;  %v285_v59 = vld [vmem:[#allocation2] sm:$0xff]  ;;  %272 = vst.msk [vmem:[#allocation2 + $0x30] sm:$0xff] %vm22_vm0, %v255_v44  ;;  %280 = vst.msk [vmem:[#allocation2 + $0x70] sm:$0xff] %vm22_vm0, %v263_v45  ;;  %v256_v61 = vadd.f32 %v424_v55, %v46_v42  ;;  %v264_v62 = vadd.f32 %v432_v56, %v54_v43  ;;  %v205_v63 = vpop.f32.mrb[7].mxu0  ;;  %v237_v0 = vpop.f32.mrb[7].mxu1 }
  0xe9   :  { %v318_v58 = vmul.f32 %v539_v39, %v295_v52  ;;  %v293_v60 = vld [vmem:[#allocation2 + $0x40] sm:$0xff]  ;;  %v308_v1 = vmul.f32 %v539_v39, %v285_v59  ;;  %v288_v3 = vld [vmem:[#allocation2 + $0x18] sm:$0xff]  ;;  %270 = vst.msk [vmem:[#allocation2 + $0x20] sm:$0xff] %vm22_vm0, %v253_v53  ;;  %278 = vst.msk [vmem:[#allocation2 + $0x60] sm:$0xff] %vm22_vm0, %v261_v54  ;;  %v254_v5 = vadd.f32 %v205_v63, %v44_v48 }
  0xea   :  { %v316_v2 = vmul.f32 %v539_v39, %v293_v60  ;;  %v296_v4 = vld [vmem:[#allocation2 + $0x58] sm:$0xff]  ;;  %v262_v6 = vadd.f32 %v237_v0, %v52_v49  ;;  %v333_v7 = vadd.f32 %v544_v51, %v310_v57  ;;  %v311_v9 = vmul.f32 %v539_v39, %v288_v3  ;;  %v286_v11 = vld [vmem:[#allocation2 + $0x8] sm:$0xff]  ;;  %273 = vst.msk [vmem:[#allocation2 + $0x38] sm:$0xff] %vm22_vm0, %v256_v61 }
  0xeb   :  { %v341_v8 = vadd.f32 %v544_v51, %v318_v58  ;;  %v319_v10 = vmul.f32 %v539_v39, %v296_v4  ;;  %v294_v12 = vld [vmem:[#allocation2 + $0x48] sm:$0xff]  ;;  %281 = vst.msk [vmem:[#allocation2 + $0x78] sm:$0xff] %vm22_vm0, %v264_v62  ;;  %v331_v13 = vadd.f32 %v544_v51, %v308_v1  ;;  %v309_v15 = vmul.f32 %v539_v39, %v286_v11 }
  0xec   :  { %v339_v14 = vadd.f32 %v544_v51, %v316_v2  ;;  %v317_v16 = vmul.f32 %v539_v39, %v294_v12  ;;  %271 = vst.msk [vmem:[#allocation2 + $0x28] sm:$0xff] %vm22_vm0, %v254_v5  ;;  %279 = vst.msk [vmem:[#allocation2 + $0x68] sm:$0xff] %vm22_vm0, %v262_v6  ;;  %v349_v17 = vmax.f32 %v333_v7, 0.0  ;;  %v334_v19 = vadd.f32 %v544_v51, %v311_v9 }
  0xed   :  { %v357_v18 = vmax.f32 %v341_v8, 0.0  ;;  %v342_v20 = vadd.f32 %v544_v51, %v319_v10  ;;  %v347_v21 = vmax.f32 %v331_v13, 0.0  ;;  %v332_v23 = vadd.f32 %v544_v51, %v309_v15 }
  0xee   :  { %v355_v22 = vmax.f32 %v339_v14, 0.0  ;;  %v340_v24 = vadd.f32 %v544_v51, %v317_v16  ;;  %365 = vst.msk [vmem:[%s654_s4 + $0x10] sm:$0xff] %vm22_vm0, %v349_v17  ;;  %v350_v25 = vmax.f32 %v334_v19, 0.0 }
  0xef   :  { %373 = vst.msk [vmem:[%s654_s4 + $0x50] sm:$0xff] %vm22_vm0, %v357_v18  ;;  %v358_v26 = vmax.f32 %v342_v20, 0.0  ;;  %363 = vst.msk [vmem:[%s654_s4] sm:$0xff] %vm22_vm0, %v347_v21  ;;  %v348_v27 = vmax.f32 %v332_v23, 0.0  ;;  %v291_v29 = vld [vmem:[#allocation2 + $0x30] sm:$0xff] }
  0xf0   :  { %371 = vst.msk [vmem:[%s654_s4 + $0x40] sm:$0xff] %vm22_vm0, %v355_v22  ;;  %v356_v28 = vmax.f32 %v340_v24, 0.0  ;;  %v299_v30 = vld [vmem:[#allocation2 + $0x70] sm:$0xff]  ;;  %366 = vst.msk [vmem:[%s654_s4 + $0x18] sm:$0xff] %vm22_vm0, %v350_v25  ;;  %v314_v31 = vmul.f32 %v539_v39, %v291_v29  ;;  %v289_v33 = vld [vmem:[#allocation2 + $0x20] sm:$0xff] }
  0xf1   :  { %374 = vst.msk [vmem:[%s654_s4 + $0x58] sm:$0xff] %vm22_vm0, %v358_v26  ;;  %v322_v32 = vmul.f32 %v539_v39, %v299_v30  ;;  %v297_v34 = vld [vmem:[#allocation2 + $0x60] sm:$0xff]  ;;  %364 = vst.msk [vmem:[%s654_s4 + $0x8] sm:$0xff] %vm22_vm0, %v348_v27  ;;  %v312_v35 = vmul.f32 %v539_v39, %v289_v33  ;;  %v292_v37 = vld [vmem:[#allocation2 + $0x38] sm:$0xff] }
  0xf2   :  { %372 = vst.msk [vmem:[%s654_s4 + $0x48] sm:$0xff] %vm22_vm0, %v356_v28  ;;  %v320_v36 = vmul.f32 %v539_v39, %v297_v34  ;;  %v300_v38 = vld [vmem:[#allocation2 + $0x78] sm:$0xff]  ;;  %v337_v40 = vadd.f32 %v544_v51, %v314_v31  ;;  %v315_v42 = vmul.f32 %v539_v39, %v292_v37 }
  0xf3   :  { %v345_v41 = vadd.f32 %v544_v51, %v322_v32  ;;  %v323_v43 = vmul.f32 %v539_v39, %v300_v38  ;;  %v290_v44 = vld [vmem:[#allocation2 + $0x28] sm:$0xff]  ;;  %v335_v46 = vadd.f32 %v544_v51, %v312_v35 }
  0xf4   :  { %v298_v45 = vld [vmem:[#allocation2 + $0x68] sm:$0xff]  ;;  %v343_v47 = vadd.f32 %v544_v51, %v320_v36  ;;  %v313_v48 = vmul.f32 %v539_v39, %v290_v44  ;;  %v353_v50 = vmax.f32 %v337_v40, 0.0  ;;  %v338_v53 = vadd.f32 %v544_v51, %v315_v42 }
  0xf5   :  { %v321_v49 = vmul.f32 %v539_v39, %v298_v45  ;;  %v361_v52 = vmax.f32 %v345_v41, 0.0  ;;  %v346_v54 = vadd.f32 %v544_v51, %v323_v43  ;;  %v351_v55 = vmax.f32 %v335_v46, 0.0 }
  0xf6   :  { %v359_v56 = vmax.f32 %v343_v47, 0.0  ;;  %v336_v57 = vadd.f32 %v544_v51, %v313_v48  ;;  %369 = vst.msk [vmem:[%s654_s4 + $0x30] sm:$0xff] %vm22_vm0, %v353_v50  ;;  %v354_v39 = vmax.f32 %v338_v53, 0.0 }
  0xf7   :  { %v344_v58 = vadd.f32 %v544_v51, %v321_v49  ;;  %377 = vst.msk [vmem:[%s654_s4 + $0x70] sm:$0xff] %vm22_vm0, %v361_v52  ;;  %v362_v59 = vmax.f32 %v346_v54, 0.0  ;;  %367 = vst.msk [vmem:[%s654_s4 + $0x20] sm:$0xff] %vm22_vm0, %v351_v55 }
  0xf8   :  { %375 = vst.msk [vmem:[%s654_s4 + $0x60] sm:$0xff] %vm22_vm0, %v359_v56  ;;  %v352_v51 = vmax.f32 %v336_v57, 0.0  ;;  %370 = vst.msk [vmem:[%s654_s4 + $0x38] sm:$0xff] %vm22_vm0, %v354_v39 }
  0xf9   :  { %v360_v60 = vmax.f32 %v344_v58, 0.0  ;;  %378 = vst.msk [vmem:[%s654_s4 + $0x78] sm:$0xff] %vm22_vm0, %v362_v59 }
  0xfa   :  { %368 = vst.msk [vmem:[%s654_s4 + $0x28] sm:$0xff] %vm22_vm0, %v352_v51 }
  0xfb   :  { %376 = vst.msk [vmem:[%s654_s4 + $0x68] sm:$0xff] %vm22_vm0, %v360_v60 }

// kernel: forward.53
= control target key start
LH: loop header
LB: loop body
LE: loop exit
PB: predicated region body
PF: predicated region fallthrough
CT: control target
= control target key end

     0   :  { %vm22_vm0 = vcmask 261120   ;;  %v447_v1 = vmov 0.0   ;;  %s649_s1 = inlined_call_operand.vmem [shape: bf16[32,32], index: 1, kind: input, shape index: {}]   ;;  %s650_s0 = inlined_call_operand.vmem [shape: bf16[128,32], index: 0, kind: input, shape index: {}]   ;;  %s651_s2 = inlined_call_operand.vmem [shape: f32[1,32], index: 2, kind: input, shape index: {}]   ;;  %s652_s3 = inlined_call_operand.vmem [shape: f32[1,32], index: 3, kind: input, shape index: {}]   ;;  %s653_s4 = inlined_call_operand.vmem [shape: f32[128,32], index: 4, kind: output, shape index: {}]  }
   0x1   :  { %v437_v0 = vld [vmem:[%s649_s1] sm:$0xff]   ;;  %25 = vst.msk [vmem:[#allocation2 + $0x10] sm:$0xff] %vm22_vm0, %v447_v1  ;;  %23 = vst.msk [vmem:[#allocation2] sm:$0xff] %vm22_vm0, %v447_v1  ;;  %v438_v2 = vld [vmem:[%s649_s1 + $0x8] sm:$0xff]  }
   0x2   :  { %24 = vst.msk [vmem:[#allocation2 + $0x8] sm:$0xff] %vm22_vm0, %v447_v1  ;;  %26 = vst.msk [vmem:[#allocation2 + $0x18] sm:$0xff] %vm22_vm0, %v447_v1  ;;  %412 = vmatprep.subr.bf16.mxu0 %v437_v0  ;;  %432 = vmatprep.subr.bf16.mxu1 %v437_v0  ;;  %v439_v3 = vld [vmem:[%s650_s0] sm:$0xff]   ;;  %v441_v5 = vld [vmem:[%s650_s0 + $0x8] sm:$0xff]  }
   0x3   :  { %27 = vst.msk [vmem:[#allocation2 + $0x20] sm:$0xff] %vm22_vm0, %v447_v1  ;;  %28 = vst.msk [vmem:[#allocation2 + $0x28] sm:$0xff] %vm22_vm0, %v447_v1  ;;  %413 = vmatpush3.bf16.msra.mxu0 %v437_v0  ;;  %434 = vmatpush3.bf16.msra.mxu1 %v437_v0  ;;  %v440_v4 = vld [vmem:[%s650_s0 + $0x20] sm:$0xff]   ;;  %v442_v6 = vld [vmem:[%s650_s0 + $0x28] sm:$0xff]  }
   0x4   :  { %29 = vst.msk [vmem:[#allocation2 + $0x30] sm:$0xff] %vm22_vm0, %v447_v1  ;;  %30 = vst.msk [vmem:[#allocation2 + $0x38] sm:$0xff] %vm22_vm0, %v447_v1  ;;  %414 = vmatprep.subr.bf16.mxu0 %v438_v2  ;;  %433 = vmatprep.subr.bf16.mxu1 %v438_v2  ;;  %v443_v7 = vld [vmem:[%s650_s0 + $0x10] sm:$0xff]   ;;  %v445_v9 = vld [vmem:[%s650_s0 + $0x18] sm:$0xff]  }
   0x5   :  { %31 = vst.msk [vmem:[#allocation2 + $0x40] sm:$0xff] %vm22_vm0, %v447_v1  ;;  %32 = vst.msk [vmem:[#allocation2 + $0x48] sm:$0xff] %vm22_vm0, %v447_v1  ;;  %416 = vmatprep.mubr.msk.bf16.mxu0 %vm22_vm0, %v439_v3  ;;  %424 = vmatprep.mubr.msk.bf16.mxu1 %vm22_vm0, %v440_v4  ;;  %v444_v8 = vld [vmem:[%s650_s0 + $0x30] sm:$0xff]   ;;  %v446_v10 = vld [vmem:[%s650_s0 + $0x38] sm:$0xff]  }
   0x6   :  { %33 = vst.msk [vmem:[#allocation2 + $0x50] sm:$0xff] %vm22_vm0, %v447_v1  ;;  %34 = vst.msk [vmem:[#allocation2 + $0x58] sm:$0xff] %vm22_vm0, %v447_v1  ;;  %v538_v39 = vld [vmem:[%s651_s2] ss:$0 sm:$0xff] }
   0x7   :  { %35 = vst.msk [vmem:[#allocation2 + $0x60] sm:$0xff] %vm22_vm0, %v447_v1  ;;  %36 = vst.msk [vmem:[#allocation2 + $0x68] sm:$0xff] %vm22_vm0, %v447_v1  ;;  %415 = vmatpush3.bf16.msra.mxu0 %v438_v2  ;;  %435 = vmatpush3.bf16.msra.mxu1 %v438_v2  ;;  %v543_v51 = vld [vmem:[%s652_s3] ss:$0 sm:$0xff] }
   0x8   :  { %37 = vst.msk [vmem:[#allocation2 + $0x70] sm:$0xff] %vm22_vm0, %v447_v1  ;;  %38 = vst.msk [vmem:[#allocation2 + $0x78] sm:$0xff] %vm22_vm0, %v447_v1  ;;  %v41_v11 = vld [vmem:[#allocation2 + $0x10] sm:$0xff]  ;;  %v39_v13 = vld [vmem:[#allocation2] sm:$0xff] }
   0x9   :  { %v42_v17 = vld [vmem:[#allocation2 + $0x18] sm:$0xff]  ;;  %v40_v23 = vld [vmem:[#allocation2 + $0x8] sm:$0xff] }
   0xa   :  { %417 = vmatmul.mubr.msk.bf16.vlgmr.msra.gmra.mrb[0].mxu0 %vm22_vm0, %v441_v5  ;;  %425 = vmatmul.mubr.msk.bf16.vlgmr.msra.gmra.mrb[0].mxu1 %vm22_vm0, %v442_v6  ;;  %v43_v37 = vld [vmem:[#allocation2 + $0x20] sm:$0xff]  ;;  %v44_v48 = vld [vmem:[#allocation2 + $0x28] sm:$0xff] }
   0xb   :  { %420 = vmatprep.mubr.msk.bf16.mxu0 %vm22_vm0, %v443_v7  ;;  %428 = vmatprep.mubr.msk.bf16.mxu1 %vm22_vm0, %v444_v8  ;;  %v45_v35 = vld [vmem:[#allocation2 + $0x30] sm:$0xff]  ;;  %v46_v42 = vld [vmem:[#allocation2 + $0x38] sm:$0xff] }
   0xc   :  { %v47_v14 = vld [vmem:[#allocation2 + $0x40] sm:$0xff]  ;;  %v48_v24 = vld [vmem:[#allocation2 + $0x48] sm:$0xff] }
   0xd   :  { %v49_v12 = vld [vmem:[#allocation2 + $0x50] sm:$0xff]  ;;  %v50_v18 = vld [vmem:[#allocation2 + $0x58] sm:$0xff] }
   0xe   :  { %v51_v38 = vld [vmem:[#allocation2 + $0x60] sm:$0xff]  ;;  %v52_v49 = vld [vmem:[#allocation2 + $0x68] sm:$0xff] }
   0xf   :  { %v53_v36 = vld [vmem:[#allocation2 + $0x70] sm:$0xff]  ;;  %v54_v43 = vld [vmem:[#allocation2 + $0x78] sm:$0xff] }
  0x12   :  { %421 = vmatmul.mubr.msk.bf16.gmra.mrb[4].mxu0 %vm22_vm0, %v445_v9  ;;  %429 = vmatmul.mubr.msk.bf16.gmra.mrb[4].mxu1 %vm22_vm0, %v446_v10 }
  0xdd   :  { %v418_v15 = vpop.f32.mrb[0].mxu0  ;;  %v426_v16 = vpop.f32.mrb[0].mxu1 }
  0xde   :  { %v251_v19 = vadd.f32 %v418_v15, %v41_v11  ;;  %v259_v20 = vadd.f32 %v426_v16, %v49_v12  ;;  %v186_v21 = vpop.f32.mrb[1].mxu0  ;;  %v218_v22 = vpop.f32.mrb[1].mxu1 }
  0xdf   :  { %v249_v25 = vadd.f32 %v186_v21, %v39_v13  ;;  %v257_v26 = vadd.f32 %v218_v22, %v47_v14  ;;  %v419_v27 = vpop.f32.mrb[2].mxu0  ;;  %v427_v28 = vpop.f32.mrb[2].mxu1 }
  0xe0   :  { %267 = vst.msk [vmem:[#allocation2 + $0x10] sm:$0xff] %vm22_vm0, %v251_v19  ;;  %275 = vst.msk [vmem:[#allocation2 + $0x50] sm:$0xff] %vm22_vm0, %v259_v20  ;;  %v252_v29 = vadd.f32 %v419_v27, %v42_v17  ;;  %v260_v30 = vadd.f32 %v427_v28, %v50_v18  ;;  %v189_v31 = vpop.f32.mrb[3].mxu0  ;;  %v221_v32 = vpop.f32.mrb[3].mxu1 }
  0xe1   :  { %265 = vst.msk [vmem:[#allocation2] sm:$0xff] %vm22_vm0, %v249_v25  ;;  %273 = vst.msk [vmem:[#allocation2 + $0x40] sm:$0xff] %vm22_vm0, %v257_v26  ;;  %v250_v33 = vadd.f32 %v189_v31, %v40_v23  ;;  %v258_v34 = vadd.f32 %v221_v32, %v48_v24 }
  0xe2   :  { %268 = vst.msk [vmem:[#allocation2 + $0x18] sm:$0xff] %vm22_vm0, %v252_v29  ;;  %276 = vst.msk [vmem:[#allocation2 + $0x58] sm:$0xff] %vm22_vm0, %v260_v30 }
  0xe3   :  { %266 = vst.msk [vmem:[#allocation2 + $0x8] sm:$0xff] %vm22_vm0, %v250_v33  ;;  %274 = vst.msk [vmem:[#allocation2 + $0x48] sm:$0xff] %vm22_vm0, %v258_v34 }
  0xe5   :  { %v422_v40 = vpop.f32.mrb[4].mxu0  ;;  %v430_v41 = vpop.f32.mrb[4].mxu1 }
  0xe6   :  { %v255_v44 = vadd.f32 %v422_v40, %v45_v35  ;;  %v263_v45 = vadd.f32 %v430_v41, %v53_v36  ;;  %v202_v46 = vpop.f32.mrb[5].mxu0  ;;  %v234_v47 = vpop.f32.mrb[5].mxu1 }
  0xe7   :  { %v286_v50 = vld [vmem:[#allocation2 + $0x10] sm:$0xff]  ;;  %v253_v53 = vadd.f32 %v202_v46, %v43_v37  ;;  %v261_v54 = vadd.f32 %v234_v47, %v51_v38  ;;  %v423_v55 = vpop.f32.mrb[6].mxu0  ;;  %v431_v56 = vpop.f32.mrb[6].mxu1 }
  0xe8   :  { %v294_v52 = vld [vmem:[#allocation2 + $0x50] sm:$0xff]  ;;  %v309_v57 = vmul.f32 %v538_v39, %v286_v50  ;;  %v284_v59 = vld [vmem:[#allocation2] sm:$0xff]  ;;  %271 = vst.msk [vmem:[#allocation2 + $0x30] sm:$0xff] %vm22_vm0, %v255_v44  ;;  %279 = vst.msk [vmem:[#allocation2 + $0x70] sm:$0xff] %vm22_vm0, %v263_v45  ;;  %v256_v61 = vadd.f32 %v423_v55, %v46_v42  ;;  %v264_v62 = vadd.f32 %v431_v56, %v54_v43  ;;  %v205_v63 = vpop.f32.mrb[7].mxu0  ;;  %v237_v0 = vpop.f32.mrb[7].mxu1 }
  0xe9   :  { %v317_v58 = vmul.f32 %v538_v39, %v294_v52  ;;  %v292_v60 = vld [vmem:[#allocation2 + $0x40] sm:$0xff]  ;;  %v307_v1 = vmul.f32 %v538_v39, %v284_v59  ;;  %v287_v3 = vld [vmem:[#allocation2 + $0x18] sm:$0xff]  ;;  %269 = vst.msk [vmem:[#allocation2 + $0x20] sm:$0xff] %vm22_vm0, %v253_v53  ;;  %277 = vst.msk [vmem:[#allocation2 + $0x60] sm:$0xff] %vm22_vm0, %v261_v54  ;;  %v254_v5 = vadd.f32 %v205_v63, %v44_v48 }
  0xea   :  { %v315_v2 = vmul.f32 %v538_v39, %v292_v60  ;;  %v295_v4 = vld [vmem:[#allocation2 + $0x58] sm:$0xff]  ;;  %v262_v6 = vadd.f32 %v237_v0, %v52_v49  ;;  %v332_v7 = vadd.f32 %v543_v51, %v309_v57  ;;  %v310_v9 = vmul.f32 %v538_v39, %v287_v3  ;;  %v285_v11 = vld [vmem:[#allocation2 + $0x8] sm:$0xff]  ;;  %272 = vst.msk [vmem:[#allocation2 + $0x38] sm:$0xff] %vm22_vm0, %v256_v61 }
  0xeb   :  { %v340_v8 = vadd.f32 %v543_v51, %v317_v58  ;;  %v318_v10 = vmul.f32 %v538_v39, %v295_v4  ;;  %v293_v12 = vld [vmem:[#allocation2 + $0x48] sm:$0xff]  ;;  %280 = vst.msk [vmem:[#allocation2 + $0x78] sm:$0xff] %vm22_vm0, %v264_v62  ;;  %v330_v13 = vadd.f32 %v543_v51, %v307_v1  ;;  %v308_v15 = vmul.f32 %v538_v39, %v285_v11 }
  0xec   :  { %v338_v14 = vadd.f32 %v543_v51, %v315_v2  ;;  %v316_v16 = vmul.f32 %v538_v39, %v293_v12  ;;  %270 = vst.msk [vmem:[#allocation2 + $0x28] sm:$0xff] %vm22_vm0, %v254_v5  ;;  %278 = vst.msk [vmem:[#allocation2 + $0x68] sm:$0xff] %vm22_vm0, %v262_v6  ;;  %v348_v17 = vmax.f32 %v332_v7, 0.0  ;;  %v333_v19 = vadd.f32 %v543_v51, %v310_v9 }
  0xed   :  { %v356_v18 = vmax.f32 %v340_v8, 0.0  ;;  %v341_v20 = vadd.f32 %v543_v51, %v318_v10  ;;  %v346_v21 = vmax.f32 %v330_v13, 0.0  ;;  %v331_v23 = vadd.f32 %v543_v51, %v308_v15 }
  0xee   :  { %v354_v22 = vmax.f32 %v338_v14, 0.0  ;;  %v339_v24 = vadd.f32 %v543_v51, %v316_v16  ;;  %364 = vst.msk [vmem:[%s653_s4 + $0x10] sm:$0xff] %vm22_vm0, %v348_v17  ;;  %v349_v25 = vmax.f32 %v333_v19, 0.0 }
  0xef   :  { %372 = vst.msk [vmem:[%s653_s4 + $0x50] sm:$0xff] %vm22_vm0, %v356_v18  ;;  %v357_v26 = vmax.f32 %v341_v20, 0.0  ;;  %362 = vst.msk [vmem:[%s653_s4] sm:$0xff] %vm22_vm0, %v346_v21  ;;  %v347_v27 = vmax.f32 %v331_v23, 0.0  ;;  %v290_v29 = vld [vmem:[#allocation2 + $0x30] sm:$0xff] }
  0xf0   :  { %370 = vst.msk [vmem:[%s653_s4 + $0x40] sm:$0xff] %vm22_vm0, %v354_v22  ;;  %v355_v28 = vmax.f32 %v339_v24, 0.0  ;;  %v298_v30 = vld [vmem:[#allocation2 + $0x70] sm:$0xff]  ;;  %365 = vst.msk [vmem:[%s653_s4 + $0x18] sm:$0xff] %vm22_vm0, %v349_v25  ;;  %v313_v31 = vmul.f32 %v538_v39, %v290_v29  ;;  %v288_v33 = vld [vmem:[#allocation2 + $0x20] sm:$0xff] }
  0xf1   :  { %373 = vst.msk [vmem:[%s653_s4 + $0x58] sm:$0xff] %vm22_vm0, %v357_v26  ;;  %v321_v32 = vmul.f32 %v538_v39, %v298_v30  ;;  %v296_v34 = vld [vmem:[#allocation2 + $0x60] sm:$0xff]  ;;  %363 = vst.msk [vmem:[%s653_s4 + $0x8] sm:$0xff] %vm22_vm0, %v347_v27  ;;  %v311_v35 = vmul.f32 %v538_v39, %v288_v33  ;;  %v291_v37 = vld [vmem:[#allocation2 + $0x38] sm:$0xff] }
  0xf2   :  { %371 = vst.msk [vmem:[%s653_s4 + $0x48] sm:$0xff] %vm22_vm0, %v355_v28  ;;  %v319_v36 = vmul.f32 %v538_v39, %v296_v34  ;;  %v299_v38 = vld [vmem:[#allocation2 + $0x78] sm:$0xff]  ;;  %v336_v40 = vadd.f32 %v543_v51, %v313_v31  ;;  %v314_v42 = vmul.f32 %v538_v39, %v291_v37 }
  0xf3   :  { %v344_v41 = vadd.f32 %v543_v51, %v321_v32  ;;  %v322_v43 = vmul.f32 %v538_v39, %v299_v38  ;;  %v289_v44 = vld [vmem:[#allocation2 + $0x28] sm:$0xff]  ;;  %v334_v46 = vadd.f32 %v543_v51, %v311_v35 }
  0xf4   :  { %v297_v45 = vld [vmem:[#allocation2 + $0x68] sm:$0xff]  ;;  %v342_v47 = vadd.f32 %v543_v51, %v319_v36  ;;  %v312_v48 = vmul.f32 %v538_v39, %v289_v44  ;;  %v352_v50 = vmax.f32 %v336_v40, 0.0  ;;  %v337_v53 = vadd.f32 %v543_v51, %v314_v42 }
  0xf5   :  { %v320_v49 = vmul.f32 %v538_v39, %v297_v45  ;;  %v360_v52 = vmax.f32 %v344_v41, 0.0  ;;  %v345_v54 = vadd.f32 %v543_v51, %v322_v43  ;;  %v350_v55 = vmax.f32 %v334_v46, 0.0 }
  0xf6   :  { %v358_v56 = vmax.f32 %v342_v47, 0.0  ;;  %v335_v57 = vadd.f32 %v543_v51, %v312_v48  ;;  %368 = vst.msk [vmem:[%s653_s4 + $0x30] sm:$0xff] %vm22_vm0, %v352_v50  ;;  %v353_v39 = vmax.f32 %v337_v53, 0.0 }
  0xf7   :  { %v343_v58 = vadd.f32 %v543_v51, %v320_v49  ;;  %376 = vst.msk [vmem:[%s653_s4 + $0x70] sm:$0xff] %vm22_vm0, %v360_v52  ;;  %v361_v59 = vmax.f32 %v345_v54, 0.0  ;;  %366 = vst.msk [vmem:[%s653_s4 + $0x20] sm:$0xff] %vm22_vm0, %v350_v55 }
  0xf8   :  { %374 = vst.msk [vmem:[%s653_s4 + $0x60] sm:$0xff] %vm22_vm0, %v358_v56  ;;  %v351_v51 = vmax.f32 %v335_v57, 0.0  ;;  %369 = vst.msk [vmem:[%s653_s4 + $0x38] sm:$0xff] %vm22_vm0, %v353_v39 }
  0xf9   :  { %v359_v60 = vmax.f32 %v343_v58, 0.0  ;;  %377 = vst.msk [vmem:[%s653_s4 + $0x78] sm:$0xff] %vm22_vm0, %v361_v59 }
  0xfa   :  { %367 = vst.msk [vmem:[%s653_s4 + $0x28] sm:$0xff] %vm22_vm0, %v351_v51 }
  0xfb   :  { %375 = vst.msk [vmem:[%s653_s4 + $0x68] sm:$0xff] %vm22_vm0, %v359_v60 }

// kernel: forward.54
= control target key start
LH: loop header
LB: loop body
LE: loop exit
PB: predicated region body
PF: predicated region fallthrough
CT: control target
= control target key end

     0   :  { %vm22_vm0 = vcmask 523264   ;;  %v188_v1 = vmov 0.0   ;;  %vm61_vm1 = vcmask 261120   ;;  %s256_s1 = inlined_call_operand.vmem [shape: bf16[32,64], index: 1, kind: input, shape index: {}]   ;;  %s257_s0 = inlined_call_operand.vmem [shape: bf16[32,32], index: 0, kind: input, shape index: {}]   ;;  %s258_s2 = inlined_call_operand.vmem [shape: f32[1,64], index: 2, kind: input, shape index: {}]   ;;  %s259_s3 = inlined_call_operand.vmem [shape: f32[1,64], index: 3, kind: input, shape index: {}]   ;;  %s260_s4 = inlined_call_operand.vmem [shape: f32[32,64], index: 4, kind: output, shape index: {}]  }
   0x1   :  { %v184_v0 = vld [vmem:[%s256_s1] sm:$0xff]   ;;  %25 = vst.msk [vmem:[#allocation2 + $0x10] sm:$0xff] %vm22_vm0, %v188_v1  ;;  %23 = vst.msk [vmem:[#allocation2] sm:$0xff] %vm22_vm0, %v188_v1  ;;  %v185_v2 = vld [vmem:[%s256_s1 + $0x8] sm:$0xff]  }
   0x2   :  { %24 = vst.msk [vmem:[#allocation2 + $0x8] sm:$0xff] %vm22_vm0, %v188_v1  ;;  %26 = vst.msk [vmem:[#allocation2 + $0x18] sm:$0xff] %vm22_vm0, %v188_v1  ;;  %175 = vmatprep.subr.bf16.mxu0 %v184_v0  ;;  %v186_v3 = vld [vmem:[%s257_s0] sm:$0xff]   ;;  %v187_v4 = vld [vmem:[%s257_s0 + $0x8] sm:$0xff]  }
   0x3   :  { %176 = vmatpush3.bf16.msra.mxu0 %v184_v0  ;;  %179 = vmatprep.mubr.msk.bf16.mxu0 %vm61_vm1, %v186_v3  ;;  %v169_v17 = vld [vmem:[%s258_s2] ss:$0 sm:$0xff] }
   0x4   :  { %177 = vmatprep.subr.bf16.mxu0 %v185_v2  ;;  %v170_v19 = vld [vmem:[%s259_s3] ss:$0 sm:$0xff] }
   0x7   :  { %178 = vmatpush3.bf16.msra.mxu0 %v185_v2 }
   0x8   :  { %v29_v5 = vld [vmem:[#allocation2 + $0x10] sm:$0xff]  ;;  %v27_v6 = vld [vmem:[#allocation2] sm:$0xff] }
   0x9   :  { %v30_v8 = vld [vmem:[#allocation2 + $0x18] sm:$0xff]  ;;  %v28_v11 = vld [vmem:[#allocation2 + $0x8] sm:$0xff] }
   0xa   :  { %180 = vmatmul.mubr.msk.bf16.vlgmr.msra.gmra.mrb[0].mxu0 %vm61_vm1, %v187_v4 }
  0xdd   :  { %v181_v7 = vpop.f32.mrb[0].mxu0 }
  0xde   :  { %v119_v9 = vadd.f32 %v181_v7, %v29_v5  ;;  %v102_v10 = vpop.f32.mrb[1].mxu0 }
  0xdf   :  { %v117_v12 = vadd.f32 %v102_v10, %v27_v6  ;;  %v182_v13 = vpop.f32.mrb[2].mxu0 }
  0xe0   :  { %124 = vst.msk [vmem:[#allocation2 + $0x10] sm:$0xff] %vm22_vm0, %v119_v9  ;;  %v120_v14 = vadd.f32 %v182_v13, %v30_v8  ;;  %v105_v15 = vpop.f32.mrb[3].mxu0 }
  0xe1   :  { %122 = vst.msk [vmem:[#allocation2] sm:$0xff] %vm22_vm0, %v117_v12  ;;  %v118_v16 = vadd.f32 %v105_v15, %v28_v11 }
  0xe2   :  { %125 = vst.msk [vmem:[#allocation2 + $0x18] sm:$0xff] %vm22_vm0, %v120_v14 }
  0xe3   :  { %123 = vst.msk [vmem:[#allocation2 + $0x8] sm:$0xff] %vm22_vm0, %v118_v16 }
  0xe7   :  { %v131_v18 = vld [vmem:[#allocation2 + $0x10] sm:$0xff] }
  0xe8   :  { %v142_v20 = vmul.f32 %v169_v17, %v131_v18  ;;  %v129_v21 = vld [vmem:[#allocation2] sm:$0xff] }
  0xe9   :  { %v140_v22 = vmul.f32 %v169_v17, %v129_v21  ;;  %v132_v23 = vld [vmem:[#allocation2 + $0x18] sm:$0xff] }
  0xea   :  { %v153_v24 = vadd.f32 %v170_v19, %v142_v20  ;;  %v143_v25 = vmul.f32 %v169_v17, %v132_v23  ;;  %v130_v26 = vld [vmem:[#allocation2 + $0x8] sm:$0xff] }
  0xeb   :  { %v151_v27 = vadd.f32 %v170_v19, %v140_v22  ;;  %v141_v28 = vmul.f32 %v169_v17, %v130_v26 }
  0xec   :  { %157 = vst.msk [vmem:[%s260_s4 + $0x10] sm:$0xff] %vm22_vm0, %v153_v24  ;;  %v154_v29 = vadd.f32 %v170_v19, %v143_v25 }
  0xed   :  { %155 = vst.msk [vmem:[%s260_s4] sm:$0xff] %vm22_vm0, %v151_v27  ;;  %v152_v30 = vadd.f32 %v170_v19, %v141_v28 }
  0xee   :  { %158 = vst.msk [vmem:[%s260_s4 + $0x18] sm:$0xff] %vm22_vm0, %v154_v29 }
  0xef   :  { %156 = vst.msk [vmem:[%s260_s4 + $0x8] sm:$0xff] %vm22_vm0, %v152_v30 }

// kernel: forward.56
= control target key start
LH: loop header
LB: loop body
LE: loop exit
PB: predicated region body
PF: predicated region fallthrough
CT: control target
= control target key end

     0   :  { %vm22_vm0 = vcmask 261120   ;;  %v218_v1 = vmov 0.0   ;;  %vm77_vm1 = vcmask 523264   ;;  %s292_s1 = inlined_call_operand.vmem [shape: bf16[64,32], index: 1, kind: input, shape index: {}]   ;;  %s293_s0 = inlined_call_operand.vmem [shape: bf16[32,64], index: 0, kind: input, shape index: {}]   ;;  %s294_s2 = inlined_call_operand.vmem [shape: f32[1,32], index: 2, kind: input, shape index: {}]   ;;  %s295_s3 = inlined_call_operand.vmem [shape: f32[1,32], index: 3, kind: input, shape index: {}]   ;;  %s296_s4 = inlined_call_operand.vmem [shape: f32[32,32], index: 4, kind: output, shape index: {}]  }
   0x1   :  { %v212_v0 = vld [vmem:[%s292_s1] sm:$0xff]   ;;  %25 = vst.msk [vmem:[#allocation2 + $0x10] sm:$0xff] %vm22_vm0, %v218_v1  ;;  %23 = vst.msk [vmem:[#allocation2] sm:$0xff] %vm22_vm0, %v218_v1  ;;  %v213_v2 = vld [vmem:[%s292_s1 + $0x8] sm:$0xff]  }
   0x2   :  { %24 = vst.msk [vmem:[#allocation2 + $0x8] sm:$0xff] %vm22_vm0, %v218_v1  ;;  %26 = vst.msk [vmem:[#allocation2 + $0x18] sm:$0xff] %vm22_vm0, %v218_v1  ;;  %199 = vmatprep.subr.bf16.mxu0 %v212_v0  ;;  %v214_v3 = vld [vmem:[%s292_s1 + $0x10] sm:$0xff]   ;;  %v216_v4 = vld [vmem:[%s293_s0] sm:$0xff]  }
   0x3   :  { %200 = vmatpush3.bf16.msra.mxu0 %v212_v0  ;;  %207 = vmatprep.mubr.msk.bf16.mxu0 %vm77_vm1, %v216_v4  ;;  %v215_v5 = vld [vmem:[%s292_s1 + $0x18] sm:$0xff]   ;;  %v217_v6 = vld [vmem:[%s293_s0 + $0x8] sm:$0xff]   ;;  %v191_v19 = vld [vmem:[%s294_s2] ss:$0 sm:$0xff] }
   0x4   :  { %201 = vmatprep.subr.bf16.mxu0 %v213_v2  ;;  %v192_v21 = vld [vmem:[%s295_s3] ss:$0 sm:$0xff] }
   0x7   :  { %202 = vmatpush3.bf16.msra.mxu0 %v213_v2 }
   0x8   :  { %203 = vmatprep.subr.bf16.mxu0 %v214_v3  ;;  %v29_v7 = vld [vmem:[#allocation2 + $0x10] sm:$0xff]  ;;  %v27_v8 = vld [vmem:[#allocation2] sm:$0xff] }
   0x9   :  { %v30_v10 = vld [vmem:[#allocation2 + $0x18] sm:$0xff]  ;;  %v28_v13 = vld [vmem:[#allocation2 + $0x8] sm:$0xff] }
   0xb   :  { %204 = vmatpush3.bf16.msra.mxu0 %v214_v3 }
   0xc   :  { %205 = vmatprep.subr.bf16.mxu0 %v215_v5 }
   0xf   :  { %206 = vmatpush3.bf16.msra.mxu0 %v215_v5 }
  0x12   :  { %208 = vmatmul.mubr.msk.bf16.vlgmr.msra.gmra.mrb[0].mxu0 %vm77_vm1, %v217_v6 }
  0xe5   :  { %v209_v9 = vpop.f32.mrb[0].mxu0 }
  0xe6   :  { %v135_v11 = vadd.f32 %v209_v9, %v29_v7  ;;  %v118_v12 = vpop.f32.mrb[1].mxu0 }
  0xe7   :  { %v133_v14 = vadd.f32 %v118_v12, %v27_v8  ;;  %v210_v15 = vpop.f32.mrb[2].mxu0 }
  0xe8   :  { %140 = vst.msk [vmem:[#allocation2 + $0x10] sm:$0xff] %vm22_vm0, %v135_v11  ;;  %v136_v16 = vadd.f32 %v210_v15, %v30_v10  ;;  %v121_v17 = vpop.f32.mrb[3].mxu0 }
  0xe9   :  { %138 = vst.msk [vmem:[#allocation2] sm:$0xff] %vm22_vm0, %v133_v14  ;;  %v134_v18 = vadd.f32 %v121_v17, %v28_v13 }
  0xea   :  { %141 = vst.msk [vmem:[#allocation2 + $0x18] sm:$0xff] %vm22_vm0, %v136_v16 }
  0xeb   :  { %139 = vst.msk [vmem:[#allocation2 + $0x8] sm:$0xff] %vm22_vm0, %v134_v18 }
  0xef   :  { %v147_v20 = vld [vmem:[#allocation2 + $0x10] sm:$0xff] }
  0xf0   :  { %v158_v22 = vmul.f32 %v191_v19, %v147_v20  ;;  %v145_v23 = vld [vmem:[#allocation2] sm:$0xff] }
  0xf1   :  { %v156_v24 = vmul.f32 %v191_v19, %v145_v23  ;;  %v148_v25 = vld [vmem:[#allocation2 + $0x18] sm:$0xff] }
  0xf2   :  { %v169_v26 = vadd.f32 %v192_v21, %v158_v22  ;;  %v159_v27 = vmul.f32 %v191_v19, %v148_v25  ;;  %v146_v28 = vld [vmem:[#allocation2 + $0x8] sm:$0xff] }
  0xf3   :  { %v167_v29 = vadd.f32 %v192_v21, %v156_v24  ;;  %v157_v30 = vmul.f32 %v191_v19, %v146_v28 }
  0xf4   :  { %v173_v31 = vmax.f32 %v169_v26, 0.0  ;;  %v170_v32 = vadd.f32 %v192_v21, %v159_v27 }
  0xf5   :  { %v171_v33 = vmax.f32 %v167_v29, 0.0  ;;  %v168_v34 = vadd.f32 %v192_v21, %v157_v30 }
  0xf6   :  { %177 = vst.msk [vmem:[%s296_s4 + $0x10] sm:$0xff] %vm22_vm0, %v173_v31  ;;  %v174_v35 = vmax.f32 %v170_v32, 0.0 }
  0xf7   :  { %175 = vst.msk [vmem:[%s296_s4] sm:$0xff] %vm22_vm0, %v171_v33  ;;  %v172_v36 = vmax.f32 %v168_v34, 0.0 }
  0xf8   :  { %178 = vst.msk [vmem:[%s296_s4 + $0x18] sm:$0xff] %vm22_vm0, %v174_v35 }
  0xf9   :  { %176 = vst.msk [vmem:[%s296_s4 + $0x8] sm:$0xff] %vm22_vm0, %v172_v36 }

// kernel: forward.59
= control target key start
LH: loop header
LB: loop body
LE: loop exit
PB: predicated region body
PF: predicated region fallthrough
CT: control target
= control target key end

     0   :  { %9 = vsyncpa [#allocation4], 0  ;;  %s352_s0 = inlined_call_operand.vmem [shape: bf16[32,32], index: 0, kind: input, shape index: {}]   ;;  %s353_s1 = inlined_call_operand.vmem [shape: bf16[32,64], index: 1, kind: input, shape index: {}]   ;;  %s354_s2 = inlined_call_operand.hbm [shape: f32[1,64], index: 2, kind: input, shape index: {}]   ;;  %s355_s3 = inlined_call_operand.hbm [shape: f32[1,64], index: 3, kind: input, shape index: {}]   ;;  %s356_s4 = inlined_call_operand.vmem [shape: f32[32,64], index: 4, kind: output, shape index: {}]  }
   0x1   :  { %10 = vsyncpa [#allocation6], 0  ;;  %s264_s15 = smov [#allocation3]   ;;  %s265_s17 = smov [#allocation5]  }
   0x2   :  { %s21_s16 = sshll.u32 %s264_s15, 4  ;;  %s31_s18 = sshll.u32 %s265_s17, 4  ;;  %s22_s16 = int_to_ptr.vmem [resolvable:$true] %s21_s16  ;;  %s32_s18 = int_to_ptr.vmem [resolvable:$true] %s31_s18 }
   0x3   :  { %s216_s21 = scalar_lea.hbm %s354_s2, 16 }
   0x4   :  { %p217_p0 = scmp.ne.s32.totalorder %s354_s2, %s216_s21  ;;  %p220_p1 = scmp.lt.u32.totalorder %s216_s21, %s354_s2 }
   0x6   :  { %p222_p2 = pnand %p220_p1, %p217_p0 }
   0x8   :  { %225 = shalt.err (!%p222_p2)
}
   0x9   :  { %s226_s26 = scalar_lea.vmem %s22_s16, 16  ;;  %s230_s27 = scalar_lea.vmem %s22_s16, 32 }
   0xa   :  { %p227_p3 = scmp.ne.s32.totalorder %s22_s16, %s226_s26  ;;  %p231_p4 = scmp.lt.s32.totalorder %s22_s16, %s22_s16 }
   0xb   :  { %p232_p5 = scmp.lt.s32.totalorder %s230_s27, %s226_s26 }
   0xd   :  { %p233_p6 = por %p232_p5, %p231_p4 }
   0xf   :  { %p234_p7 = pnand %p233_p6, %p227_p3 }
  0x11   :  { %237 = shalt.err (!%p234_p7)
}
  0x12   :  { %24 = dma.hbm_to_vmem [thread:$0]  %s354_s2, 16, %s22_s16, [#allocation4]  }
  0x13   :  { %s238_s6 = scalar_lea.hbm %s355_s3, 16 }
  0x14   :  { %p239_p8 = scmp.ne.s32.totalorder %s355_s3, %s238_s6  ;;  %p242_p9 = scmp.lt.u32.totalorder %s238_s6, %s355_s3 }
  0x16   :  { %p244_p10 = pnand %p242_p9, %p239_p8 }
  0x18   :  { %247 = shalt.err (!%p244_p10)
}
  0x19   :  { %s248_s11 = scalar_lea.vmem %s32_s18, 16  ;;  %s252_s12 = scalar_lea.vmem %s32_s18, 32 }
  0x1a   :  { %p249_p11 = scmp.ne.s32.totalorder %s32_s18, %s248_s11  ;;  %p253_p12 = scmp.lt.s32.totalorder %s32_s18, %s32_s18 }
  0x1b   :  { %p254_p13 = scmp.lt.s32.totalorder %s252_s12, %s248_s11 }
  0x1d   :  { %p255_p0 = por %p254_p13, %p253_p12 }
  0x1f   :  { %p256_p1 = pnand %p255_p0, %p249_p11 }
  0x21   :  { %259 = shalt.err (!%p256_p1)
}
  0x22   :  { %34 = dma.hbm_to_vmem [thread:$0]  %s355_s3, 16, %s32_s18, [#allocation6]  }
  0x23   :  { %260 = dma.done.wait [#allocation4], 16  }
  0x24   :  { %261 = vsyncadd [#allocation4], 4294967280 }
  0x25   :  { %262 = dma.done.wait [#allocation6], 16  }
  0x26   :  { %263 = vsyncadd [#allocation6], 4294967280  ;;  %vm46_vm0 = vcmask 523264   ;;  %v266_v0 = vmov 0.0   ;;  %v212_v1 = vld [vmem:[%s353_s1] sm:$0xff]   ;;  %v213_v2 = vld [vmem:[%s353_s1 + $0x8] sm:$0xff]  }
  0x27   :  { %49 = vst.msk [vmem:[#allocation2 + $0x10] sm:$0xff] %vm46_vm0, %v266_v0  ;;  %47 = vst.msk [vmem:[#allocation2] sm:$0xff] %vm46_vm0, %v266_v0  ;;  %vm85_vm1 = vcmask 261120   ;;  %201 = vmatprep.subr.bf16.mxu0 %v212_v1  ;;  %v214_v3 = vld [vmem:[%s352_s0] sm:$0xff]   ;;  %v215_v4 = vld [vmem:[%s352_s0 + $0x8] sm:$0xff]  }
  0x28   :  { %48 = vst.msk [vmem:[#allocation2 + $0x8] sm:$0xff] %vm46_vm0, %v266_v0  ;;  %50 = vst.msk [vmem:[#allocation2 + $0x18] sm:$0xff] %vm46_vm0, %v266_v0  ;;  %202 = vmatpush3.bf16.msra.mxu0 %v212_v1  ;;  %205 = vmatprep.mubr.msk.bf16.mxu0 %vm85_vm1, %v214_v3  ;;  %v195_v17 = vld [vmem:[#allocation3] ss:$0 sm:$0xff]  ;;  %v196_v19 = vld [vmem:[#allocation5] ss:$0 sm:$0xff] }
  0x29   :  { %203 = vmatprep.subr.bf16.mxu0 %v213_v2 }
  0x2c   :  { %204 = vmatpush3.bf16.msra.mxu0 %v213_v2 }
  0x2e   :  { %v53_v5 = vld [vmem:[#allocation2 + $0x10] sm:$0xff]  ;;  %v51_v6 = vld [vmem:[#allocation2] sm:$0xff] }
  0x2f   :  { %206 = vmatmul.mubr.msk.bf16.vlgmr.msra.gmra.mrb[0].mxu0 %vm85_vm1, %v215_v4  ;;  %v54_v8 = vld [vmem:[#allocation2 + $0x18] sm:$0xff]  ;;  %v52_v11 = vld [vmem:[#allocation2 + $0x8] sm:$0xff] }
 0x102   :  { %v207_v7 = vpop.f32.mrb[0].mxu0 }
 0x103   :  { %v143_v9 = vadd.f32 %v207_v7, %v53_v5  ;;  %v126_v10 = vpop.f32.mrb[1].mxu0 }
 0x104   :  { %v141_v12 = vadd.f32 %v126_v10, %v51_v6  ;;  %v208_v13 = vpop.f32.mrb[2].mxu0 }
 0x105   :  { %148 = vst.msk [vmem:[#allocation2 + $0x10] sm:$0xff] %vm46_vm0, %v143_v9  ;;  %v144_v14 = vadd.f32 %v208_v13, %v54_v8  ;;  %v129_v15 = vpop.f32.mrb[3].mxu0 }
 0x106   :  { %146 = vst.msk [vmem:[#allocation2] sm:$0xff] %vm46_vm0, %v141_v12  ;;  %v142_v16 = vadd.f32 %v129_v15, %v52_v11 }
 0x107   :  { %149 = vst.msk [vmem:[#allocation2 + $0x18] sm:$0xff] %vm46_vm0, %v144_v14 }
 0x108   :  { %147 = vst.msk [vmem:[#allocation2 + $0x8] sm:$0xff] %vm46_vm0, %v142_v16 }
 0x10c   :  { %v155_v18 = vld [vmem:[#allocation2 + $0x10] sm:$0xff] }
 0x10d   :  { %v166_v20 = vmul.f32 %v195_v17, %v155_v18  ;;  %v153_v21 = vld [vmem:[#allocation2] sm:$0xff] }
 0x10e   :  { %v164_v22 = vmul.f32 %v195_v17, %v153_v21  ;;  %v156_v23 = vld [vmem:[#allocation2 + $0x18] sm:$0xff] }
 0x10f   :  { %v177_v24 = vadd.f32 %v196_v19, %v166_v20  ;;  %v167_v25 = vmul.f32 %v195_v17, %v156_v23  ;;  %v154_v26 = vld [vmem:[#allocation2 + $0x8] sm:$0xff] }
 0x110   :  { %v175_v27 = vadd.f32 %v196_v19, %v164_v22  ;;  %v165_v28 = vmul.f32 %v195_v17, %v154_v26 }
 0x111   :  { %181 = vst.msk [vmem:[%s356_s4 + $0x10] sm:$0xff] %vm46_vm0, %v177_v24  ;;  %v178_v29 = vadd.f32 %v196_v19, %v167_v25 }
 0x112   :  { %179 = vst.msk [vmem:[%s356_s4] sm:$0xff] %vm46_vm0, %v175_v27  ;;  %v176_v30 = vadd.f32 %v196_v19, %v165_v28 }
 0x113   :  { %182 = vst.msk [vmem:[%s356_s4 + $0x18] sm:$0xff] %vm46_vm0, %v178_v29 }
 0x114   :  { %180 = vst.msk [vmem:[%s356_s4 + $0x8] sm:$0xff] %vm46_vm0, %v176_v30 }
 0x115   :  { %187 = vsyncpa [#allocation4], 1 }
 0x116   :  { %188 = vsyncpa [#allocation6], 1 }

// kernel: forward.61
= control target key start
LH: loop header
LB: loop body
LE: loop exit
PB: predicated region body
PF: predicated region fallthrough
CT: control target
= control target key end

     0   :  { %9 = vsyncpa [#allocation4], 0  ;;  %s226_s15 = smov [#allocation3]   ;;  %s304_s0 = inlined_call_operand.vmem [shape: bf16[32,32], index: 0, kind: input, shape index: {}]   ;;  %s305_s1 = inlined_call_operand.vmem [shape: bf16[32,64], index: 1, kind: input, shape index: {}]   ;;  %s306_s2 = inlined_call_operand.vmem [shape: f32[1,64], index: 2, kind: input, shape index: {}]   ;;  %s307_s3 = inlined_call_operand.hbm [shape: f32[1,64], index: 3, kind: input, shape index: {}]   ;;  %s308_s4 = inlined_call_operand.vmem [shape: f32[32,64], index: 4, kind: output, shape index: {}]  }
   0x1   :  { %s22_s16 = sshll.u32 %s226_s15, 4  ;;  %s202_s19 = scalar_lea.hbm %s307_s3, 16  ;;  %s23_s16 = int_to_ptr.vmem [resolvable:$true] %s22_s16 }
   0x2   :  { %p203_p0 = scmp.ne.s32.totalorder %s307_s3, %s202_s19  ;;  %p206_p1 = scmp.lt.u32.totalorder %s202_s19, %s307_s3 }
   0x4   :  { %p208_p2 = pnand %p206_p1, %p203_p0 }
   0x6   :  { %211 = shalt.err (!%p208_p2)
}
   0x7   :  { %s212_s24 = scalar_lea.vmem %s23_s16, 16  ;;  %s216_s25 = scalar_lea.vmem %s23_s16, 32 }
   0x8   :  { %p213_p3 = scmp.ne.s32.totalorder %s23_s16, %s212_s24  ;;  %p217_p4 = scmp.lt.s32.totalorder %s23_s16, %s23_s16 }
   0x9   :  { %p218_p5 = scmp.lt.s32.totalorder %s216_s25, %s212_s24 }
   0xb   :  { %p219_p6 = por %p218_p5, %p217_p4 }
   0xd   :  { %p220_p7 = pnand %p219_p6, %p213_p3 }
   0xf   :  { %223 = shalt.err (!%p220_p7)
}
  0x10   :  { %25 = dma.hbm_to_vmem [thread:$0]  %s307_s3, 16, %s23_s16, [#allocation4]  }
  0x11   :  { %224 = dma.done.wait [#allocation4], 16  }
  0x12   :  { %225 = vsyncadd [#allocation4], 4294967280  ;;  %vm34_vm0 = vcmask 523264   ;;  %v227_v0 = vmov 0.0   ;;  %v198_v1 = vld [vmem:[%s305_s1] sm:$0xff]   ;;  %v199_v2 = vld [vmem:[%s305_s1 + $0x8] sm:$0xff]  }
  0x13   :  { %37 = vst.msk [vmem:[#allocation2 + $0x10] sm:$0xff] %vm34_vm0, %v227_v0  ;;  %35 = vst.msk [vmem:[#allocation2] sm:$0xff] %vm34_vm0, %v227_v0  ;;  %vm73_vm1 = vcmask 261120   ;;  %188 = vmatprep.subr.bf16.mxu0 %v198_v1  ;;  %v200_v3 = vld [vmem:[%s304_s0] sm:$0xff]   ;;  %v201_v4 = vld [vmem:[%s304_s0 + $0x8] sm:$0xff]  }
  0x14   :  { %36 = vst.msk [vmem:[#allocation2 + $0x8] sm:$0xff] %vm34_vm0, %v227_v0  ;;  %38 = vst.msk [vmem:[#allocation2 + $0x18] sm:$0xff] %vm34_vm0, %v227_v0  ;;  %189 = vmatpush3.bf16.msra.mxu0 %v198_v1  ;;  %192 = vmatprep.mubr.msk.bf16.mxu0 %vm73_vm1, %v200_v3  ;;  %v182_v17 = vld [vmem:[%s306_s2] ss:$0 sm:$0xff] }
  0x15   :  { %190 = vmatprep.subr.bf16.mxu0 %v199_v2  ;;  %v183_v19 = vld [vmem:[#allocation3] ss:$0 sm:$0xff] }
  0x18   :  { %191 = vmatpush3.bf16.msra.mxu0 %v199_v2 }
  0x1a   :  { %v41_v5 = vld [vmem:[#allocation2 + $0x10] sm:$0xff]  ;;  %v39_v6 = vld [vmem:[#allocation2] sm:$0xff] }
  0x1b   :  { %193 = vmatmul.mubr.msk.bf16.vlgmr.msra.gmra.mrb[0].mxu0 %vm73_vm1, %v201_v4  ;;  %v42_v8 = vld [vmem:[#allocation2 + $0x18] sm:$0xff]  ;;  %v40_v11 = vld [vmem:[#allocation2 + $0x8] sm:$0xff] }
  0xee   :  { %v194_v7 = vpop.f32.mrb[0].mxu0 }
  0xef   :  { %v131_v9 = vadd.f32 %v194_v7, %v41_v5  ;;  %v114_v10 = vpop.f32.mrb[1].mxu0 }
  0xf0   :  { %v129_v12 = vadd.f32 %v114_v10, %v39_v6  ;;  %v195_v13 = vpop.f32.mrb[2].mxu0 }
  0xf1   :  { %136 = vst.msk [vmem:[#allocation2 + $0x10] sm:$0xff] %vm34_vm0, %v131_v9  ;;  %v132_v14 = vadd.f32 %v195_v13, %v42_v8  ;;  %v117_v15 = vpop.f32.mrb[3].mxu0 }
  0xf2   :  { %134 = vst.msk [vmem:[#allocation2] sm:$0xff] %vm34_vm0, %v129_v12  ;;  %v130_v16 = vadd.f32 %v117_v15, %v40_v11 }
  0xf3   :  { %137 = vst.msk [vmem:[#allocation2 + $0x18] sm:$0xff] %vm34_vm0, %v132_v14 }
  0xf4   :  { %135 = vst.msk [vmem:[#allocation2 + $0x8] sm:$0xff] %vm34_vm0, %v130_v16 }
  0xf8   :  { %v143_v18 = vld [vmem:[#allocation2 + $0x10] sm:$0xff] }
  0xf9   :  { %v154_v20 = vmul.f32 %v182_v17, %v143_v18  ;;  %v141_v21 = vld [vmem:[#allocation2] sm:$0xff] }
  0xfa   :  { %v152_v22 = vmul.f32 %v182_v17, %v141_v21  ;;  %v144_v23 = vld [vmem:[#allocation2 + $0x18] sm:$0xff] }
  0xfb   :  { %v165_v24 = vadd.f32 %v183_v19, %v154_v20  ;;  %v155_v25 = vmul.f32 %v182_v17, %v144_v23  ;;  %v142_v26 = vld [vmem:[#allocation2 + $0x8] sm:$0xff] }
  0xfc   :  { %v163_v27 = vadd.f32 %v183_v19, %v152_v22  ;;  %v153_v28 = vmul.f32 %v182_v17, %v142_v26 }
  0xfd   :  { %169 = vst.msk [vmem:[%s308_s4 + $0x10] sm:$0xff] %vm34_vm0, %v165_v24  ;;  %v166_v29 = vadd.f32 %v183_v19, %v155_v25 }
  0xfe   :  { %167 = vst.msk [vmem:[%s308_s4] sm:$0xff] %vm34_vm0, %v163_v27  ;;  %v164_v30 = vadd.f32 %v183_v19, %v153_v28 }
  0xff   :  { %170 = vst.msk [vmem:[%s308_s4 + $0x18] sm:$0xff] %vm34_vm0, %v166_v29 }
 0x100   :  { %168 = vst.msk [vmem:[%s308_s4 + $0x8] sm:$0xff] %vm34_vm0, %v164_v30 }
 0x101   :  { %175 = vsyncpa [#allocation4], 1 }

// kernel: forward.62
= control target key start
LH: loop header
LB: loop body
LE: loop exit
PB: predicated region body
PF: predicated region fallthrough
CT: control target
= control target key end

     0   :  { %9 = vsyncpa [#allocation4], 0  ;;  %s256_s15 = smov [#allocation3]   ;;  %s340_s0 = inlined_call_operand.vmem [shape: bf16[32,64], index: 0, kind: input, shape index: {}]   ;;  %s341_s1 = inlined_call_operand.vmem [shape: bf16[64,32], index: 1, kind: input, shape index: {}]   ;;  %s342_s2 = inlined_call_operand.vmem [shape: f32[1,32], index: 2, kind: input, shape index: {}]   ;;  %s343_s3 = inlined_call_operand.hbm [shape: f32[1,32], index: 3, kind: input, shape index: {}]   ;;  %s344_s4 = inlined_call_operand.vmem [shape: f32[32,32], index: 4, kind: output, shape index: {}]  }
   0x1   :  { %s22_s16 = sshll.u32 %s256_s15, 4  ;;  %s232_s19 = scalar_lea.hbm %s343_s3, 16  ;;  %s23_s16 = int_to_ptr.vmem [resolvable:$true] %s22_s16 }
   0x2   :  { %p233_p0 = scmp.ne.s32.totalorder %s343_s3, %s232_s19  ;;  %p236_p1 = scmp.lt.u32.totalorder %s232_s19, %s343_s3 }
   0x4   :  { %p238_p2 = pnand %p236_p1, %p233_p0 }
   0x6   :  { %241 = shalt.err (!%p238_p2)
}
   0x7   :  { %s242_s24 = scalar_lea.vmem %s23_s16, 16  ;;  %s246_s25 = scalar_lea.vmem %s23_s16, 32 }
   0x8   :  { %p243_p3 = scmp.ne.s32.totalorder %s23_s16, %s242_s24  ;;  %p247_p4 = scmp.lt.s32.totalorder %s23_s16, %s23_s16 }
   0x9   :  { %p248_p5 = scmp.lt.s32.totalorder %s246_s25, %s242_s24 }
   0xb   :  { %p249_p6 = por %p248_p5, %p247_p4 }
   0xd   :  { %p250_p7 = pnand %p249_p6, %p243_p3 }
   0xf   :  { %253 = shalt.err (!%p250_p7)
}
  0x10   :  { %25 = dma.hbm_to_vmem [thread:$0]  %s343_s3, 16, %s23_s16, [#allocation4]  }
  0x11   :  { %254 = dma.done.wait [#allocation4], 16  }
  0x12   :  { %255 = vsyncadd [#allocation4], 4294967280  ;;  %vm34_vm0 = vcmask 261120   ;;  %v257_v0 = vmov 0.0   ;;  %v226_v1 = vld [vmem:[%s341_s1] sm:$0xff]   ;;  %v227_v2 = vld [vmem:[%s341_s1 + $0x8] sm:$0xff]  }
  0x13   :  { %37 = vst.msk [vmem:[#allocation2 + $0x10] sm:$0xff] %vm34_vm0, %v257_v0  ;;  %35 = vst.msk [vmem:[#allocation2] sm:$0xff] %vm34_vm0, %v257_v0  ;;  %212 = vmatprep.subr.bf16.mxu0 %v226_v1  ;;  %v228_v3 = vld [vmem:[%s341_s1 + $0x10] sm:$0xff]   ;;  %vm89_vm1 = vcmask 523264   ;;  %v230_v4 = vld [vmem:[%s340_s0] sm:$0xff]  }
  0x14   :  { %36 = vst.msk [vmem:[#allocation2 + $0x8] sm:$0xff] %vm34_vm0, %v257_v0  ;;  %38 = vst.msk [vmem:[#allocation2 + $0x18] sm:$0xff] %vm34_vm0, %v257_v0  ;;  %213 = vmatpush3.bf16.msra.mxu0 %v226_v1  ;;  %220 = vmatprep.mubr.msk.bf16.mxu0 %vm89_vm1, %v230_v4  ;;  %v229_v5 = vld [vmem:[%s341_s1 + $0x18] sm:$0xff]   ;;  %v231_v6 = vld [vmem:[%s340_s0 + $0x8] sm:$0xff]  }
  0x15   :  { %214 = vmatprep.subr.bf16.mxu0 %v227_v2  ;;  %v204_v19 = vld [vmem:[%s342_s2] ss:$0 sm:$0xff] }
  0x16   :  { %v205_v21 = vld [vmem:[#allocation3] ss:$0 sm:$0xff] }
  0x18   :  { %215 = vmatpush3.bf16.msra.mxu0 %v227_v2 }
  0x19   :  { %216 = vmatprep.subr.bf16.mxu0 %v228_v3 }
  0x1a   :  { %v41_v7 = vld [vmem:[#allocation2 + $0x10] sm:$0xff]  ;;  %v39_v8 = vld [vmem:[#allocation2] sm:$0xff] }
  0x1b   :  { %v42_v10 = vld [vmem:[#allocation2 + $0x18] sm:$0xff]  ;;  %v40_v13 = vld [vmem:[#allocation2 + $0x8] sm:$0xff] }
  0x1c   :  { %217 = vmatpush3.bf16.msra.mxu0 %v228_v3 }
  0x1d   :  { %218 = vmatprep.subr.bf16.mxu0 %v229_v5 }
  0x20   :  { %219 = vmatpush3.bf16.msra.mxu0 %v229_v5 }
  0x23   :  { %221 = vmatmul.mubr.msk.bf16.vlgmr.msra.gmra.mrb[0].mxu0 %vm89_vm1, %v231_v6 }
  0xf6   :  { %v222_v9 = vpop.f32.mrb[0].mxu0 }
  0xf7   :  { %v147_v11 = vadd.f32 %v222_v9, %v41_v7  ;;  %v130_v12 = vpop.f32.mrb[1].mxu0 }
  0xf8   :  { %v145_v14 = vadd.f32 %v130_v12, %v39_v8  ;;  %v223_v15 = vpop.f32.mrb[2].mxu0 }
  0xf9   :  { %152 = vst.msk [vmem:[#allocation2 + $0x10] sm:$0xff] %vm34_vm0, %v147_v11  ;;  %v148_v16 = vadd.f32 %v223_v15, %v42_v10  ;;  %v133_v17 = vpop.f32.mrb[3].mxu0 }
  0xfa   :  { %150 = vst.msk [vmem:[#allocation2] sm:$0xff] %vm34_vm0, %v145_v14  ;;  %v146_v18 = vadd.f32 %v133_v17, %v40_v13 }
  0xfb   :  { %153 = vst.msk [vmem:[#allocation2 + $0x18] sm:$0xff] %vm34_vm0, %v148_v16 }
  0xfc   :  { %151 = vst.msk [vmem:[#allocation2 + $0x8] sm:$0xff] %vm34_vm0, %v146_v18 }
 0x100   :  { %v159_v20 = vld [vmem:[#allocation2 + $0x10] sm:$0xff] }
 0x101   :  { %v170_v22 = vmul.f32 %v204_v19, %v159_v20  ;;  %v157_v23 = vld [vmem:[#allocation2] sm:$0xff] }
 0x102   :  { %v168_v24 = vmul.f32 %v204_v19, %v157_v23  ;;  %v160_v25 = vld [vmem:[#allocation2 + $0x18] sm:$0xff] }
 0x103   :  { %v181_v26 = vadd.f32 %v205_v21, %v170_v22  ;;  %v171_v27 = vmul.f32 %v204_v19, %v160_v25  ;;  %v158_v28 = vld [vmem:[#allocation2 + $0x8] sm:$0xff] }
 0x104   :  { %v179_v29 = vadd.f32 %v205_v21, %v168_v24  ;;  %v169_v30 = vmul.f32 %v204_v19, %v158_v28 }
 0x105   :  { %v185_v31 = vmax.f32 %v181_v26, 0.0  ;;  %v182_v32 = vadd.f32 %v205_v21, %v171_v27 }
 0x106   :  { %v183_v33 = vmax.f32 %v179_v29, 0.0  ;;  %v180_v34 = vadd.f32 %v205_v21, %v169_v30 }
 0x107   :  { %189 = vst.msk [vmem:[%s344_s4 + $0x10] sm:$0xff] %vm34_vm0, %v185_v31  ;;  %v186_v35 = vmax.f32 %v182_v32, 0.0 }
 0x108   :  { %187 = vst.msk [vmem:[%s344_s4] sm:$0xff] %vm34_vm0, %v183_v33  ;;  %v184_v36 = vmax.f32 %v180_v34, 0.0 }
 0x109   :  { %190 = vst.msk [vmem:[%s344_s4 + $0x18] sm:$0xff] %vm34_vm0, %v186_v35 }
 0x10a   :  { %188 = vst.msk [vmem:[%s344_s4 + $0x8] sm:$0xff] %vm34_vm0, %v184_v36 }
 0x10b   :  { %195 = vsyncpa [#allocation4], 1 }

// kernel: forward.66
= control target key start
LH: loop header
LB: loop body
LE: loop exit
PB: predicated region body
PF: predicated region fallthrough
CT: control target
= control target key end

     0   :  { %vm22_vm0 = vcmask 523264   ;;  %v217_v1 = vmov 0.0   ;;  %s293_s1 = inlined_call_operand.vmem [shape: bf16[64,64], index: 1, kind: input, shape index: {}]   ;;  %s294_s0 = inlined_call_operand.vmem [shape: bf16[32,64], index: 0, kind: input, shape index: {}]   ;;  %s295_s2 = inlined_call_operand.vmem [shape: f32[1,64], index: 2, kind: input, shape index: {}]   ;;  %s296_s3 = inlined_call_operand.vmem [shape: f32[1,64], index: 3, kind: input, shape index: {}]   ;;  %s297_s4 = inlined_call_operand.vmem [shape: f32[32,64], index: 4, kind: output, shape index: {}]  }
   0x1   :  { %v211_v0 = vld [vmem:[%s293_s1] sm:$0xff]   ;;  %25 = vst.msk [vmem:[#allocation2 + $0x10] sm:$0xff] %vm22_vm0, %v217_v1  ;;  %23 = vst.msk [vmem:[#allocation2] sm:$0xff] %vm22_vm0, %v217_v1  ;;  %v212_v2 = vld [vmem:[%s293_s1 + $0x8] sm:$0xff]  }
   0x2   :  { %24 = vst.msk [vmem:[#allocation2 + $0x8] sm:$0xff] %vm22_vm0, %v217_v1  ;;  %26 = vst.msk [vmem:[#allocation2 + $0x18] sm:$0xff] %vm22_vm0, %v217_v1  ;;  %198 = vmatprep.subr.bf16.mxu0 %v211_v0  ;;  %v213_v3 = vld [vmem:[%s293_s1 + $0x10] sm:$0xff]   ;;  %v215_v4 = vld [vmem:[%s294_s0] sm:$0xff]  }
   0x3   :  { %199 = vmatpush3.bf16.msra.mxu0 %v211_v0  ;;  %206 = vmatprep.mubr.msk.bf16.mxu0 %vm22_vm0, %v215_v4  ;;  %v214_v5 = vld [vmem:[%s293_s1 + $0x18] sm:$0xff]   ;;  %v216_v6 = vld [vmem:[%s294_s0 + $0x8] sm:$0xff]   ;;  %v190_v19 = vld [vmem:[%s295_s2] ss:$0 sm:$0xff] }
   0x4   :  { %200 = vmatprep.subr.bf16.mxu0 %v212_v2  ;;  %v191_v21 = vld [vmem:[%s296_s3] ss:$0 sm:$0xff] }
   0x7   :  { %201 = vmatpush3.bf16.msra.mxu0 %v212_v2 }
   0x8   :  { %202 = vmatprep.subr.bf16.mxu0 %v213_v3  ;;  %v29_v7 = vld [vmem:[#allocation2 + $0x10] sm:$0xff]  ;;  %v27_v8 = vld [vmem:[#allocation2] sm:$0xff] }
   0x9   :  { %v30_v10 = vld [vmem:[#allocation2 + $0x18] sm:$0xff]  ;;  %v28_v13 = vld [vmem:[#allocation2 + $0x8] sm:$0xff] }
   0xb   :  { %203 = vmatpush3.bf16.msra.mxu0 %v213_v3 }
   0xc   :  { %204 = vmatprep.subr.bf16.mxu0 %v214_v5 }
   0xf   :  { %205 = vmatpush3.bf16.msra.mxu0 %v214_v5 }
  0x12   :  { %207 = vmatmul.mubr.msk.bf16.vlgmr.msra.gmra.mrb[0].mxu0 %vm22_vm0, %v216_v6 }
  0xe5   :  { %v208_v9 = vpop.f32.mrb[0].mxu0 }
  0xe6   :  { %v135_v11 = vadd.f32 %v208_v9, %v29_v7  ;;  %v118_v12 = vpop.f32.mrb[1].mxu0 }
  0xe7   :  { %v133_v14 = vadd.f32 %v118_v12, %v27_v8  ;;  %v209_v15 = vpop.f32.mrb[2].mxu0 }
  0xe8   :  { %139 = vst.msk [vmem:[#allocation2 + $0x10] sm:$0xff] %vm22_vm0, %v135_v11  ;;  %v136_v16 = vadd.f32 %v209_v15, %v30_v10  ;;  %v121_v17 = vpop.f32.mrb[3].mxu0 }
  0xe9   :  { %137 = vst.msk [vmem:[#allocation2] sm:$0xff] %vm22_vm0, %v133_v14  ;;  %v134_v18 = vadd.f32 %v121_v17, %v28_v13 }
  0xea   :  { %140 = vst.msk [vmem:[#allocation2 + $0x18] sm:$0xff] %vm22_vm0, %v136_v16 }
  0xeb   :  { %138 = vst.msk [vmem:[#allocation2 + $0x8] sm:$0xff] %vm22_vm0, %v134_v18 }
  0xef   :  { %v146_v20 = vld [vmem:[#allocation2 + $0x10] sm:$0xff] }
  0xf0   :  { %v157_v22 = vmul.f32 %v190_v19, %v146_v20  ;;  %v144_v23 = vld [vmem:[#allocation2] sm:$0xff] }
  0xf1   :  { %v155_v24 = vmul.f32 %v190_v19, %v144_v23  ;;  %v147_v25 = vld [vmem:[#allocation2 + $0x18] sm:$0xff] }
  0xf2   :  { %v168_v26 = vadd.f32 %v191_v21, %v157_v22  ;;  %v158_v27 = vmul.f32 %v190_v19, %v147_v25  ;;  %v145_v28 = vld [vmem:[#allocation2 + $0x8] sm:$0xff] }
  0xf3   :  { %v166_v29 = vadd.f32 %v191_v21, %v155_v24  ;;  %v156_v30 = vmul.f32 %v190_v19, %v145_v28 }
  0xf4   :  { %v172_v31 = vmax.f32 %v168_v26, 0.0  ;;  %v169_v32 = vadd.f32 %v191_v21, %v158_v27 }
  0xf5   :  { %v170_v33 = vmax.f32 %v166_v29, 0.0  ;;  %v167_v34 = vadd.f32 %v191_v21, %v156_v30 }
  0xf6   :  { %176 = vst.msk [vmem:[%s297_s4 + $0x10] sm:$0xff] %vm22_vm0, %v172_v31  ;;  %v173_v35 = vmax.f32 %v169_v32, 0.0 }
  0xf7   :  { %174 = vst.msk [vmem:[%s297_s4] sm:$0xff] %vm22_vm0, %v170_v33  ;;  %v171_v36 = vmax.f32 %v167_v34, 0.0 }
  0xf8   :  { %177 = vst.msk [vmem:[%s297_s4 + $0x18] sm:$0xff] %vm22_vm0, %v173_v35 }
  0xf9   :  { %175 = vst.msk [vmem:[%s297_s4 + $0x8] sm:$0xff] %vm22_vm0, %v171_v36 }

// kernel: forward.67
= control target key start
LH: loop header
LB: loop body
LE: loop exit
PB: predicated region body
PF: predicated region fallthrough
CT: control target
= control target key end

     0   :  { %9 = vsyncpa [#allocation4], 0  ;;  %s305_s0 = inlined_call_operand.vmem [shape: bf16[8,64], index: 0, kind: input, shape index: {}]   ;;  %s306_s1 = inlined_call_operand.vmem [shape: bf16[64,128], index: 1, kind: input, shape index: {}]   ;;  %s307_s2 = inlined_call_operand.hbm [shape: f32[1,128], index: 2, kind: input, shape index: {}]   ;;  %s308_s3 = inlined_call_operand.hbm [shape: f32[1,128], index: 3, kind: input, shape index: {}]   ;;  %s309_s4 = inlined_call_operand.vmem [shape: f32[8,128], index: 4, kind: output, shape index: {}]  }
   0x1   :  { %10 = vsyncpa [#allocation6], 0  ;;  %s234_s15 = smov [#allocation3]   ;;  %s235_s17 = smov [#allocation5]  }
   0x2   :  { %s21_s16 = sshll.u32 %s234_s15, 4  ;;  %s31_s18 = sshll.u32 %s235_s17, 4  ;;  %s22_s16 = int_to_ptr.vmem [resolvable:$true] %s21_s16  ;;  %s32_s18 = int_to_ptr.vmem [resolvable:$true] %s31_s18 }
   0x3   :  { %s186_s21 = scalar_lea.hbm %s307_s2, 16 }
   0x4   :  { %p187_p0 = scmp.ne.s32.totalorder %s307_s2, %s186_s21  ;;  %p190_p1 = scmp.lt.u32.totalorder %s186_s21, %s307_s2 }
   0x6   :  { %p192_p2 = pnand %p190_p1, %p187_p0 }
   0x8   :  { %195 = shalt.err (!%p192_p2)
}
   0x9   :  { %s196_s26 = scalar_lea.vmem %s22_s16, 16  ;;  %s200_s27 = scalar_lea.vmem %s22_s16, 32 }
   0xa   :  { %p197_p3 = scmp.ne.s32.totalorder %s22_s16, %s196_s26  ;;  %p201_p4 = scmp.lt.s32.totalorder %s22_s16, %s22_s16 }
   0xb   :  { %p202_p5 = scmp.lt.s32.totalorder %s200_s27, %s196_s26 }
   0xd   :  { %p203_p6 = por %p202_p5, %p201_p4 }
   0xf   :  { %p204_p7 = pnand %p203_p6, %p197_p3 }
  0x11   :  { %207 = shalt.err (!%p204_p7)
}
  0x12   :  { %24 = dma.hbm_to_vmem [thread:$0]  %s307_s2, 16, %s22_s16, [#allocation4]  }
  0x13   :  { %s208_s6 = scalar_lea.hbm %s308_s3, 16 }
  0x14   :  { %p209_p8 = scmp.ne.s32.totalorder %s308_s3, %s208_s6  ;;  %p212_p9 = scmp.lt.u32.totalorder %s208_s6, %s308_s3 }
  0x16   :  { %p214_p10 = pnand %p212_p9, %p209_p8 }
  0x18   :  { %217 = shalt.err (!%p214_p10)
}
  0x19   :  { %s218_s11 = scalar_lea.vmem %s32_s18, 16  ;;  %s222_s12 = scalar_lea.vmem %s32_s18, 32 }
  0x1a   :  { %p219_p11 = scmp.ne.s32.totalorder %s32_s18, %s218_s11  ;;  %p223_p12 = scmp.lt.s32.totalorder %s32_s18, %s32_s18 }
  0x1b   :  { %p224_p13 = scmp.lt.s32.totalorder %s222_s12, %s218_s11 }
  0x1d   :  { %p225_p0 = por %p224_p13, %p223_p12 }
  0x1f   :  { %p226_p1 = pnand %p225_p0, %p219_p11 }
  0x21   :  { %229 = shalt.err (!%p226_p1)
}
  0x22   :  { %34 = dma.hbm_to_vmem [thread:$0]  %s308_s3, 16, %s32_s18, [#allocation6]  }
  0x23   :  { %230 = dma.done.wait [#allocation4], 16  }
  0x24   :  { %231 = vsyncadd [#allocation4], 4294967280 }
  0x25   :  { %232 = dma.done.wait [#allocation6], 16  }
  0x26   :  { %233 = vsyncadd [#allocation6], 4294967280  ;;  %v236_v0 = vmov 0.0   ;;  %vm237_vm0 = vmmov 0   ;;  %v182_v1 = vld [vmem:[%s306_s1] sm:$0xff]   ;;  %v183_v2 = vld [vmem:[%s306_s1 + $0x8] sm:$0xff]  }
  0x27   :  { %166 = vmatprep.subr.bf16.mxu0 %v236_v0  ;;  %174 = vmatprep.mubr.msk.bf16.mxu0 %vm237_vm0, %v236_v0  ;;  %v184_v3 = vld [vmem:[%s306_s1 + $0x10] sm:$0xff]   ;;  %v185_v4 = vld [vmem:[%s306_s1 + $0x18] sm:$0xff]   ;;  %v48_v5 = vld [vmem:[%s305_s0] sm:$0xf]  ;;  %vm81_vm1 = vcmask 523264  }
  0x28   :  { %167 = vmatpush3.bf16.msra.mxu0 %v182_v1  ;;  %v159_v6 = vld [vmem:[#allocation3] ss:$0 sm:$0xff]  ;;  %v160_v8 = vld [vmem:[#allocation5] ss:$0 sm:$0xff] }
  0x29   :  { %168 = vmatprep.subr.bf16.mxu0 %v236_v0 }
  0x2c   :  { %169 = vmatpush3.bf16.msra.mxu0 %v183_v2 }
  0x2d   :  { %170 = vmatprep.subr.bf16.mxu0 %v236_v0 }
  0x30   :  { %171 = vmatpush3.bf16.msra.mxu0 %v184_v3 }
  0x31   :  { %172 = vmatprep.subr.bf16.mxu0 %v236_v0 }
  0x34   :  { %173 = vmatpush3.bf16.msra.mxu0 %v185_v4 }
  0x37   :  { %175 = vmatmul.mubr.msk.bf16.vlgmr.msra.gmra.mrb[0].mxu0 %vm81_vm1, %v48_v5 }
 0x10a   :  { %v119_v7 = vpop.f32.mrb[0].mxu0 }
 0x10b   :  { %v138_v9 = vmul.f32 %v159_v6, %v119_v7  ;;  %v176_v10 = vpop.f32.mrb[1].mxu0 }
 0x10c   :  { %v122_v11 = vpop.f32.mrb[2].mxu0 }
 0x10d   :  { %v146_v12 = vadd.f32 %v160_v8, %v138_v9  ;;  %v177_v13 = vpop.f32.mrb[3].mxu0 }
 0x10f   :  { %147 = vst [vmem:[%s309_s4] sm:$0xff] %v146_v12 }
 0x110   :  { %152 = vsyncpa [#allocation4], 1 }
 0x111   :  { %153 = vsyncpa [#allocation6], 1 }

// kernel: reverse
= control target key start
LH: loop header
LB: loop body
LE: loop exit
PB: predicated region body
PF: predicated region fallthrough
CT: control target
= control target key end

     0   :  { %s872_s0 = inlined_call_operand.vmem [shape: bf16[3,3,32,2,32], index: 0, kind: input, shape index: {}]   ;;  %s873_s1 = inlined_call_operand.vmem [shape: bf16[3,3,32,2,32], index: 1, kind: output, shape index: {}]  }
   0x1   :  { %v504_v0 = vld [vmem:[%s872_s0 + $0x100] sm:$0xff]   ;;  %v520_v9 = vld [vmem:[%s872_s0 + $0x110] sm:$0xff]   ;;  %v574_v18 = vld [vmem:[%s872_s0 + $0x108] sm:$0xff]  }
   0x2   :  { %v505_v1 = vld [vmem:[%s872_s0 + $0xa0] sm:$0xff]   ;;  %7 = vst [vmem:[%s873_s1] sm:$0xff] %v504_v0   ;;  %v522_v10 = vld [vmem:[%s872_s0 + $0xb0] sm:$0xff]   ;;  %521 = vst [vmem:[%s873_s1 + $0x10] sm:$0xff] %v520_v9  }
   0x3   :  { %v507_v2 = vld [vmem:[%s872_s0 + $0x40] sm:$0xff]   ;;  %506 = vst [vmem:[%s873_s1 + $0x60] sm:$0xff] %v505_v1   ;;  %v524_v11 = vld [vmem:[%s872_s0 + $0x50] sm:$0xff]   ;;  %523 = vst [vmem:[%s873_s1 + $0x70] sm:$0xff] %v522_v10  }
   0x4   :  { %508 = vst [vmem:[%s873_s1 + $0xc0] sm:$0xff] %v507_v2   ;;  %v509_v3 = vld [vmem:[%s872_s0 + $0xe0] sm:$0xff]   ;;  %525 = vst [vmem:[%s873_s1 + $0xd0] sm:$0xff] %v524_v11   ;;  %v526_v12 = vld [vmem:[%s872_s0 + $0xf0] sm:$0xff]  }
   0x5   :  { %v511_v4 = vld [vmem:[%s872_s0 + $0x80] sm:$0xff]   ;;  %510 = vst [vmem:[%s873_s1 + $0x20] sm:$0xff] %v509_v3   ;;  %v528_v13 = vld [vmem:[%s872_s0 + $0x90] sm:$0xff]   ;;  %527 = vst [vmem:[%s873_s1 + $0x30] sm:$0xff] %v526_v12  }
   0x6   :  { %v513_v5 = vld [vmem:[%s872_s0 + $0x20] sm:$0xff]   ;;  %512 = vst [vmem:[%s873_s1 + $0x80] sm:$0xff] %v511_v4   ;;  %v530_v14 = vld [vmem:[%s872_s0 + $0x30] sm:$0xff]   ;;  %529 = vst [vmem:[%s873_s1 + $0x90] sm:$0xff] %v528_v13  }
   0x7   :  { %514 = vst [vmem:[%s873_s1 + $0xe0] sm:$0xff] %v513_v5   ;;  %v515_v6 = vld [vmem:[%s872_s0 + $0xc0] sm:$0xff]   ;;  %531 = vst [vmem:[%s873_s1 + $0xf0] sm:$0xff] %v530_v14   ;;  %v532_v15 = vld [vmem:[%s872_s0 + $0xd0] sm:$0xff]  }
   0x8   :  { %v517_v7 = vld [vmem:[%s872_s0 + $0x60] sm:$0xff]   ;;  %516 = vst [vmem:[%s873_s1 + $0x40] sm:$0xff] %v515_v6   ;;  %v534_v16 = vld [vmem:[%s872_s0 + $0x70] sm:$0xff]   ;;  %533 = vst [vmem:[%s873_s1 + $0x50] sm:$0xff] %v532_v15  }
   0x9   :  { %v57_v8 = vld [vmem:[%s872_s0] sm:$0xff]   ;;  %518 = vst [vmem:[%s873_s1 + $0xa0] sm:$0xff] %v517_v7   ;;  %v536_v17 = vld [vmem:[%s872_s0 + $0x10] sm:$0xff]   ;;  %535 = vst [vmem:[%s873_s1 + $0xb0] sm:$0xff] %v534_v16  }
   0xa   :  { %519 = vst [vmem:[%s873_s1 + $0x100] sm:$0xff] %v57_v8   ;;  %537 = vst [vmem:[%s873_s1 + $0x110] sm:$0xff] %v536_v17   ;;  %v576_v19 = vld [vmem:[%s872_s0 + $0xa8] sm:$0xff]   ;;  %v592_v27 = vld [vmem:[%s872_s0 + $0x118] sm:$0xff]  }
   0xb   :  { %v578_v20 = vld [vmem:[%s872_s0 + $0x48] sm:$0xff]   ;;  %575 = vst [vmem:[%s873_s1 + $0x8] sm:$0xff] %v574_v18   ;;  %577 = vst [vmem:[%s873_s1 + $0x68] sm:$0xff] %v576_v19   ;;  %v594_v28 = vld [vmem:[%s872_s0 + $0xb8] sm:$0xff]  }
   0xc   :  { %579 = vst [vmem:[%s873_s1 + $0xc8] sm:$0xff] %v578_v20   ;;  %v580_v21 = vld [vmem:[%s872_s0 + $0xe8] sm:$0xff]   ;;  %v596_v29 = vld [vmem:[%s872_s0 + $0x58] sm:$0xff]   ;;  %593 = vst [vmem:[%s873_s1 + $0x18] sm:$0xff] %v592_v27  }
   0xd   :  { %v582_v22 = vld [vmem:[%s872_s0 + $0x88] sm:$0xff]   ;;  %581 = vst [vmem:[%s873_s1 + $0x28] sm:$0xff] %v580_v21   ;;  %595 = vst [vmem:[%s873_s1 + $0x78] sm:$0xff] %v594_v28   ;;  %v598_v30 = vld [vmem:[%s872_s0 + $0xf8] sm:$0xff]  }
   0xe   :  { %v584_v23 = vld [vmem:[%s872_s0 + $0x28] sm:$0xff]   ;;  %583 = vst [vmem:[%s873_s1 + $0x88] sm:$0xff] %v582_v22   ;;  %597 = vst [vmem:[%s873_s1 + $0xd8] sm:$0xff] %v596_v29   ;;  %v600_v31 = vld [vmem:[%s872_s0 + $0x98] sm:$0xff]  }
   0xf   :  { %585 = vst [vmem:[%s873_s1 + $0xe8] sm:$0xff] %v584_v23   ;;  %v586_v24 = vld [vmem:[%s872_s0 + $0xc8] sm:$0xff]   ;;  %v602_v32 = vld [vmem:[%s872_s0 + $0x38] sm:$0xff]   ;;  %599 = vst [vmem:[%s873_s1 + $0x38] sm:$0xff] %v598_v30  }
  0x10   :  { %v588_v25 = vld [vmem:[%s872_s0 + $0x68] sm:$0xff]   ;;  %587 = vst [vmem:[%s873_s1 + $0x48] sm:$0xff] %v586_v24   ;;  %601 = vst [vmem:[%s873_s1 + $0x98] sm:$0xff] %v600_v31   ;;  %v604_v33 = vld [vmem:[%s872_s0 + $0xd8] sm:$0xff]  }
  0x11   :  { %v590_v26 = vld [vmem:[%s872_s0 + $0x8] sm:$0xff]   ;;  %589 = vst [vmem:[%s873_s1 + $0xa8] sm:$0xff] %v588_v25   ;;  %603 = vst [vmem:[%s873_s1 + $0xf8] sm:$0xff] %v602_v32   ;;  %v606_v34 = vld [vmem:[%s872_s0 + $0x78] sm:$0xff]  }
  0x12   :  { %591 = vst [vmem:[%s873_s1 + $0x108] sm:$0xff] %v590_v26   ;;  %v608_v35 = vld [vmem:[%s872_s0 + $0x18] sm:$0xff]   ;;  %605 = vst [vmem:[%s873_s1 + $0x58] sm:$0xff] %v604_v33  }
  0x13   :  { %607 = vst [vmem:[%s873_s1 + $0xb8] sm:$0xff] %v606_v34   ;;  %609 = vst [vmem:[%s873_s1 + $0x118] sm:$0xff] %v608_v35  }

// kernel: forward.69
= control target key start
LH: loop header
LB: loop body
LE: loop exit
PB: predicated region body
PF: predicated region fallthrough
CT: control target
= control target key end

     0   :  { %vm22_vm0 = vcmask 523264   ;;  %v208_v0 = vmov 0.0   ;;  %vm209_vm1 = vmmov 0   ;;  %s274_s1 = inlined_call_operand.vmem [shape: bf16[128,64], index: 1, kind: input, shape index: {}]   ;;  %s275_s0 = inlined_call_operand.vmem [shape: bf16[8,128], index: 0, kind: input, shape index: {}]   ;;  %s276_s2 = inlined_call_operand.vmem [shape: f32[1,64], index: 2, kind: input, shape index: {}]   ;;  %s277_s3 = inlined_call_operand.vmem [shape: f32[1,64], index: 3, kind: input, shape index: {}]   ;;  %s278_s4 = inlined_call_operand.vmem [shape: f32[8,64], index: 4, kind: output, shape index: {}]  }
   0x1   :  { %178 = vmatprep.subr.bf16.mxu0 %v208_v0  ;;  %v200_v1 = vld [vmem:[%s274_s1] sm:$0xff]   ;;  %194 = vmatprep.mubr.msk.bf16.mxu0 %vm209_vm1, %v208_v0  ;;  %23 = vst.msk [vmem:[#allocation2] sm:$0xff] %vm22_vm0, %v208_v0  ;;  %v201_v2 = vld [vmem:[%s274_s1 + $0x8] sm:$0xff]   ;;  %v202_v3 = vld [vmem:[%s274_s1 + $0x10] sm:$0xff]  }
   0x2   :  { %179 = vmatpush3.bf16.msra.mxu0 %v200_v1  ;;  %v203_v4 = vld [vmem:[%s274_s1 + $0x18] sm:$0xff]   ;;  %v204_v5 = vld [vmem:[%s274_s1 + $0x20] sm:$0xff]   ;;  %v205_v6 = vld [vmem:[%s274_s1 + $0x28] sm:$0xff]  }
   0x3   :  { %180 = vmatprep.subr.bf16.mxu0 %v208_v0  ;;  %v206_v7 = vld [vmem:[%s274_s1 + $0x30] sm:$0xff]   ;;  %v207_v8 = vld [vmem:[%s274_s1 + $0x38] sm:$0xff]   ;;  %v25_v9 = vld [vmem:[%s275_s0] sm:$0xf] }
   0x4   :  { %v167_v16 = vld [vmem:[%s276_s2] ss:$0 sm:$0xff] }
   0x5   :  { %v168_v18 = vld [vmem:[%s277_s3] ss:$0 sm:$0xff] }
   0x6   :  { %181 = vmatpush3.bf16.msra.mxu0 %v201_v2 }
   0x7   :  { %182 = vmatprep.subr.bf16.mxu0 %v208_v0 }
   0x8   :  { %v24_v10 = vld [vmem:[#allocation2] sm:$0xff] }
   0xa   :  { %183 = vmatpush3.bf16.msra.mxu0 %v202_v3 }
   0xb   :  { %184 = vmatprep.subr.bf16.mxu0 %v208_v0 }
   0xe   :  { %185 = vmatpush3.bf16.msra.mxu0 %v203_v4 }
   0xf   :  { %186 = vmatprep.subr.bf16.mxu0 %v208_v0 }
  0x12   :  { %187 = vmatpush3.bf16.msra.mxu0 %v204_v5 }
  0x13   :  { %188 = vmatprep.subr.bf16.mxu0 %v208_v0 }
  0x16   :  { %189 = vmatpush3.bf16.msra.mxu0 %v205_v6 }
  0x17   :  { %190 = vmatprep.subr.bf16.mxu0 %v208_v0 }
  0x1a   :  { %191 = vmatpush3.bf16.msra.mxu0 %v206_v7 }
  0x1b   :  { %192 = vmatprep.subr.bf16.mxu0 %v208_v0 }
  0x1e   :  { %193 = vmatpush3.bf16.msra.mxu0 %v207_v8 }
  0x21   :  { %195 = vmatmul.mubr.bf16.vlgmr.msra.gmra.mrb[0].mxu0 %v25_v9 }
  0xf4   :  { %v124_v11 = vpop.f32.mrb[0].mxu0 }
  0xf5   :  { %v130_v12 = vadd.f32 %v124_v11, %v24_v10  ;;  %v196_v13 = vpop.f32.mrb[1].mxu0 }
  0xf6   :  { %v127_v14 = vpop.f32.mrb[2].mxu0 }
  0xf7   :  { %132 = vst.msk [vmem:[#allocation2] sm:$0xff] %vm22_vm0, %v130_v12  ;;  %v197_v15 = vpop.f32.mrb[3].mxu0 }
  0xfe   :  { %v136_v17 = vld [vmem:[#allocation2] sm:$0xff] }
  0xff   :  { %v144_v19 = vmul.f32 %v167_v16, %v136_v17 }
 0x101   :  { %v152_v20 = vadd.f32 %v168_v18, %v144_v19 }
 0x103   :  { %v153_v21 = vmax.f32 %v152_v20, 0.0 }
 0x105   :  { %154 = vst.msk [vmem:[%s278_s4] sm:$0xff] %vm22_vm0, %v153_v21 }

// kernel: forward.70
= control target key start
LH: loop header
LB: loop body
LE: loop exit
PB: predicated region body
PF: predicated region fallthrough
CT: control target
= control target key end

     0   :  { %v158_v0 = vmov 0.0   ;;  %vm159_vm0 = vmmov 0   ;;  %vm57_vm1 = vcmask 523264   ;;  %s209_s1 = inlined_call_operand.vmem [shape: bf16[64,128], index: 1, kind: input, shape index: {}]   ;;  %s210_s0 = inlined_call_operand.vmem [shape: bf16[8,64], index: 0, kind: input, shape index: {}]   ;;  %s211_s2 = inlined_call_operand.vmem [shape: f32[1,128], index: 2, kind: input, shape index: {}]   ;;  %s212_s3 = inlined_call_operand.vmem [shape: f32[1,128], index: 3, kind: input, shape index: {}]   ;;  %s213_s4 = inlined_call_operand.vmem [shape: f32[8,128], index: 4, kind: output, shape index: {}]  }
   0x1   :  { %140 = vmatprep.subr.bf16.mxu0 %v158_v0  ;;  %v154_v1 = vld [vmem:[%s209_s1] sm:$0xff]   ;;  %148 = vmatprep.mubr.msk.bf16.mxu0 %vm159_vm0, %v158_v0  ;;  %v155_v2 = vld [vmem:[%s209_s1 + $0x8] sm:$0xff]   ;;  %v156_v3 = vld [vmem:[%s209_s1 + $0x10] sm:$0xff]  }
   0x2   :  { %141 = vmatpush3.bf16.msra.mxu0 %v154_v1  ;;  %v157_v4 = vld [vmem:[%s209_s1 + $0x18] sm:$0xff]   ;;  %v24_v5 = vld [vmem:[%s210_s0] sm:$0xf] }
   0x3   :  { %142 = vmatprep.subr.bf16.mxu0 %v158_v0  ;;  %v133_v6 = vld [vmem:[%s211_s2] ss:$0 sm:$0xff] }
   0x4   :  { %v134_v8 = vld [vmem:[%s212_s3] ss:$0 sm:$0xff] }
   0x6   :  { %143 = vmatpush3.bf16.msra.mxu0 %v155_v2 }
   0x7   :  { %144 = vmatprep.subr.bf16.mxu0 %v158_v0 }
   0xa   :  { %145 = vmatpush3.bf16.msra.mxu0 %v156_v3 }
   0xb   :  { %146 = vmatprep.subr.bf16.mxu0 %v158_v0 }
   0xe   :  { %147 = vmatpush3.bf16.msra.mxu0 %v157_v4 }
  0x11   :  { %149 = vmatmul.mubr.msk.bf16.vlgmr.msra.gmra.mrb[0].mxu0 %vm57_vm1, %v24_v5 }
  0xe4   :  { %v95_v7 = vpop.f32.mrb[0].mxu0 }
  0xe5   :  { %v114_v9 = vmul.f32 %v133_v6, %v95_v7  ;;  %v150_v10 = vpop.f32.mrb[1].mxu0 }
  0xe6   :  { %v98_v11 = vpop.f32.mrb[2].mxu0 }
  0xe7   :  { %v122_v12 = vadd.f32 %v134_v8, %v114_v9  ;;  %v151_v13 = vpop.f32.mrb[3].mxu0 }
  0xe9   :  { %123 = vst [vmem:[%s213_s4] sm:$0xff] %v122_v12 }

// kernel: forward.73
= control target key start
LH: loop header
LB: loop body
LE: loop exit
PB: predicated region body
PF: predicated region fallthrough
CT: control target
= control target key end

     0   :  { %10 = vsyncpa [#allocation3], 0  ;;  %s1180_s0 = inlined_call_operand.vmem [shape: f32[2,4,128], index: 0, kind: input, shape index: {}]   ;;  %s1181_s1 = inlined_call_operand.vmem [shape: f32[128,1], index: 1, kind: input, shape index: {}]   ;;  %s1182_s2 = inlined_call_operand.vmem [shape: f32[5,1], index: 2, kind: input, shape index: {}]   ;;  %s1183_s3 = inlined_call_operand.vmem [shape: f32[1,128,2], index: 3, kind: input, shape index: {}]   ;;  %s1184_s4 = inlined_call_operand.vmem [shape: f32[1,2], index: 4, kind: input, shape index: {}]   ;;  %s1185_s5 = inlined_call_operand.hbm [shape: f32[2,1,2], index: 5, kind: output, shape index: {}]  }
   0x1   :  { %12 = vsyncpa [#allocation3 + $0x1], 0  ;;  %s951_s18 = smov 0   ;;  %s953_s19 = smov 0  }
   0x2   :  { %s955_s20 = smov 0   ;;  %s957_s21 = smov 0  }
   0x3 LB: > { %s972_s22 = sadd.s32 4294967295, %s915_s21   ;;  %s632_s23 = sadd.s32 4294967294, %s915_s21   ;;  %s915_s21 = sphi %s957_s21, %s1191_s21   ;;  %s911_s20 = sphi %s955_s20, %s1190_s20   ;;  %s907_s19 = sphi %s953_s19, %s1189_s19   ;;  %s903_s18 = sphi %s951_s18, %s1188_s18  }
   0x4   : > { %s976_s24 = sadd.s32 1, %s915_s21   ;;  %s135_s25 = sadd.s32 1, %s911_s20 }
   0x5   : > { %s132_s26 = ssub.s32 %s915_s21, %s976_s24  ;;  %p145_p0 = scmp.ne.s32.totalorder %s911_s20, %s907_s19 }
   0x6   : > { %p133_p1 = scmp.eq.s32.totalorder %s132_s26, 0  ;;  %p146_p2 = scmp.eq.s32.totalorder %s972_s22, 1 }
   0x7   : > { %p151_p3 = scmp.ne.s32.totalorder %s907_s19, %s903_s18  ;;  %p152_p4 = scmp.eq.s32.totalorder %s632_s23, 1 }
   0x8   : > { %s987_s27 = scalar_select %p133_p1, %s911_s20, %s135_s25  }
   0x9   : > { %p989_p5 = por %p146_p2, %p145_p0  ;;  %p993_p6 = por %p152_p4, %p151_p3 }
   0xa   : > { %p635_p7 = scmp.ge.s32.totalorder %s915_s21, 1  ;;  %p189_p8 = scmp.lt.s32.totalorder %s915_s21, 3 }
   0xc   : > { %p190_p9 = pnand %p635_p7, %p189_p8 }
   0xd   : > { %v239_v0 = vld [vmem:[%s1181_s1] sm:$0xff] (!%p190_p9)  ;;  %v240_v1 = vld [vmem:[%s1181_s1 + $0x8] sm:$0xff] (!%p190_p9)  ;;  %v241_v2 = vld [vmem:[%s1181_s1 + $0x10] sm:$0xff] (!%p190_p9)  ;;  %v917_v3 = vmov (!%p190_p9), 0.0|0.0   ;;  %vm918_vm0 = vmmov (!%p190_p9), 0   ;;  %v919_v6 = vmov (!%p190_p9), 0.0  }
   0xe   : > { %193 = sbr.rel (%p190_p9) target bundleno = 911 (0x38f), region = 40  ;;  %753 = vmatprep.subr.bf16.mxu0 (!%p190_p9), %v917_v3  ;;  %v754_v4 = vpack.c.bf16 (!%p190_p9), %v240_v1, %v239_v0  ;;  %v242_v5 = vld [vmem:[%s1181_s1 + $0x18] sm:$0xff] (!%p190_p9)  ;;  %710 = vmatprep.mubr.msk.f32.mxu0 (!%p190_p9), %vm918_vm0, %v919_v6  ;;  %p215_p10 = scmp.lt.s32.totalorder (!%p190_p9), %s972_s22, 1  ;;  %v243_v8 = vld [vmem:[%s1181_s1 + $0x20] sm:$0xff] (!%p190_p9)  ;;  %v244_v9 = vld [vmem:[%s1181_s1 + $0x28] sm:$0xff] (!%p190_p9)  ;;  %vm221_vm1 = vcmask (!%p190_p9), 1043456  }
   0xf   : > { %713 = vmatprep.subr.mxu1 (!%p190_p9), %v919_v6  ;;  %715 = vmatprep.mubr.msk.f32.mxu1 (!%p190_p9), %vm918_vm0, %v919_v6  ;;  %v757_v7 = vpack.c.bf16 (!%p190_p9), %v242_v5, %v241_v2  ;;  %v760_v10 = vpack.c.bf16 (!%p190_p9), %v244_v9, %v243_v8  ;;  %v245_v12 = vld [vmem:[%s1181_s1 + $0x30] sm:$0xff] (!%p190_p9)  ;;  %v246_v13 = vld [vmem:[%s1181_s1 + $0x38] sm:$0xff] (!%p190_p9)  ;;  %v247_v18 = vld [vmem:[%s1181_s1 + $0x40] sm:$0xff] (!%p190_p9)  ;;  %vm334_vm4 = vcmask (!%p190_p9), 4096   ;;  %vm326_vm5 = vcmask (!%p190_p9), 3072   ;;  %s213_s12 = sand.u32 (!%p190_p9), 1, %s907_s19  }
  0x10   : > { %755 = vmatpush3.bf16.msra.mxu0 (!%p190_p9), %v754_v4  ;;  %v763_v16 = vpack.c.bf16 (!%p190_p9), %v246_v13, %v245_v12  ;;  %v248_v19 = vld [vmem:[%s1181_s1 + $0x48] sm:$0xff] (!%p190_p9)  ;;  %v249_v23 = vld [vmem:[%s1181_s1 + $0x50] sm:$0xff] (!%p190_p9)  ;;  %v250_v24 = vld [vmem:[%s1181_s1 + $0x58] sm:$0xff] (!%p190_p9)  ;;  %vm398_vm6 = vcmask (!%p190_p9), 31744   ;;  %s639_s15 = sshll.u32 (!%p190_p9), %s972_s22, 4  ;;  %s214_s16 = scalar_lea.vmem (!%p190_p9), [#allocation2], %s213_s12 }
  0x11   : > { %756 = vmatprep.subr.bf16.mxu0 (!%p190_p9), %v917_v3  ;;  %v766_v21 = vpack.c.bf16 (!%p190_p9), %v248_v19, %v247_v18  ;;  %v769_v26 = vpack.c.bf16 (!%p190_p9), %v250_v24, %v249_v23  ;;  %v251_v28 = vld [vmem:[%s1181_s1 + $0x60] sm:$0xff] (!%p190_p9)  ;;  %v252_v29 = vld [vmem:[%s1181_s1 + $0x68] sm:$0xff] (!%p190_p9)  ;;  %v253_v33 = vld [vmem:[%s1181_s1 + $0x70] sm:$0xff] (!%p190_p9)  ;;  %s577_s17 = sshll.u32 (!%p190_p9), %s214_s16, 4  ;;  %vm562_vm7 = vcmask (!%p190_p9), 8192   ;;  %s1138_s26 = scalar_lea.hbm (!%p190_p9), %s1185_s5, %s639_s15  ;;  %s1140_s17 = int_to_ptr.vmem [resolvable:$true] %s577_s17 }
  0x12   : > { %v772_v31 = vpack.c.bf16 (!%p190_p9), %v252_v29, %v251_v28  ;;  %v254_v34 = vld [vmem:[%s1181_s1 + $0x78] sm:$0xff] (!%p190_p9)  ;;  %v325_v43 = vld [vmem:[%s1182_s2] sm:$0x1f] (!%p190_p9)  ;;  %v476_v23 = vld [vmem:[%s1183_s3 + $0x8] sm:$0xff] (!%p190_p9)  ;;  %s853_s6 = scalar_lea.vmem (!%p190_p9), %s1140_s17, 16 }
  0x13   : > { %v775_v35 = vpack.c.bf16 (!%p190_p9), %v254_v34, %v253_v33  ;;  %v335_v44 = vsel (!%p190_p9), %vm334_vm4, %v325_v43, -inf  ;;  %v479_v29 = vld [vmem:[%s1183_s3 + $0x20] sm:$0xff] (!%p190_p9)  ;;  %p854_p11 = scmp.ne.s32.totalorder (!%p190_p9), %s1140_s17, %s853_s6 }
  0x14   : > { %758 = vmatpush3.bf16.msra.mxu0 (!%p190_p9), %v757_v7  ;;  %v336_v45 = vrot.slane (!%p190_p9), %v335_v44, 4  ;;  %v483_v34 = vld [vmem:[%s1183_s3 + $0x40] sm:$0xff] (!%p190_p9) }
  0x15   : > { %s216_s13 = scalar_select %p215_p10, %s972_s22, 1  ;;  %759 = vmatprep.subr.bf16.mxu0 %v917_v3 }
  0x16   : > { %v337_v46 = vmax.f32 %v335_v44, %v336_v45  ;;  %v490_v44 = vld [vmem:[%s1183_s3 + $0x78] sm:$0xff]  ;;  %p855_p12 = pnand %p854_p11, %p989_p5  ;;  %s920_s22 = smov [#allocation2]  }
  0x17   : > { %s636_s23 = sshll.u32 %s216_s13, 2  ;;  %s857_s7 = sshll.u32 %s920_s22, 4  ;;  %s858_s7 = int_to_ptr.vmem [resolvable:$false] %s857_s7 }
  0x18   : > { %s218_s30 = scalar_lea.vmem %s1180_s0, %s636_s23  ;;  %761 = vmatpush3.bf16.msra.mxu0 %v760_v10  ;;  %v338_v47 = vrot.slane %v337_v46, 2  ;;  %p856_p13 = pneg %p855_p12 }
  0x19   : > { %v219_v11 = vld [vmem:[%s218_s30] sm:$0xf]  ;;  %762 = vmatprep.subr.bf16.mxu0 %v917_v3  ;;  %s565_s30 = scalar_lea.sflag [#allocation3], %s213_s12  ;;  %s859_s8 = scalar_lea.vmem %s858_s7, 32 }
  0x1a   : > { %v220_v14 = vmul.f32 %v219_v11, %v219_v11  ;;  %714 = vmatpush3.msk.msra.mxu1 %vm221_vm1, %v219_v11  ;;  %v339_v52 = vmax.f32 %v337_v46, %v338_v47  ;;  %p860_p0 = scmp.lt.s32.totalorder %s1140_s17, %s858_s7  ;;  %p861_p1 = scmp.lt.s32.totalorder %s859_s8, %s853_s6 }
  0x1b   : > { %777 = vmatprep.subr.bf16.mxu1 %v917_v3 }
  0x1c   : > { %v222_v15 = vsel %vm221_vm1, %v220_v14, 0.0  ;;  %764 = vmatpush3.bf16.msra.mxu0 %v763_v16  ;;  %v340_v55 = vrot.slane %v339_v52, 1  ;;  %p862_p2 = por %p861_p1, %p860_p0 }
  0x1d   : > { %v223_v17 = vrot.slane %v222_v15, 4  ;;  %765 = vmatprep.subr.bf16.mxu0 %v917_v3 }
  0x1e   : > { %v341_v58 = vmax.f32 %v339_v52, %v340_v55  ;;  %p863_p3 = pnand %p862_p2, %p856_p13 }
  0x1f   : > { %v224_v20 = vadd.f32 %v223_v17, %v222_v15 }
  0x20   : > { %767 = vmatpush3.bf16.msra.mxu0 %v766_v21 }
  0x21   : > { %v225_v22 = vrot.slane %v224_v20, 2  ;;  %768 = vmatprep.subr.bf16.mxu0 %v917_v3 }
  0x23   : > { %v226_v25 = vadd.f32 %v225_v22, %v224_v20  ;;  %v475_v22 = vld [vmem:[%s1183_s3] sm:$0xff] }
  0x24   : > { %770 = vmatpush3.bf16.msra.mxu0 %v769_v26  ;;  %v778_v24 = vpack.c.bf16 %v476_v23, %v475_v22  ;;  %v478_v26 = vld [vmem:[%s1183_s3 + $0x18] sm:$0xff] }
  0x25   : > { %v227_v27 = vrot.slane %v226_v25, 1  ;;  %771 = vmatprep.subr.bf16.mxu0 %v917_v3 }
  0x27   : > { %v228_v30 = vadd.f32 %v227_v27, %v226_v25  ;;  %v477_v25 = vld [vmem:[%s1183_s3 + $0x10] sm:$0xff] }
  0x28   : > { %773 = vmatpush3.bf16.msra.mxu0 %v772_v31  ;;  %v781_v28 = vpack.c.bf16 %v478_v26, %v477_v25 }
  0x29   : > { %v229_v32 = vmax.f32 %v228_v30, 1e-24  ;;  %774 = vmatprep.subr.bf16.mxu0 %v917_v3  ;;  %v480_v30 = vld [vmem:[%s1183_s3 + $0x28] sm:$0xff] }
  0x2a   : > { %v784_v31 = vpack.c.bf16 %v480_v30, %v479_v29 }
  0x2b   : > { %843 = vrsqrt.f32 %v229_v32  ;;  %vm232_vm2 = vcmp.eq.f32.partialorder %v229_v32, inf  ;;  %v235_v37 = vand.u32 2147483648, %v229_v32  ;;  %vm234_vm3 = vcmp.eq.f32.partialorder %v229_v32, 0.0 }
  0x2c   : > { %776 = vmatpush3.bf16.msra.mxu0 %v775_v35  ;;  %v484_v35 = vld [vmem:[%s1183_s3 + $0x48] sm:$0xff] }
  0x35   : > { %v844_v36 = vpop.eup %843 }
  0x36   : > { %v231_v38 = vmul.f32 %v844_v36, %v229_v32  ;;  %v790_v36 = vpack.c.bf16 %v484_v35, %v483_v34 }
  0x38   : > { %v233_v39 = vsel %vm232_vm2, %v229_v32, %v231_v38  ;;  %v481_v32 = vld [vmem:[%s1183_s3 + $0x30] sm:$0xff]  ;;  %v486_v38 = vld [vmem:[%s1183_s3 + $0x58] sm:$0xff] }
  0x39   : > { %v236_v40 = vsel %vm234_vm3, %v235_v37, %v233_v39  ;;  %v485_v37 = vld [vmem:[%s1183_s3 + $0x50] sm:$0xff] }
  0x3a   : > { %845 = vrcp.f32 %v236_v40  ;;  %v793_v39 = vpack.c.bf16 %v486_v38, %v485_v37  ;;  %v487_v40 = vld [vmem:[%s1183_s3 + $0x60] sm:$0xff] }
  0x44   : > { %v846_v41 = vpop.eup %845 }
  0x45   : > { %v238_v42 = vmul.f32 %v846_v41, %v219_v11  ;;  %v488_v41 = vld [vmem:[%s1183_s3 + $0x68] sm:$0xff] }
  0x47   : > { %711 = vmatmul.mubr.f32.vlgmr.msra.gmra.mrb[0].mxu0 %v238_v42  ;;  %v796_v42 = vpack.c.bf16 %v488_v41, %v487_v40 }
 0x11a   : > { %v321_v48 = vpop.f32.mrb[0].mxu0 }
 0x11b   : > { %v327_v49 = vsel %vm326_vm5, %v321_v48, -inf  ;;  %v712_v50 = vpop.f32.mrb[1].mxu0 }
 0x11c   : > { %v328_v51 = vrot.slane %v327_v49, 4 }
 0x11e   : > { %v329_v53 = vmax.f32 %v327_v49, %v328_v51 }
 0x120   : > { %v330_v54 = vrot.slane %v329_v53, 2 }
 0x122   : > { %v331_v56 = vmax.f32 %v329_v53, %v330_v54 }
 0x124   : > { %v332_v57 = vrot.slane %v331_v56, 1 }
 0x126   : > { %v333_v59 = vmax.f32 %v331_v56, %v332_v57 }
 0x128   : > { %v342_v60 = vmax.f32 %v333_v59, %v341_v58 }
 0x12a   : > { %v343_v61 = vsub.f32 %v321_v48, %v342_v60  ;;  %v346_v62 = vsub.f32 %v325_v43, %v342_v60  ;;  %v489_v43 = vld [vmem:[%s1183_s3 + $0x70] sm:$0xff]  ;;  %v491_v48 = vld [vmem:[%s1184_s4] sm:$0x1] }
 0x12b   : > { %v799_v45 = vpack.c.bf16 %v490_v44, %v489_v43 }
 0x12c   : > { %v344_v63 = vmul.f32 1.442695, %v343_v61  ;;  %v347_v0 = vmul.f32 1.442695, %v346_v62 }
 0x12e   : > { %847 = vpow2.f32 %v344_v63 }
 0x12f   : > { %849 = vpow2.f32 %v347_v0 }
 0x138   : > { %v848_v1 = vpop.eup %847 }
 0x139   : > { %v850_v2 = vpop.eup %849  ;;  %v349_v4 = vsel %vm326_vm5, %v848_v1, 0.0 }
 0x13a   : > { %v350_v5 = vrot.slane %v349_v4, 4  ;;  %v356_v7 = vsel %vm334_vm4, %v850_v2, 0.0 }
 0x13b   : > { %v357_v8 = vrot.slane %v356_v7, 4 }
 0x13c   : > { %v351_v9 = vadd.f32 %v350_v5, %v349_v4 }
 0x13d   : > { %v358_v10 = vadd.f32 %v357_v8, %v356_v7 }
 0x13e   : > { %v352_v11 = vrot.slane %v351_v9, 2 }
 0x13f   : > { %v359_v12 = vrot.slane %v358_v10, 2 }
 0x140   : > { %v353_v13 = vadd.f32 %v352_v11, %v351_v9 }
 0x141   : > { %v360_v14 = vadd.f32 %v359_v12, %v358_v10 }
 0x142   : > { %v354_v15 = vrot.slane %v353_v13, 1 }
 0x143   : > { %v361_v16 = vrot.slane %v360_v14, 1 }
 0x144   : > { %v355_v17 = vadd.f32 %v354_v15, %v353_v13 }
 0x145   : > { %v362_v18 = vadd.f32 %v361_v16, %v360_v14 }
 0x147   : > { %v363_v19 = vadd.f32 %v362_v18, %v355_v17 }
 0x149   : > { %851 = vrcp.f32 %v363_v19 }
 0x153   : > { %v852_v20 = vpop.eup %851 }
 0x154   : > { %v365_v21 = vmul.f32 %v852_v20, %v848_v1 }
 0x156   : > { %366 = vxpose.xlu0.b32.start.end [1/1] (short) (narrow) %v365_v21, 8 }
 0x1d6   : > { %v382_v27 = vpop.trf.xlu0 }
 0x1d7   : > { %716 = vmatmul.mubr.msk.f32.vlgmr.msra.gmra.mrb[0].mxu1 %vm398_vm6, %v382_v27 }
 0x1d8   : > { %779 = vmatpush3.bf16.msra.mxu1 %v778_v24  ;;  %750 = vmatprep.mubr.msk.f32.mxu1 %vm918_vm0, %v919_v6  ;;  %v482_v6 = vld [vmem:[%s1183_s3 + $0x38] sm:$0xff] }
 0x1d9   : > { %780 = vmatprep.subr.bf16.mxu1 %v917_v3  ;;  %v787_v33 = vpack.c.bf16 %v482_v6, %v481_v32 }
 0x1dc   : > { %782 = vmatpush3.bf16.msra.mxu1 %v781_v28 }
 0x1dd   : > { %783 = vmatprep.subr.bf16.mxu1 %v917_v3 }
 0x1e0   : > { %785 = vmatpush3.bf16.msra.mxu1 %v784_v31 }
 0x1e1   : > { %786 = vmatprep.subr.bf16.mxu1 %v917_v3 }
 0x1e4   : > { %788 = vmatpush3.bf16.msra.mxu1 %v787_v33 }
 0x1e5   : > { %789 = vmatprep.subr.bf16.mxu1 %v917_v3 }
 0x1e8   : > { %791 = vmatpush3.bf16.msra.mxu1 %v790_v36 }
 0x1e9   : > { %792 = vmatprep.subr.bf16.mxu1 %v917_v3 }
 0x1ec   : > { %794 = vmatpush3.bf16.msra.mxu1 %v793_v39 }
 0x1ed   : > { %795 = vmatprep.subr.bf16.mxu1 %v917_v3 }
 0x1f0   : > { %797 = vmatpush3.bf16.msra.mxu1 %v796_v42 }
 0x1f1   : > { %798 = vmatprep.subr.bf16.mxu1 %v917_v3 }
 0x1f4   : > { %800 = vmatpush3.bf16.msra.mxu1 %v799_v45 }
 0x2aa   : > { %v471_v46 = vpop.f32.mrb[0].mxu1 }
 0x2ab   : > { %v717_v47 = vpop.f32.mrb[1].mxu1  ;;  %751 = vmatmul.mubr.f32.vlgmr.msra.gmra.mrb[2].mxu1 %v471_v46 }
 0x37e   : > { %v558_v49 = vpop.f32.mrb[2].mxu1 }
 0x37f   : > { %v559_v50 = vadd.f32 %v558_v49, %v491_v48  ;;  %v752_v51 = vpop.f32.mrb[3].mxu1 }
 0x381   : > { %563 = vst.msk [vmem:[%s214_s16] sm:$0x1] %vm562_vm7, %v559_v50 }
 0x382   : > { %866 = shalt.err (!%p863_p3)
}
 0x383   : > { %s867_s9 = scalar_lea.hbm %s1138_s26, 16  ;;  %s871_s12 = scalar_lea.hbm %s1185_s5, 32 }
 0x384   : > { %p868_p4 = scmp.ne.s32.totalorder %s1138_s26, %s867_s9  ;;  %p872_p9 = scmp.lt.u32.totalorder %s1138_s26, %s1185_s5 }
 0x385   : > { %p873_p10 = scmp.lt.u32.totalorder %s871_s12, %s867_s9  ;;  %p875_p12 = scmp.lt.u32.totalorder %s867_s9, %s1138_s26 }
 0x386   : > { %p869_p7 = pnand %p868_p4, %p989_p5 }
 0x387   : > { %p874_p11 = por %p873_p10, %p872_p9 }
 0x388   : > { %p870_p8 = pneg %p869_p7 }
 0x389   : > { %p876_p13 = por %p875_p12, %p874_p11 }
 0x38b   : > { %p877_p0 = pnand %p876_p13, %p870_p8 }
 0x38d   : > { %880 = shalt.err (!%p877_p0)
}
 0x38e   : > { %801 = dma.vmem_to_hbm [thread:$0]  (%p989_p5), %s1140_s17, 16, %s1138_s26, %s565_s30  }
 0x38f PF: > { %p807_p1 = scmp.ge.s32.totalorder %s915_s21, 2  ;;  %s589_s15 = sand.u32 1, %s903_s18  }
 0x390   : > { %s590_s16 = scalar_lea.sflag [#allocation3], %s589_s15 }
 0x391   : > { %p804_p2 = pnand %p807_p1, %p993_p6 }
 0x393   : > { %898 = dma.done.wait (!%p804_p2), %s590_s16, 16  }
 0x394   : > { %900 = vsyncadd (!%p804_p2), %s590_s16, 4294967280  ;;  %p15_p3 = scmp.ge.s32.totalorder %s976_s24, 4   ;;  %s1188_s18 = smov %s907_s19 }
 0x395   : > { %s1189_s19 = smov %s911_s20  ;;  %s1190_s20 = smov %s987_s27 }
 0x396   : > { %s1191_s21 = smov %s976_s24  ;;  %17 = sbr.rel (!%p15_p3) target bundleno = 3 (0x3), region = 75 }
 0x39d   :  { %594 = vsyncpa [#allocation3], 1 }
 0x39e   :  { %596 = vsyncpa [#allocation3 + $0x1], 1 }

</bundles_post_ra>
